<compile_context>
chip_gen: v7x
topology: tpu7x:2x2x1
jax: 0.10.0
libtpu: 0.0.40
codegen_flags: <defaults>
</compile_context>

<pallas_src>
import math

import jax
import jax.numpy as jnp
from jax.experimental import pallas as pl
from jax.experimental.pallas import tpu as pltpu


_PACK = 8  # points packed per packed-row (8*d_out lanes per output row)


# ---------------------------------------------------------------------------
# Frequency / constant-table construction (trace time, pure Python)
# ---------------------------------------------------------------------------

def _linspace(a, b, n):
    if n == 1:
        return [float(a)]
    step = (b - a) / (n - 1)
    return [float(a + i * step) for i in range(n)]


def make_freqs(max_logscale, N_freqs, logscale=True, multi_pi=False):
    if logscale:
        freqs = [2.0 ** e for e in _linspace(0.0, float(max_logscale), N_freqs)]
    else:
        freqs = _linspace(1.0, 2.0 ** float(max_logscale), N_freqs)
    if multi_pi:
        freqs = [f * math.pi for f in freqs]
    return freqs


def _build_tables(freqs, n_in, pack):
    """Block-diagonal spread/scale matrix M (pack*C, pack*d_out) plus
    per-column phase (pi/2 for cos columns) and passthrough-mask rows (1, L).
    Column order inside each point's d_out block matches PyTorch."""
    d_out = n_in * (1 + 2 * len(freqs))
    K, L = pack * n_in, pack * d_out
    m = [[0.0] * L for _ in range(K)]
    phase = [0.0] * L
    is_pass = [0.0] * L
    half_pi = math.pi / 2.0
    for p in range(pack):
        kb, ob = p * n_in, p * d_out
        for c in range(n_in):                       # raw x passthrough cols
            m[kb + c][ob + c] = 1.0
            is_pass[ob + c] = 1.0
        for j, f in enumerate(freqs):
            sbase = ob + n_in + 2 * n_in * j        # sin(f * x_c)
            cbase = sbase + n_in                    # cos(f * x_c) = sin(. + pi/2)
            for c in range(n_in):
                m[kb + c][sbase + c] = float(f)
                m[kb + c][cbase + c] = float(f)
                phase[cbase + c] = half_pi
    return (jnp.asarray(m, jnp.float32),
            jnp.asarray([phase], jnp.float32),
            jnp.asarray([is_pass], jnp.float32))


# ---------------------------------------------------------------------------
# Kernel
# ---------------------------------------------------------------------------

def _posemb_kernel(x_ref, m_ref, phase_ref, pass_ref, o_ref):
    # x_ref:     (tile_rows, PACK*C)       packed input rows
    # m_ref:     (PACK*C, PACK*d_out)      block-diagonal spread/scale (resident)
    # phase_ref: (1, PACK*d_out)           0 / pi/2 per column (resident)
    # pass_ref:  (1, PACK*d_out)           1.0 on raw-x passthrough columns
    # o_ref:     (tile_rows, PACK*d_out)
    x = x_ref[...].astype(jnp.float32)
    # scaled[:, p*d_out + k] = freq_k * x[:, p*C + chan_k]  (one nonzero per col)
    scaled = jnp.dot(x, m_ref[...], preferred_element_type=jnp.float32)
    # Single full-width trig pass: sin columns use phase 0, cos columns pi/2.
    trig = jnp.sin(scaled + phase_ref[...])
    # Passthrough columns take `scaled` (== x) exactly -> inf/NaN-safe.
    out = jnp.where(pass_ref[...] > 0.5, scaled, trig)
    o_ref[...] = out.astype(o_ref.dtype)


# ---------------------------------------------------------------------------
# Wrapper
# ---------------------------------------------------------------------------

def _round_up(a, m):
    return ((a + m - 1) // m) * m


def _lane_pad(n):
    return _round_up(n, 128)


def _vmem_capacity_bytes():
    """Per-core VMEM capacity; conservative 64 MiB (v7x) fallback."""
    try:
        info = pltpu.get_tpu_info()
        for name in ("vmem_capacity_bytes", "vmem_size_bytes", "vmem_bytes"):
            v = getattr(info, name, None)
            if v:
                return int(v)
    except Exception:
        pass
    return 64 << 20


def pos_embedding(x, *, max_logscale, N_freqs, logscale=True, multi_pi=False,
                  tile_points=None, out_dtype=None):
    """x: (..., C) -> (..., C + 2*C*N_freqs), same column order as PyTorch."""
    orig_shape = x.shape
    n_in = orig_shape[-1]
    d_out = n_in * (1 + 2 * N_freqs)
    out_dtype = x.dtype if out_dtype is None else out_dtype

    x2 = x.reshape(-1, n_in)
    B = x2.shape[0]

    freqs = make_freqs(max_logscale, N_freqs, logscale, multi_pi)
    mmat, phase, pmask = _build_tables(freqs, n_in, _PACK)

    # Pack PACK points per row: row-major HBM makes these reshapes free.
    Bp = _round_up(B, _PACK)
    if Bp != B:
        x2 = jnp.pad(x2, ((0, Bp - B), (0, 0)))
    rows = Bp // _PACK
    K = _PACK * n_in            # packed input lanes per row
    L = _PACK * d_out           # packed output lanes per row (lane-dense)
    xr = x2.reshape(rows, K)

    # --- tiling & generation-aware VMEM budget -----------------------------
    in_row_b = _lane_pad(K) * 4
    out_row_b = _lane_pad(L) * 4
    # 2x double-buffered in/out blocks + ~3 out-sized f32 temps + 1 in-sized temp
    per_row = 3 * in_row_b + 5 * out_row_b

    vmem_cap = _vmem_capacity_bytes()
    rows_budget = max(8, ((int(0.55 * vmem_cap) // per_row) // 8) * 8)

    tp = 16384 if tile_points is None else int(tile_points)   # points per step
    tile_rows = max(8, tp // _PACK)
    tile_rows = min(tile_rows, rows_budget)
    # >= 2 grid steps when possible so v7x's two TensorCores both get work.
    half = max(8, _round_up(pl.cdiv(rows, 2), 8))
    tile_rows = min(tile_rows, half)
    tile_rows = min(tile_rows, rows)
    if tile_rows < rows:
        tile_rows = max(8, (tile_rows // 8) * 8)   # sublane (8) alignment
    grid = (pl.cdiv(rows, tile_rows),)

    table_bytes = 2 * ((K + 2) * _lane_pad(L) * 4)
    vmem_limit = tile_rows * per_row + table_bytes + (2 << 20)
    vmem_limit = int(min(max(vmem_limit, 16 << 20), int(0.85 * vmem_cap)))

    out = pl.pallas_call(
        _posemb_kernel,
        out_shape=jax.ShapeDtypeStruct((rows, L), out_dtype),
        grid_spec=pltpu.PrefetchScalarGridSpec(
            num_scalar_prefetch=0,
            grid=grid,
            in_specs=[
                pl.BlockSpec((tile_rows, K), lambda i: (i, 0)),
                pl.BlockSpec((K, L), lambda i: (0, 0)),   # resident table
                pl.BlockSpec((1, L), lambda i: (0, 0)),   # resident phase row
                pl.BlockSpec((1, L), lambda i: (0, 0)),   # resident pass mask
            ],
            out_specs=pl.BlockSpec((tile_rows, L), lambda i: (i, 0)),
        ),
        compiler_params=pltpu.CompilerParams(
            dimension_semantics=("parallel",),
            vmem_limit_bytes=vmem_limit,
        ),
    )(xr, mmat, phase, pmask)

    out = out.reshape(Bp, d_out)
    if Bp != B:
        out = out[:B]
    return out.reshape(*orig_shape[:-1], d_out)


# ---------------------------------------------------------------------------
# Reference + test
# ---------------------------------------------------------------------------

def posemb_reference(x, freqs):
    outs = [x]
    for f in freqs:
        fx = jnp.float32(f) * x
        outs.append(jnp.sin(fx))
        outs.append(jnp.cos(fx))
    return jnp.concatenate(outs, axis=-1)


if __name__ == "__main__":
    C = 3
    N_FREQS, MAX_LOGSCALE = 10, 4          # d_out = 3 + 6*10 = 63
    freqs = make_freqs(MAX_LOGSCALE, N_FREQS, logscale=True, multi_pi=False)

    key = jax.random.PRNGKey(0)
    k1, k2 = jax.random.split(key)

    # Main case: enough points that the >=2-step cap gives a 2-step grid.
    x = jax.random.uniform(k1, (2048, C), jnp.float32, -1.0, 1.0)
    out = jax.block_until_ready(
        pos_embedding(x, max_logscale=MAX_LOGSCALE, N_freqs=N_FREQS))
    ref = posemb_reference(x, freqs)
    assert out.shape == (2048, C * (1 + 2 * N_FREQS))
    assert jnp.allclose(out, ref, atol=1e-4, rtol=1e-4), "mismatch vs reference"

    # Ragged case: B not a multiple of the packing factor (pad + slice path).
    xb = jax.random.uniform(k2, (100, C), jnp.float32, -1.0, 1.0)
    outb = jax.block_until_ready(
        pos_embedding(xb, max_logscale=MAX_LOGSCALE, N_freqs=N_FREQS))
    refb = posemb_reference(xb, freqs)
    assert outb.shape == (100, C * (1 + 2 * N_FREQS))
    assert jnp.allclose(outb, refb, atol=1e-4, rtol=1e-4), "ragged mismatch"

    print("KERNEL_OK")
</pallas_src>

<mosaic_0001>
module attributes {stable_mosaic.version = 11 : i64} {
  func.func @_posemb_kernel(%arg0: i32, %arg1: memref<128x24xf32, #tpu.memory_space<vmem>>, %arg2: memref<24x504xf32, #tpu.memory_space<vmem>>, %arg3: memref<1x504xf32, #tpu.memory_space<vmem>>, %arg4: memref<1x504xf32, #tpu.memory_space<vmem>>, %arg5: memref<128x504xf32, #tpu.memory_space<vmem>>) attributes {dimension_semantics = [#tpu.dimension_semantics<parallel>], iteration_bounds = array<i64: 2>, scalar_prefetch = 0 : i64, scratch_operands = 0 : i64, tpu.core_type = #tpu.core_type<tc>, window_params = [{transform_indices = @transform_0, window_bounds = array<i64: 128, 24>}, {pipeline_mode = #tpu.pipeline_mode<synchronous>, transform_indices = @transform_1, window_bounds = array<i64: 24, 504>}, {pipeline_mode = #tpu.pipeline_mode<synchronous>, transform_indices = @transform_2, window_bounds = array<i64: 1, 504>}, {pipeline_mode = #tpu.pipeline_mode<synchronous>, transform_indices = @transform_3, window_bounds = array<i64: 1, 504>}, {transform_indices = @transform_4, window_bounds = array<i64: 128, 504>}]} {
    %c0 = arith.constant 0 : index
    %c0_0 = arith.constant 0 : index
    %0 = vector.load %arg1[%c0, %c0_0] : memref<128x24xf32, #tpu.memory_space<vmem>>, vector<128x24xf32>
    %c0_1 = arith.constant 0 : index
    %c0_2 = arith.constant 0 : index
    %1 = vector.load %arg2[%c0_1, %c0_2] : memref<24x504xf32, #tpu.memory_space<vmem>>, vector<24x504xf32>
    %cst = arith.constant dense<0.000000e+00> : vector<128x504xf32>
    %2 = tpu.matmul %0, %1, %cst {dimension_numbers = #tpu.dot_dimension_numbers<[1], [0], [0], [1], [0, 0, 1, 1], [], []>} : vector<128x24xf32>, vector<24x504xf32>, vector<128x504xf32> -> vector<128x504xf32>
    %c0_3 = arith.constant 0 : index
    %c0_4 = arith.constant 0 : index
    %3 = vector.load %arg3[%c0_3, %c0_4] : memref<1x504xf32, #tpu.memory_space<vmem>>, vector<1x504xf32>
    %4 = vector.broadcast %3 : vector<1x504xf32> to vector<128x504xf32>
    %5 = arith.addf %2, %4 : vector<128x504xf32>
    %6 = math.sin %5 : vector<128x504xf32>
    %c0_5 = arith.constant 0 : index
    %c0_6 = arith.constant 0 : index
    %7 = vector.load %arg4[%c0_5, %c0_6] : memref<1x504xf32, #tpu.memory_space<vmem>>, vector<1x504xf32>
    %cst_7 = arith.constant 5.000000e-01 : f32
    %8 = vector.broadcast %cst_7 : f32 to vector<1x504xf32>
    %9 = arith.cmpf ogt, %7, %8 : vector<1x504xf32>
    %10 = vector.shape_cast %9 : vector<1x504xi1> to vector<1x504xi1>
    %11 = vector.broadcast %10 : vector<1x504xi1> to vector<128x504xi1>
    %12 = arith.select %11, %2, %6 : vector<128x504xi1>, vector<128x504xf32>
    %c0_8 = arith.constant 0 : index
    %c0_9 = arith.constant 0 : index
    %13 = vector.load %arg5[%c0_8, %c0_9] : memref<128x504xf32, #tpu.memory_space<vmem>>, vector<128x504xf32>
    tpu.vector_store %arg5[%c0_8, %c0_9], %12 {strides = array<i32>} : memref<128x504xf32, #tpu.memory_space<vmem>>, vector<128x504xf32>,
    return
  }
  func.func @transform_0(%arg0: i32) -> (i32, i32) {
    %c0_i32 = arith.constant 0 : i32
    %c0_i32_0 = arith.constant 0 : i32
    return %arg0, %c0_i32 : i32, i32
  }
  func.func @transform_1(%arg0: i32) -> (i32, i32) {
    %c0_i32 = arith.constant 0 : i32
    %c0_i32_0 = arith.constant 0 : i32
    %c0_i32_1 = arith.constant 0 : i32
    return %c0_i32, %c0_i32_0 : i32, i32
  }
  func.func @transform_2(%arg0: i32) -> (i32, i32) {
    %c0_i32 = arith.constant 0 : i32
    %c0_i32_0 = arith.constant 0 : i32
    %c0_i32_1 = arith.constant 0 : i32
    return %c0_i32, %c0_i32_0 : i32, i32
  }
  func.func @transform_3(%arg0: i32) -> (i32, i32) {
    %c0_i32 = arith.constant 0 : i32
    %c0_i32_0 = arith.constant 0 : i32
    %c0_i32_1 = arith.constant 0 : i32
    return %c0_i32, %c0_i32_0 : i32, i32
  }
  func.func @transform_4(%arg0: i32) -> (i32, i32) {
    %c0_i32 = arith.constant 0 : i32
    %c0_i32_0 = arith.constant 0 : i32
    return %arg0, %c0_i32 : i32, i32
  }
}

</mosaic_0001>

<bundles_post_ra>
// kernel: tpu_custom_call.1
= control target key start
LH: loop header
LB: loop body
LE: loop exit
PB: predicated region body
PF: predicated region fallthrough
CT: control target
= control target key end

     0   :  { %s8432_s15 = smov 0   ;;  %s14041_s0 = inlined_call_operand.vmem [shape: f32[256,24], index: 0, kind: input, shape index: {}]   ;;  %s14042_s1 = inlined_call_operand.vmem [shape: f32[24,504], index: 1, kind: input, shape index: {}]   ;;  %s14043_s2 = inlined_call_operand.vmem [shape: f32[1,504], index: 2, kind: input, shape index: {}]   ;;  %s14044_s3 = inlined_call_operand.vmem [shape: f32[1,504], index: 3, kind: input, shape index: {}]   ;;  %s14045_s4 = inlined_call_operand.vmem [shape: f32[256,504], index: 4, kind: output, shape index: {}]  }
   0x1 LB: > { %s7554_s16 = sadd.s32 4294967295, %s8397_s15   ;;  %p7558_p0 = scmp.ge.s32.totalorder %s8397_s15, 1  ;;  %s8397_s15 = sphi %s8432_s15, %s14_s15  }
   0x2   : > { %p163_p1 = scmp.lt.s32.totalorder %s8397_s15, 3 }
   0x4   : > { %p164_p2 = pnand %p7558_p0, %p163_p1 }
   0x5   : > { %v220_v0 = vld [vmem:[%s14042_s1 + $0x8] sm:$0xff] (!%p164_p2)  ;;  %v222_v2 = vld [vmem:[%s14042_s1 + $0x18] sm:$0xff] (!%p164_p2)  ;;  %s7559_s23 = sshll.u32 (!%p164_p2), %s7554_s16, 4  ;;  %v219_v5 = vld [vmem:[%s14042_s1] sm:$0xff] (!%p164_p2)  ;;  %v8399_v7 = vmov (!%p164_p2), 0.0   ;;  %vm231_vm0 = vcmask (!%p164_p2), 195584   ;;  %v604_v33 = vlaneseq (!%p164_p2) }
   0x6   : > { %167 = sbr.rel (%p164_p2) target bundleno = 1872 (0x750), region = 36  ;;  %v224_v1 = vld [vmem:[%s14042_s1 + $0x28] sm:$0xff] (!%p164_p2)  ;;  %v226_v4 = vld [vmem:[%s14042_s1 + $0x38] sm:$0xff] (!%p164_p2)  ;;  %v223_v6 = vld [vmem:[%s14042_s1 + $0x20] sm:$0xff] (!%p164_p2)  ;;  %344 = vmatprep.mubr.f32.mxu0 (!%p164_p2), %v8399_v7  ;;  %505 = vmatprep.mubr.f32.mxu1 (!%p164_p2), %v8399_v7  ;;  %p191_p3 = scmp.lt.s32.totalorder (!%p164_p2), %s7559_s23, 31 }
   0x7   : > { %v7855_v3 = vpack.c.bf16 (!%p164_p2), %v224_v1, %v220_v0  ;;  %v7859_v8 = vpack.c.bf16 (!%p164_p2), %v226_v4, %v222_v2  ;;  %v7857_v9 = vpack.c.bf16 (!%p164_p2), %v223_v6, %v219_v5  ;;  %v221_v10 = vld [vmem:[%s14042_s1 + $0x10] sm:$0xff] (!%p164_p2)  ;;  %v228_v12 = vld [vmem:[%s14042_s1 + $0x48] sm:$0xff] (!%p164_p2)  ;;  %v230_v14 = vld [vmem:[%s14042_s1 + $0x58] sm:$0xff] (!%p164_p2)  ;;  %v8564_v34 = vshrl.u32 (!%p164_p2), %v604_v33, 7 }
   0x8   : > { %v225_v11 = vld [vmem:[%s14042_s1 + $0x30] sm:$0xff] (!%p164_p2)  ;;  %v227_v15 = vld [vmem:[%s14042_s1 + $0x40] sm:$0xff] (!%p164_p2) }
   0x9   : > { %7856 = vmatprep.subr.bf16.mxu0 (!%p164_p2), %v7855_v3  ;;  %v7861_v13 = vpack.c.bf16 (!%p164_p2), %v225_v11, %v221_v10  ;;  %7860 = vmatprep.subr.bf16.mxu1 (!%p164_p2), %v7859_v8  ;;  %v229_v16 = vld [vmem:[%s14042_s1 + $0x50] sm:$0xff] (!%p164_p2)  ;;  %v606_v35 = vsub.s32 (!%p164_p2), 0, %v8564_v34  ;;  %v602_v36 = vld [vmem:[%s14043_s2] sm:$0xf] (!%p164_p2)  ;;  %v614_v37 = vsub.s32 (!%p164_p2), 2, %v8564_v34  ;;  %v14047_v38 = vsub.s32 (!%p164_p2), 1, %v8564_v34 }
   0xa   : > { %7858 = vmatpush1.bf16.msra.mxu0 (!%p164_p2), %v7857_v9  ;;  %v14046_v56 = vsub.s32 (!%p164_p2), 3, %v8564_v34 }
   0xb   : > { %7862 = vmatpush1.bf16.msra.mxu1 (!%p164_p2), %v7861_v13  ;;  %284 = vmatprep.subr.mxu0 (!%p164_p2), %v228_v12  ;;  %v8574_v39 = vrot.slane (!%p164_p2), %v602_v36, %v606_v35  ;;  %v8578_v40 = vrot.slane (!%p164_p2), %v602_v36, %v614_v37  ;;  %v8582_v41 = vrot.slane (!%p164_p2), %v602_v36, %v14047_v38 }
   0xc   : > { %445 = vmatprep.subr.mxu1 (!%p164_p2), %v230_v14  ;;  %v8624_v4 = vrot.slane (!%p164_p2), %v602_v36, %v14046_v56 }
   0xd   : > { %s14180_s23 = smov (!%p191_p3, %s7559_s23), 31 }
   0xe   : > { %s7560_s14 = sshll.u32 %s14180_s23, 3  ;;  %285 = vmatpush1.msra.mxu0 %v227_v15  ;;  %s7854_s26 = sshll.u32 %s14180_s23, 5 }
   0xf   : > { %s8484_s20 = scalar_lea.vmem %s14041_s0, %s7560_s14  ;;  %446 = vmatpush1.msra.mxu1 %v229_v16  ;;  %s8911_s28 = scalar_lea.vmem %s14045_s4, %s7854_s26 }
  0x10   : > { %v203_v17 = vld [vmem:[%s8484_s20] sm:$0xff]  ;;  %v204_v18 = vld [vmem:[%s8484_s20 + $0x8] sm:$0xff]  ;;  %v205_v19 = vld [vmem:[%s8484_s20 + $0x10] sm:$0xff] }
  0x11   : > { %7564 = vmatmul.mubr.msk.f32.vlgmr.msra.gmra.mrb[0].mxu0 %vm231_vm0, %v203_v17  ;;  %7580 = vmatmul.mubr.msk.f32.vlgmr.msra.gmra.mrb[0].mxu1 %vm231_vm0, %v203_v17  ;;  %v206_v20 = vld [vmem:[%s8484_s20 + $0x18] sm:$0xff]  ;;  %v207_v21 = vld [vmem:[%s8484_s20 + $0x20] sm:$0xff]  ;;  %v208_v22 = vld [vmem:[%s8484_s20 + $0x28] sm:$0xff] }
  0x12   : > { %350 = vmatprep.mubr.f32.mxu0 %v8399_v7  ;;  %511 = vmatprep.mubr.f32.mxu1 %v8399_v7  ;;  %v209_v23 = vld [vmem:[%s8484_s20 + $0x30] sm:$0xff]  ;;  %v210_v24 = vld [vmem:[%s8484_s20 + $0x38] sm:$0xff]  ;;  %v211_v25 = vld [vmem:[%s8484_s20 + $0x40] sm:$0xff] }
  0x13   : > { %v212_v26 = vld [vmem:[%s8484_s20 + $0x48] sm:$0xff]  ;;  %v213_v27 = vld [vmem:[%s8484_s20 + $0x50] sm:$0xff]  ;;  %v214_v28 = vld [vmem:[%s8484_s20 + $0x58] sm:$0xff] }
  0x14   : > { %v215_v29 = vld [vmem:[%s8484_s20 + $0x60] sm:$0xff]  ;;  %v216_v30 = vld [vmem:[%s8484_s20 + $0x68] sm:$0xff]  ;;  %v217_v31 = vld [vmem:[%s8484_s20 + $0x70] sm:$0xff] }
  0x15   : > { %7565 = vmatmul.mubr.msk.f32.gmra.mrb[2].mxu0 %vm231_vm0, %v204_v18  ;;  %7581 = vmatmul.mubr.msk.f32.gmra.mrb[2].mxu1 %vm231_vm0, %v204_v18  ;;  %v218_v32 = vld [vmem:[%s8484_s20 + $0x78] sm:$0xff] }
  0x16   : > { %356 = vmatprep.mubr.f32.mxu0 %v8399_v7  ;;  %517 = vmatprep.mubr.f32.mxu1 %v8399_v7 }
  0x19   : > { %7566 = vmatmul.mubr.msk.f32.gmra.mrb[4].mxu0 %vm231_vm0, %v205_v19  ;;  %7582 = vmatmul.mubr.msk.f32.gmra.mrb[4].mxu1 %vm231_vm0, %v205_v19  ;;  %v8400_v19 = vmov 683565275  }
  0x1a   : > { %362 = vmatprep.mubr.f32.mxu0 %v8399_v7  ;;  %523 = vmatprep.mubr.f32.mxu1 %v8399_v7 }
  0x1d   : > { %7567 = vmatmul.mubr.msk.f32.gmra.mrb[6].mxu0 %vm231_vm0, %v206_v20  ;;  %7583 = vmatmul.mubr.msk.f32.gmra.mrb[6].mxu1 %vm231_vm0, %v206_v20 }
  0x1e   : > { %368 = vmatprep.mubr.f32.mxu0 %v8399_v7  ;;  %529 = vmatprep.mubr.f32.mxu1 %v8399_v7 }
  0x21   : > { %7568 = vmatmul.mubr.msk.f32.gmra.mrb[8].mxu0 %vm231_vm0, %v207_v21  ;;  %7584 = vmatmul.mubr.msk.f32.gmra.mrb[8].mxu1 %vm231_vm0, %v207_v21 }
  0x22   : > { %374 = vmatprep.mubr.f32.mxu0 %v8399_v7  ;;  %535 = vmatprep.mubr.f32.mxu1 %v8399_v7 }
  0x25   : > { %7569 = vmatmul.mubr.msk.f32.gmra.mrb[10].mxu0 %vm231_vm0, %v208_v22  ;;  %7585 = vmatmul.mubr.msk.f32.gmra.mrb[10].mxu1 %vm231_vm0, %v208_v22 }
  0x26   : > { %380 = vmatprep.mubr.f32.mxu0 %v8399_v7  ;;  %541 = vmatprep.mubr.f32.mxu1 %v8399_v7 }
  0x29   : > { %7570 = vmatmul.mubr.msk.f32.gmra.mrb[12].mxu0 %vm231_vm0, %v209_v23  ;;  %7586 = vmatmul.mubr.msk.f32.gmra.mrb[12].mxu1 %vm231_vm0, %v209_v23  ;;  %v8401_v23 = vmov 2475754826  }
  0x2a   : > { %386 = vmatprep.mubr.f32.mxu0 %v8399_v7  ;;  %547 = vmatprep.mubr.f32.mxu1 %v8399_v7 }
  0x2d   : > { %7571 = vmatmul.mubr.msk.f32.gmra.mrb[14].mxu0 %vm231_vm0, %v210_v24  ;;  %7587 = vmatmul.mubr.msk.f32.gmra.mrb[14].mxu1 %vm231_vm0, %v210_v24 }
  0x2e   : > { %392 = vmatprep.mubr.f32.mxu0 %v8399_v7  ;;  %553 = vmatprep.mubr.f32.mxu1 %v8399_v7 }
  0x31   : > { %7572 = vmatmul.mubr.msk.f32.gmra.mrb[16].mxu0 %vm231_vm0, %v211_v25  ;;  %7588 = vmatmul.mubr.msk.f32.gmra.mrb[16].mxu1 %vm231_vm0, %v211_v25  ;;  %v14049_v25 = vmov 2131351028  }
  0x32   : > { %398 = vmatprep.mubr.f32.mxu0 %v8399_v7  ;;  %559 = vmatprep.mubr.f32.mxu1 %v8399_v7 }
  0x35   : > { %7573 = vmatmul.mubr.msk.f32.gmra.mrb[18].mxu0 %vm231_vm0, %v212_v26  ;;  %7589 = vmatmul.mubr.msk.f32.gmra.mrb[18].mxu1 %vm231_vm0, %v212_v26 }
  0x36   : > { %404 = vmatprep.mubr.f32.mxu0 %v8399_v7  ;;  %565 = vmatprep.mubr.f32.mxu1 %v8399_v7 }
  0x39   : > { %7574 = vmatmul.mubr.msk.f32.gmra.mrb[20].mxu0 %vm231_vm0, %v213_v27  ;;  %7590 = vmatmul.mubr.msk.f32.gmra.mrb[20].mxu1 %vm231_vm0, %v213_v27  ;;  %v8403_v27 = vmov 2102212464  }
  0x3a   : > { %410 = vmatprep.mubr.f32.mxu0 %v8399_v7  ;;  %571 = vmatprep.mubr.f32.mxu1 %v8399_v7 }
  0x3d   : > { %7575 = vmatmul.mubr.msk.f32.gmra.mrb[22].mxu0 %vm231_vm0, %v214_v28  ;;  %7591 = vmatmul.mubr.msk.f32.gmra.mrb[22].mxu1 %vm231_vm0, %v214_v28 }
  0x3e   : > { %416 = vmatprep.mubr.f32.mxu0 %v8399_v7  ;;  %577 = vmatprep.mubr.f32.mxu1 %v8399_v7 }
  0x41   : > { %7576 = vmatmul.mubr.msk.f32.gmra.mrb[24].mxu0 %vm231_vm0, %v215_v29  ;;  %7592 = vmatmul.mubr.msk.f32.gmra.mrb[24].mxu1 %vm231_vm0, %v215_v29  ;;  %v8404_v29 = vmov 920167782  }
  0x42   : > { %422 = vmatprep.mubr.f32.mxu0 %v8399_v7  ;;  %583 = vmatprep.mubr.f32.mxu1 %v8399_v7 }
  0x45   : > { %7577 = vmatmul.mubr.msk.f32.gmra.mrb[26].mxu0 %vm231_vm0, %v216_v30  ;;  %7593 = vmatmul.mubr.msk.f32.gmra.mrb[26].mxu1 %vm231_vm0, %v216_v30 }
  0x46   : > { %428 = vmatprep.mubr.f32.mxu0 %v8399_v7  ;;  %589 = vmatprep.mubr.f32.mxu1 %v8399_v7 }
  0x49   : > { %7578 = vmatmul.mubr.msk.f32.gmra.mrb[28].mxu0 %vm231_vm0, %v217_v31  ;;  %7594 = vmatmul.mubr.msk.f32.gmra.mrb[28].mxu1 %vm231_vm0, %v217_v31 }
  0x4a   : > { %434 = vmatprep.mubr.f32.mxu0 %v8399_v7  ;;  %595 = vmatprep.mubr.f32.mxu1 %v8399_v7 }
  0x4d   : > { %7579 = vmatmul.mubr.msk.f32.gmra.mrb[30].mxu0 %vm231_vm0, %v218_v32  ;;  %7595 = vmatmul.mubr.msk.f32.gmra.mrb[30].mxu1 %vm231_vm0, %v218_v32 }
  0xe4   : > { %v8584_v42 = vpop.f32.mrb[0].mxu0  ;;  %v8590_v44 = vpop.f32.mrb[0].mxu1 }
  0xe5   : > { %v8588_v43 = vadd.f32 %v8574_v39, %v8584_v42  ;;  %v8592_v45 = vpop.f32.mrb[1].mxu0  ;;  %v8596_v46 = vadd.f32 %v8578_v40, %v8590_v44  ;;  %v8602_v48 = vpop.f32.mrb[1].mxu1 }
  0xe6   : > { %v8600_v47 = vadd.f32 %v8582_v41, %v8592_v45  ;;  %v8629_v13 = vadd.f32 %v8624_v4, %v8602_v48 }
  0xe7   : > { %v688_v49 = vand.u32 2147483647, %v8588_v43  ;;  %v691_v50 = vand.u32 2139095040, %v8588_v43  ;;  %v896_v51 = vand.u32 2147483647, %v8596_v46  ;;  %v899_v52 = vand.u32 2139095040, %v8596_v46 }
  0xe8   : > { %v8608_v53 = vpop.f32.mrb[2].mxu0  ;;  %v795_v59 = vand.u32 2139095040, %v8600_v47  ;;  %v8616_v61 = vpop.f32.mrb[2].mxu1  ;;  %v14048_v7 = vand.u32 2147483647, %v8600_v47  ;;  %vm690_vm15 = vcmp.lt.s32.totalorder %v8588_v43, 0 }
  0xe9   : > { %v692_v54 = vshrl.u32 %v691_v50, 23  ;;  %v695_v55 = vand.u32 8388607, %v688_v49  ;;  %v900_v57 = vshrl.u32 %v899_v52, 23  ;;  %v903_v58 = vand.u32 8388607, %v896_v51 }
  0xea   : > { %v8618_v62 = vpop.f32.mrb[3].mxu0  ;;  %v796_v0 = vshrl.u32 %v795_v59, 23  ;;  %v8620_v1 = vpop.f32.mrb[3].mxu1  ;;  %v8637_v16 = vand.u32 8388607, %v14048_v7  ;;  %vm898_vm0 = vcmp.lt.s32.totalorder %v8596_v46, 0 }
  0xeb   : > { %v7596_v60 = vadd.s32 4294967169, %v692_v54  ;;  %v7604_v63 = vadd.s32 4294967169, %v900_v57  ;;  %v696_v2 = vor.u32 8388608, %v695_v55  ;;  %v904_v5 = vor.u32 8388608, %v903_v58 }
  0xec   : > { %v7600_v8 = vadd.s32 4294967169, %v796_v0  ;;  %v8405_v52 = vmov 1326507024  }
  0xed   : > { %v698_v3 = vadd.s32 1, %v7596_v60  ;;  %v906_v6 = vadd.s32 1, %v7604_v63  ;;  %v8631_v14 = vshll.u32 %v696_v2, 8  ;;  %v8633_v15 = vshll.u32 %v904_v5, 8 }
  0xee   : > { %v8639_v17 = vadd.s32 1, %v7600_v8 }
  0xef   : > { %vm699_vm1 = vcmp.gt.s32.totalorder %v698_v3, 0  ;;  %vm907_vm2 = vcmp.gt.s32.totalorder %v906_v6, 0 }
  0xf0   : > { %v700_v9 = vsel %vm699_vm1, %v698_v3, 0  ;;  %v908_v12 = vsel %vm907_vm2, %v906_v6, 0  ;;  %vm803_vm7 = vcmp.gt.s32.totalorder %v8639_v17, 0 }
  0xf1   : > { %v701_v10 = vshrl.u32 %v700_v9, 5  ;;  %v702_v11 = vand.u32 31, %v700_v9  ;;  %v8642_v21 = vshrl.u32 %v908_v12, 5  ;;  %v910_v22 = vand.u32 31, %v908_v12 }
  0xf3   : > { %v703_v18 = vsub.s32 32, %v702_v11  ;;  %v705_v20 = vshll.u32 %v8400_v19, %v702_v11  ;;  %v708_v24 = vshll.u32 %v8401_v23, %v702_v11  ;;  %v711_v26 = vshll.u32 %v14049_v25, %v702_v11 }
  0xf4   : > { %v714_v28 = vshll.u32 %v8403_v27, %v702_v11  ;;  %v717_v30 = vshll.u32 %v8404_v29, %v702_v11  ;;  %vm720_vm3 = vcmp.lt.s32.totalorder %v701_v10, 1  ;;  %vm721_vm4 = vcmp.lt.s32.totalorder %v701_v10, 2 }
  0xf5   : > { %v706_v31 = vshrl.u32 %v8401_v23, %v703_v18  ;;  %v709_v32 = vshrl.u32 %v14049_v25, %v703_v18  ;;  %v712_v33 = vshrl.u32 %v8403_v27, %v703_v18  ;;  %v704_v36 = vshrl.u32 %v8400_v19, %v703_v18 }
  0xf6   : > { %v715_v50 = vshrl.u32 %v8404_v29, %v703_v18  ;;  %v718_v54 = vshrl.u32 %v8405_v52, %v703_v18  ;;  %v911_v59 = vsub.s32 32, %v910_v22  ;;  %vm722_vm5 = vcmp.lt.s32.totalorder %v701_v10, 3 }
  0xf7   : > { %v707_v55 = vor.u32 %v706_v31, %v705_v20  ;;  %v710_v57 = vor.u32 %v709_v32, %v708_v24  ;;  %v713_v58 = vor.u32 %v712_v33, %v711_v26  ;;  %vm723_vm6 = vcmp.lt.s32.totalorder %v701_v10, 4 }
  0xf8   : > { %v716_v60 = vor.u32 %v715_v50, %v714_v28  ;;  %v719_v63 = vor.u32 %v718_v54, %v717_v30  ;;  %v913_v11 = vshll.u32 %v8400_v19, %v910_v22  ;;  %v914_v20 = vshrl.u32 %v8401_v23, %v911_v59 }
  0xf9   : > { %v724_v0 = vsel %vm720_vm3, %v704_v36, %v707_v55  ;;  %v725_v2 = vsel %vm723_vm6, %v713_v58, 2102212464  ;;  %v728_v3 = vsel %vm720_vm3, %v707_v55, %v710_v57  ;;  %v732_v5 = vsel %vm720_vm3, %v710_v57, %v713_v58 }
  0xfa   : > { %v726_v6 = vsel %vm722_vm5, %v710_v57, %v725_v2  ;;  %v729_v8 = vsel %vm723_vm6, %v716_v60, 920167782  ;;  %v733_v9 = vsel %vm723_vm6, %v719_v63, 1326507024  ;;  %v916_v24 = vshll.u32 %v8401_v23, %v910_v22 }
  0xfb   : > { %v730_v12 = vsel %vm722_vm5, %v713_v58, %v729_v8  ;;  %v734_v18 = vsel %vm722_vm5, %v716_v60, %v733_v9  ;;  %v727_v26 = vsel %vm721_vm4, %v724_v0, %v726_v6  ;;  %v917_v31 = vshrl.u32 %v14049_v25, %v911_v59 }
  0xfc   : > { %v731_v28 = vsel %vm721_vm4, %v728_v3, %v730_v12  ;;  %v735_v30 = vsel %vm721_vm4, %v732_v5, %v734_v18  ;;  %v915_v54 = vor.u32 %v914_v20, %v913_v11  ;;  %v919_v57 = vshll.u32 %v14049_v25, %v910_v22 }
  0xfd   : > { %v8666_v32 = vmul.u32.u64.low %v8631_v14, %v735_v30  ;;  %v8667_v33 = vmul.u32.u64.high %v8631_v14, %v735_v30, %v8666_v32  ;;  %v8670_v36 = vmul.u32.u64.low %v8631_v14, %v731_v28  ;;  %v8671_v50 = vmul.u32.u64.high %v8631_v14, %v731_v28, %v8670_v36 }
  0xfe   : > { %v918_v55 = vor.u32 %v917_v31, %v916_v24  ;;  %v920_v58 = vshrl.u32 %v8403_v27, %v911_v59  ;;  %v912_v10 = vshrl.u32 %v8400_v19, %v911_v59  ;;  %v922_v60 = vshll.u32 %v8403_v27, %v910_v22 }
  0xff   : > { %v923_v63 = vshrl.u32 %v8404_v29, %v911_v59  ;;  %v926_v0 = vshrl.u32 %v8405_v52, %v911_v59  ;;  %v743_v2 = vmul.u32 %v8631_v14, %v727_v26  ;;  %v925_v5 = vshll.u32 %v8404_v29, %v910_v22 }
 0x100   : > { %v921_v3 = vor.u32 %v920_v58, %v919_v57  ;;  %vm928_vm8 = vcmp.lt.s32.totalorder %v8642_v21, 1  ;;  %vm745_vm9 = vc.u32 %v8667_v33, %v8670_v36  ;;  %v746_v6 = vadd.s32 1, %v8671_v50 }
 0x101   : > { %v924_v8 = vor.u32 %v923_v63, %v922_v60  ;;  %vm929_vm10 = vcmp.lt.s32.totalorder %v8642_v21, 2  ;;  %v927_v9 = vor.u32 %v926_v0, %v925_v5  ;;  %vm930_vm11 = vcmp.lt.s32.totalorder %v8642_v21, 3 }
 0x102   : > { %vm931_vm12 = vcmp.lt.s32.totalorder %v8642_v21, 4  ;;  %v936_v59 = vsel %vm928_vm8, %v915_v54, %v918_v55  ;;  %v747_v14 = vsel %vm745_vm9, %v746_v6, %v8671_v50  ;;  %v940_v12 = vsel %vm928_vm8, %v918_v55, %v921_v3  ;;  %v7344_v50 = vld [vmem:[%s14044_s3] sm:$0xf] }
 0x103   : > { %v933_v11 = vsel %vm931_vm12, %v921_v3, 2102212464  ;;  %v937_v22 = vsel %vm931_vm12, %v924_v8, 920167782  ;;  %v748_v18 = vadd.s32 %v747_v14, %v743_v2  ;;  %v932_v20 = vsel %vm928_vm8, %v912_v10, %v915_v54 }
 0x104   : > { %v938_v24 = vsel %vm930_vm11, %v921_v3, %v937_v22  ;;  %v941_v26 = vsel %vm931_vm12, %v927_v9, 1326507024  ;;  %v934_v28 = vsel %vm930_vm11, %v918_v55, %v933_v11  ;;  %v804_v32 = vsel %vm803_vm7, %v8639_v17, 0 }
 0x105   : > { %v939_v30 = vsel %vm929_vm10, %v936_v59, %v938_v24  ;;  %v942_v31 = vsel %vm930_vm11, %v924_v8, %v941_v26  ;;  %v749_v57 = vadd.s32 536870912, %v748_v18  ;;  %v935_v17 = vsel %vm929_vm10, %v932_v20, %v934_v28 }
 0x106   : > { %v943_v58 = vsel %vm929_vm10, %v940_v12, %v942_v31  ;;  %v8701_v54 = vmul.u32.u64.low %v8633_v15, %v939_v30  ;;  %v8702_v10 = vmul.u32.u64.high %v8633_v15, %v939_v30, %v8701_v54  ;;  %v806_v0 = vand.u32 31, %v804_v32 }
 0x107   : > { %v8706_v55 = vmul.u32.u64.low %v8633_v15, %v943_v58  ;;  %v8707_v60 = vmul.u32.u64.high %v8633_v15, %v943_v58, %v8706_v55  ;;  %v750_v63 = vshrl.u32 %v749_v57, 30  ;;  %vm7345_vm13 = vcmp.gt.f32.partialorder %v7344_v50, 0.5 }
 0x108   : > { %v800_v2 = vor.u32 8388608, %v8637_v16  ;;  %v954_v5 = vadd.s32 1, %v8702_v10  ;;  %v807_v6 = vsub.s32 32, %v806_v0  ;;  %v1003_v8 = vand.u32 2139095040, %v8629_v13 }
 0x109   : > { %v751_v3 = vshll.u32 %v750_v63, 30  ;;  %v951_v9 = vmul.u32 %v8633_v15, %v935_v17  ;;  %vm953_vm14 = vc.u32 %v8707_v60, %v8701_v54  ;;  %v8406_v14 = vmov 0   ;;  %v8727_v15 = vpop.f32.mrb[4].mxu0 }
 0x10a   : > { %v8719_v21 = vsel %vm7345_vm13, 1, %v8406_v14  ;;  %v955_v11 = vsel %vm953_vm14, %v954_v5, %v8702_v10  ;;  %v810_v22 = vshrl.u32 %v8401_v23, %v807_v6  ;;  %v8724_v12 = vshll.u32 %v800_v2, 8 }
 0x10b   : > { %v8717_v59 = vsub.s32 %v748_v18, %v751_v3  ;;  %v956_v16 = vadd.s32 %v955_v11, %v951_v9  ;;  %v1000_v20 = vand.u32 2147483647, %v8629_v13  ;;  %v813_v18 = vshrl.u32 %v14049_v25, %v807_v6 }
 0x10c   : > { %v816_v26 = vshrl.u32 %v8403_v27, %v807_v6  ;;  %v1004_v28 = vshrl.u32 %v1003_v8, 23  ;;  %v774_v30 = vsub.s32 4, %v750_v63  ;;  %v8732_v57 = vshrl.u32 %v804_v32, 5 }
 0x10d   : > { %v754_v24 = vsub.s32 0, %v8717_v59  ;;  %v957_v31 = vadd.s32 536870912, %v956_v16  ;;  %v809_v50 = vshll.u32 %v8400_v19, %v806_v0  ;;  %v812_v10 = vshll.u32 %v8401_v23, %v806_v0 }
 0x10e   : > { %v815_v55 = vshll.u32 %v14049_v25, %v806_v0  ;;  %v819_v17 = vshrl.u32 %v8404_v29, %v807_v6  ;;  %v818_v5 = vshll.u32 %v8403_v27, %v806_v0  ;;  %v822_v8 = vshrl.u32 %v8405_v52, %v807_v6 }
 0x10f   : > { %v7597_v58 = vmin.u32 %v754_v24, %v8717_v59  ;;  %v958_v2 = vshrl.u32 %v957_v31, 30  ;;  %v811_v3 = vor.u32 %v810_v22, %v809_v50  ;;  %v814_v32 = vor.u32 %v813_v18, %v812_v10 }
 0x110   : > { %v817_v14 = vor.u32 %v816_v26, %v815_v55  ;;  %v821_v11 = vshll.u32 %v8404_v29, %v806_v0  ;;  %v744_v24 = vadd.s32 %v8670_v36, %v8667_v33  ;;  %v820_v38 = vor.u32 %v819_v17, %v818_v5 }
 0x111   : > { %v756_v9 = vclz %v7597_v58  ;;  %v959_v56 = vshll.u32 %v958_v2, 30  ;;  %v7608_v7 = vadd.s32 4294967169, %v1004_v28  ;;  %vm824_vm1 = vcmp.lt.s32.totalorder %v8732_v57, 1 }
 0x112   : > { %v823_v31 = vor.u32 %v822_v8, %v821_v11  ;;  %vm827_vm2 = vcmp.lt.s32.totalorder %v8732_v57, 4  ;;  %vm8749_vm3 = vcmp.le.f32.partialorder %v688_v49, 0.7853982  ;;  %vm825_vm4 = vcmp.lt.s32.totalorder %v8732_v57, 2 }
 0x113   : > { %v7598_v25 = vadd.s32 4294967294, %v756_v9  ;;  %v8753_v18 = vsub.s32 %v956_v16, %v959_v56  ;;  %vm826_vm5 = vcmp.lt.s32.totalorder %v8732_v57, 3  ;;  %v833_v33 = vsel %vm827_vm2, %v820_v38, 920167782 }
 0x114   : > { %v775_v36 = vsel %vm690_vm15, %v774_v30, %v750_v63  ;;  %vm8763_vm7 = vcmp.le.f32.partialorder %v896_v51, 0.7853982  ;;  %v832_v56 = vsel %vm824_vm1, %v811_v3, %v814_v32  ;;  %v834_v0 = vsel %vm826_vm5, %v817_v14, %v833_v33 }
 0x115   : > { %vm7599_vm6 = vcmp.lt.s32.totalorder %v7598_v25, 0  ;;  %v962_v26 = vsub.s32 0, %v8753_v18  ;;  %v982_v28 = vsub.s32 4, %v958_v2  ;;  %v836_v50 = vsel %vm824_vm1, %v814_v32, %v817_v14 }
 0x116   : > { %v759_v16 = vsel %vm7599_vm6, 0, %v7598_v25  ;;  %v829_v51 = vsel %vm827_vm2, %v817_v14, 2102212464  ;;  %v837_v58 = vsel %vm827_vm2, %v823_v31, 1326507024  ;;  %v808_v55 = vshrl.u32 %v8400_v19, %v807_v6 }
 0x117   : > { %v760_v63 = vsub.s32 32, %v759_v16  ;;  %v764_v30 = vsub.s32 4294967266, %v759_v16  ;;  %v7605_v10 = vmin.u32 %v962_v26, %v8753_v18  ;;  %v835_v25 = vsel %vm825_vm4, %v832_v56, %v834_v0 }
 0x118   : > { %v838_v17 = vsel %vm826_vm5, %v820_v38, %v837_v58  ;;  %v761_v5 = vshll.u32 %v8717_v59, %v759_v16  ;;  %v983_v31 = vsel %vm898_vm0, %v982_v28, %v958_v2  ;;  %v828_v6 = vsel %vm824_vm1, %v808_v55, %v811_v3 }
 0x119   : > { %v762_v8 = vshrl.u32 %v744_v24, %v760_v63  ;;  %v765_v9 = vadd.s32 127, %v764_v30  ;;  %v839_v14 = vsel %vm825_vm4, %v836_v50, %v838_v17  ;;  %v964_v11 = vclz %v7605_v10  ;;  %v8808_v63 = vpop.f32.mrb[4].mxu1 }
 0x11a   : > { %v830_v33 = vsel %vm826_vm5, %v814_v32, %v829_v51  ;;  %v8794_v38 = vmul.u32.u64.low %v8724_v12, %v839_v14  ;;  %v8795_v59 = vmul.u32.u64.high %v8724_v12, %v839_v14, %v8794_v38  ;;  %v1010_v50 = vadd.s32 1, %v7608_v7 }
 0x11b   : > { %v763_v56 = vor.u32 %v762_v8, %v761_v5  ;;  %v766_v0 = vshll.u32 %v765_v9, 23  ;;  %v7606_v24 = vadd.s32 4294967294, %v964_v11  ;;  %v777_v3 = vsel %vm8749_vm3, 0, %v775_v36 }
 0x11c   : > { %v8798_v16 = vmul.u32.u64.low %v8724_v12, %v835_v25  ;;  %v8799_v26 = vmul.u32.u64.high %v8724_v12, %v835_v25, %v8798_v16  ;;  %v952_v32 = vadd.s32 %v8701_v54, %v8707_v60  ;;  %v1007_v28 = vand.u32 8388607, %v1000_v20 }
 0x11d   : > { %v767_v2 = vor.u32 4788187, %v766_v0  ;;  %vm7607_vm8 = vcmp.lt.s32.totalorder %v7606_v24, 0  ;;  %v985_v30 = vsel %vm8763_vm7, 0, %v983_v31  ;;  %v831_v51 = vsel %vm825_vm4, %v828_v6, %v830_v33 }
 0x11e   : > { %vm1011_vm9 = vcmp.gt.s32.totalorder %v1010_v50, 0  ;;  %v770_v58 = vcvt.s32.f32 %v763_v56  ;;  %v967_v10 = vsel %vm7607_vm8, 0, %v7606_v24  ;;  %vm849_vm10 = vc.u32 %v8795_v59, %v8798_v16 }
 0x11f   : > { %v768_v7 = vand.u32 2147483647, %v767_v2  ;;  %v781_v54 = vadd.s32 3, %v777_v3  ;;  %v968_v60 = vsub.s32 32, %v967_v10  ;;  %v972_v36 = vsub.s32 4294967266, %v967_v10 }
 0x120   : > { %v850_v55 = vadd.s32 1, %v8799_v26  ;;  %v989_v17 = vadd.s32 3, %v985_v30  ;;  %v847_v5 = vmul.u32 %v8724_v12, %v831_v51  ;;  %v1012_v8 = vsel %vm1011_vm9, %v1010_v50, 0 }
 0x121   : > { %v771_v25 = vmul.f32 %v770_v58, %v768_v7  ;;  %v969_v57 = vshll.u32 %v8753_v18, %v967_v10  ;;  %v970_v9 = vshrl.u32 %v952_v32, %v968_v60  ;;  %v973_v14 = vadd.s32 127, %v972_v36 }
 0x122   : > { %v851_v11 = vsel %vm849_vm10, %v850_v55, %v8799_v26  ;;  %v1014_v33 = vand.u32 31, %v1012_v8  ;;  %v8823_v56 = vrot.slane %v8719_v21, %v606_v35  ;;  %v8828_v12 = vrot.slane %v8719_v21, %v614_v37 }
 0x123   : > { %v772_v31 = vxor.u32 2147483648, %v771_v25  ;;  %v852_v6 = vadd.s32 %v851_v11, %v847_v5  ;;  %v971_v0 = vor.u32 %v970_v9, %v969_v57  ;;  %v974_v38 = vshll.u32 %v973_v14, 23 }
 0x124   : > { %v8832_v24 = vand.u32 3, %v781_v54  ;;  %v1015_v50 = vsub.s32 32, %v1014_v33  ;;  %v8837_v3 = vand.u32 3, %v989_v17  ;;  %v1008_v32 = vor.u32 8388608, %v1007_v28 }
 0x125   : > { %v773_v18 = vsel %vm690_vm15, %v772_v31, %v771_v25  ;;  %v853_v26 = vadd.s32 536870912, %v852_v6  ;;  %v975_v35 = vor.u32 4788187, %v974_v38  ;;  %v8841_v37 = vshrl.u32 %v1012_v8, 5 }
 0x126   : > { %v776_v2 = vsel %vm8749_vm3, %v8588_v43, %v773_v18  ;;  %v1018_v51 = vshrl.u32 %v8401_v23, %v1015_v50  ;;  %v978_v58 = vcvt.s32.f32 %v971_v0  ;;  %v14055_v10 = vmov 2131351028  }
 0x127   : > { %8135 = vcosq.f32 %v776_v2  ;;  %v8839_v30 = vshrl.u32 %v853_v26, 30  ;;  %v976_v7 = vand.u32 2147483647, %v975_v35  ;;  %v1021_v54 = vshrl.u32 %v14055_v10, %v1015_v50 }
 0x128   : > { %8137 = vsinq.f32 %v776_v2  ;;  %v1017_v22 = vshll.u32 %v8400_v19, %v1014_v33  ;;  %v1023_v36 = vshll.u32 %v14055_v10, %v1014_v33  ;;  %v1024_v28 = vshrl.u32 %v8403_v27, %v1015_v50 }
 0x129   : > { %v855_v60 = vshll.u32 %v8839_v30, 30  ;;  %v979_v55 = vmul.f32 %v978_v58, %v976_v7  ;;  %v1020_v25 = vshll.u32 %v8401_v23, %v1014_v33  ;;  %v1026_v17 = vshll.u32 %v8403_v27, %v1014_v33 }
 0x12a   : > { %v1027_v5 = vshrl.u32 %v8404_v29, %v1015_v50  ;;  %vm787_vm11 = vcmp.eq.s32.totalorder %v8832_v24, 2  ;;  %v1019_v57 = vor.u32 %v1018_v51, %v1017_v22  ;;  %v1025_v9 = vor.u32 %v1024_v28, %v1023_v36 }
 0x12b   : > { %v8853_v8 = vsub.s32 %v852_v6, %v855_v60  ;;  %v8855_v14 = vshll.u32 %v1008_v32, 8  ;;  %vm784_vm12 = vcmp.eq.s32.totalorder %v8832_v24, 0  ;;  %v980_v11 = vxor.u32 2147483648, %v979_v55 }
 0x12c   : > { %v1022_v31 = vor.u32 %v1021_v54, %v1020_v25  ;;  %v1028_v0 = vor.u32 %v1027_v5, %v1026_v17  ;;  %v1030_v38 = vshrl.u32 %v8405_v52, %v1015_v50  ;;  %vm783_vm13 = vcmp.lt.s32.totalorder %v8832_v24, 2 }
 0x12d   : > { %vm7363_vm14 = vcmp.eq.s32.totalorder %v8823_v56, 1  ;;  %v848_v18 = vadd.s32 %v8798_v16, %v8795_v59  ;;  %v858_v6 = vsub.s32 0, %v8853_v8  ;;  %v1029_v26 = vshll.u32 %v8404_v29, %v1014_v33 }
 0x12e   : > { %v8867_v2 = vadd.f32 %v8574_v39, %v8608_v53  ;;  %vm780_vm15 = vweird.f32 %v8588_v43  ;;  %v981_v35 = vsel %vm898_vm0, %v980_v11, %v979_v55  ;;  %v1016_v32 = vshrl.u32 %v8400_v19, %v1015_v50 }
 0x12f   : > { %vm1032_vm1 = vcmp.lt.s32.totalorder %v8841_v37, 1  ;;  %vm1035_vm2 = vcmp.lt.s32.totalorder %v8841_v37, 4  ;;  %v984_v59 = vsel %vm8763_vm7, %v8596_v46, %v981_v35  ;;  %v7601_v16 = vmin.u32 %v858_v6, %v8853_v8 }
 0x130   : > { %v1031_v33 = vor.u32 %v1030_v38, %v1029_v26  ;;  %v1037_v51 = vsel %vm1035_vm2, %v1025_v9, 2102212464  ;;  %8139 = vcosq.f32 %v984_v59  ;;  %vm1033_vm0 = vcmp.lt.s32.totalorder %v8841_v37, 2 }
 0x131   : > { %v1040_v50 = vsel %vm1032_vm1, %v1019_v57, %v1022_v31  ;;  %v1041_v7 = vsel %vm1035_vm2, %v1028_v0, 920167782  ;;  %v8136_v58 = vpop.eup %8135  ;;  %8141 = vsinq.f32 %v984_v59  ;;  %v860_v49 = vclz %v7601_v16 }
 0x132   : > { %vm1034_vm3 = vcmp.lt.s32.totalorder %v8841_v37, 3  ;;  %v1036_v54 = vsel %vm1032_vm1, %v1016_v32, %v1019_v57  ;;  %v8138_v60 = vpop.eup %8137  ;;  %v788_v22 = vxor.u32 2147483648, %v8136_v58  ;;  %v1044_v55 = vsel %vm1032_vm1, %v1022_v31, %v1025_v9 }
 0x133   : > { %v1038_v36 = vsel %vm1034_vm3, %v1022_v31, %v1037_v51  ;;  %v1042_v28 = vsel %vm1034_vm3, %v1025_v9, %v1041_v7  ;;  %v785_v25 = vxor.u32 2147483648, %v8138_v60  ;;  %v7602_v17 = vadd.s32 4294967294, %v860_v49 }
 0x134   : > { %v1043_v5 = vsel %vm1033_vm0, %v1040_v50, %v1042_v28  ;;  %v1045_v11 = vsel %vm1035_vm2, %v1031_v33, 1326507024  ;;  %v789_v38 = vsel %vm787_vm11, %v788_v22, %v8138_v60  ;;  %v878_v31 = vsub.s32 4, %v8839_v30 }
 0x135   : > { %v1046_v57 = vsel %vm1034_vm3, %v1028_v0, %v1045_v11  ;;  %v8899_v6 = vmul.u32.u64.low %v8855_v14, %v1043_v5  ;;  %v8900_v26 = vmul.u32.u64.high %v8855_v14, %v1043_v5, %v8899_v6  ;;  %v786_v9 = vsel %vm784_vm12, %v8136_v58, %v785_v25 }
 0x136   : > { %vm7603_vm4 = vcmp.lt.s32.totalorder %v7602_v17, 0  ;;  %v1047_v35 = vsel %vm1033_vm0, %v1044_v55, %v1046_v57  ;;  %v790_v0 = vsel %vm783_vm13, %v786_v9, %v789_v38  ;;  %vm7365_vm5 = vcmp.eq.s32.totalorder %v8828_v12, 1  ;;  %v8950_v9 = vpop.f32.mrb[5].mxu0 }
 0x137   : > { %v863_v32 = vsel %vm7603_vm4, 0, %v7602_v17  ;;  %v8917_v59 = vmul.u32.u64.low %v8855_v14, %v1047_v35  ;;  %v8918_v16 = vmul.u32.u64.high %v8855_v14, %v1047_v35, %v8917_v59  ;;  %v791_v33 = vsel %vm780_vm15, nan, %v790_v0 }
 0x138   : > { %vm988_vm6 = vweird.f32 %v8596_v46  ;;  %v864_v51 = vsub.s32 32, %v863_v32  ;;  %v868_v50 = vsub.s32 4294967266, %v863_v32  ;;  %v1039_v7 = vsel %vm1033_vm0, %v1036_v54, %v1038_v36 }
 0x139   : > { %v7367_v24 = vsel %vm7363_vm14, %v8584_v42, %v791_v33  ;;  %v14056_v58 = vand.u32 2147483647, %v8600_v47  ;;  %vm794_vm8 = vcmp.lt.s32.totalorder %v8600_v47, 0  ;;  %v1058_v43 = vadd.s32 1, %v8900_v26 }
 0x13a   : > { %7431 = vst [vmem:[%s8911_s28] sm:$0xff] %v7367_v24  ;;  %v865_v60 = vshll.u32 %v8853_v8, %v863_v32  ;;  %v866_v22 = vshrl.u32 %v848_v18, %v864_v51  ;;  %v869_v37 = vadd.s32 127, %v868_v50  ;;  %v1107_v54 = vand.u32 2139095040, %v8867_v2  ;;  %v8140_v36 = vpop.eup %8139 }
 0x13b   : > { %vm8930_vm7 = vcmp.le.f32.partialorder %v14056_v58, 0.7853982  ;;  %vm991_vm9 = vcmp.lt.s32.totalorder %v8837_v3, 2  ;;  %v879_v42 = vsel %vm794_vm8, %v878_v31, %v8839_v30  ;;  %v1055_v28 = vmul.u32 %v8855_v14, %v1039_v7  ;;  %v8142_v55 = vpop.eup %8141 }
 0x13c   : > { %vm1057_vm10 = vc.u32 %v8918_v16, %v8899_v6  ;;  %v996_v25 = vxor.u32 2147483648, %v8140_v36  ;;  %v867_v17 = vor.u32 %v866_v22, %v865_v60  ;;  %v870_v8 = vshll.u32 %v869_v37, 23 }
 0x13d   : > { %v1059_v18 = vsel %vm1057_vm10, %v1058_v43, %v8900_v26  ;;  %v993_v5 = vxor.u32 2147483648, %v8142_v55  ;;  %vm995_vm11 = vcmp.eq.s32.totalorder %v8837_v3, 2  ;;  %v1108_v38 = vshrl.u32 %v1107_v54, 23 }
 0x13e   : > { %v1060_v11 = vadd.s32 %v1059_v18, %v1055_v28  ;;  %vm992_vm12 = vcmp.eq.s32.totalorder %v8837_v3, 0  ;;  %v997_v57 = vsel %vm995_vm11, %v996_v25, %v8142_v55  ;;  %v871_v30 = vor.u32 4788187, %v870_v8 }
 0x13f   : > { %v1104_v14 = vand.u32 2147483647, %v8867_v2  ;;  %v994_v31 = vsel %vm992_vm12, %v8140_v36, %v993_v5  ;;  %v881_v35 = vsel %vm8930_vm7, 0, %v879_v42  ;;  %v7612_v26 = vadd.s32 4294967169, %v1108_v38 }
 0x140   : > { %v1061_v0 = vadd.s32 536870912, %v1060_v11  ;;  %v998_v32 = vsel %vm991_vm9, %v994_v31, %v997_v57  ;;  %v872_v59 = vand.u32 2147483647, %v871_v30  ;;  %v874_v33 = vcvt.s32.f32 %v867_v17 }
 0x141   : > { %v8958_v51 = vadd.f32 %v8578_v40, %v8616_v61  ;;  %v999_v50 = vsel %vm988_vm6, nan, %v998_v32  ;;  %v1114_v24 = vadd.s32 1, %v7612_v26  ;;  %v885_v60 = vadd.s32 3, %v881_v35 }
 0x142   : > { %v1062_v7 = vshrl.u32 %v1061_v0, 30  ;;  %v7369_v58 = vsel %vm7365_vm5, %v8590_v44, %v999_v50  ;;  %v875_v43 = vmul.f32 %v874_v33, %v872_v59  ;;  %v1111_v3 = vand.u32 8388607, %v1104_v14 }
 0x143   : > { %7433 = vst [vmem:[%s8911_s28 + $0x10] sm:$0xff] %v7369_v58  ;;  %vm1115_vm13 = vcmp.gt.s32.totalorder %v1114_v24, 0  ;;  %v1315_v36 = vand.u32 2139095040, %v8958_v51  ;;  %v14059_v46 = vsub.s32 1, %v8564_v34  ;;  %v8978_v25 = vand.u32 3, %v885_v60 }
 0x144   : > { %v1063_v22 = vshll.u32 %v1062_v7, 30  ;;  %v876_v37 = vxor.u32 2147483648, %v875_v43  ;;  %v1116_v54 = vsel %vm1115_vm13, %v1114_v24, 0  ;;  %vm1002_vm15 = vcmp.lt.s32.totalorder %v8629_v13, 0 }
 0x145   : > { %v8972_v42 = vrot.slane %v8719_v21, %v14059_v46  ;;  %v1118_v44 = vand.u32 31, %v1116_v54  ;;  %v1112_v17 = vor.u32 8388608, %v1111_v3  ;;  %v1086_v5 = vsub.s32 4, %v1062_v7 }
 0x146   : > { %v8974_v28 = vsub.s32 %v1060_v11, %v1063_v22  ;;  %v877_v55 = vsel %vm794_vm8, %v876_v37, %v875_v43  ;;  %v1056_v11 = vadd.s32 %v8899_v6, %v8918_v16  ;;  %v8987_v57 = vshrl.u32 %v1116_v54, 5 }
 0x147   : > { %v880_v8 = vsel %vm8930_vm7, %v8600_v47, %v877_v55  ;;  %v1119_v38 = vsub.s32 32, %v1118_v44  ;;  %v1316_v30 = vshrl.u32 %v1315_v36, 23  ;;  %v1121_v35 = vshll.u32 %v8400_v19, %v1118_v44 }
 0x148   : > { %v1066_v18 = vsub.s32 0, %v8974_v28  ;;  %8143 = vcosq.f32 %v880_v8  ;;  %v1124_v0 = vshll.u32 %v8401_v23, %v1118_v44  ;;  %v1127_v32 = vshll.u32 %v14055_v10, %v1118_v44 }
 0x149   : > { %8145 = vsinq.f32 %v880_v8  ;;  %v1122_v49 = vshrl.u32 %v8401_v23, %v1119_v38  ;;  %v1125_v26 = vshrl.u32 %v14055_v10, %v1119_v38  ;;  %v1128_v59 = vshrl.u32 %v8403_v27, %v1119_v38 }
 0x14a   : > { %v7609_v31 = vmin.u32 %v1066_v18, %v8974_v28  ;;  %v8998_v6 = vsel %vm1002_vm15, %v1086_v5, %v1062_v7  ;;  %v1130_v16 = vshll.u32 %v8403_v27, %v1118_v44  ;;  %v9001_v50 = vshll.u32 %v1112_v17, 8 }
 0x14b   : > { %vm891_vm1 = vcmp.eq.s32.totalorder %v8978_v25, 2  ;;  %v1123_v24 = vor.u32 %v1122_v49, %v1121_v35  ;;  %v1126_v58 = vor.u32 %v1125_v26, %v1124_v0  ;;  %v1129_v43 = vor.u32 %v1128_v59, %v1127_v32 }
 0x14c   : > { %v1068_v33 = vclz %v7609_v31  ;;  %v1131_v60 = vshrl.u32 %v8404_v29, %v1119_v38  ;;  %vm888_vm2 = vcmp.eq.s32.totalorder %v8978_v25, 0  ;;  %v1133_v22 = vshll.u32 %v8404_v29, %v1118_v44 }
 0x14d   : > { %v1134_v37 = vshrl.u32 %v8405_v52, %v1119_v38  ;;  %v7620_v7 = vadd.s32 4294967169, %v1316_v30  ;;  %vm887_vm0 = vcmp.lt.s32.totalorder %v8978_v25, 2  ;;  %vm7364_vm3 = vcmp.eq.s32.totalorder %v8972_v42, 1 }
 0x14e   : > { %v7610_v3 = vadd.s32 4294967294, %v1068_v33  ;;  %v1120_v54 = vshrl.u32 %v8400_v19, %v1119_v38  ;;  %v1132_v36 = vor.u32 %v1131_v60, %v1130_v16  ;;  %vm1136_vm4 = vcmp.lt.s32.totalorder %v8987_v57, 1 }
 0x14f   : > { %vm1139_vm6 = vcmp.lt.s32.totalorder %v8987_v57, 4  ;;  %vm884_vm7 = vweird.f32 %v8600_v47  ;;  %vm9016_vm8 = vcmp.le.f32.partialorder %v1000_v20, 0.7853982  ;;  %v1135_v44 = vor.u32 %v1134_v37, %v1133_v22  ;;  %v9028_v20 = vpop.f32.mrb[5].mxu1 }
 0x150   : > { %vm7611_vm9 = vcmp.lt.s32.totalorder %v7610_v3, 0  ;;  %vm1137_vm10 = vcmp.lt.s32.totalorder %v8987_v57, 2  ;;  %v1141_v55 = vsel %vm1139_vm6, %v1129_v43, 2102212464  ;;  %vm1138_vm11 = vcmp.lt.s32.totalorder %v8987_v57, 3 }
 0x151   : > { %v1071_v17 = vsel %vm7611_vm9, 0, %v7610_v3  ;;  %v1144_v8 = vsel %vm1136_vm4, %v1123_v24, %v1126_v58  ;;  %v1145_v18 = vsel %vm1139_vm6, %v1132_v36, 920167782  ;;  %v1140_v30 = vsel %vm1136_vm4, %v1120_v54, %v1123_v24 }
 0x152   : > { %v1072_v5 = vsub.s32 32, %v1071_v17  ;;  %v1076_v38 = vsub.s32 4294967266, %v1071_v17  ;;  %v1142_v31 = vsel %vm1138_vm11, %v1126_v58, %v1141_v55  ;;  %v8144_v35 = vpop.eup %8143  ;;  %v1073_v0 = vshll.u32 %v8974_v28, %v1071_v17 }
 0x153   : > { %v1146_v49 = vsel %vm1138_vm11, %v1129_v43, %v1145_v18  ;;  %v1148_v26 = vsel %vm1136_vm4, %v1126_v58, %v1129_v43  ;;  %v1149_v32 = vsel %vm1139_vm6, %v1135_v44, 1326507024  ;;  %v8146_v59 = vpop.eup %8145  ;;  %v892_v33 = vxor.u32 2147483648, %v8144_v35 }
 0x154   : > { %v1074_v16 = vshrl.u32 %v1056_v11, %v1072_v5  ;;  %v1077_v60 = vadd.s32 127, %v1076_v38  ;;  %v1147_v24 = vsel %vm1137_vm10, %v1144_v8, %v1146_v49  ;;  %v889_v3 = vxor.u32 2147483648, %v8146_v59 }
 0x155   : > { %v1150_v28 = vsel %vm1138_vm11, %v1132_v36, %v1149_v32  ;;  %v9046_v22 = vmul.u32.u64.low %v9001_v50, %v1147_v24  ;;  %v9047_v37 = vmul.u32.u64.high %v9001_v50, %v1147_v24, %v9046_v22  ;;  %v893_v58 = vsel %vm891_vm1, %v892_v33, %v8146_v59 }
 0x156   : > { %v1075_v43 = vor.u32 %v1074_v16, %v1073_v0  ;;  %v1078_v54 = vshll.u32 %v1077_v60, 23  ;;  %v1151_v11 = vsel %vm1137_vm10, %v1148_v26, %v1150_v28  ;;  %v890_v44 = vsel %vm888_vm2, %v8144_v35, %v889_v3 }
 0x157   : > { %v9057_v55 = vmul.u32.u64.low %v9001_v50, %v1151_v11  ;;  %v9058_v36 = vmul.u32.u64.high %v9001_v50, %v1151_v11, %v9057_v55  ;;  %v1322_v17 = vadd.s32 1, %v7620_v7  ;;  %v894_v8 = vsel %vm887_vm0, %v890_v44, %v893_v58 }
 0x158   : > { %v1079_v18 = vor.u32 4788187, %v1078_v54  ;;  %v1143_v5 = vsel %vm1137_vm10, %v1140_v30, %v1142_v31  ;;  %v1312_v38 = vand.u32 2147483647, %v8958_v51  ;;  %v895_v0 = vsel %vm884_vm7, nan, %v894_v8 }
 0x159   : > { %v1089_v35 = vsel %vm9016_vm8, 0, %v8998_v6  ;;  %v1162_v49 = vadd.s32 1, %v9047_v37  ;;  %vm1323_vm12 = vcmp.gt.s32.totalorder %v1322_v17, 0  ;;  %v7368_v25 = vsel %vm7364_vm3, %v8592_v45, %v895_v0 }
 0x15a   : > { %v1080_v7 = vand.u32 2147483647, %v1079_v18  ;;  %v1082_v26 = vcvt.s32.f32 %v1075_v43  ;;  %v1324_v57 = vsel %vm1323_vm12, %v1322_v17, 0  ;;  %7432 = vst [vmem:[%s8911_s28 + $0x8] sm:$0xff] %v7368_v25  ;;  %v1159_v30 = vmul.u32 %v9001_v50, %v1143_v5 }
 0x15b   : > { %vm1161_vm13 = vc.u32 %v9058_v36, %v9046_v22  ;;  %v1326_v47 = vand.u32 31, %v1324_v57  ;;  %v1319_v32 = vand.u32 8388607, %v1312_v38  ;;  %v9083_v59 = vadd.f32 %v8582_v41, %v8618_v62 }
 0x15c   : > { %v1083_v31 = vmul.f32 %v1082_v26, %v1080_v7  ;;  %v1163_v6 = vsel %vm1161_vm13, %v1162_v49, %v9047_v37  ;;  %v1093_v45 = vadd.s32 3, %v1089_v35  ;;  %v9085_v16 = vshrl.u32 %v1324_v57, 5 }
 0x15d   : > { %v1164_v33 = vadd.s32 %v1163_v6, %v1159_v30  ;;  %v1327_v60 = vsub.s32 32, %v1326_v47  ;;  %v1329_v24 = vshll.u32 %v8400_v19, %v1326_v47  ;;  %v1332_v3 = vshll.u32 %v8401_v23, %v1326_v47 }
 0x15e   : > { %v1084_v50 = vxor.u32 2147483648, %v1083_v31  ;;  %v1335_v28 = vshll.u32 %v14055_v10, %v1326_v47  ;;  %v1338_v54 = vshll.u32 %v8403_v27, %v1326_v47  ;;  %v1320_v35 = vor.u32 8388608, %v1319_v32 }
 0x15f   : > { %v1165_v37 = vadd.s32 536870912, %v1164_v33  ;;  %v1330_v58 = vshrl.u32 %v8401_v23, %v1327_v60  ;;  %v1333_v43 = vshrl.u32 %v14055_v10, %v1327_v60  ;;  %v1336_v44 = vshrl.u32 %v8403_v27, %v1327_v60 }
 0x160   : > { %v1085_v11 = vsel %vm1002_vm15, %v1084_v50, %v1083_v31  ;;  %v1339_v55 = vshrl.u32 %v8404_v29, %v1327_v60  ;;  %v1342_v17 = vshrl.u32 %v8405_v52, %v1327_v60  ;;  %v1341_v25 = vshll.u32 %v8404_v29, %v1326_v47 }
 0x161   : > { %v1088_v8 = vsel %vm9016_vm8, %v8629_v13, %v1085_v11  ;;  %v9101_v18 = vshrl.u32 %v1165_v37, 30  ;;  %v1331_v5 = vor.u32 %v1330_v58, %v1329_v24  ;;  %v1334_v0 = vor.u32 %v1333_v43, %v1332_v3 }
 0x162   : > { %8147 = vcosq.f32 %v1088_v8  ;;  %v1340_v49 = vor.u32 %v1339_v55, %v1338_v54  ;;  %v1337_v26 = vor.u32 %v1336_v44, %v1335_v28  ;;  %v14062_v57 = vsub.s32 3, %v8564_v34 }
 0x163   : > { %8149 = vsinq.f32 %v1088_v8  ;;  %v1167_v7 = vshll.u32 %v9101_v18, 30  ;;  %v1343_v46 = vor.u32 %v1342_v17, %v1341_v25  ;;  %vm1344_vm15 = vcmp.lt.s32.totalorder %v9085_v16, 1 }
 0x164   : > { %v9108_v30 = vrot.slane %v8719_v21, %v14062_v57  ;;  %v1211_v31 = vand.u32 2139095040, %v9083_v59  ;;  %v1094_v6 = vand.u32 3, %v1093_v45  ;;  %vm1347_vm1 = vcmp.lt.s32.totalorder %v9085_v16, 4 }
 0x165   : > { %v9112_v50 = vsub.s32 %v1164_v33, %v1167_v7  ;;  %v1352_v47 = vsel %vm1344_vm15, %v1331_v5, %v1334_v0  ;;  %vm1346_vm2 = vcmp.lt.s32.totalorder %v9085_v16, 3  ;;  %v1353_v32 = vsel %vm1347_vm1, %v1340_v49, 920167782 }
 0x166   : > { %v1360_v34 = vshll.u32 %v1320_v35, 8  ;;  %vm1106_vm0 = vcmp.lt.s32.totalorder %v8867_v2, 0  ;;  %vm1345_vm4 = vcmp.lt.s32.totalorder %v9085_v16, 2  ;;  %v1354_v45 = vsel %vm1346_vm2, %v1337_v26, %v1353_v32 }
 0x167   : > { %v1170_v21 = vsub.s32 0, %v9112_v50  ;;  %v1356_v33 = vsel %vm1344_vm15, %v1334_v0, %v1337_v26  ;;  %vm7366_vm6 = vcmp.eq.s32.totalorder %v9108_v30, 1  ;;  %v1349_v24 = vsel %vm1347_vm1, %v1337_v26, 2102212464 }
 0x168   : > { %v1355_v3 = vsel %vm1345_vm4, %v1352_v47, %v1354_v45  ;;  %v1357_v28 = vsel %vm1347_vm1, %v1343_v46, 1326507024  ;;  %v1212_v37 = vshrl.u32 %v1211_v31, 23  ;;  %vm1092_vm7 = vweird.f32 %v8629_v13 }
 0x169   : > { %vm1095_vm8 = vcmp.lt.s32.totalorder %v1094_v6, 2  ;;  %vm7434_vm9 = vcmask 982016   ;;  %v7613_v58 = vmin.u32 %v1170_v21, %v9112_v50  ;;  %v1328_v43 = vshrl.u32 %v8400_v19, %v1327_v60 }
 0x16a   : > { %v1358_v54 = vsel %vm1346_vm2, %v1340_v49, %v1357_v28  ;;  %v9135_v44 = vmul.u32.u64.low %v1360_v34, %v1355_v3  ;;  %v9136_v55 = vmul.u32.u64.high %v1360_v34, %v1355_v3, %v9135_v44  ;;  %v7616_v17 = vadd.s32 4294967169, %v1212_v37 }
 0x16b   : > { %v1359_v11 = vsel %vm1345_vm4, %v1356_v33, %v1358_v54  ;;  %vm1096_vm10 = vcmp.eq.s32.totalorder %v1094_v6, 0  ;;  %v1172_v8 = vclz %v7613_v58  ;;  %v1348_v35 = vsel %vm1344_vm15, %v1328_v43, %v1331_v5 }
 0x16c   : > { %v1350_v25 = vsel %vm1346_vm2, %v1334_v0, %v1349_v24  ;;  %v8148_v60 = vpop.eup %8147  ;;  %v1190_v7 = vsub.s32 4, %v9101_v18  ;;  %v9144_v49 = vmul.u32.u64.low %v1360_v34, %v1359_v11  ;;  %v9145_v26 = vmul.u32.u64.high %v1360_v34, %v1359_v11, %v9144_v49 }
 0x16d   : > { %v1218_v57 = vadd.s32 1, %v7616_v17  ;;  %v8150_v46 = vpop.eup %8149  ;;  %vm1099_vm11 = vcmp.eq.s32.totalorder %v1094_v6, 2  ;;  %v1100_v31 = vxor.u32 2147483648, %v8148_v60  ;;  %v7614_v47 = vadd.s32 4294967294, %v1172_v8  ;;  %v9167_v6 = vpop.f32.mrb[6].mxu0 }
 0x16e   : > { %v1208_v32 = vand.u32 2147483647, %v9083_v59  ;;  %v1097_v21 = vxor.u32 2147483648, %v8150_v46  ;;  %v1351_v5 = vsel %vm1345_vm4, %v1348_v35, %v1350_v25  ;;  %v1370_v45 = vadd.s32 1, %v9136_v55 }
 0x16f   : > { %vm1219_vm12 = vcmp.gt.s32.totalorder %v1218_v57, 0  ;;  %v1101_v0 = vsel %vm1099_vm11, %v1100_v31, %v8150_v46  ;;  %v1160_v33 = vadd.s32 %v9046_v22, %v9058_v36  ;;  %vm7615_vm13 = vcmp.lt.s32.totalorder %v7614_v47, 0 }
 0x170   : > { %v1220_v24 = vsel %vm1219_vm12, %v1218_v57, 0  ;;  %v1098_v3 = vsel %vm1096_vm10, %v8148_v60, %v1097_v21  ;;  %v1175_v28 = vsel %vm7615_vm13, 0, %v7614_v47  ;;  %v1191_v37 = vsel %vm1106_vm0, %v1190_v7, %v9101_v18 }
 0x171   : > { %vm1369_vm15 = vc.u32 %v9145_v26, %v9135_v44  ;;  %v1102_v16 = vsel %vm1095_vm8, %v1098_v3, %v1101_v0  ;;  %v1176_v58 = vsub.s32 32, %v1175_v28  ;;  %v1180_v43 = vsub.s32 4294967266, %v1175_v28 }
 0x172   : > { %v1367_v54 = vmul.u32 %v1360_v34, %v1351_v5  ;;  %v1103_v22 = vsel %vm1092_vm7, nan, %v1102_v16  ;;  %v1177_v36 = vshll.u32 %v9112_v50, %v1175_v28  ;;  %v1371_v11 = vsel %vm1369_vm15, %v1370_v45, %v9136_v55 }
 0x173   : > { %v1222_v17 = vand.u32 31, %v1220_v24  ;;  %v7370_v18 = vsel %vm7366_vm6, %v8602_v48, %v1103_v22  ;;  %v1178_v8 = vshrl.u32 %v1160_v33, %v1176_v58  ;;  %v1181_v35 = vadd.s32 127, %v1180_v43 }
 0x174   : > { %v1372_v25 = vadd.s32 %v1371_v11, %v1367_v54  ;;  %7435 = vst.msk [vmem:[%s8911_s28 + $0x18] sm:$0xff] %vm7434_vm9, %v7370_v18  ;;  %vm9173_vm1 = vcmp.le.f32.partialorder %v1104_v14, 0.7853982  ;;  %v1215_v48 = vand.u32 8388607, %v1208_v32  ;;  %v1221_v5 = vshrl.u32 %v1220_v24, 5 }
 0x175   : > { %v1223_v50 = vsub.s32 32, %v1222_v17  ;;  %v1179_v34 = vor.u32 %v1178_v8, %v1177_v36  ;;  %v1182_v55 = vshll.u32 %v1181_v35, 23  ;;  %v1193_v7 = vsel %vm9173_vm1, 0, %v1191_v37 }
 0x176   : > { %v1373_v60 = vadd.s32 536870912, %v1372_v25  ;;  %v1225_v49 = vshll.u32 %v8400_v19, %v1222_v17  ;;  %v1228_v45 = vshll.u32 %v8401_v23, %v1222_v17  ;;  %v1231_v0 = vshll.u32 %v14055_v10, %v1222_v17 }
 0x177   : > { %v1226_v57 = vshrl.u32 %v8401_v23, %v1223_v50  ;;  %v1229_v46 = vshrl.u32 %v14055_v10, %v1223_v50  ;;  %v1183_v14 = vor.u32 4788187, %v1182_v55  ;;  %v1232_v47 = vshrl.u32 %v8403_v27, %v1223_v50 }
 0x178   : > { %v1374_v31 = vshrl.u32 %v1373_v60, 30  ;;  %v1235_v21 = vshrl.u32 %v8404_v29, %v1223_v50  ;;  %v1234_v33 = vshll.u32 %v8403_v27, %v1222_v17  ;;  %v1186_v28 = vcvt.s32.f32 %v1179_v34 }
 0x179   : > { %v1184_v3 = vand.u32 2147483647, %v1183_v14  ;;  %v1227_v16 = vor.u32 %v1226_v57, %v1225_v49  ;;  %v1230_v58 = vor.u32 %v1229_v46, %v1228_v45  ;;  %v1237_v54 = vshll.u32 %v8404_v29, %v1222_v17 }
 0x17a   : > { %v1375_v37 = vshll.u32 %v1374_v31, 30  ;;  %v1236_v43 = vor.u32 %v1235_v21, %v1234_v33  ;;  %v1238_v22 = vshrl.u32 %v8405_v52, %v1223_v50  ;;  %v1197_v11 = vadd.s32 3, %v1193_v7 }
 0x17b   : > { %v1187_v36 = vmul.f32 %v1186_v28, %v1184_v3  ;;  %v1233_v24 = vor.u32 %v1232_v47, %v1231_v0  ;;  %v1216_v8 = vor.u32 8388608, %v1215_v48  ;;  %v1224_v35 = vshrl.u32 %v8400_v19, %v1223_v50 }
 0x17c   : > { %v9191_v18 = vsub.s32 %v1372_v25, %v1375_v37  ;;  %v1239_v55 = vor.u32 %v1238_v22, %v1237_v54  ;;  %v9196_v34 = vadd.f32 %v8624_v4, %v8620_v1  ;;  %vm1240_vm2 = vcmp.lt.s32.totalorder %v1221_v5, 1 }
 0x17d   : > { %v1188_v60 = vxor.u32 2147483648, %v1187_v36  ;;  %vm1243_vm4 = vcmp.lt.s32.totalorder %v1221_v5, 4  ;;  %vm1241_vm7 = vcmp.lt.s32.totalorder %v1221_v5, 2  ;;  %vm1242_vm8 = vcmp.lt.s32.totalorder %v1221_v5, 3 }
 0x17e   : > { %v1378_v49 = vsub.s32 0, %v9191_v18  ;;  %v1248_v17 = vsel %vm1240_vm2, %v1227_v16, %v1230_v58  ;;  %v1249_v25 = vsel %vm1243_vm4, %v1236_v43, 920167782  ;;  %v1245_v7 = vsel %vm1243_vm4, %v1233_v24, 2102212464 }
 0x17f   : > { %v1189_v48 = vsel %vm1106_vm0, %v1188_v60, %v1187_v36  ;;  %v1250_v57 = vsel %vm1242_vm8, %v1233_v24, %v1249_v25  ;;  %v1252_v47 = vsel %vm1240_vm2, %v1230_v58, %v1233_v24  ;;  %v1253_v21 = vsel %vm1243_vm4, %v1239_v55, 1326507024  ;;  %v9216_v60 = vpop.f32.mrb[6].mxu1 }
 0x180   : > { %v7621_v50 = vmin.u32 %v1378_v49, %v9191_v18  ;;  %v1192_v46 = vsel %vm9173_vm1, %v8867_v2, %v1189_v48  ;;  %v1251_v14 = vsel %vm1241_vm7, %v1248_v17, %v1250_v57  ;;  %v1398_v0 = vsub.s32 4, %v1374_v31 }
 0x181   : > { %8151 = vcosq.f32 %v1192_v46  ;;  %v1256_v33 = vshll.u32 %v1216_v8, 8  ;;  %v1244_v3 = vsel %vm1240_vm2, %v1224_v35, %v1227_v16  ;;  %v1246_v28 = vsel %vm1242_vm8, %v1230_v58, %v1245_v7 }
 0x182   : > { %v1380_v45 = vclz %v7621_v50  ;;  %8153 = vsinq.f32 %v1192_v46  ;;  %v1254_v37 = vsel %vm1242_vm8, %v1236_v43, %v1253_v21  ;;  %vm1314_vm0 = vcmp.lt.s32.totalorder %v8958_v51, 0 }
 0x183   : > { %v1255_v13 = vsel %vm1241_vm7, %v1252_v47, %v1254_v37  ;;  %v9213_v22 = vmul.u32.u64.low %v1256_v33, %v1251_v14  ;;  %v9214_v36 = vmul.u32.u64.high %v1256_v33, %v1251_v14, %v9213_v22  ;;  %v1419_v8 = vand.u32 2139095040, %v9196_v34 }
 0x184   : > { %v7622_v54 = vadd.s32 4294967294, %v1380_v45  ;;  %v9219_v24 = vmul.u32.u64.low %v1256_v33, %v1255_v13  ;;  %v9220_v55 = vmul.u32.u64.high %v1256_v33, %v1255_v13, %v9219_v24  ;;  %vm9225_vm10 = vcmp.le.f32.partialorder %v1312_v38, 0.7853982 }
 0x185   : > { %v1399_v58 = vsel %vm1314_vm0, %v1398_v0, %v1374_v31  ;;  %v1247_v43 = vsel %vm1241_vm7, %v1244_v3, %v1246_v28  ;;  %v1198_v35 = vand.u32 3, %v1197_v11  ;;  %v1420_v17 = vshrl.u32 %v1419_v8, 23 }
 0x186   : > { %vm7623_vm11 = vcmp.lt.s32.totalorder %v7622_v54, 0  ;;  %v9234_v25 = vadd.f32 %v8574_v39, %v8727_v15  ;;  %v1368_v48 = vadd.s32 %v9135_v44, %v9145_v26  ;;  %v1266_v7 = vadd.s32 1, %v9214_v36 }
 0x187   : > { %v1383_v49 = vsel %vm7623_vm11, 0, %v7622_v54  ;;  %vm1196_vm12 = vweird.f32 %v8867_v2  ;;  %v1401_v31 = vsel %vm9225_vm10, 0, %v1399_v58  ;;  %v1263_v5 = vmul.u32 %v1256_v33, %v1247_v43 }
 0x188   : > { %v1384_v38 = vsub.s32 32, %v1383_v49  ;;  %v1388_v50 = vsub.s32 4294967266, %v1383_v49  ;;  %vm1265_vm13 = vc.u32 %v9220_v55, %v9213_v22  ;;  %v7624_v11 = vadd.s32 4294967169, %v1420_v17 }
 0x189   : > { %v1385_v57 = vshll.u32 %v9191_v18, %v1383_v49  ;;  %v1267_v47 = vsel %vm1265_vm13, %v1266_v7, %v9214_v36  ;;  %vm1199_vm15 = vcmp.lt.s32.totalorder %v1198_v35, 2  ;;  %v1416_v26 = vand.u32 2147483647, %v9196_v34 }
 0x18a   : > { %v1386_v46 = vshrl.u32 %v1368_v48, %v1384_v38  ;;  %v1389_v14 = vadd.s32 127, %v1388_v50  ;;  %v1268_v44 = vadd.s32 %v1267_v47, %v1263_v5  ;;  %v1426_v21 = vadd.s32 1, %v7624_v11 }
 0x18b   : > { %v8152_v45 = vpop.eup %8151  ;;  %vm1200_vm1 = vcmp.eq.s32.totalorder %v1198_v35, 0  ;;  %v1405_v28 = vadd.s32 3, %v1401_v31  ;;  %v1523_v18 = vand.u32 2139095040, %v9234_v25  ;;  %vm1203_vm4 = vcmp.eq.s32.totalorder %v1198_v35, 2 }
 0x18c   : > { %v1387_v0 = vor.u32 %v1386_v46, %v1385_v57  ;;  %v1390_v3 = vshll.u32 %v1389_v14, 23  ;;  %v8154_v33 = vpop.eup %8153  ;;  %v1204_v37 = vxor.u32 2147483648, %v8152_v45  ;;  %v1269_v54 = vadd.s32 536870912, %v1268_v44 }
 0x18d   : > { %vm1427_vm2 = vcmp.gt.s32.totalorder %v1426_v21, 0  ;;  %v1201_v13 = vxor.u32 2147483648, %v8154_v33  ;;  %v1423_v43 = vand.u32 8388607, %v1416_v26  ;;  %v9252_v50 = vand.u32 3, %v1405_v28 }
 0x18e   : > { %v1391_v24 = vor.u32 4788187, %v1390_v3  ;;  %v1428_v36 = vsel %vm1427_vm2, %v1426_v21, 0  ;;  %v1205_v8 = vsel %vm1203_vm4, %v1204_v37, %v8154_v33  ;;  %v9247_v58 = vshrl.u32 %v1269_v54, 30 }
 0x18f   : > { %v1430_v49 = vand.u32 31, %v1428_v36  ;;  %v1202_v17 = vsel %vm1200_vm1, %v8152_v45, %v1201_v13  ;;  %v1394_v38 = vcvt.s32.f32 %v1387_v0  ;;  %v1524_v11 = vshrl.u32 %v1523_v18, 23 }
 0x190   : > { %v1392_v48 = vand.u32 2147483647, %v1391_v24  ;;  %v1206_v7 = vsel %vm1199_vm15, %v1202_v17, %v1205_v8  ;;  %v1271_v31 = vshll.u32 %v9247_v58, 30  ;;  %v1264_v14 = vadd.s32 %v9213_v22, %v9220_v55 }
 0x191   : > { %v1431_v5 = vsub.s32 32, %v1430_v49  ;;  %v1207_v57 = vsel %vm1196_vm12, nan, %v1206_v7  ;;  %v1520_v47 = vand.u32 2147483647, %v9234_v25  ;;  %v1424_v35 = vor.u32 8388608, %v1423_v43 }
 0x192   : > { %v1395_v46 = vmul.f32 %v1394_v38, %v1392_v48  ;;  %v7371_v21 = vsel %vm7363_vm14, %v8608_v53, %v1207_v57  ;;  %v9263_v45 = vsub.s32 %v1268_v44, %v1271_v31  ;;  %v1433_v0 = vshll.u32 %v8400_v19, %v1430_v49 }
 0x193   : > { %7436 = vst [vmem:[%s8911_s28 + $0x20] sm:$0xff] %v7371_v21  ;;  %v1434_v28 = vshrl.u32 %v8401_v23, %v1431_v5  ;;  %v1436_v2 = vshll.u32 %v8401_v23, %v1430_v49  ;;  %v1437_v33 = vshrl.u32 %v14055_v10, %v1431_v5  ;;  %v1439_v55 = vshll.u32 %v14055_v10, %v1430_v49 }
 0x194   : > { %v1396_v3 = vxor.u32 2147483648, %v1395_v46  ;;  %v1274_v22 = vsub.s32 0, %v9263_v45  ;;  %v1440_v37 = vshrl.u32 %v8403_v27, %v1431_v5  ;;  %v7628_v53 = vadd.s32 4294967169, %v1524_v11 }
 0x195   : > { %v1429_v54 = vshrl.u32 %v1428_v36, 5  ;;  %v1435_v18 = vor.u32 %v1434_v28, %v1433_v0  ;;  %v1438_v13 = vor.u32 %v1437_v33, %v1436_v2  ;;  %v1442_v17 = vshll.u32 %v8403_v27, %v1430_v49 }
 0x196   : > { %v1397_v44 = vsel %vm1314_vm0, %v1396_v3, %v1395_v46  ;;  %v7617_v8 = vmin.u32 %v1274_v22, %v9263_v45  ;;  %v1441_v43 = vor.u32 %v1440_v37, %v1439_v55  ;;  %v1443_v48 = vshrl.u32 %v8404_v29, %v1431_v5 }
 0x197   : > { %v1400_v24 = vsel %vm9225_vm10, %v8958_v51, %v1397_v44  ;;  %v1445_v38 = vshll.u32 %v8404_v29, %v1430_v49  ;;  %v1446_v7 = vshrl.u32 %v8405_v52, %v1431_v5  ;;  %vm1210_vm7 = vcmp.lt.s32.totalorder %v9083_v59, 0 }
 0x198   : > { %8155 = vcosq.f32 %v1400_v24  ;;  %v1276_v36 = vclz %v7617_v8  ;;  %v9284_v31 = vshll.u32 %v1424_v35, 8  ;;  %v9288_v16 = vand.u32 8388607, %v1520_v47 }
 0x199   : > { %8157 = vsinq.f32 %v1400_v24  ;;  %v1294_v11 = vsub.s32 4, %v9247_v58  ;;  %v1444_v57 = vor.u32 %v1443_v48, %v1442_v17  ;;  %v1447_v46 = vor.u32 %v1446_v7, %v1445_v38 }
 0x19a   : > { %v1530_v21 = vadd.s32 1, %v7628_v53  ;;  %v7618_v0 = vadd.s32 4294967294, %v1276_v36  ;;  %v1432_v49 = vshrl.u32 %v8400_v19, %v1431_v5  ;;  %vm1448_vm8 = vcmp.lt.s32.totalorder %v1429_v54, 1 }
 0x19b   : > { %vm1451_vm0 = vcmp.lt.s32.totalorder %v1429_v54, 4  ;;  %vm9294_vm10 = vcmp.le.f32.partialorder %v1208_v32, 0.7853982  ;;  %vm1450_vm11 = vcmp.lt.s32.totalorder %v1429_v54, 3  ;;  %v1456_v28 = vsel %vm1448_vm8, %v1435_v18, %v1438_v13 }
 0x19c   : > { %v1453_v35 = vsel %vm1451_vm0, %v1441_v43, 2102212464  ;;  %v1457_v2 = vsel %vm1451_vm0, %v1444_v57, 920167782  ;;  %vm7619_vm12 = vcmp.lt.s32.totalorder %v7618_v0, 0  ;;  %vm1449_vm13 = vcmp.lt.s32.totalorder %v1429_v54, 2 }
 0x19d   : > { %v1458_v33 = vsel %vm1450_vm11, %v1441_v43, %v1457_v2  ;;  %v1460_v22 = vsel %vm1448_vm8, %v1438_v13, %v1441_v43  ;;  %vm1407_vm15 = vcmp.lt.s32.totalorder %v9252_v50, 2  ;;  %v1279_v5 = vsel %vm7619_vm12, 0, %v7618_v0 }
 0x19e   : > { %v1452_v55 = vsel %vm1448_vm8, %v1432_v49, %v1435_v18  ;;  %v1459_v37 = vsel %vm1449_vm13, %v1456_v28, %v1458_v33  ;;  %v1461_v53 = vsel %vm1451_vm0, %v1447_v46, 1326507024  ;;  %vm1404_vm1 = vweird.f32 %v8958_v51 }
 0x19f   : > { %v1280_v32 = vsub.s32 32, %v1279_v5  ;;  %v1284_v44 = vsub.s32 4294967266, %v1279_v5  ;;  %v1454_v24 = vsel %vm1450_vm11, %v1438_v13, %v1453_v35  ;;  %v1462_v8 = vsel %vm1450_vm11, %v1444_v57, %v1461_v53 }
 0x1a0   : > { %v1281_v17 = vshll.u32 %v9263_v45, %v1279_v5  ;;  %v1463_v48 = vsel %vm1449_vm13, %v1460_v22, %v1462_v8  ;;  %v9307_v43 = vmul.u32.u64.low %v9284_v31, %v1459_v37  ;;  %v9308_v38 = vmul.u32.u64.high %v9284_v31, %v1459_v37, %v9307_v43  ;;  %v9322_v5 = vpop.f32.mrb[7].mxu0 }
 0x1a1   : > { %v1282_v18 = vshrl.u32 %v1264_v14, %v1280_v32  ;;  %v1285_v7 = vadd.s32 127, %v1284_v44  ;;  %v9312_v36 = vmul.u32.u64.low %v9284_v31, %v1463_v48  ;;  %v9313_v46 = vmul.u32.u64.high %v9284_v31, %v1463_v48, %v9312_v36 }
 0x1a2   : > { %v8156_v0 = vpop.eup %8155  ;;  %vm1408_vm2 = vcmp.eq.s32.totalorder %v9252_v50, 0  ;;  %v1295_v45 = vsel %vm1210_vm7, %v1294_v11, %v9247_v58  ;;  %v1455_v13 = vsel %vm1449_vm13, %v1452_v55, %v1454_v24  ;;  %vm1531_vm4 = vcmp.gt.s32.totalorder %v1530_v21, 0 }
 0x1a3   : > { %v8158_v57 = vpop.eup %8157  ;;  %v1412_v49 = vxor.u32 2147483648, %v8156_v0  ;;  %v1283_v35 = vor.u32 %v1282_v18, %v1281_v17  ;;  %v1286_v28 = vshll.u32 %v1285_v7, 23  ;;  %v1532_v14 = vsel %vm1531_vm4, %v1530_v21, 0 }
 0x1a4   : > { %v1409_v2 = vxor.u32 2147483648, %v8158_v57  ;;  %vm1411_vm8 = vcmp.eq.s32.totalorder %v9252_v50, 2  ;;  %v1474_v33 = vadd.s32 1, %v9308_v38  ;;  %v1534_v22 = vand.u32 31, %v1532_v14 }
 0x1a5   : > { %v1413_v37 = vsel %vm1411_vm8, %v1412_v49, %v8158_v57  ;;  %v1287_v53 = vor.u32 4788187, %v1286_v28  ;;  %v1297_v58 = vsel %vm9294_vm10, 0, %v1295_v45  ;;  %v1528_v54 = vor.u32 8388608, %v9288_v16 }
 0x1a6   : > { %v1410_v11 = vsel %vm1408_vm2, %v8156_v0, %v1409_v2  ;;  %v1471_v21 = vmul.u32 %v9284_v31, %v1455_v13  ;;  %vm1473_vm0 = vc.u32 %v9313_v46, %v9307_v43  ;;  %v1535_v55 = vsub.s32 32, %v1534_v22 }
 0x1a7   : > { %v1414_v32 = vsel %vm1407_vm15, %v1410_v11, %v1413_v37  ;;  %v1288_v44 = vand.u32 2147483647, %v1287_v53  ;;  %v1290_v24 = vcvt.s32.f32 %v1283_v35  ;;  %v1475_v8 = vsel %vm1473_vm0, %v1474_v33, %v9308_v38 }
 0x1a8   : > { %v1415_v16 = vsel %vm1404_vm1, nan, %v1414_v32  ;;  %v1476_v17 = vadd.s32 %v1475_v8, %v1471_v21  ;;  %v1533_v48 = vshrl.u32 %v1532_v14, 5  ;;  %v1538_v18 = vshrl.u32 %v8401_v23, %v1535_v55 }
 0x1a9   : > { %v7373_v31 = vsel %vm7365_vm5, %v8616_v61, %v1415_v16  ;;  %v1291_v7 = vmul.f32 %v1290_v24, %v1288_v44  ;;  %v1537_v36 = vshll.u32 %v8400_v19, %v1534_v22  ;;  %v1541_v50 = vshrl.u32 %v14055_v10, %v1535_v55 }
 0x1aa   : > { %7438 = vst [vmem:[%s8911_s28 + $0x30] sm:$0xff] %v7373_v31  ;;  %v1477_v0 = vadd.s32 536870912, %v1476_v17  ;;  %v1540_v38 = vshll.u32 %v8401_v23, %v1534_v22  ;;  %v1543_v51 = vshll.u32 %v14055_v10, %v1534_v22  ;;  %v1544_v45 = vshrl.u32 %v8403_v27, %v1535_v55 }
 0x1ab   : > { %v1292_v13 = vxor.u32 2147483648, %v1291_v7  ;;  %v1539_v57 = vor.u32 %v1538_v18, %v1537_v36  ;;  %v1546_v49 = vshll.u32 %v8403_v27, %v1534_v22  ;;  %v1547_v35 = vshrl.u32 %v8404_v29, %v1535_v55 }
 0x1ac   : > { %v1478_v61 = vshrl.u32 %v1477_v0, 30  ;;  %v1542_v28 = vor.u32 %v1541_v50, %v1540_v38  ;;  %v1545_v14 = vor.u32 %v1544_v45, %v1543_v51  ;;  %v1550_v2 = vshrl.u32 %v8405_v52, %v1535_v55 }
 0x1ad   : > { %v1293_v33 = vsel %vm1210_vm7, %v1292_v13, %v1291_v7  ;;  %v1301_v37 = vadd.s32 3, %v1297_v58  ;;  %v1548_v53 = vor.u32 %v1547_v35, %v1546_v49  ;;  %v1549_v11 = vshll.u32 %v8404_v29, %v1534_v22 }
 0x1ae   : > { %v1296_v21 = vsel %vm9294_vm10, %v9083_v59, %v1293_v33  ;;  %v1479_v32 = vshll.u32 %v1478_v61, 30  ;;  %v9356_v44 = vshll.u32 %v1528_v54, 8  ;;  %v9360_v24 = vadd.f32 %v8578_v40, %v8808_v63 }
 0x1af   : > { %8159 = vcosq.f32 %v1296_v21  ;;  %v1551_v8 = vor.u32 %v1550_v2, %v1549_v11  ;;  %vm1552_vm11 = vcmp.lt.s32.totalorder %v1533_v48, 1  ;;  %vm1555_vm12 = vcmp.lt.s32.totalorder %v1533_v48, 4 }
 0x1b0   : > { %8161 = vsinq.f32 %v1296_v21  ;;  %v9362_v58 = vsub.s32 %v1476_v17, %v1479_v32  ;;  %v1557_v22 = vsel %vm1555_vm12, %v1545_v14, 2102212464  ;;  %v1560_v16 = vsel %vm1552_vm11, %v1539_v57, %v1542_v28 }
 0x1b1   : > { %v1536_v3 = vshrl.u32 %v8400_v19, %v1535_v55  ;;  %vm1553_vm7 = vcmp.lt.s32.totalorder %v1533_v48, 2  ;;  %vm1554_vm10 = vcmp.lt.s32.totalorder %v1533_v48, 3  ;;  %v1561_v54 = vsel %vm1555_vm12, %v1548_v53, 920167782 }
 0x1b2   : > { %v1482_v18 = vsub.s32 0, %v9362_v58  ;;  %v1502_v31 = vsub.s32 4, %v1478_v61  ;;  %v1562_v7 = vsel %vm1554_vm10, %v1545_v14, %v1561_v54  ;;  %v1564_v36 = vsel %vm1552_vm11, %v1542_v28, %v1545_v14 }
 0x1b3   : > { %v1556_v50 = vsel %vm1552_vm11, %v1536_v3, %v1539_v57  ;;  %v1558_v0 = vsel %vm1554_vm10, %v1542_v28, %v1557_v22  ;;  %v1563_v38 = vsel %vm1553_vm7, %v1560_v16, %v1562_v7  ;;  %v1565_v17 = vsel %vm1555_vm12, %v1551_v8, 1326507024  ;;  %v9401_v22 = vpop.f32.mrb[7].mxu1 }
 0x1b4   : > { %v1302_v51 = vand.u32 3, %v1301_v37  ;;  %v7625_v45 = vmin.u32 %v1482_v18, %v9362_v58  ;;  %v1566_v13 = vsel %vm1554_vm10, %v1548_v53, %v1565_v17  ;;  %vm1418_vm13 = vcmp.lt.s32.totalorder %v9196_v34, 0 }
 0x1b5   : > { %v1567_v55 = vsel %vm1553_vm7, %v1564_v36, %v1566_v13  ;;  %v9374_v49 = vmul.u32.u64.low %v9356_v44, %v1563_v38  ;;  %v9375_v35 = vmul.u32.u64.high %v9356_v44, %v1563_v38, %v9374_v49  ;;  %vm1300_vm15 = vweird.f32 %v9083_v59 }
 0x1b6   : > { %vm9381_vm1 = vcmp.le.f32.partialorder %v1416_v26, 0.7853982  ;;  %v1484_v28 = vclz %v7625_v45  ;;  %v1503_v14 = vsel %vm1418_vm13, %v1502_v31, %v1478_v61  ;;  %v1559_v2 = vsel %vm1553_vm7, %v1556_v50, %v1558_v0 }
 0x1b7   : > { %v9389_v33 = vmul.u32.u64.low %v9356_v44, %v1567_v55  ;;  %v9390_v37 = vmul.u32.u64.high %v9356_v44, %v1567_v55, %v9389_v33  ;;  %v1728_v53 = vand.u32 2147483647, %v9360_v24  ;;  %v1731_v11 = vand.u32 2139095040, %v9360_v24 }
 0x1b8   : > { %vm1303_vm2 = vcmp.lt.s32.totalorder %v1302_v51, 2  ;;  %vm1304_vm4 = vcmp.eq.s32.totalorder %v1302_v51, 0  ;;  %v7626_v26 = vadd.s32 4294967294, %v1484_v28  ;;  %v9396_v21 = vadd.f32 %v8582_v41, %v8950_v9 }
 0x1b9   : > { %v8160_v32 = vpop.eup %8159  ;;  %vm1307_vm8 = vcmp.eq.s32.totalorder %v1302_v51, 2  ;;  %v1472_v48 = vadd.s32 %v9307_v43, %v9313_v46  ;;  %v1578_v61 = vadd.s32 1, %v9375_v35  ;;  %v1732_v8 = vshrl.u32 %v1731_v11, 23 }
 0x1ba   : > { %v8162_v16 = vpop.eup %8161  ;;  %v1308_v3 = vxor.u32 2147483648, %v8160_v32  ;;  %vm7627_vm0 = vcmp.lt.s32.totalorder %v7626_v26, 0  ;;  %v1505_v54 = vsel %vm9381_vm1, 0, %v1503_v14  ;;  %v1575_v18 = vmul.u32 %v9356_v44, %v1559_v2 }
 0x1bb   : > { %v1305_v31 = vxor.u32 2147483648, %v8162_v16  ;;  %v1487_v7 = vsel %vm7627_vm0, 0, %v7626_v26  ;;  %vm1577_vm11 = vc.u32 %v9390_v37, %v9374_v49  ;;  %v1735_v43 = vand.u32 8388607, %v1728_v53 }
 0x1bc   : > { %v1309_v46 = vsel %vm1307_vm8, %v1308_v3, %v8162_v16  ;;  %v1488_v36 = vsub.s32 32, %v1487_v7  ;;  %v1492_v50 = vsub.s32 4294967266, %v1487_v7  ;;  %v1627_v0 = vand.u32 2139095040, %v9396_v21 }
 0x1bd   : > { %v1306_v38 = vsel %vm1304_vm4, %v8160_v32, %v1305_v31  ;;  %v1489_v17 = vshll.u32 %v9362_v58, %v1487_v7  ;;  %v1579_v44 = vsel %vm1577_vm11, %v1578_v61, %v9375_v35  ;;  %v7636_v45 = vadd.s32 4294967169, %v1732_v8 }
 0x1be   : > { %v1310_v13 = vsel %vm1303_vm2, %v1306_v38, %v1309_v46  ;;  %v1490_v55 = vshrl.u32 %v1472_v48, %v1488_v36  ;;  %v1493_v28 = vadd.s32 127, %v1492_v50  ;;  %v1580_v14 = vadd.s32 %v1579_v44, %v1575_v18 }
 0x1bf   : > { %v1311_v2 = vsel %vm1300_vm15, nan, %v1310_v13  ;;  %v1509_v33 = vadd.s32 3, %v1505_v54  ;;  %v1738_v11 = vadd.s32 1, %v7636_v45  ;;  %v1736_v35 = vor.u32 8388608, %v1735_v43 }
 0x1c0   : > { %v7372_v26 = vsel %vm7364_vm3, %v8618_v62, %v1311_v2  ;;  %v1491_v32 = vor.u32 %v1490_v55, %v1489_v17  ;;  %v1494_v16 = vshll.u32 %v1493_v28, 23  ;;  %v1581_v58 = vadd.s32 536870912, %v1580_v14 }
 0x1c1   : > { %7437 = vst [vmem:[%s8911_s28 + $0x28] sm:$0xff] %v7372_v26  ;;  %vm1739_vm12 = vcmp.gt.s32.totalorder %v1738_v11, 0  ;;  %v1624_v51 = vand.u32 2147483647, %v9396_v21  ;;  %v1628_v3 = vshrl.u32 %v1627_v0, 23  ;;  %v9422_v31 = vand.u32 3, %v1509_v33 }
 0x1c2   : > { %v1495_v48 = vor.u32 4788187, %v1494_v16  ;;  %v1582_v61 = vshrl.u32 %v1581_v58, 30  ;;  %v1740_v8 = vsel %vm1739_vm12, %v1738_v11, 0  ;;  %v1498_v54 = vcvt.s32.f32 %v1491_v32 }
 0x1c3   : > { %v1742_v59 = vand.u32 31, %v1740_v8  ;;  %vm1522_vm7 = vcmp.lt.s32.totalorder %v9234_v25, 0  ;;  %v9427_v7 = vadd.s32 %v9374_v49, %v9390_v37  ;;  %v9429_v46 = vshll.u32 %v1736_v35, 8 }
 0x1c4   : > { %v1496_v18 = vand.u32 2147483647, %v1495_v48  ;;  %v1583_v62 = vshll.u32 %v1582_v61, 30  ;;  %v9433_v36 = vand.u32 8388607, %v1624_v51  ;;  %v9437_v38 = vshrl.u32 %v1740_v8, 5 }
 0x1c5   : > { %v1743_v43 = vsub.s32 32, %v1742_v59  ;;  %v7632_v17 = vadd.s32 4294967169, %v1628_v3  ;;  %v1606_v44 = vsub.s32 4, %v1582_v61  ;;  %v1745_v45 = vshll.u32 %v8400_v19, %v1742_v59 }
 0x1c6   : > { %v1499_v50 = vmul.f32 %v1498_v54, %v1496_v18  ;;  %v9435_v0 = vsub.s32 %v1580_v14, %v1583_v62  ;;  %v1748_v28 = vshll.u32 %v8401_v23, %v1742_v59  ;;  %v1751_v14 = vshll.u32 %v14055_v10, %v1742_v59 }
 0x1c7   : > { %v1746_v13 = vshrl.u32 %v8401_v23, %v1743_v43  ;;  %v1749_v49 = vshrl.u32 %v14055_v10, %v1743_v43  ;;  %v1752_v2 = vshrl.u32 %v8403_v27, %v1743_v43  ;;  %v1754_v11 = vshll.u32 %v8403_v27, %v1742_v59 }
 0x1c8   : > { %v1500_v37 = vxor.u32 2147483648, %v1499_v50  ;;  %v1586_v55 = vsub.s32 0, %v9435_v0  ;;  %v1755_v26 = vshrl.u32 %v8404_v29, %v1743_v43  ;;  %v1757_v35 = vshll.u32 %v8404_v29, %v1742_v59 }
 0x1c9   : > { %v1747_v33 = vor.u32 %v1746_v13, %v1745_v45  ;;  %v1750_v58 = vor.u32 %v1749_v49, %v1748_v28  ;;  %v1753_v8 = vor.u32 %v1752_v2, %v1751_v14  ;;  %v1758_v18 = vshrl.u32 %v8405_v52, %v1743_v43 }
 0x1ca   : > { %v1501_v32 = vsel %vm1418_vm13, %v1500_v37, %v1499_v50  ;;  %v7629_v16 = vmin.u32 %v1586_v55, %v9435_v0  ;;  %v1756_v3 = vor.u32 %v1755_v26, %v1754_v11  ;;  %v1632_v62 = vor.u32 8388608, %v9433_v36 }
 0x1cb   : > { %v1504_v48 = vsel %vm9381_vm1, %v9196_v34, %v1501_v32  ;;  %v1634_v45 = vadd.s32 1, %v7632_v17  ;;  %vm9459_vm10 = vcmp.le.f32.partialorder %v1520_v47, 0.7853982  ;;  %v1607_v57 = vsel %vm1522_vm7, %v1606_v44, %v1582_v61 }
 0x1cc   : > { %8163 = vcosq.f32 %v1504_v48  ;;  %v1588_v54 = vclz %v7629_v16  ;;  %v1744_v59 = vshrl.u32 %v8400_v19, %v1743_v43  ;;  %v1759_v13 = vor.u32 %v1758_v18, %v1757_v35 }
 0x1cd   : > { %8165 = vsinq.f32 %v1504_v48  ;;  %vm1760_vm13 = vcmp.lt.s32.totalorder %v9437_v38, 1  ;;  %vm1762_vm15 = vcmp.lt.s32.totalorder %v9437_v38, 3  ;;  %vm1763_vm1 = vcmp.lt.s32.totalorder %v9437_v38, 4 }
 0x1ce   : > { %v7630_v49 = vadd.s32 4294967294, %v1588_v54  ;;  %v1765_v36 = vsel %vm1763_vm1, %v1753_v8, 2102212464  ;;  %v1768_v17 = vsel %vm1760_vm13, %v1747_v33, %v1750_v58  ;;  %v1769_v37 = vsel %vm1763_vm1, %v1756_v3, 920167782 }
 0x1cf   : > { %v1772_v47 = vsel %vm1760_vm13, %v1750_v58, %v1753_v8  ;;  %vm1761_vm4 = vcmp.lt.s32.totalorder %v9437_v38, 2  ;;  %v1770_v61 = vsel %vm1762_vm15, %v1753_v8, %v1769_v37  ;;  %v1773_v44 = vsel %vm1763_vm1, %v1759_v13, 1326507024 }
 0x1d0   : > { %vm7631_vm2 = vcmp.lt.s32.totalorder %v7630_v49, 0  ;;  %vm1512_vm8 = vcmp.eq.s32.totalorder %v9422_v31, 0  ;;  %v1764_v55 = vsel %vm1760_vm13, %v1744_v59, %v1747_v33  ;;  %v1771_v28 = vsel %vm1761_vm4, %v1768_v17, %v1770_v61 }
 0x1d1   : > { %v1591_v43 = vsel %vm7631_vm2, 0, %v7630_v49  ;;  %v1774_v2 = vsel %vm1762_vm15, %v1756_v3, %v1773_v44  ;;  %vm1511_vm0 = vcmp.lt.s32.totalorder %v9422_v31, 2  ;;  %v1766_v26 = vsel %vm1762_vm15, %v1750_v58, %v1765_v36  ;;  %v9494_v58 = vpop.f32.mrb[8].mxu0 }
 0x1d2   : > { %v1592_v14 = vsub.s32 32, %v1591_v43  ;;  %v1596_v11 = vsub.s32 4294967266, %v1591_v43  ;;  %v1775_v32 = vsel %vm1761_vm4, %v1772_v47, %v1774_v2  ;;  %vm1508_vm11 = vweird.f32 %v9196_v34 }
 0x1d3   : > { %v9484_v33 = vmul.u32.u64.low %v9429_v46, %v1775_v32  ;;  %v9485_v16 = vmul.u32.u64.high %v9429_v46, %v1775_v32, %v9484_v33  ;;  %v9488_v35 = vmul.u32.u64.low %v9429_v46, %v1771_v28  ;;  %v9489_v48 = vmul.u32.u64.high %v9429_v46, %v1771_v28, %v9488_v35 }
 0x1d4   : > { %v1593_v8 = vshll.u32 %v9435_v0, %v1591_v43  ;;  %v1594_v3 = vshrl.u32 %v9427_v7, %v1592_v14  ;;  %v1597_v18 = vadd.s32 127, %v1596_v11  ;;  %vm1635_vm12 = vcmp.gt.s32.totalorder %v1634_v45, 0 }
 0x1d5   : > { %vm1515_vm13 = vcmp.eq.s32.totalorder %v9422_v31, 2  ;;  %v1767_v54 = vsel %vm1761_vm4, %v1764_v55, %v1766_v26  ;;  %v1636_v59 = vsel %vm1635_vm12, %v1634_v45, 0  ;;  %v9499_v13 = vshll.u32 %v1632_v62, 8 }
 0x1d6   : > { %v8164_v49 = vpop.eup %8163  ;;  %v1595_v36 = vor.u32 %v1594_v3, %v1593_v8  ;;  %v1598_v17 = vshll.u32 %v1597_v18, 23  ;;  %v1609_v0 = vsel %vm9459_vm10, 0, %v1607_v57  ;;  %v1638_v37 = vand.u32 31, %v1636_v59 }
 0x1d7   : > { %v8166_v7 = vpop.eup %8165  ;;  %v1516_v47 = vxor.u32 2147483648, %v8164_v49  ;;  %vm1785_vm15 = vc.u32 %v9485_v16, %v9488_v35  ;;  %v1786_v61 = vadd.s32 1, %v9489_v48  ;;  %v9508_v38 = vadd.f32 %v8624_v4, %v9028_v20 }
 0x1d8   : > { %v1513_v62 = vxor.u32 2147483648, %v8166_v7  ;;  %v1599_v45 = vor.u32 4788187, %v1598_v17  ;;  %v1783_v44 = vmul.u32 %v9429_v46, %v1767_v54  ;;  %v1639_v43 = vsub.s32 32, %v1638_v37 }
 0x1d9   : > { %v1517_v57 = vsel %vm1515_vm13, %v1516_v47, %v8166_v7  ;;  %v1613_v55 = vadd.s32 3, %v1609_v0  ;;  %v1787_v28 = vsel %vm1785_vm15, %v1786_v61, %v9489_v48  ;;  %v9514_v2 = vshrl.u32 %v1636_v59, 5 }
 0x1da   : > { %v1514_v14 = vsel %vm1512_vm8, %v8164_v49, %v1513_v62  ;;  %v1600_v11 = vand.u32 2147483647, %v1599_v45  ;;  %v1602_v26 = vcvt.s32.f32 %v1595_v36  ;;  %v1788_v32 = vadd.s32 %v1787_v28, %v1783_v44 }
 0x1db   : > { %v1518_v33 = vsel %vm1511_vm0, %v1514_v14, %v1517_v57  ;;  %v1641_v46 = vshll.u32 %v8400_v19, %v1638_v37  ;;  %v1642_v8 = vshrl.u32 %v8401_v23, %v1639_v43  ;;  %v1645_v3 = vshrl.u32 %v14055_v10, %v1639_v43 }
 0x1dc   : > { %v1519_v48 = vsel %vm1508_vm11, nan, %v1518_v33  ;;  %v1603_v18 = vmul.f32 %v1602_v26, %v1600_v11  ;;  %v1789_v54 = vadd.s32 536870912, %v1788_v32  ;;  %v1648_v59 = vshrl.u32 %v8403_v27, %v1639_v43 }
 0x1dd   : > { %v7374_v49 = vsel %vm7366_vm6, %v8620_v1, %v1519_v48  ;;  %v1643_v36 = vor.u32 %v1642_v8, %v1641_v46  ;;  %v1644_v31 = vshll.u32 %v8401_v23, %v1638_v37  ;;  %v1647_v17 = vshll.u32 %v14055_v10, %v1638_v37 }
 0x1de   : > { %7439 = vst.msk [vmem:[%s8911_s28 + $0x38] sm:$0xff] %vm7434_vm9, %v7374_v49  ;;  %v1604_v0 = vxor.u32 2147483648, %v1603_v18  ;;  %v1790_v7 = vshrl.u32 %v1789_v54, 30  ;;  %v1650_v34 = vshll.u32 %v8403_v27, %v1638_v37  ;;  %v1651_v47 = vshrl.u32 %v8404_v29, %v1639_v43 }
 0x1df   : > { %v1646_v61 = vor.u32 %v1645_v3, %v1644_v31  ;;  %v1649_v62 = vor.u32 %v1648_v59, %v1647_v17  ;;  %v1653_v45 = vshll.u32 %v8404_v29, %v1638_v37  ;;  %v1654_v44 = vshrl.u32 %v8405_v52, %v1639_v43 }
 0x1e0   : > { %v1605_v1 = vsel %vm1522_vm7, %v1604_v0, %v1603_v18  ;;  %v9539_v57 = vand.u32 3, %v1613_v55  ;;  %v1791_v28 = vshll.u32 %v1790_v7, 30  ;;  %v1652_v14 = vor.u32 %v1651_v47, %v1650_v34 }
 0x1e1   : > { %v1608_v11 = vsel %vm9459_vm10, %v9234_v25, %v1605_v1  ;;  %v1640_v26 = vshrl.u32 %v8400_v19, %v1639_v43  ;;  %v1655_v33 = vor.u32 %v1654_v44, %v1653_v45  ;;  %v1835_v46 = vand.u32 2139095040, %v9508_v38 }
 0x1e2   : > { %8167 = vcosq.f32 %v1608_v11  ;;  %v9546_v37 = vsub.s32 %v1788_v32, %v1791_v28  ;;  %vm1656_vm1 = vcmp.lt.s32.totalorder %v9514_v2, 1  ;;  %vm1659_vm7 = vcmp.lt.s32.totalorder %v9514_v2, 4 }
 0x1e3   : > { %8169 = vsinq.f32 %v1608_v11  ;;  %vm1657_vm2 = vcmp.lt.s32.totalorder %v9514_v2, 2  ;;  %v1661_v55 = vsel %vm1659_vm7, %v1649_v62, 2102212464  ;;  %v1664_v8 = vsel %vm1656_vm1, %v1643_v36, %v1646_v61  ;;  %v9576_v11 = vpop.f32.mrb[8].mxu1 }
 0x1e4   : > { %v1794_v50 = vsub.s32 0, %v9546_v37  ;;  %v1814_v3 = vsub.s32 4, %v1790_v7  ;;  %vm1658_vm10 = vcmp.lt.s32.totalorder %v9514_v2, 3  ;;  %v1665_v43 = vsel %vm1659_vm7, %v1652_v14, 920167782 }
 0x1e5   : > { %v1660_v48 = vsel %vm1656_vm1, %v1640_v26, %v1643_v36  ;;  %v1666_v18 = vsel %vm1658_vm10, %v1649_v62, %v1665_v43  ;;  %v1668_v54 = vsel %vm1656_vm1, %v1646_v61, %v1649_v62  ;;  %v1669_v32 = vsel %vm1659_vm7, %v1655_v33, 1326507024 }
 0x1e6   : > { %v7637_v59 = vmin.u32 %v1794_v50, %v9546_v37  ;;  %v1662_v49 = vsel %vm1658_vm10, %v1646_v61, %v1661_v55  ;;  %v1667_v31 = vsel %vm1657_vm2, %v1664_v8, %v1666_v18  ;;  %v1670_v17 = vsel %vm1658_vm10, %v1652_v14, %v1669_v32 }
 0x1e7   : > { %vm1730_vm4 = vcmp.lt.s32.totalorder %v9360_v24, 0  ;;  %v1671_v0 = vsel %vm1657_vm2, %v1668_v54, %v1670_v17  ;;  %v9560_v34 = vmul.u32.u64.low %v9499_v13, %v1667_v31  ;;  %v9561_v47 = vmul.u32.u64.high %v9499_v13, %v1667_v31, %v9560_v34 }
 0x1e8   : > { %v1796_v36 = vclz %v7637_v59  ;;  %v1815_v62 = vsel %vm1730_vm4, %v1814_v3, %v1790_v7  ;;  %v1832_v45 = vand.u32 2147483647, %v9508_v38  ;;  %v9568_v61 = vadd.f32 %v8574_v39, %v9167_v6 }
 0x1e9   : > { %v1663_v44 = vsel %vm1657_vm2, %v1660_v48, %v1662_v49  ;;  %v9573_v1 = vmul.u32.u64.low %v9499_v13, %v1671_v0  ;;  %v9574_v28 = vmul.u32.u64.high %v9499_v13, %v1671_v0, %v9573_v1  ;;  %v1836_v14 = vshrl.u32 %v1835_v46, 23 }
 0x1ea   : > { %vm1615_vm8 = vcmp.lt.s32.totalorder %v9539_v57, 2  ;;  %vm1616_vm0 = vcmp.eq.s32.totalorder %v9539_v57, 0  ;;  %vm9582_vm11 = vcmp.le.f32.partialorder %v1728_v53, 0.7853982  ;;  %v7638_v26 = vadd.s32 4294967294, %v1796_v36 }
 0x1eb   : > { %vm1619_vm12 = vcmp.eq.s32.totalorder %v9539_v57, 2  ;;  %v1784_v2 = vadd.s32 %v9488_v35, %v9485_v16  ;;  %v1682_v33 = vadd.s32 1, %v9561_v47  ;;  %v7640_v46 = vadd.s32 4294967169, %v1836_v14 }
 0x1ec   : > { %v8168_v55 = vpop.eup %8167  ;;  %vm7639_vm13 = vcmp.lt.s32.totalorder %v7638_v26, 0  ;;  %v1817_v8 = vsel %vm9582_vm11, 0, %v1815_v62  ;;  %v1679_v50 = vmul.u32 %v9499_v13, %v1663_v44  ;;  %v1839_v53 = vand.u32 8388607, %v1832_v45 }
 0x1ed   : > { %v8170_v3 = vpop.eup %8169  ;;  %v1620_v43 = vxor.u32 2147483648, %v8168_v55  ;;  %v1799_v48 = vsel %vm7639_vm13, 0, %v7638_v26  ;;  %vm1681_vm15 = vc.u32 %v9574_v28, %v9560_v34  ;;  %v1936_v16 = vand.u32 2147483647, %v9568_v61 }
 0x1ee   : > { %v1617_v35 = vxor.u32 2147483648, %v8170_v3  ;;  %v1800_v18 = vsub.s32 32, %v1799_v48  ;;  %v1804_v54 = vsub.s32 4294967266, %v1799_v48  ;;  %v1939_v32 = vand.u32 2139095040, %v9568_v61 }
 0x1ef   : > { %v1621_v59 = vsel %vm1619_vm12, %v1620_v43, %v8170_v3  ;;  %v1801_v13 = vshll.u32 %v9546_v37, %v1799_v48  ;;  %v1683_v49 = vsel %vm1681_vm15, %v1682_v33, %v9561_v47  ;;  %v1842_v31 = vadd.s32 1, %v7640_v46 }
 0x1f0   : > { %v1618_v17 = vsel %vm1616_vm0, %v8168_v55, %v1617_v35  ;;  %v1802_v0 = vshrl.u32 %v1784_v2, %v1800_v18  ;;  %v1805_v36 = vadd.s32 127, %v1804_v54  ;;  %v1684_v62 = vadd.s32 %v1683_v49, %v1679_v50 }
 0x1f1   : > { %vm1612_vm1 = vweird.f32 %v9234_v25  ;;  %v1622_v44 = vsel %vm1615_vm8, %v1618_v17, %v1621_v59  ;;  %vm1843_vm7 = vcmp.gt.s32.totalorder %v1842_v31, 0  ;;  %v1821_v33 = vadd.s32 3, %v1817_v8 }
 0x1f2   : > { %v1623_v1 = vsel %vm1612_vm1, nan, %v1622_v44  ;;  %v1803_v14 = vor.u32 %v1802_v0, %v1801_v13  ;;  %v1806_v26 = vshll.u32 %v1805_v36, 23  ;;  %v1685_v37 = vadd.s32 536870912, %v1684_v62 }
 0x1f3   : > { %v7375_v47 = vsel %vm7363_vm14, %v8727_v15, %v1623_v1  ;;  %v1840_v46 = vor.u32 8388608, %v1839_v53  ;;  %v1844_v55 = vsel %vm1843_vm7, %v1842_v31, 0  ;;  %v1940_v3 = vshrl.u32 %v1939_v32, 23 }
 0x1f4   : > { %7440 = vst [vmem:[%s8911_s28 + $0x40] sm:$0xff] %v7375_v47  ;;  %v1807_v2 = vor.u32 4788187, %v1806_v26  ;;  %v1686_v50 = vshrl.u32 %v1685_v37, 30  ;;  %v9613_v25 = vand.u32 8388607, %v1936_v16  ;;  %v1810_v48 = vcvt.s32.f32 %v1803_v14 }
 0x1f5   : > { %v1846_v57 = vand.u32 31, %v1844_v55  ;;  %v9615_v18 = vand.u32 3, %v1821_v33  ;;  %v9618_v54 = vadd.s32 %v9560_v34, %v9574_v28  ;;  %v9620_v8 = vshll.u32 %v1840_v46, 8 }
 0x1f6   : > { %v1808_v43 = vand.u32 2147483647, %v1807_v2  ;;  %v1687_v35 = vshll.u32 %v1686_v50, 30  ;;  %v7644_v32 = vadd.s32 4294967169, %v1940_v3  ;;  %v1944_v13 = vor.u32 8388608, %v9613_v25 }
 0x1f7   : > { %v1847_v15 = vsub.s32 32, %v1846_v57  ;;  %v9625_v49 = vshrl.u32 %v1844_v55, 5  ;;  %v1849_v31 = vshll.u32 %v8400_v19, %v1846_v57  ;;  %vm1626_vm2 = vcmp.lt.s32.totalorder %v9396_v21, 0 }
 0x1f8   : > { %v1811_v53 = vmul.f32 %v1810_v48, %v1808_v43  ;;  %v9622_v59 = vsub.s32 %v1684_v62, %v1687_v35  ;;  %v1852_v28 = vshll.u32 %v8401_v23, %v1846_v57  ;;  %v1855_v1 = vshll.u32 %v14055_v10, %v1846_v57 }
 0x1f9   : > { %v1850_v17 = vshrl.u32 %v8401_v23, %v1847_v15  ;;  %v1853_v0 = vshrl.u32 %v14055_v10, %v1847_v15  ;;  %v1856_v62 = vshrl.u32 %v8403_v27, %v1847_v15  ;;  %v1858_v14 = vshll.u32 %v8403_v27, %v1846_v57 }
 0x1fa   : > { %v1812_v36 = vxor.u32 2147483648, %v1811_v53  ;;  %v1690_v34 = vsub.s32 0, %v9622_v59  ;;  %v1859_v26 = vshrl.u32 %v8404_v29, %v1847_v15  ;;  %v1861_v46 = vshll.u32 %v8404_v29, %v1846_v57 }
 0x1fb   : > { %v1851_v44 = vor.u32 %v1850_v17, %v1849_v31  ;;  %v1854_v33 = vor.u32 %v1853_v0, %v1852_v28  ;;  %v1857_v2 = vor.u32 %v1856_v62, %v1855_v1  ;;  %v1862_v43 = vshrl.u32 %v8405_v52, %v1847_v15 }
 0x1fc   : > { %v1813_v37 = vsel %vm1730_vm4, %v1812_v36, %v1811_v53  ;;  %v7633_v47 = vmin.u32 %v1690_v34, %v9622_v59  ;;  %v1860_v3 = vor.u32 %v1859_v26, %v1858_v14  ;;  %v1710_v35 = vsub.s32 4, %v1686_v50 }
 0x1fd   : > { %v1816_v55 = vsel %vm9582_vm11, %v9360_v24, %v1813_v37  ;;  %v1946_v31 = vadd.s32 1, %v7644_v32  ;;  %vm9647_vm10 = vcmp.le.f32.partialorder %v1624_v51, 0.7853982  ;;  %v1848_v57 = vshrl.u32 %v8400_v19, %v1847_v15 }
 0x1fe   : > { %8171 = vcosq.f32 %v1816_v55  ;;  %v1692_v48 = vclz %v7633_v47  ;;  %v1863_v17 = vor.u32 %v1862_v43, %v1861_v46  ;;  %vm1864_vm4 = vcmp.lt.s32.totalorder %v9625_v49, 1 }
 0x1ff   : > { %8173 = vsinq.f32 %v1816_v55  ;;  %vm1866_vm8 = vcmp.lt.s32.totalorder %v9625_v49, 3  ;;  %vm1867_vm0 = vcmp.lt.s32.totalorder %v9625_v49, 4  ;;  %v1872_v32 = vsel %vm1864_vm4, %v1851_v44, %v1854_v33 }
 0x200   : > { %v7634_v7 = vadd.s32 4294967294, %v1692_v48  ;;  %v1869_v0 = vsel %vm1867_vm0, %v1857_v2, 2102212464  ;;  %v1873_v36 = vsel %vm1867_vm0, %v1860_v3, 920167782  ;;  %v1876_v51 = vsel %vm1864_vm4, %v1854_v33, %v1857_v2  ;;  %v9686_v48 = vpop.f32.mrb[9].mxu0 }
 0x201   : > { %v1877_v34 = vsel %vm1867_vm0, %v1863_v17, 1326507024  ;;  %vm1865_vm12 = vcmp.lt.s32.totalorder %v9625_v49, 2  ;;  %v1874_v15 = vsel %vm1866_vm8, %v1857_v2, %v1873_v36  ;;  %vm1824_vm13 = vcmp.eq.s32.totalorder %v9615_v18, 0 }
 0x202   : > { %vm7635_vm11 = vcmp.lt.s32.totalorder %v7634_v7, 0  ;;  %v1878_v28 = vsel %vm1866_vm8, %v1860_v3, %v1877_v34  ;;  %v1711_v1 = vsel %vm1626_vm2, %v1710_v35, %v1686_v50  ;;  %v1875_v14 = vsel %vm1865_vm12, %v1872_v32, %v1874_v15 }
 0x203   : > { %v1695_v62 = vsel %vm7635_vm11, 0, %v7634_v7  ;;  %v1879_v26 = vsel %vm1865_vm12, %v1876_v51, %v1878_v28  ;;  %vm1823_vm15 = vcmp.lt.s32.totalorder %v9615_v18, 2  ;;  %v1868_v46 = vsel %vm1864_vm4, %v1848_v57, %v1851_v44 }
 0x204   : > { %v1696_v37 = vsub.s32 32, %v1695_v62  ;;  %v1700_v47 = vsub.s32 4294967266, %v1695_v62  ;;  %v1870_v55 = vsel %vm1866_vm8, %v1854_v33, %v1869_v0  ;;  %vm1820_vm1 = vweird.f32 %v9360_v24 }
 0x205   : > { %v9678_v50 = vmul.u32.u64.low %v9620_v8, %v1879_v26  ;;  %v9679_v2 = vmul.u32.u64.high %v9620_v8, %v1879_v26, %v9678_v50  ;;  %v9682_v3 = vmul.u32.u64.low %v9620_v8, %v1875_v14  ;;  %v9683_v43 = vmul.u32.u64.high %v9620_v8, %v1875_v14, %v9682_v3 }
 0x206   : > { %v1697_v35 = vshll.u32 %v9622_v59, %v1695_v62  ;;  %v1698_v44 = vshrl.u32 %v9618_v54, %v1696_v37  ;;  %v1701_v57 = vadd.s32 127, %v1700_v47  ;;  %vm1947_vm7 = vcmp.gt.s32.totalorder %v1946_v31, 0 }
 0x207   : > { %vm1827_vm4 = vcmp.eq.s32.totalorder %v9615_v18, 2  ;;  %v1871_v33 = vsel %vm1865_vm12, %v1868_v46, %v1870_v55  ;;  %v1948_v17 = vsel %vm1947_vm7, %v1946_v31, 0  ;;  %v9695_v7 = vshll.u32 %v1944_v13, 8 }
 0x208   : > { %v8172_v32 = vpop.eup %8171  ;;  %v1699_v0 = vor.u32 %v1698_v44, %v1697_v35  ;;  %v1702_v36 = vshll.u32 %v1701_v57, 23  ;;  %v1713_v59 = vsel %vm9647_vm10, 0, %v1711_v1  ;;  %v1950_v51 = vand.u32 31, %v1948_v17 }
 0x209   : > { %v8174_v54 = vpop.eup %8173  ;;  %v1828_v34 = vxor.u32 2147483648, %v8172_v32  ;;  %vm1889_vm8 = vc.u32 %v9679_v2, %v9682_v3  ;;  %v1890_v49 = vadd.s32 1, %v9683_v43  ;;  %v9704_v31 = vadd.f32 %v8578_v40, %v9216_v60 }
 0x20a   : > { %v1825_v25 = vxor.u32 2147483648, %v8174_v54  ;;  %v1703_v13 = vor.u32 4788187, %v1702_v36  ;;  %v1887_v15 = vmul.u32 %v9620_v8, %v1871_v33  ;;  %v1951_v28 = vsub.s32 32, %v1950_v51 }
 0x20b   : > { %v1829_v62 = vsel %vm1827_vm4, %v1828_v34, %v8174_v54  ;;  %v1717_v1 = vadd.s32 3, %v1713_v59  ;;  %v1891_v14 = vsel %vm1889_vm8, %v1890_v49, %v9683_v43  ;;  %v9710_v26 = vshrl.u32 %v1948_v17, 5 }
 0x20c   : > { %v1826_v37 = vsel %vm1824_vm13, %v8172_v32, %v1825_v25  ;;  %v1704_v47 = vand.u32 2147483647, %v1703_v13  ;;  %v1706_v46 = vcvt.s32.f32 %v1699_v0  ;;  %v1892_v55 = vadd.s32 %v1891_v14, %v1887_v15 }
 0x20d   : > { %v1830_v50 = vsel %vm1823_vm15, %v1826_v37, %v1829_v62  ;;  %v1953_v8 = vshll.u32 %v8400_v19, %v1950_v51  ;;  %v1954_v35 = vshrl.u32 %v8401_v23, %v1951_v28  ;;  %v1957_v44 = vshrl.u32 %v14055_v10, %v1951_v28 }
 0x20e   : > { %v1831_v43 = vsel %vm1820_vm1, nan, %v1830_v50  ;;  %v1707_v57 = vmul.f32 %v1706_v46, %v1704_v47  ;;  %v1893_v33 = vadd.s32 536870912, %v1892_v55  ;;  %v1960_v17 = vshrl.u32 %v8403_v27, %v1951_v28 }
 0x20f   : > { %v7377_v32 = vsel %vm7365_vm5, %v8808_v63, %v1831_v43  ;;  %v1955_v0 = vor.u32 %v1954_v35, %v1953_v8  ;;  %v1956_v18 = vshll.u32 %v8401_v23, %v1950_v51  ;;  %v1959_v36 = vshll.u32 %v14055_v10, %v1950_v51 }
 0x210   : > { %7442 = vst [vmem:[%s8911_s28 + $0x50] sm:$0xff] %v7377_v32  ;;  %v1708_v59 = vxor.u32 2147483648, %v1707_v57  ;;  %v1894_v54 = vshrl.u32 %v1893_v33, 30  ;;  %v1962_v34 = vshll.u32 %v8403_v27, %v1950_v51  ;;  %v1963_v24 = vshrl.u32 %v8404_v29, %v1951_v28 }
 0x211   : > { %v1958_v49 = vor.u32 %v1957_v44, %v1956_v18  ;;  %v1961_v25 = vor.u32 %v1960_v17, %v1959_v36  ;;  %v1965_v13 = vshll.u32 %v8404_v29, %v1950_v51  ;;  %v1966_v15 = vshrl.u32 %v8405_v52, %v1951_v28 }
 0x212   : > { %v1709_v63 = vsel %vm1626_vm2, %v1708_v59, %v1707_v57  ;;  %v9734_v62 = vand.u32 3, %v1717_v1  ;;  %v1895_v14 = vshll.u32 %v1894_v54, 30  ;;  %v1964_v37 = vor.u32 %v1963_v24, %v1962_v34 }
 0x213   : > { %v1712_v47 = vsel %vm9647_vm10, %v9396_v21, %v1709_v63  ;;  %v1952_v46 = vshrl.u32 %v8400_v19, %v1951_v28  ;;  %v1967_v50 = vor.u32 %v1966_v15, %v1965_v13  ;;  %v2147_v8 = vand.u32 2139095040, %v9704_v31 }
 0x214   : > { %8175 = vcosq.f32 %v1712_v47  ;;  %v9741_v51 = vsub.s32 %v1892_v55, %v1895_v14  ;;  %vm1968_vm0 = vcmp.lt.s32.totalorder %v9710_v26, 1  ;;  %vm1971_vm2 = vcmp.lt.s32.totalorder %v9710_v26, 4 }
 0x215   : > { %8177 = vsinq.f32 %v1712_v47  ;;  %vm1969_vm11 = vcmp.lt.s32.totalorder %v9710_v26, 2  ;;  %v1973_v1 = vsel %vm1971_vm2, %v1961_v25, 2102212464  ;;  %v1976_v35 = vsel %vm1968_vm0, %v1955_v0, %v1958_v49 }
 0x216   : > { %v1898_v53 = vsub.s32 0, %v9741_v51  ;;  %v1918_v44 = vsub.s32 4, %v1894_v54  ;;  %vm1970_vm10 = vcmp.lt.s32.totalorder %v9710_v26, 3  ;;  %v1977_v28 = vsel %vm1971_vm2, %v1964_v37, 920167782 }
 0x217   : > { %v1972_v43 = vsel %vm1968_vm0, %v1952_v46, %v1955_v0  ;;  %v1978_v57 = vsel %vm1970_vm10, %v1961_v25, %v1977_v28  ;;  %v1980_v33 = vsel %vm1968_vm0, %v1958_v49, %v1961_v25  ;;  %v1981_v55 = vsel %vm1971_vm2, %v1967_v50, 1326507024 }
 0x218   : > { %v7641_v17 = vmin.u32 %v1898_v53, %v9741_v51  ;;  %v1974_v32 = vsel %vm1970_vm10, %v1958_v49, %v1973_v1  ;;  %v1979_v18 = vsel %vm1969_vm11, %v1976_v35, %v1978_v57  ;;  %v1982_v36 = vsel %vm1970_vm10, %v1964_v37, %v1981_v55  ;;  %v9761_v49 = vpop.f32.mrb[9].mxu1 }
 0x219   : > { %vm1834_vm12 = vcmp.lt.s32.totalorder %v9508_v38, 0  ;;  %v1983_v59 = vsel %vm1969_vm11, %v1980_v33, %v1982_v36  ;;  %v9755_v34 = vmul.u32.u64.low %v9695_v7, %v1979_v18  ;;  %v9756_v24 = vmul.u32.u64.high %v9695_v7, %v1979_v18, %v9755_v34 }
 0x21a   : > { %v1900_v0 = vclz %v7641_v17  ;;  %v1919_v25 = vsel %vm1834_vm12, %v1918_v44, %v1894_v54  ;;  %v2144_v13 = vand.u32 2147483647, %v9704_v31  ;;  %v1975_v15 = vsel %vm1969_vm11, %v1972_v43, %v1974_v32 }
 0x21b   : > { %v9766_v63 = vmul.u32.u64.low %v9695_v7, %v1983_v59  ;;  %v9767_v14 = vmul.u32.u64.high %v9695_v7, %v1983_v59, %v9766_v63  ;;  %v2148_v37 = vshrl.u32 %v2147_v8, 23  ;;  %vm1719_vm13 = vcmp.lt.s32.totalorder %v9734_v62, 2 }
 0x21c   : > { %vm9772_vm15 = vcmp.le.f32.partialorder %v1832_v45, 0.7853982  ;;  %v7642_v54 = vadd.s32 4294967294, %v1900_v0  ;;  %vm1720_vm1 = vcmp.eq.s32.totalorder %v9734_v62, 0  ;;  %vm1723_vm7 = vcmp.eq.s32.totalorder %v9734_v62, 2 }
 0x21d   : > { %v1994_v26 = vadd.s32 1, %v9756_v24  ;;  %v7652_v46 = vadd.s32 4294967169, %v2148_v37  ;;  %v1888_v8 = vadd.s32 %v9682_v3, %v9679_v2  ;;  %v1921_v1 = vsel %vm9772_vm15, 0, %v1919_v25 }
 0x21e   : > { %v8176_v50 = vpop.eup %8175  ;;  %vm7643_vm4 = vcmp.lt.s32.totalorder %v7642_v54, 0  ;;  %v1991_v45 = vmul.u32 %v9695_v7, %v1975_v15  ;;  %vm1993_vm8 = vc.u32 %v9767_v14, %v9755_v34  ;;  %v2151_v28 = vand.u32 8388607, %v2144_v13 }
 0x21f   : > { %v8178_v35 = vpop.eup %8177  ;;  %v1724_v53 = vxor.u32 2147483648, %v8176_v50  ;;  %v1903_v44 = vsel %vm7643_vm4, 0, %v7642_v54  ;;  %v9789_v2 = vadd.f32 %v8582_v41, %v9322_v5  ;;  %v1995_v55 = vsel %vm1993_vm8, %v1994_v26, %v9756_v24 }
 0x220   : > { %v1721_v43 = vxor.u32 2147483648, %v8178_v35  ;;  %v1904_v57 = vsub.s32 32, %v1903_v44  ;;  %v1908_v33 = vsub.s32 4294967266, %v1903_v44  ;;  %v1905_v7 = vshll.u32 %v9741_v51, %v1903_v44 }
 0x221   : > { %v1725_v3 = vsel %vm1723_vm7, %v1724_v53, %v8178_v35  ;;  %v2154_v17 = vadd.s32 1, %v7652_v46  ;;  %v1996_v59 = vadd.s32 %v1995_v55, %v1991_v45  ;;  %vm1716_vm0 = vweird.f32 %v9396_v21 }
 0x222   : > { %v1722_v32 = vsel %vm1720_vm1, %v8176_v50, %v1721_v43  ;;  %v1906_v18 = vshrl.u32 %v1888_v8, %v1904_v57  ;;  %v1909_v36 = vadd.s32 127, %v1908_v33  ;;  %v1925_v37 = vadd.s32 3, %v1921_v1 }
 0x223   : > { %v1726_v0 = vsel %vm1719_vm13, %v1722_v32, %v1725_v3  ;;  %vm2155_vm2 = vcmp.gt.s32.totalorder %v2154_v17, 0  ;;  %v1997_v51 = vadd.s32 536870912, %v1996_v59  ;;  %v2152_v50 = vor.u32 8388608, %v2151_v28 }
 0x224   : > { %v1727_v25 = vsel %vm1716_vm0, nan, %v1726_v0  ;;  %v1907_v15 = vor.u32 %v1906_v18, %v1905_v7  ;;  %v1910_v63 = vshll.u32 %v1909_v36, 23  ;;  %v2156_v54 = vsel %vm2155_vm2, %v2154_v17, 0 }
 0x225   : > { %v7376_v24 = vsel %vm7364_vm3, %v8950_v9, %v1727_v25  ;;  %v1998_v46 = vshrl.u32 %v1997_v51, 30  ;;  %v2043_v21 = vand.u32 2139095040, %v9789_v2  ;;  %v2158_v8 = vand.u32 31, %v2156_v54 }
 0x226   : > { %7441 = vst [vmem:[%s8911_s28 + $0x48] sm:$0xff] %v7376_v24  ;;  %v1911_v26 = vor.u32 4788187, %v1910_v63  ;;  %v1914_v45 = vcvt.s32.f32 %v1907_v15  ;;  %v9805_v53 = vand.u32 3, %v1925_v37  ;;  %v1992_v44 = vadd.s32 %v9755_v34, %v9767_v14 }
 0x227   : > { %v1999_v35 = vshll.u32 %v1998_v46, 30  ;;  %v2159_v43 = vsub.s32 32, %v2158_v8  ;;  %v2040_v57 = vand.u32 2147483647, %v9789_v2  ;;  %v9811_v33 = vshll.u32 %v2152_v50, 8 }
 0x228   : > { %v1912_v62 = vand.u32 2147483647, %v1911_v26  ;;  %v2044_v3 = vshrl.u32 %v2043_v21, 23  ;;  %v9813_v28 = vshrl.u32 %v2156_v54, 5  ;;  %v2161_v7 = vshll.u32 %v8400_v19, %v2158_v8 }
 0x229   : > { %v9809_v1 = vsub.s32 %v1996_v59, %v1999_v35  ;;  %v2162_v55 = vshrl.u32 %v8401_v23, %v2159_v43  ;;  %v2165_v17 = vshrl.u32 %v14055_v10, %v2159_v43  ;;  %vm1938_vm11 = vcmp.lt.s32.totalorder %v9568_v61, 0 }
 0x22a   : > { %v1915_v9 = vmul.f32 %v1914_v45, %v1912_v62  ;;  %v2164_v14 = vshll.u32 %v8401_v23, %v2158_v8  ;;  %v2168_v18 = vshrl.u32 %v8403_v27, %v2159_v43  ;;  %v2167_v59 = vshll.u32 %v14055_v10, %v2158_v8 }
 0x22b   : > { %v2002_v34 = vsub.s32 0, %v9809_v1  ;;  %v2163_v36 = vor.u32 %v2162_v55, %v2161_v7  ;;  %v2170_v0 = vshll.u32 %v8403_v27, %v2158_v8  ;;  %v2171_v25 = vshrl.u32 %v8404_v29, %v2159_v43 }
 0x22c   : > { %v1916_v32 = vxor.u32 2147483648, %v1915_v9  ;;  %v2166_v51 = vor.u32 %v2165_v17, %v2164_v14  ;;  %v2173_v24 = vshll.u32 %v8404_v29, %v2158_v8  ;;  %v2169_v54 = vor.u32 %v2168_v18, %v2167_v59 }
 0x22d   : > { %v7645_v63 = vmin.u32 %v2002_v34, %v9809_v1  ;;  %v2172_v26 = vor.u32 %v2171_v25, %v2170_v0  ;;  %v2174_v50 = vshrl.u32 %v8405_v52, %v2159_v43  ;;  %v2022_v62 = vsub.s32 4, %v1998_v46 }
 0x22e   : > { %v1917_v15 = vsel %vm1834_vm12, %v1916_v32, %v1915_v9  ;;  %v7648_v45 = vadd.s32 4294967169, %v2044_v3  ;;  %v2160_v35 = vshrl.u32 %v8400_v19, %v2159_v43  ;;  %vm2176_vm10 = vcmp.lt.s32.totalorder %v9813_v28, 1 }
 0x22f   : > { %v1920_v37 = vsel %vm9772_vm15, %v9508_v38, %v1917_v15  ;;  %v2004_v21 = vclz %v7645_v63  ;;  %v2175_v9 = vor.u32 %v2174_v50, %v2173_v24  ;;  %vm9837_vm12 = vcmp.le.f32.partialorder %v1936_v16, 0.7853982 }
 0x230   : > { %8179 = vcosq.f32 %v1920_v37  ;;  %vm2178_vm13 = vcmp.lt.s32.totalorder %v9813_v28, 3  ;;  %vm2179_vm15 = vcmp.lt.s32.totalorder %v9813_v28, 4  ;;  %v2184_v3 = vsel %vm2176_vm10, %v2163_v36, %v2166_v51 }
 0x231   : > { %8181 = vsinq.f32 %v1920_v37  ;;  %v7646_v47 = vadd.s32 4294967294, %v2004_v21  ;;  %v2181_v7 = vsel %vm2179_vm15, %v2169_v54, 2102212464  ;;  %v2185_v55 = vsel %vm2179_vm15, %v2172_v26, 920167782 }
 0x232   : > { %v2188_v43 = vsel %vm2176_vm10, %v2166_v51, %v2169_v54  ;;  %v2189_v17 = vsel %vm2179_vm15, %v2175_v9, 1326507024  ;;  %vm2177_vm7 = vcmp.lt.s32.totalorder %v9813_v28, 2  ;;  %v2186_v16 = vsel %vm2178_vm13, %v2169_v54, %v2185_v55 }
 0x233   : > { %vm7647_vm1 = vcmp.lt.s32.totalorder %v7646_v47, 0  ;;  %v2190_v32 = vsel %vm2178_vm13, %v2172_v26, %v2189_v17  ;;  %v2023_v14 = vsel %vm1938_vm11, %v2022_v62, %v1998_v46  ;;  %v2187_v18 = vsel %vm2177_vm7, %v2184_v3, %v2186_v16 }
 0x234   : > { %v2007_v34 = vsel %vm7647_vm1, 0, %v7646_v47  ;;  %v2191_v59 = vsel %vm2177_vm7, %v2188_v43, %v2190_v32  ;;  %v2180_v15 = vsel %vm2176_vm10, %v2160_v35, %v2163_v36  ;;  %v2182_v63 = vsel %vm2178_vm13, %v2166_v51, %v2181_v7  ;;  %v9873_v36 = vpop.f32.mrb[10].mxu0 }
 0x235   : > { %v2008_v0 = vsub.s32 32, %v2007_v34  ;;  %v2012_v25 = vsub.s32 4294967266, %v2007_v34  ;;  %vm1924_vm4 = vweird.f32 %v9508_v38  ;;  %v2009_v26 = vshll.u32 %v9809_v1, %v2007_v34 }
 0x236   : > { %v9864_v24 = vmul.u32.u64.low %v9811_v33, %v2191_v59  ;;  %v9865_v37 = vmul.u32.u64.high %v9811_v33, %v2191_v59, %v9864_v24  ;;  %v9868_v46 = vmul.u32.u64.low %v9811_v33, %v2187_v18  ;;  %v9869_v54 = vmul.u32.u64.high %v9811_v33, %v2187_v18, %v9868_v46 }
 0x237   : > { %v2010_v50 = vshrl.u32 %v1992_v44, %v2008_v0  ;;  %v2013_v21 = vadd.s32 127, %v2012_v25  ;;  %v2050_v62 = vadd.s32 1, %v7648_v45  ;;  %vm1927_vm8 = vcmp.lt.s32.totalorder %v9805_v53, 2 }
 0x238   : > { %vm1928_vm0 = vcmp.eq.s32.totalorder %v9805_v53, 0  ;;  %vm1931_vm2 = vcmp.eq.s32.totalorder %v9805_v53, 2  ;;  %v2183_v51 = vsel %vm2177_vm7, %v2180_v15, %v2182_v63  ;;  %v2047_v1 = vand.u32 8388607, %v2040_v57 }
 0x239   : > { %v2011_v9 = vor.u32 %v2010_v50, %v2009_v26  ;;  %v2014_v47 = vshll.u32 %v2013_v21, 23  ;;  %vm2051_vm10 = vcmp.gt.s32.totalorder %v2050_v62, 0  ;;  %v2025_v3 = vsel %vm9837_vm12, 0, %v2023_v14 }
 0x23a   : > { %v8180_v35 = vpop.eup %8179  ;;  %vm2201_vm13 = vc.u32 %v9865_v37, %v9868_v46  ;;  %v2202_v7 = vadd.s32 1, %v9869_v54  ;;  %v2199_v43 = vmul.u32 %v9811_v33, %v2183_v51  ;;  %v2052_v17 = vsel %vm2051_vm10, %v2050_v62, 0 }
 0x23b   : > { %v8182_v44 = vpop.eup %8181  ;;  %v1932_v45 = vxor.u32 2147483648, %v8180_v35  ;;  %v2015_v28 = vor.u32 4788187, %v2014_v47  ;;  %v2054_v34 = vand.u32 31, %v2052_v17  ;;  %v9893_v18 = vadd.f32 %v8624_v4, %v9401_v22 }
 0x23c   : > { %v1929_v55 = vxor.u32 2147483648, %v8182_v44  ;;  %v2203_v32 = vsel %vm2201_vm13, %v2202_v7, %v9869_v54  ;;  %v2018_v0 = vcvt.s32.f32 %v2011_v9  ;;  %v2029_v15 = vadd.s32 3, %v2025_v3 }
 0x23d   : > { %v1933_v16 = vsel %vm1931_vm2, %v1932_v45, %v8182_v44  ;;  %v2016_v59 = vand.u32 2147483647, %v2015_v28  ;;  %v2204_v25 = vadd.s32 %v2203_v32, %v2199_v43  ;;  %v2048_v63 = vor.u32 8388608, %v2047_v1 }
 0x23e   : > { %v1930_v14 = vsel %vm1928_vm0, %v8180_v35, %v1929_v55  ;;  %v2055_v24 = vsub.s32 32, %v2054_v34  ;;  %v2053_v21 = vshrl.u32 %v2052_v17, 5  ;;  %v2057_v51 = vshll.u32 %v8400_v19, %v2054_v34 }
 0x23f   : > { %v1934_v33 = vsel %vm1927_vm8, %v1930_v14, %v1933_v16  ;;  %v2019_v26 = vmul.f32 %v2018_v0, %v2016_v59  ;;  %v2205_v50 = vadd.s32 536870912, %v2204_v25  ;;  %v2060_v38 = vshll.u32 %v8401_v23, %v2054_v34 }
 0x240   : > { %v1935_v54 = vsel %vm1924_vm4, nan, %v1934_v33  ;;  %v2058_v35 = vshrl.u32 %v8401_v23, %v2055_v24  ;;  %v2061_v53 = vshrl.u32 %v14055_v10, %v2055_v24  ;;  %v2064_v1 = vshrl.u32 %v8403_v27, %v2055_v24 }
 0x241   : > { %v7378_v62 = vsel %vm7366_vm6, %v9028_v20, %v1935_v54  ;;  %v2020_v9 = vxor.u32 2147483648, %v2019_v26  ;;  %v9909_v47 = vshrl.u32 %v2205_v50, 30  ;;  %v2063_v45 = vshll.u32 %v14055_v10, %v2054_v34 }
 0x242   : > { %7443 = vst.msk [vmem:[%s8911_s28 + $0x58] sm:$0xff] %vm7434_vm9, %v7378_v62  ;;  %v2059_v44 = vor.u32 %v2058_v35, %v2057_v51  ;;  %v2066_v20 = vshll.u32 %v8403_v27, %v2054_v34  ;;  %v2067_v3 = vshrl.u32 %v8404_v29, %v2055_v24  ;;  %v2062_v28 = vor.u32 %v2061_v53, %v2060_v38 }
 0x243   : > { %v2021_v7 = vsel %vm1938_vm11, %v2020_v9, %v2019_v26  ;;  %v2207_v55 = vshll.u32 %v9909_v47, 30  ;;  %v2069_v43 = vshll.u32 %v8404_v29, %v2054_v34  ;;  %v2065_v16 = vor.u32 %v2064_v1, %v2063_v45 }
 0x244   : > { %v2024_v17 = vsel %vm9837_vm12, %v9568_v61, %v2021_v7  ;;  %v2068_v32 = vor.u32 %v2067_v3, %v2066_v20  ;;  %v2070_v14 = vshrl.u32 %v8405_v52, %v2055_v24  ;;  %v9928_v0 = vadd.f32 %v8574_v39, %v9494_v58 }
 0x245   : > { %8183 = vcosq.f32 %v2024_v17  ;;  %v9924_v59 = vsub.s32 %v2204_v25, %v2207_v55  ;;  %v2030_v33 = vand.u32 3, %v2029_v15  ;;  %v2251_v34 = vand.u32 2139095040, %v9893_v18 }
 0x246   : > { %8185 = vsinq.f32 %v2024_v17  ;;  %v2071_v54 = vor.u32 %v2070_v14, %v2069_v43  ;;  %vm2146_vm11 = vcmp.lt.s32.totalorder %v9704_v31, 0  ;;  %vm2072_vm12 = vcmp.lt.s32.totalorder %v2053_v21, 1  ;;  %v9948_v43 = vpop.f32.mrb[10].mxu1 }
 0x247   : > { %v2210_v8 = vsub.s32 0, %v9924_v59  ;;  %vm2075_vm15 = vcmp.lt.s32.totalorder %v2053_v21, 4  ;;  %v2088_v26 = vshll.u32 %v2048_v63, 8  ;;  %vm2074_vm1 = vcmp.lt.s32.totalorder %v2053_v21, 3 }
 0x248   : > { %v2077_v50 = vsel %vm2075_vm15, %v2065_v16, 2102212464  ;;  %v2080_v25 = vsel %vm2072_vm12, %v2059_v44, %v2062_v28  ;;  %v2081_v62 = vsel %vm2075_vm15, %v2068_v32, 920167782  ;;  %v2056_v35 = vshrl.u32 %v8400_v19, %v2055_v24 }
 0x249   : > { %v7653_v51 = vmin.u32 %v2210_v8, %v9924_v59  ;;  %vm2073_vm7 = vcmp.lt.s32.totalorder %v2053_v21, 2  ;;  %v2082_v15 = vsel %vm2074_vm1, %v2065_v16, %v2081_v62  ;;  %v2084_v9 = vsel %vm2072_vm12, %v2062_v28, %v2065_v16 }
 0x24a   : > { %v2083_v53 = vsel %vm2073_vm7, %v2080_v25, %v2082_v15  ;;  %v2085_v38 = vsel %vm2075_vm15, %v2071_v54, 1326507024  ;;  %v2252_v1 = vshrl.u32 %v2251_v34, 23  ;;  %vm2031_vm4 = vcmp.lt.s32.totalorder %v2030_v33, 2 }
 0x24b   : > { %v2212_v63 = vclz %v7653_v51  ;;  %v2076_v45 = vsel %vm2072_vm12, %v2056_v35, %v2059_v44  ;;  %v2078_v20 = vsel %vm2074_vm1, %v2062_v28, %v2077_v50  ;;  %vm2028_vm8 = vweird.f32 %v9568_v61 }
 0x24c   : > { %v2230_v3 = vsub.s32 4, %v9909_v47  ;;  %v2086_v24 = vsel %vm2074_vm1, %v2068_v32, %v2085_v38  ;;  %v9944_v7 = vmul.u32.u64.low %v2088_v26, %v2083_v53  ;;  %v9945_v55 = vmul.u32.u64.high %v2088_v26, %v2083_v53, %v9944_v7 }
 0x24d   : > { %vm2032_vm0 = vcmp.eq.s32.totalorder %v2030_v33, 0  ;;  %v7654_v17 = vadd.s32 4294967294, %v2212_v63  ;;  %v2087_v16 = vsel %vm2073_vm7, %v2084_v9, %v2086_v24  ;;  %v7656_v14 = vadd.s32 4294967169, %v2252_v1 }
 0x24e   : > { %vm2035_vm2 = vcmp.eq.s32.totalorder %v2030_v33, 2  ;;  %v2079_v44 = vsel %vm2073_vm7, %v2076_v45, %v2078_v20  ;;  %v9952_v28 = vmul.u32.u64.low %v2088_v26, %v2087_v16  ;;  %v9953_v54 = vmul.u32.u64.high %v2088_v26, %v2087_v16, %v9952_v28 }
 0x24f   : > { %v8184_v34 = vpop.eup %8183  ;;  %v2200_v32 = vadd.s32 %v9868_v46, %v9865_v37  ;;  %vm7655_vm10 = vcmp.lt.s32.totalorder %v7654_v17, 0  ;;  %v2248_v8 = vand.u32 2147483647, %v9893_v18  ;;  %v2258_v50 = vadd.s32 1, %v7656_v14 }
 0x250   : > { %v8186_v25 = vpop.eup %8185  ;;  %v2036_v62 = vxor.u32 2147483648, %v8184_v34  ;;  %v2215_v51 = vsel %vm7655_vm10, 0, %v7654_v17  ;;  %v2231_v35 = vsel %vm2146_vm11, %v2230_v3, %v9909_v47  ;;  %v2098_v21 = vadd.s32 1, %v9945_v55 }
 0x251   : > { %v2033_v15 = vxor.u32 2147483648, %v8186_v25  ;;  %v2216_v53 = vsub.s32 32, %v2215_v51  ;;  %v2220_v9 = vsub.s32 4294967266, %v2215_v51  ;;  %v2095_v38 = vmul.u32 %v2088_v26, %v2079_v44 }
 0x252   : > { %v2037_v1 = vsel %vm2035_vm2, %v2036_v62, %v8186_v25  ;;  %v2217_v37 = vshll.u32 %v9924_v59, %v2215_v51  ;;  %vm2097_vm13 = vc.u32 %v9953_v54, %v9944_v7  ;;  %vm2259_vm12 = vcmp.gt.s32.totalorder %v2258_v50, 0 }
 0x253   : > { %v2034_v46 = vsel %vm2032_vm0, %v8184_v34, %v2033_v15  ;;  %v2218_v63 = vshrl.u32 %v2200_v32, %v2216_v53  ;;  %v2221_v45 = vadd.s32 127, %v2220_v9  ;;  %v2099_v47 = vsel %vm2097_vm13, %v2098_v21, %v9945_v55 }
 0x254   : > { %v2038_v20 = vsel %vm2031_vm4, %v2034_v46, %v2037_v1  ;;  %v2100_v3 = vadd.s32 %v2099_v47, %v2095_v38  ;;  %v2255_v26 = vand.u32 8388607, %v2248_v8  ;;  %v2260_v24 = vsel %vm2259_vm12, %v2258_v50, 0 }
 0x255   : > { %v2039_v59 = vsel %vm2028_vm8, nan, %v2038_v20  ;;  %v2219_v17 = vor.u32 %v2218_v63, %v2217_v37  ;;  %v2222_v16 = vshll.u32 %v2221_v45, 23  ;;  %vm9978_vm15 = vcmp.le.f32.partialorder %v2144_v13, 0.7853982 }
 0x256   : > { %v7379_v14 = vsel %vm7363_vm14, %v9167_v6, %v2039_v59  ;;  %v2101_v33 = vadd.s32 536870912, %v2100_v3  ;;  %v2262_v44 = vand.u32 31, %v2260_v24  ;;  %v2233_v61 = vsel %vm9978_vm15, 0, %v2231_v35 }
 0x257   : > { %7444 = vst [vmem:[%s8911_s28 + $0x60] sm:$0xff] %v7379_v14  ;;  %v2223_v28 = vor.u32 4788187, %v2222_v16  ;;  %v2352_v34 = vand.u32 2147483647, %v9928_v0  ;;  %v9988_v32 = vadd.f32 %v8578_v40, %v9576_v11  ;;  %v2256_v50 = vor.u32 8388608, %v2255_v26 }
 0x258   : > { %v9990_v6 = vshrl.u32 %v2101_v33, 30  ;;  %v2263_v13 = vsub.s32 32, %v2262_v44  ;;  %v2355_v25 = vand.u32 2139095040, %v9928_v0  ;;  %v2226_v51 = vcvt.s32.f32 %v2219_v17 }
 0x259   : > { %v2224_v62 = vand.u32 2147483647, %v2223_v28  ;;  %v9993_v21 = vshrl.u32 %v2260_v24, 5  ;;  %v2265_v15 = vshll.u32 %v8400_v19, %v2262_v44  ;;  %v2268_v9 = vshll.u32 %v8401_v23, %v2262_v44 }
 0x25a   : > { %v2103_v35 = vshll.u32 %v9990_v6, 30  ;;  %v2266_v53 = vshrl.u32 %v8401_v23, %v2263_v13  ;;  %v2271_v38 = vshll.u32 %v14055_v10, %v2262_v44  ;;  %v2269_v37 = vshrl.u32 %v14055_v10, %v2263_v13 }
 0x25b   : > { %v2227_v1 = vmul.f32 %v2226_v51, %v2224_v62  ;;  %v2272_v46 = vshrl.u32 %v8403_v27, %v2263_v13  ;;  %v2275_v63 = vshrl.u32 %v8404_v29, %v2263_v13  ;;  %v2237_v45 = vadd.s32 3, %v2233_v61 }
 0x25c   : > { %v10003_v47 = vsub.s32 %v2100_v3, %v2103_v35  ;;  %v2274_v20 = vshll.u32 %v8403_v27, %v2262_v44  ;;  %v2278_v26 = vshrl.u32 %v8405_v52, %v2263_v13  ;;  %v2267_v59 = vor.u32 %v2266_v53, %v2265_v15 }
 0x25d   : > { %v2228_v24 = vxor.u32 2147483648, %v2227_v1  ;;  %v2270_v17 = vor.u32 %v2269_v37, %v2268_v9  ;;  %v2273_v16 = vor.u32 %v2272_v46, %v2271_v38  ;;  %v2277_v28 = vshll.u32 %v8404_v29, %v2262_v44 }
 0x25e   : > { %v2106_v14 = vsub.s32 0, %v10003_v47  ;;  %v2276_v33 = vor.u32 %v2275_v63, %v2274_v20  ;;  %v10009_v62 = vshll.u32 %v2256_v50, 8  ;;  %vm2042_vm1 = vcmp.lt.s32.totalorder %v9789_v2, 0 }
 0x25f   : > { %v2229_v61 = vsel %vm2146_vm11, %v2228_v24, %v2227_v1  ;;  %v2264_v3 = vshrl.u32 %v8400_v19, %v2263_v13  ;;  %vm2280_vm7 = vcmp.lt.s32.totalorder %v9993_v21, 1  ;;  %v2356_v51 = vshrl.u32 %v2355_v25, 23 }
 0x260   : > { %v2232_v15 = vsel %vm9978_vm15, %v9704_v31, %v2229_v61  ;;  %v7649_v35 = vmin.u32 %v2106_v14, %v10003_v47  ;;  %v2279_v53 = vor.u32 %v2278_v26, %v2277_v28  ;;  %vm2283_vm4 = vcmp.lt.s32.totalorder %v9993_v21, 4 }
 0x261   : > { %8187 = vcosq.f32 %v2232_v15  ;;  %v2285_v44 = vsel %vm2283_vm4, %v2273_v16, 2102212464  ;;  %v2288_v50 = vsel %vm2280_vm7, %v2267_v59, %v2270_v17  ;;  %v2289_v13 = vsel %vm2283_vm4, %v2276_v33, 920167782 }
 0x262   : > { %8189 = vsinq.f32 %v2232_v15  ;;  %v2108_v25 = vclz %v7649_v35  ;;  %vm2281_vm11 = vcmp.lt.s32.totalorder %v9993_v21, 2  ;;  %vm2282_vm8 = vcmp.lt.s32.totalorder %v9993_v21, 3 }
 0x263   : > { %v2126_v55 = vsub.s32 4, %v9990_v6  ;;  %v2284_v9 = vsel %vm2280_vm7, %v2264_v3, %v2267_v59  ;;  %v2290_v38 = vsel %vm2282_vm8, %v2273_v16, %v2289_v13  ;;  %v2292_v1 = vsel %vm2280_vm7, %v2270_v17, %v2273_v16 }
 0x264   : > { %v7650_v37 = vadd.s32 4294967294, %v2108_v25  ;;  %v2286_v46 = vsel %vm2282_vm8, %v2270_v17, %v2285_v44  ;;  %v2291_v63 = vsel %vm2281_vm11, %v2288_v50, %v2290_v38  ;;  %v2293_v20 = vsel %vm2283_vm4, %v2279_v53, 1326507024 }
 0x265   : > { %v2294_v26 = vsel %vm2282_vm8, %v2276_v33, %v2293_v20  ;;  %v10039_v24 = vmul.u32.u64.low %v10009_v62, %v2291_v63  ;;  %v10040_v14 = vmul.u32.u64.high %v10009_v62, %v2291_v63, %v10039_v24  ;;  %v7660_v28 = vadd.s32 4294967169, %v2356_v51 }
 0x266   : > { %vm10045_vm0 = vcmp.le.f32.partialorder %v2040_v57, 0.7853982  ;;  %v2096_v17 = vadd.s32 %v9944_v7, %v9953_v54  ;;  %vm7651_vm2 = vcmp.lt.s32.totalorder %v7650_v37, 0  ;;  %v2295_v16 = vsel %vm2281_vm11, %v2292_v1, %v2294_v26  ;;  %v10067_v1 = vpop.f32.mrb[11].mxu0 }
 0x267   : > { %v2111_v33 = vsel %vm7651_vm2, 0, %v7650_v37  ;;  %v10054_v61 = vmul.u32.u64.low %v10009_v62, %v2295_v16  ;;  %v10055_v3 = vmul.u32.u64.high %v10009_v62, %v2295_v16, %v10054_v61  ;;  %v2362_v15 = vadd.s32 1, %v7660_v28 }
 0x268   : > { %vm2236_vm10 = vweird.f32 %v9704_v31  ;;  %v2112_v51 = vsub.s32 32, %v2111_v33  ;;  %v2116_v57 = vsub.s32 4294967266, %v2111_v33  ;;  %v2127_v35 = vsel %vm2042_vm1, %v2126_v55, %v9990_v6 }
 0x269   : > { %v2287_v7 = vsel %vm2281_vm11, %v2284_v9, %v2286_v46  ;;  %v2238_v54 = vand.u32 3, %v2237_v45  ;;  %v2306_v53 = vadd.s32 1, %v10040_v14  ;;  %v2359_v44 = vand.u32 8388607, %v2352_v34 }
 0x26a   : > { %vm2363_vm13 = vcmp.gt.s32.totalorder %v2362_v15, 0  ;;  %v2113_v50 = vshll.u32 %v10003_v47, %v2111_v33  ;;  %v2114_v13 = vshrl.u32 %v2096_v17, %v2112_v51  ;;  %v2117_v25 = vadd.s32 127, %v2116_v57 }
 0x26b   : > { %v2364_v38 = vsel %vm2363_vm13, %v2362_v15, 0  ;;  %v8188_v37 = vpop.eup %8187  ;;  %v2129_v6 = vsel %vm10045_vm0, 0, %v2127_v35  ;;  %v2303_v21 = vmul.u32 %v10009_v62, %v2287_v7  ;;  %vm2305_vm12 = vc.u32 %v10055_v3, %v10039_v24 }
 0x26c   : > { %v2366_v45 = vand.u32 31, %v2364_v38  ;;  %v8190_v55 = vpop.eup %8189  ;;  %v2244_v9 = vxor.u32 2147483648, %v8188_v37  ;;  %v2115_v46 = vor.u32 %v2114_v13, %v2113_v50  ;;  %v2118_v63 = vshll.u32 %v2117_v25, 23 }
 0x26d   : > { %v2307_v47 = vsel %vm2305_vm12, %v2306_v53, %v10040_v14  ;;  %v2241_v20 = vxor.u32 2147483648, %v8190_v55  ;;  %vm2243_vm15 = vcmp.eq.s32.totalorder %v2238_v54, 2  ;;  %vm2239_vm7 = vcmp.lt.s32.totalorder %v2238_v54, 2 }
 0x26e   : > { %v2308_v26 = vadd.s32 %v2307_v47, %v2303_v21  ;;  %v2367_v28 = vsub.s32 32, %v2366_v45  ;;  %vm2240_vm4 = vcmp.eq.s32.totalorder %v2238_v54, 0  ;;  %v2245_v17 = vsel %vm2243_vm15, %v2244_v9, %v8190_v55 }
 0x26f   : > { %v2119_v16 = vor.u32 4788187, %v2118_v63  ;;  %v2242_v33 = vsel %vm2240_vm4, %v8188_v37, %v2241_v20  ;;  %v2133_v62 = vadd.s32 3, %v2129_v6  ;;  %v2360_v15 = vor.u32 8388608, %v2359_v44 }
 0x270   : > { %v2309_v61 = vadd.s32 536870912, %v2308_v26  ;;  %v2246_v51 = vsel %vm2239_vm7, %v2242_v33, %v2245_v17  ;;  %v2122_v35 = vcvt.s32.f32 %v2115_v46  ;;  %v2365_v7 = vshrl.u32 %v2364_v38, 5 }
 0x271   : > { %v2120_v57 = vand.u32 2147483647, %v2119_v16  ;;  %v2247_v14 = vsel %vm2236_vm10, nan, %v2246_v51  ;;  %v2370_v50 = vshrl.u32 %v8401_v23, %v2367_v28  ;;  %v2376_v54 = vshrl.u32 %v8403_v27, %v2367_v28 }
 0x272   : > { %v10077_v53 = vshrl.u32 %v2309_v61, 30  ;;  %v7381_v13 = vsel %vm7365_vm5, %v9216_v60, %v2247_v14  ;;  %v2369_v44 = vshll.u32 %v8400_v19, %v2366_v45  ;;  %v2373_v37 = vshrl.u32 %v14055_v10, %v2367_v28 }
 0x273   : > { %v2123_v25 = vmul.f32 %v2122_v35, %v2120_v57  ;;  %7446 = vst [vmem:[%s8911_s28 + $0x70] sm:$0xff] %v7381_v13  ;;  %v2372_v31 = vshll.u32 %v8401_v23, %v2366_v45  ;;  %v2375_v6 = vshll.u32 %v14055_v10, %v2366_v45  ;;  %v2379_v21 = vshrl.u32 %v8404_v29, %v2367_v28 }
 0x274   : > { %v2311_v38 = vshll.u32 %v10077_v53, 30  ;;  %v2378_v9 = vshll.u32 %v8403_v27, %v2366_v45  ;;  %v2381_v46 = vshll.u32 %v8404_v29, %v2366_v45  ;;  %v2382_v60 = vshrl.u32 %v8405_v52, %v2367_v28 }
 0x275   : > { %v2124_v55 = vxor.u32 2147483648, %v2123_v25  ;;  %v2371_v47 = vor.u32 %v2370_v50, %v2369_v44  ;;  %v2377_v20 = vor.u32 %v2376_v54, %v2375_v6  ;;  %v2374_v16 = vor.u32 %v2373_v37, %v2372_v31 }
 0x276   : > { %v10094_v63 = vsub.s32 %v2308_v26, %v2311_v38  ;;  %v2380_v33 = vor.u32 %v2379_v21, %v2378_v9  ;;  %v2383_v61 = vor.u32 %v2382_v60, %v2381_v46  ;;  %v10101_v57 = vand.u32 3, %v2133_v62  ;;  %v10110_v46 = vpop.f32.mrb[11].mxu1 }
 0x277   : > { %v2125_v17 = vsel %vm2042_vm1, %v2124_v55, %v2123_v25  ;;  %v2400_v35 = vshll.u32 %v2360_v15, 8  ;;  %v2368_v26 = vshrl.u32 %v8400_v19, %v2367_v28  ;;  %vm2387_vm11 = vcmp.lt.s32.totalorder %v2365_v7, 4 }
 0x278   : > { %v2128_v51 = vsel %vm10045_vm0, %v9789_v2, %v2125_v17  ;;  %v2314_v45 = vsub.s32 0, %v10094_v63  ;;  %v2563_v14 = vand.u32 2139095040, %v9988_v32  ;;  %vm2384_vm1 = vcmp.lt.s32.totalorder %v2365_v7, 1 }
 0x279   : > { %8191 = vcosq.f32 %v2128_v51  ;;  %v2389_v54 = vsel %vm2387_vm11, %v2377_v20, 2102212464  ;;  %v2392_v13 = vsel %vm2384_vm1, %v2371_v47, %v2374_v16  ;;  %v2393_v25 = vsel %vm2387_vm11, %v2380_v33, 920167782 }
 0x27a   : > { %8193 = vsinq.f32 %v2128_v51  ;;  %v7657_v50 = vmin.u32 %v2314_v45, %v10094_v63  ;;  %v2396_v59 = vsel %vm2384_vm1, %v2374_v16, %v2377_v20  ;;  %v2397_v44 = vsel %vm2387_vm11, %v2383_v61, 1326507024 }
 0x27b   : > { %v2334_v37 = vsub.s32 4, %v10077_v53  ;;  %vm2385_vm8 = vcmp.lt.s32.totalorder %v2365_v7, 2  ;;  %vm2386_vm0 = vcmp.lt.s32.totalorder %v2365_v7, 3  ;;  %v2388_v15 = vsel %vm2384_vm1, %v2368_v26, %v2371_v47 }
 0x27c   : > { %v2316_v62 = vclz %v7657_v50  ;;  %v2390_v38 = vsel %vm2386_vm0, %v2374_v16, %v2389_v54  ;;  %v2394_v28 = vsel %vm2386_vm0, %v2377_v20, %v2393_v25  ;;  %v2398_v31 = vsel %vm2386_vm0, %v2380_v33, %v2397_v44 }
 0x27d   : > { %v2395_v21 = vsel %vm2385_vm8, %v2392_v13, %v2394_v28  ;;  %v2399_v55 = vsel %vm2385_vm8, %v2396_v59, %v2398_v31  ;;  %v2564_v9 = vshrl.u32 %v2563_v14, 23  ;;  %vm2132_vm2 = vweird.f32 %v9789_v2 }
 0x27e   : > { %v7658_v6 = vadd.s32 4294967294, %v2316_v62  ;;  %v10112_v60 = vmul.u32.u64.low %v2400_v35, %v2399_v55  ;;  %v10113_v17 = vmul.u32.u64.high %v2400_v35, %v2399_v55, %v10112_v60  ;;  %vm2250_vm10 = vcmp.lt.s32.totalorder %v9893_v18, 0 }
 0x27f   : > { %v10115_v61 = vmul.u32.u64.low %v2400_v35, %v2395_v21  ;;  %v10116_v51 = vmul.u32.u64.high %v2400_v35, %v2395_v21, %v10115_v61  ;;  %v2391_v47 = vsel %vm2385_vm8, %v2388_v15, %v2390_v38  ;;  %v7668_v20 = vadd.s32 4294967169, %v2564_v9 }
 0x280   : > { %vm7659_vm13 = vcmp.lt.s32.totalorder %v7658_v6, 0  ;;  %vm2136_vm12 = vcmp.eq.s32.totalorder %v10101_v57, 0  ;;  %vm10125_vm15 = vcmp.le.f32.partialorder %v2248_v8, 0.7853982  ;;  %v2560_v45 = vand.u32 2147483647, %v9988_v32 }
 0x281   : > { %v2319_v33 = vsel %vm7659_vm13, 0, %v7658_v6  ;;  %v2304_v26 = vadd.s32 %v10039_v24, %v10055_v3  ;;  %v2335_v7 = vsel %vm2250_vm10, %v2334_v37, %v10077_v53  ;;  %v2407_v13 = vmul.u32 %v2400_v35, %v2391_v47 }
 0x282   : > { %v2320_v14 = vsub.s32 32, %v2319_v33  ;;  %v2324_v50 = vsub.s32 4294967266, %v2319_v33  ;;  %vm2409_vm7 = vc.u32 %v10113_v17, %v10115_v61  ;;  %v2410_v8 = vadd.s32 1, %v10116_v51 }
 0x283   : > { %v8192_v54 = vpop.eup %8191  ;;  %v2570_v25 = vadd.s32 1, %v7668_v20  ;;  %v2321_v62 = vshll.u32 %v10094_v63, %v2319_v33  ;;  %vm2139_vm4 = vcmp.eq.s32.totalorder %v10101_v57, 2  ;;  %vm2135_vm1 = vcmp.lt.s32.totalorder %v10101_v57, 2 }
 0x284   : > { %v8194_v59 = vpop.eup %8193  ;;  %v2140_v44 = vxor.u32 2147483648, %v8192_v54  ;;  %v2322_v15 = vshrl.u32 %v2304_v26, %v2320_v14  ;;  %v2325_v24 = vadd.s32 127, %v2324_v50  ;;  %v2411_v38 = vsel %vm2409_vm7, %v2410_v8, %v10116_v51 }
 0x285   : > { %v2137_v3 = vxor.u32 2147483648, %v8194_v59  ;;  %vm2571_vm11 = vcmp.gt.s32.totalorder %v2570_v25, 0  ;;  %v2412_v28 = vadd.s32 %v2411_v38, %v2407_v13  ;;  %v2337_v63 = vsel %vm10125_vm15, 0, %v2335_v7 }
 0x286   : > { %v2141_v53 = vsel %vm2139_vm4, %v2140_v44, %v8194_v59  ;;  %v2323_v35 = vor.u32 %v2322_v15, %v2321_v62  ;;  %v2326_v37 = vshll.u32 %v2325_v24, 23  ;;  %v2572_v6 = vsel %vm2571_vm11, %v2570_v25, 0 }
 0x287   : > { %v2138_v31 = vsel %vm2136_vm12, %v8192_v54, %v2137_v3  ;;  %v2413_v9 = vadd.s32 536870912, %v2412_v28  ;;  %v2567_v60 = vand.u32 8388607, %v2560_v45  ;;  %v2574_v47 = vand.u32 31, %v2572_v6 }
 0x288   : > { %v2142_v21 = vsel %vm2135_vm1, %v2138_v31, %v2141_v53  ;;  %v2327_v55 = vor.u32 4788187, %v2326_v37  ;;  %v2330_v33 = vcvt.s32.f32 %v2323_v35  ;;  %v2341_v14 = vadd.s32 3, %v2337_v63 }
 0x289   : > { %v2143_v51 = vsel %vm2132_vm2, nan, %v2142_v21  ;;  %v10153_v26 = vshrl.u32 %v2413_v9, 30  ;;  %v2575_v50 = vsub.s32 32, %v2574_v47  ;;  %v10158_v7 = vadd.f32 %v8582_v41, %v9686_v48 }
 0x28a   : > { %v7380_v20 = vsel %vm7364_vm3, %v9322_v5, %v2143_v51  ;;  %v2328_v57 = vand.u32 2147483647, %v2327_v55  ;;  %v2568_v13 = vor.u32 8388608, %v2567_v60  ;;  %v2577_v8 = vshll.u32 %v8400_v19, %v2574_v47 }
 0x28b   : > { %7445 = vst [vmem:[%s8911_s28 + $0x68] sm:$0xff] %v7380_v20  ;;  %v2415_v2 = vshll.u32 %v10153_v26, 30  ;;  %v2578_v25 = vshrl.u32 %v8401_v23, %v2575_v50  ;;  %v2580_v5 = vshll.u32 %v8401_v23, %v2574_v47  ;;  %v2581_v59 = vshrl.u32 %v14055_v10, %v2575_v50 }
 0x28c   : > { %v2331_v54 = vmul.f32 %v2330_v33, %v2328_v57  ;;  %v2584_v44 = vshrl.u32 %v8403_v27, %v2575_v50  ;;  %v2583_v24 = vshll.u32 %v14055_v10, %v2574_v47  ;;  %v2587_v3 = vshrl.u32 %v8404_v29, %v2575_v50 }
 0x28d   : > { %v10166_v15 = vsub.s32 %v2412_v28, %v2415_v2  ;;  %v10170_v38 = vand.u32 3, %v2341_v14  ;;  %v2573_v53 = vshrl.u32 %v2572_v6, 5  ;;  %v2579_v35 = vor.u32 %v2578_v25, %v2577_v8 }
 0x28e   : > { %v2332_v62 = vxor.u32 2147483648, %v2331_v54  ;;  %v2586_v37 = vshll.u32 %v8403_v27, %v2574_v47  ;;  %v2582_v21 = vor.u32 %v2581_v59, %v2580_v5  ;;  %v2585_v55 = vor.u32 %v2584_v44, %v2583_v24 }
 0x28f   : > { %v2418_v63 = vsub.s32 0, %v10166_v15  ;;  %vm2354_vm8 = vcmp.lt.s32.totalorder %v9928_v0, 0  ;;  %v2589_v60 = vshll.u32 %v8404_v29, %v2574_v47  ;;  %v2590_v6 = vshrl.u32 %v8405_v52, %v2575_v50 }
 0x290   : > { %v2333_v31 = vsel %vm2250_vm10, %v2332_v62, %v2331_v54  ;;  %v2588_v9 = vor.u32 %v2587_v3, %v2586_v37  ;;  %v10183_v20 = vshll.u32 %v2568_v13, 8  ;;  %v2459_v57 = vand.u32 2139095040, %v10158_v7 }
 0x291   : > { %v2336_v28 = vsel %vm10125_vm15, %v9893_v18, %v2333_v31  ;;  %v7661_v51 = vmin.u32 %v2418_v63, %v10166_v15  ;;  %v2438_v33 = vsub.s32 4, %v10153_v26  ;;  %v2576_v16 = vshrl.u32 %v8400_v19, %v2575_v50 }
 0x292   : > { %8195 = vcosq.f32 %v2336_v28  ;;  %v2591_v14 = vor.u32 %v2590_v6, %v2589_v60  ;;  %vm2592_vm0 = vcmp.lt.s32.totalorder %v2573_v53, 1  ;;  %vm2593_vm2 = vcmp.lt.s32.totalorder %v2573_v53, 2 }
 0x293   : > { %8197 = vsinq.f32 %v2336_v28  ;;  %v2420_v54 = vclz %v7661_v51  ;;  %vm2595_vm10 = vcmp.lt.s32.totalorder %v2573_v53, 4  ;;  %vm2594_vm13 = vcmp.lt.s32.totalorder %v2573_v53, 3 }
 0x294   : > { %v2597_v47 = vsel %vm2595_vm10, %v2585_v55, 2102212464  ;;  %v2600_v2 = vsel %vm2592_vm0, %v2579_v35, %v2582_v21  ;;  %v2601_v8 = vsel %vm2595_vm10, %v2588_v9, 920167782  ;;  %vm10190_vm12 = vcmp.le.f32.partialorder %v2352_v34, 0.7853982 }
 0x295   : > { %v7662_v25 = vadd.s32 4294967294, %v2420_v54  ;;  %v2596_v5 = vsel %vm2592_vm0, %v2576_v16, %v2579_v35  ;;  %v2602_v59 = vsel %vm2594_vm13, %v2585_v55, %v2601_v8  ;;  %v2604_v44 = vsel %vm2592_vm0, %v2582_v21, %v2585_v55 }
 0x296   : > { %vm2344_vm15 = vcmp.eq.s32.totalorder %v10170_v38, 0  ;;  %v2598_v50 = vsel %vm2594_vm13, %v2582_v21, %v2597_v47  ;;  %v2603_v62 = vsel %vm2593_vm2, %v2600_v2, %v2602_v59  ;;  %v2605_v24 = vsel %vm2595_vm10, %v2591_v14, 1326507024 }
 0x297   : > { %v2460_v3 = vshrl.u32 %v2459_v57, 23  ;;  %vm7663_vm7 = vcmp.lt.s32.totalorder %v7662_v25, 0  ;;  %v2606_v37 = vsel %vm2594_vm13, %v2588_v9, %v2605_v24  ;;  %v2456_v35 = vand.u32 2147483647, %v10158_v7 }
 0x298   : > { %v10197_v31 = vmul.u32.u64.low %v10183_v20, %v2603_v62  ;;  %v10198_v63 = vmul.u32.u64.high %v10183_v20, %v2603_v62, %v10197_v31  ;;  %v2423_v34 = vsel %vm7663_vm7, 0, %v7662_v25  ;;  %v2607_v28 = vsel %vm2593_vm2, %v2604_v44, %v2606_v37 }
 0x299   : > { %v7664_v55 = vadd.s32 4294967169, %v2460_v3  ;;  %v2408_v21 = vadd.s32 %v10115_v61, %v10113_v17  ;;  %v2424_v60 = vsub.s32 32, %v2423_v34  ;;  %v2428_v6 = vsub.s32 4294967266, %v2423_v34  ;;  %v10215_v61 = vpop.f32.mrb[12].mxu0 }
 0x29a   : > { %v2439_v9 = vsel %vm2354_vm8, %v2438_v33, %v10153_v26  ;;  %v2599_v51 = vsel %vm2593_vm2, %v2596_v5, %v2598_v50  ;;  %v10210_v57 = vmul.u32.u64.low %v10183_v20, %v2607_v28  ;;  %v10211_v16 = vmul.u32.u64.high %v10183_v20, %v2607_v28, %v10210_v57 }
 0x29b   : > { %v2466_v14 = vadd.s32 1, %v7664_v55  ;;  %v2425_v47 = vshll.u32 %v10166_v15, %v2423_v34  ;;  %v2426_v2 = vshrl.u32 %v2408_v21, %v2424_v60  ;;  %v2429_v8 = vadd.s32 127, %v2428_v6 }
 0x29c   : > { %v8196_v54 = vpop.eup %8195  ;;  %v2618_v17 = vadd.s32 1, %v10198_v63  ;;  %vm2347_vm4 = vcmp.eq.s32.totalorder %v10170_v38, 2  ;;  %v2463_v53 = vand.u32 8388607, %v2456_v35  ;;  %v2441_v15 = vsel %vm10190_vm12, 0, %v2439_v9 }
 0x29d   : > { %v8198_v25 = vpop.eup %8197  ;;  %v2348_v26 = vxor.u32 2147483648, %v8196_v54  ;;  %vm2467_vm11 = vcmp.gt.s32.totalorder %v2466_v14, 0  ;;  %v2427_v5 = vor.u32 %v2426_v2, %v2425_v47  ;;  %v2430_v59 = vshll.u32 %v2429_v8, 23 }
 0x29e   : > { %v2345_v33 = vxor.u32 2147483648, %v8198_v25  ;;  %v2468_v44 = vsel %vm2467_vm11, %v2466_v14, 0  ;;  %v2615_v62 = vmul.u32 %v10183_v20, %v2599_v51  ;;  %vm2617_vm1 = vc.u32 %v10211_v16, %v10197_v31 }
 0x29f   : > { %v2349_v50 = vsel %vm2347_vm4, %v2348_v26, %v8198_v25  ;;  %vm2343_vm0 = vcmp.lt.s32.totalorder %v10170_v38, 2  ;;  %v2431_v3 = vor.u32 4788187, %v2430_v59  ;;  %v2619_v37 = vsel %vm2617_vm1, %v2618_v17, %v10198_v63 }
 0x2a0   : > { %v2346_v24 = vsel %vm2344_vm15, %v8196_v54, %v2345_v33  ;;  %vm2340_vm2 = vweird.f32 %v9893_v18  ;;  %v2620_v28 = vadd.s32 %v2619_v37, %v2615_v62  ;;  %v2470_v55 = vand.u32 31, %v2468_v44 }
 0x2a1   : > { %v2350_v34 = vsel %vm2343_vm0, %v2346_v24, %v2349_v50  ;;  %v2432_v60 = vand.u32 2147483647, %v2431_v3  ;;  %v2434_v20 = vcvt.s32.f32 %v2427_v5  ;;  %v2445_v6 = vadd.s32 3, %v2441_v15 }
 0x2a2   : > { %v2351_v21 = vsel %vm2340_vm2, nan, %v2350_v34  ;;  %v2621_v51 = vadd.s32 536870912, %v2620_v28  ;;  %v2464_v38 = vor.u32 8388608, %v2463_v53  ;;  %v2471_v57 = vsub.s32 32, %v2470_v55 }
 0x2a3   : > { %v7382_v9 = vsel %vm7366_vm6, %v9401_v22, %v2351_v21  ;;  %v2435_v14 = vmul.f32 %v2434_v20, %v2432_v60  ;;  %v2469_v63 = vshrl.u32 %v2468_v44, 5  ;;  %v2473_v18 = vshll.u32 %v8400_v19, %v2470_v55 }
 0x2a4   : > { %7447 = vst.msk [vmem:[%s8911_s28 + $0x78] sm:$0xff] %vm7434_vm9, %v7382_v9  ;;  %v2476_v54 = vshll.u32 %v8401_v23, %v2470_v55  ;;  %vm2562_vm10 = vcmp.lt.s32.totalorder %v9988_v32, 0  ;;  %v2622_v47 = vshrl.u32 %v2621_v51, 30  ;;  %v2474_v2 = vshrl.u32 %v8401_v23, %v2471_v57 }
 0x2a5   : > { %v2477_v8 = vshrl.u32 %v14055_v10, %v2471_v57  ;;  %v2479_v22 = vshll.u32 %v14055_v10, %v2470_v55  ;;  %v2436_v17 = vxor.u32 2147483648, %v2435_v14  ;;  %v2480_v25 = vshrl.u32 %v8403_v27, %v2471_v57 }
 0x2a6   : > { %v2482_v26 = vshll.u32 %v8403_v27, %v2470_v55  ;;  %v2483_v53 = vshrl.u32 %v8404_v29, %v2471_v57  ;;  %v2623_v33 = vshll.u32 %v2622_v47, 30  ;;  %v2475_v5 = vor.u32 %v2474_v2, %v2473_v18 }
 0x2a7   : > { %v2478_v59 = vor.u32 %v2477_v8, %v2476_v54  ;;  %v2485_v44 = vshll.u32 %v8404_v29, %v2470_v55  ;;  %v2437_v50 = vsel %vm2354_vm8, %v2436_v17, %v2435_v14  ;;  %v2481_v15 = vor.u32 %v2480_v25, %v2479_v22 }
 0x2a8   : > { %v2484_v62 = vor.u32 %v2483_v53, %v2482_v26  ;;  %v2486_v24 = vshrl.u32 %v8405_v52, %v2471_v57  ;;  %v2440_v3 = vsel %vm10190_vm12, %v9928_v0, %v2437_v50  ;;  %v10251_v37 = vand.u32 3, %v2445_v6 }
 0x2a9   : > { %v10253_v34 = vsub.s32 %v2620_v28, %v2623_v33  ;;  %v10257_v21 = vadd.f32 %v8624_v4, %v9761_v49  ;;  %8199 = vcosq.f32 %v2440_v3  ;;  %v2646_v55 = vsub.s32 4, %v2622_v47 }
 0x2aa   : > { %v2487_v60 = vor.u32 %v2486_v24, %v2485_v44  ;;  %v2504_v20 = vshll.u32 %v2464_v38, 8  ;;  %8201 = vsinq.f32 %v2440_v3  ;;  %vm2488_vm8 = vcmp.lt.s32.totalorder %v2469_v63, 1 }
 0x2ab   : > { %v2626_v9 = vsub.s32 0, %v10253_v34  ;;  %vm2491_vm13 = vcmp.lt.s32.totalorder %v2469_v63, 4  ;;  %vm2490_vm15 = vcmp.lt.s32.totalorder %v2469_v63, 3  ;;  %v2496_v6 = vsel %vm2488_vm8, %v2475_v5, %v2478_v59 }
 0x2ac   : > { %v2493_v13 = vsel %vm2491_vm13, %v2481_v15, 2102212464  ;;  %v2497_v51 = vsel %vm2491_vm13, %v2484_v62, 920167782  ;;  %v2472_v14 = vshrl.u32 %v8400_v19, %v2471_v57  ;;  %vm2489_vm12 = vcmp.lt.s32.totalorder %v2469_v63, 2 }
 0x2ad   : > { %v7669_v28 = vmin.u32 %v2626_v9, %v10253_v34  ;;  %v2498_v18 = vsel %vm2490_vm15, %v2481_v15, %v2497_v51  ;;  %v2647_v38 = vsel %vm2562_vm10, %v2646_v55, %v2622_v47  ;;  %v2500_v2 = vsel %vm2488_vm8, %v2478_v59, %v2481_v15 }
 0x2ae   : > { %v2499_v54 = vsel %vm2489_vm12, %v2496_v6, %v2498_v18  ;;  %v2501_v8 = vsel %vm2491_vm13, %v2487_v60, 1326507024  ;;  %vm10270_vm7 = vcmp.le.f32.partialorder %v2560_v45, 0.7853982  ;;  %v2492_v57 = vsel %vm2488_vm8, %v2472_v14, %v2475_v5 }
 0x2af   : > { %v2628_v17 = vclz %v7669_v28  ;;  %v2494_v25 = vsel %vm2490_vm15, %v2478_v59, %v2493_v13  ;;  %vm2447_vm4 = vcmp.lt.s32.totalorder %v10251_v37, 2  ;;  %v2502_v47 = vsel %vm2490_vm15, %v2484_v62, %v2501_v8 }
 0x2b0   : > { %v10278_v26 = vmul.u32.u64.low %v2504_v20, %v2499_v54  ;;  %v10279_v53 = vmul.u32.u64.high %v2504_v20, %v2499_v54, %v10278_v26  ;;  %v2667_v33 = vand.u32 2139095040, %v10257_v21  ;;  %vm2444_vm11 = vweird.f32 %v9928_v0 }
 0x2b1   : > { %vm2448_vm1 = vcmp.eq.s32.totalorder %v10251_v37, 0  ;;  %v7670_v45 = vadd.s32 4294967294, %v2628_v17  ;;  %v2649_v5 = vsel %vm10270_vm7, 0, %v2647_v38  ;;  %v2503_v59 = vsel %vm2489_vm12, %v2500_v2, %v2502_v47  ;;  %v10297_v38 = vpop.f32.mrb[12].mxu1 }
 0x2b2   : > { %v2495_v44 = vsel %vm2489_vm12, %v2492_v57, %v2494_v25  ;;  %v10289_v50 = vmul.u32.u64.low %v2504_v20, %v2503_v59  ;;  %v10290_v15 = vmul.u32.u64.high %v2504_v20, %v2503_v59, %v10289_v50  ;;  %v2668_v62 = vshrl.u32 %v2667_v33, 23 }
 0x2b3   : > { %vm2451_vm0 = vcmp.eq.s32.totalorder %v10251_v37, 2  ;;  %v2616_v24 = vadd.s32 %v10197_v31, %v10211_v16  ;;  %vm7671_vm2 = vcmp.lt.s32.totalorder %v7670_v45, 0  ;;  %v2664_v3 = vand.u32 2147483647, %v10257_v21  ;;  %v8200_v55 = vpop.eup %8199 }
 0x2b4   : > { %v2631_v60 = vsel %vm7671_vm2, 0, %v7670_v45  ;;  %v2653_v9 = vadd.s32 3, %v2649_v5  ;;  %v2514_v13 = vadd.s32 1, %v10279_v53  ;;  %v7672_v6 = vadd.s32 4294967169, %v2668_v62  ;;  %v8202_v63 = vpop.eup %8201 }
 0x2b5   : > { %v2452_v51 = vxor.u32 2147483648, %v8200_v55  ;;  %v2632_v28 = vsub.s32 32, %v2631_v60  ;;  %v2636_v14 = vsub.s32 4294967266, %v2631_v60  ;;  %v2511_v18 = vmul.u32 %v2504_v20, %v2495_v44 }
 0x2b6   : > { %v2449_v54 = vxor.u32 2147483648, %v8202_v63  ;;  %v2633_v2 = vshll.u32 %v10253_v34, %v2631_v60  ;;  %vm2513_vm8 = vc.u32 %v10290_v15, %v10278_v26  ;;  %v2674_v31 = vadd.s32 1, %v7672_v6 }
 0x2b7   : > { %v2453_v16 = vsel %vm2451_vm0, %v2452_v51, %v8202_v63  ;;  %v2634_v8 = vshrl.u32 %v2616_v24, %v2632_v28  ;;  %v2637_v17 = vadd.s32 127, %v2636_v14  ;;  %v2515_v57 = vsel %vm2513_vm8, %v2514_v13, %v10279_v53 }
 0x2b8   : > { %v2450_v20 = vsel %vm2448_vm1, %v8200_v55, %v2449_v54  ;;  %v2516_v25 = vadd.s32 %v2515_v57, %v2511_v18  ;;  %v2671_v47 = vand.u32 8388607, %v2664_v3  ;;  %vm2675_vm13 = vcmp.gt.s32.totalorder %v2674_v31, 0 }
 0x2b9   : > { %v2454_v34 = vsel %vm2447_vm4, %v2450_v20, %v2453_v16  ;;  %v2635_v33 = vor.u32 %v2634_v8, %v2633_v2  ;;  %v2638_v45 = vshll.u32 %v2637_v17, 23  ;;  %v2676_v5 = vsel %vm2675_vm13, %v2674_v31, 0 }
 0x2ba   : > { %v2455_v59 = vsel %vm2444_vm11, nan, %v2454_v34  ;;  %v2517_v44 = vadd.s32 536870912, %v2516_v25  ;;  %v2678_v50 = vand.u32 31, %v2676_v5  ;;  %v10315_v53 = vadd.f32 %v8574_v39, %v9873_v36 }
 0x2bb   : > { %v7383_v62 = vsel %vm7363_vm14, %v9494_v58, %v2455_v59  ;;  %v2639_v24 = vor.u32 4788187, %v2638_v45  ;;  %v2642_v13 = vcvt.s32.f32 %v2635_v33  ;;  %v10323_v6 = vand.u32 3, %v2653_v9 }
 0x2bc   : > { %7448 = vst [vmem:[%s8911_s28 + $0x80] sm:$0xff] %v7383_v62  ;;  %v10321_v37 = vshrl.u32 %v2517_v44, 30  ;;  %v2679_v55 = vsub.s32 32, %v2678_v50  ;;  %v2672_v0 = vor.u32 8388608, %v2671_v47  ;;  %v2681_v51 = vshll.u32 %v8400_v19, %v2678_v50 }
 0x2bd   : > { %v2640_v60 = vand.u32 2147483647, %v2639_v24  ;;  %v2771_v14 = vand.u32 2139095040, %v10315_v53  ;;  %v2684_v9 = vshll.u32 %v8401_v23, %v2678_v50  ;;  %v2687_v16 = vshll.u32 %v14055_v10, %v2678_v50 }
 0x2be   : > { %v2519_v63 = vshll.u32 %v10321_v37, 30  ;;  %v2682_v28 = vshrl.u32 %v8401_v23, %v2679_v55  ;;  %v2685_v58 = vshrl.u32 %v14055_v10, %v2679_v55  ;;  %v2688_v54 = vshrl.u32 %v8403_v27, %v2679_v55 }
 0x2bf   : > { %v2643_v18 = vmul.f32 %v2642_v13, %v2640_v60  ;;  %v2691_v2 = vshrl.u32 %v8404_v29, %v2679_v55  ;;  %v2694_v8 = vshrl.u32 %v8405_v52, %v2679_v55  ;;  %v2677_v57 = vshrl.u32 %v2676_v5, 5 }
 0x2c0   : > { %v10332_v31 = vsub.s32 %v2516_v25, %v2519_v63  ;;  %v2690_v20 = vshll.u32 %v8403_v27, %v2678_v50  ;;  %v2693_v47 = vshll.u32 %v8404_v29, %v2678_v50  ;;  %v2683_v33 = vor.u32 %v2682_v28, %v2681_v51 }
 0x2c1   : > { %v2644_v17 = vxor.u32 2147483648, %v2643_v18  ;;  %v2686_v45 = vor.u32 %v2685_v58, %v2684_v9  ;;  %v2689_v59 = vor.u32 %v2688_v54, %v2687_v16  ;;  %v2512_v44 = vadd.s32 %v10278_v26, %v10290_v15 }
 0x2c2   : > { %v2522_v34 = vsub.s32 0, %v10332_v31  ;;  %v2692_v62 = vor.u32 %v2691_v2, %v2690_v20  ;;  %v2712_v24 = vshll.u32 %v2672_v0, 8  ;;  %v2695_v50 = vor.u32 %v2694_v8, %v2693_v47  ;;  %v10355_v20 = vpop.f32.mrb[13].mxu0 }
 0x2c3   : > { %v2645_v25 = vsel %vm2562_vm10, %v2644_v17, %v2643_v18  ;;  %v2772_v13 = vshrl.u32 %v2771_v14, 23  ;;  %v2680_v63 = vshrl.u32 %v8400_v19, %v2679_v55  ;;  %vm2696_vm15 = vcmp.lt.s32.totalorder %v2677_v57, 1 }
 0x2c4   : > { %v2648_v5 = vsel %vm10270_vm7, %v9988_v32, %v2645_v25  ;;  %v7665_v60 = vmin.u32 %v2522_v34, %v10332_v31  ;;  %vm2699_vm12 = vcmp.lt.s32.totalorder %v2677_v57, 4  ;;  %v2704_v18 = vsel %vm2696_vm15, %v2683_v33, %v2686_v45 }
 0x2c5   : > { %8203 = vcosq.f32 %v2648_v5  ;;  %v2701_v28 = vsel %vm2699_vm12, %v2689_v59, 2102212464  ;;  %vm2697_vm10 = vcmp.lt.s32.totalorder %v2677_v57, 2  ;;  %vm2698_vm4 = vcmp.lt.s32.totalorder %v2677_v57, 3 }
 0x2c6   : > { %8205 = vsinq.f32 %v2648_v5  ;;  %v2524_v51 = vclz %v7665_v60  ;;  %v2705_v26 = vsel %vm2699_vm12, %v2692_v62, 920167782  ;;  %v2708_v15 = vsel %vm2696_vm15, %v2686_v45, %v2689_v59 }
 0x2c7   : > { %v2700_v22 = vsel %vm2696_vm15, %v2680_v63, %v2683_v33  ;;  %v2706_v58 = vsel %vm2698_vm4, %v2689_v59, %v2705_v26  ;;  %v2709_v54 = vsel %vm2699_vm12, %v2695_v50, 1326507024  ;;  %v2702_v2 = vsel %vm2698_vm4, %v2686_v45, %v2701_v28 }
 0x2c8   : > { %v7666_v0 = vadd.s32 4294967294, %v2524_v51  ;;  %v2707_v14 = vsel %vm2697_vm10, %v2704_v18, %v2706_v58  ;;  %v2710_v9 = vsel %vm2698_vm4, %v2692_v62, %v2709_v54  ;;  %v7676_v16 = vadd.s32 4294967169, %v2772_v13 }
 0x2c9   : > { %v2711_v55 = vsel %vm2697_vm10, %v2708_v15, %v2710_v9  ;;  %v10351_v8 = vmul.u32.u64.low %v2712_v24, %v2707_v14  ;;  %v10352_v17 = vmul.u32.u64.high %v2712_v24, %v2707_v14, %v10351_v8  ;;  %v2542_v34 = vsub.s32 4, %v10321_v37 }
 0x2ca   : > { %vm7667_vm7 = vcmp.lt.s32.totalorder %v7666_v0, 0  ;;  %v10358_v33 = vmul.u32.u64.low %v2712_v24, %v2711_v55  ;;  %v10359_v59 = vmul.u32.u64.high %v2712_v24, %v2711_v55, %v10358_v33  ;;  %v2703_v62 = vsel %vm2697_vm10, %v2700_v22, %v2702_v2 }
 0x2cb   : > { %v2527_v47 = vsel %vm7667_vm7, 0, %v7666_v0  ;;  %v2778_v5 = vadd.s32 1, %v7676_v16  ;;  %vm2656_vm11 = vcmp.eq.s32.totalorder %v10323_v6, 0  ;;  %vm10365_vm1 = vcmp.le.f32.partialorder %v2456_v35, 0.7853982 }
 0x2cc   : > { %v2528_v45 = vsub.s32 32, %v2527_v47  ;;  %v2532_v25 = vsub.s32 4294967266, %v2527_v47  ;;  %vm2458_vm0 = vcmp.lt.s32.totalorder %v10158_v7, 0  ;;  %v2529_v50 = vshll.u32 %v10332_v31, %v2527_v47 }
 0x2cd   : > { %v2722_v51 = vadd.s32 1, %v10352_v17  ;;  %vm2779_vm2 = vcmp.gt.s32.totalorder %v2778_v5, 0  ;;  %v2543_v28 = vsel %vm2458_vm0, %v2542_v34, %v10321_v37  ;;  %v2719_v18 = vmul.u32 %v2712_v24, %v2703_v62 }
 0x2ce   : > { %v2530_v13 = vshrl.u32 %v2512_v44, %v2528_v45  ;;  %v2533_v63 = vadd.s32 127, %v2532_v25  ;;  %vm2721_vm8 = vc.u32 %v10359_v59, %v10351_v8  ;;  %v2780_v35 = vsel %vm2779_vm2, %v2778_v5, 0 }
 0x2cf   : > { %v8204_v57 = vpop.eup %8203  ;;  %v2723_v31 = vsel %vm2721_vm8, %v2722_v51, %v10352_v17  ;;  %vm2659_vm13 = vcmp.eq.s32.totalorder %v10323_v6, 2  ;;  %v2782_v54 = vand.u32 31, %v2780_v35  ;;  %v2545_v37 = vsel %vm10365_vm1, 0, %v2543_v28 }
 0x2d0   : > { %v8206_v26 = vpop.eup %8205  ;;  %v2660_v15 = vxor.u32 2147483648, %v8204_v57  ;;  %v2531_v0 = vor.u32 %v2530_v13, %v2529_v50  ;;  %v2534_v22 = vshll.u32 %v2533_v63, 23  ;;  %v2724_v58 = vadd.s32 %v2723_v31, %v2719_v18 }
 0x2d1   : > { %v2657_v44 = vxor.u32 2147483648, %v8206_v26  ;;  %v2768_v24 = vand.u32 2147483647, %v10315_v53  ;;  %vm2655_vm15 = vcmp.lt.s32.totalorder %v10323_v6, 2  ;;  %v2783_v55 = vsub.s32 32, %v2782_v54 }
 0x2d2   : > { %v2661_v2 = vsel %vm2659_vm13, %v2660_v15, %v8206_v26  ;;  %v2535_v14 = vor.u32 4788187, %v2534_v22  ;;  %v2725_v16 = vadd.s32 536870912, %v2724_v58  ;;  %vm2652_vm12 = vweird.f32 %v9988_v32 }
 0x2d3   : > { %v2658_v9 = vsel %vm2656_vm11, %v8204_v57, %v2657_v44  ;;  %v2538_v34 = vcvt.s32.f32 %v2531_v0  ;;  %v2549_v45 = vadd.s32 3, %v2545_v37  ;;  %v2786_v62 = vshrl.u32 %v8401_v23, %v2783_v55 }
 0x2d4   : > { %v2662_v17 = vsel %vm2655_vm15, %v2658_v9, %v2661_v2  ;;  %v2536_v47 = vand.u32 2147483647, %v2535_v14  ;;  %v2726_v25 = vshrl.u32 %v2725_v16, 30  ;;  %v2775_v6 = vand.u32 8388607, %v2768_v24 }
 0x2d5   : > { %v2663_v33 = vsel %vm2652_vm12, nan, %v2662_v17  ;;  %v2789_v13 = vshrl.u32 %v14055_v10, %v2783_v55  ;;  %v2781_v63 = vshrl.u32 %v2780_v35, 5  ;;  %v2785_v51 = vshll.u32 %v8400_v19, %v2782_v54 }
 0x2d6   : > { %v7385_v5 = vsel %vm7365_vm5, %v9576_v11, %v2663_v33  ;;  %v2539_v50 = vmul.f32 %v2538_v34, %v2536_v47  ;;  %v2727_v32 = vshll.u32 %v2726_v25, 30  ;;  %v2792_v57 = vshrl.u32 %v8403_v27, %v2783_v55 }
 0x2d7   : > { %7450 = vst [vmem:[%s8911_s28 + $0x90] sm:$0xff] %v7385_v5  ;;  %v2788_v18 = vshll.u32 %v8401_v23, %v2782_v54  ;;  %v2794_v26 = vshll.u32 %v8403_v27, %v2782_v54  ;;  %v2795_v11 = vshrl.u32 %v8404_v29, %v2783_v55  ;;  %v2787_v0 = vor.u32 %v2786_v62, %v2785_v51 }
 0x2d8   : > { %v2540_v28 = vxor.u32 2147483648, %v2539_v50  ;;  %v10399_v15 = vsub.s32 %v2724_v58, %v2727_v32  ;;  %v2791_v22 = vshll.u32 %v14055_v10, %v2782_v54  ;;  %v2798_v31 = vshrl.u32 %v8405_v52, %v2783_v55 }
 0x2d9   : > { %vm2666_vm10 = vcmp.lt.s32.totalorder %v10257_v21, 0  ;;  %v2790_v44 = vor.u32 %v2789_v13, %v2788_v18  ;;  %v2796_v2 = vor.u32 %v2795_v11, %v2794_v26  ;;  %v2797_v14 = vshll.u32 %v8404_v29, %v2782_v54 }
 0x2da   : > { %v2541_v35 = vsel %vm2458_vm0, %v2540_v28, %v2539_v50  ;;  %v10410_v58 = vand.u32 3, %v2549_v45  ;;  %v2730_v9 = vsub.s32 0, %v10399_v15  ;;  %v2793_v16 = vor.u32 %v2792_v57, %v2791_v22 }
 0x2db   : > { %v2544_v37 = vsel %vm10365_vm1, %v10158_v7, %v2541_v35  ;;  %v2776_v17 = vor.u32 8388608, %v2775_v6  ;;  %v2799_v47 = vor.u32 %v2798_v31, %v2797_v14  ;;  %v10415_v34 = vadd.f32 %v8578_v40, %v9948_v43 }
 0x2dc   : > { %8207 = vcosq.f32 %v2544_v37  ;;  %vm10419_vm4 = vcmp.le.f32.partialorder %v2664_v3, 0.7853982  ;;  %v7673_v60 = vmin.u32 %v2730_v9, %v10399_v15  ;;  %vm2800_vm7 = vcmp.lt.s32.totalorder %v2781_v63, 1 }
 0x2dd   : > { %8209 = vsinq.f32 %v2544_v37  ;;  %vm2803_vm11 = vcmp.lt.s32.totalorder %v2781_v63, 4  ;;  %v2750_v33 = vsub.s32 4, %v2726_v25  ;;  %v2784_v45 = vshrl.u32 %v8400_v19, %v2783_v55 }
 0x2de   : > { %v2808_v62 = vsel %vm2800_vm7, %v2787_v0, %v2790_v44  ;;  %v2809_v5 = vsel %vm2803_vm11, %v2796_v2, 920167782  ;;  %v2732_v50 = vclz %v7673_v60  ;;  %vm2802_vm1 = vcmp.lt.s32.totalorder %v2781_v63, 3 }
 0x2df   : > { %v2805_v6 = vsel %vm2803_vm11, %v2793_v16, 2102212464  ;;  %v2812_v13 = vsel %vm2800_vm7, %v2790_v44, %v2793_v16  ;;  %vm2801_vm0 = vcmp.lt.s32.totalorder %v2781_v63, 2  ;;  %v2810_v32 = vsel %vm2802_vm1, %v2793_v16, %v2809_v5 }
 0x2e0   : > { %v2813_v51 = vsel %vm2803_vm11, %v2799_v47, 1326507024  ;;  %v2816_v3 = vshll.u32 %v2776_v17, 8  ;;  %v7674_v57 = vadd.s32 4294967294, %v2732_v50  ;;  %v2804_v28 = vsel %vm2800_vm7, %v2784_v45, %v2787_v0 }
 0x2e1   : > { %v2811_v18 = vsel %vm2801_vm0, %v2808_v62, %v2810_v32  ;;  %v2814_v26 = vsel %vm2802_vm1, %v2796_v2, %v2813_v51  ;;  %vm2551_vm2 = vcmp.lt.s32.totalorder %v10410_v58, 2  ;;  %v2806_v11 = vsel %vm2802_vm1, %v2790_v44, %v2805_v6 }
 0x2e2   : > { %v2815_v55 = vsel %vm2801_vm0, %v2812_v13, %v2814_v26  ;;  %v10428_v22 = vmul.u32.u64.low %v2816_v3, %v2811_v18  ;;  %v10429_v31 = vmul.u32.u64.high %v2816_v3, %v2811_v18, %v10428_v22  ;;  %vm7675_vm8 = vcmp.lt.s32.totalorder %v7674_v57, 0 }
 0x2e3   : > { %v2751_v35 = vsel %vm2666_vm10, %v2750_v33, %v2726_v25  ;;  %v10434_v14 = vmul.u32.u64.low %v2816_v3, %v2815_v55  ;;  %v10435_v37 = vmul.u32.u64.high %v2816_v3, %v2815_v55, %v10434_v14  ;;  %vm2552_vm13 = vcmp.eq.s32.totalorder %v10410_v58, 0 }
 0x2e4   : > { %vm2555_vm15 = vcmp.eq.s32.totalorder %v10410_v58, 2  ;;  %v2735_v0 = vsel %vm7675_vm8, 0, %v7674_v57  ;;  %v2979_v44 = vand.u32 2139095040, %v10415_v34  ;;  %v2720_v2 = vadd.s32 %v10351_v8, %v10359_v59  ;;  %v10448_v8 = vpop.f32.mrb[13].mxu1 }
 0x2e5   : > { %v2736_v9 = vsub.s32 32, %v2735_v0  ;;  %v2740_v16 = vsub.s32 4294967266, %v2735_v0  ;;  %v2807_v17 = vsel %vm2801_vm0, %v2804_v28, %v2806_v11  ;;  %v2753_v25 = vsel %vm10419_vm4, 0, %v2751_v35 }
 0x2e6   : > { %v8208_v47 = vpop.eup %8207  ;;  %v2826_v60 = vadd.s32 1, %v10429_v31  ;;  %v2976_v33 = vand.u32 2147483647, %v10415_v34  ;;  %v2980_v45 = vshrl.u32 %v2979_v44, 23  ;;  %v2737_v50 = vshll.u32 %v10399_v15, %v2735_v0 }
 0x2e7   : > { %v8210_v62 = vpop.eup %8209  ;;  %v2556_v5 = vxor.u32 2147483648, %v8208_v47  ;;  %v2738_v6 = vshrl.u32 %v2720_v2, %v2736_v9  ;;  %v2741_v13 = vadd.s32 127, %v2740_v16  ;;  %v2823_v63 = vmul.u32 %v2816_v3, %v2807_v17 }
 0x2e8   : > { %v2553_v59 = vxor.u32 2147483648, %v8210_v62  ;;  %vm2825_vm12 = vc.u32 %v10435_v37, %v10428_v22  ;;  %v7684_v32 = vadd.s32 4294967169, %v2980_v45  ;;  %v10459_v3 = vadd.f32 %v8582_v41, %v10067_v1 }
 0x2e9   : > { %v2557_v51 = vsel %vm2555_vm15, %v2556_v5, %v8210_v62  ;;  %v2739_v57 = vor.u32 %v2738_v6, %v2737_v50  ;;  %v2742_v28 = vshll.u32 %v2741_v13, 23  ;;  %v2827_v18 = vsel %vm2825_vm12, %v2826_v60, %v10429_v31 }
 0x2ea   : > { %v2554_v15 = vsel %vm2552_vm13, %v8208_v47, %v2553_v59  ;;  %v2828_v26 = vadd.s32 %v2827_v18, %v2823_v63  ;;  %v2986_v11 = vadd.s32 1, %v7684_v32  ;;  %vm2548_vm7 = vweird.f32 %v10158_v7 }
 0x2eb   : > { %v2558_v55 = vsel %vm2551_vm2, %v2554_v15, %v2557_v51  ;;  %v2743_v35 = vor.u32 4788187, %v2742_v28  ;;  %v2757_v14 = vadd.s32 3, %v2753_v25  ;;  %v2983_v31 = vand.u32 8388607, %v2976_v33 }
 0x2ec   : > { %v2559_v0 = vsel %vm2548_vm7, nan, %v2558_v55  ;;  %v2829_v44 = vadd.s32 536870912, %v2828_v26  ;;  %vm2987_vm11 = vcmp.gt.s32.totalorder %v2986_v11, 0  ;;  %v2746_v16 = vcvt.s32.f32 %v2739_v57 }
 0x2ed   : > { %v7384_v2 = vsel %vm7364_vm3, %v9686_v48, %v2559_v0  ;;  %v2744_v9 = vand.u32 2147483647, %v2743_v35  ;;  %v2988_v17 = vsel %vm2987_vm11, %v2986_v11, 0  ;;  %v2875_v47 = vand.u32 2139095040, %v10459_v3 }
 0x2ee   : > { %7449 = vst [vmem:[%s8911_s28 + $0x88] sm:$0xff] %v7384_v2  ;;  %v10470_v7 = vshrl.u32 %v2829_v44, 30  ;;  %v2990_v58 = vand.u32 31, %v2988_v17  ;;  %v10474_v5 = vand.u32 3, %v2757_v14  ;;  %v2984_v50 = vor.u32 8388608, %v2983_v31 }
 0x2ef   : > { %v2747_v25 = vmul.f32 %v2746_v16, %v2744_v9  ;;  %v2872_v6 = vand.u32 2147483647, %v10459_v3  ;;  %v2989_v13 = vshrl.u32 %v2988_v17, 5  ;;  %v2876_v63 = vshrl.u32 %v2875_v47, 23 }
 0x2f0   : > { %v2831_v60 = vshll.u32 %v10470_v7, 30  ;;  %v2991_v45 = vsub.s32 32, %v2990_v58  ;;  %v2993_v51 = vshll.u32 %v8400_v19, %v2990_v58  ;;  %v2999_v11 = vshll.u32 %v14055_v10, %v2990_v58 }
 0x2f1   : > { %v2748_v62 = vxor.u32 2147483648, %v2747_v25  ;;  %v3002_v35 = vshll.u32 %v8403_v27, %v2990_v58  ;;  %v3005_v54 = vshll.u32 %v8404_v29, %v2990_v58  ;;  %v10496_v16 = vshll.u32 %v2984_v50, 8 }
 0x2f2   : > { %v10477_v48 = vsub.s32 %v2828_v26, %v2831_v60  ;;  %v2994_v59 = vshrl.u32 %v8401_v23, %v2991_v45  ;;  %v2997_v57 = vshrl.u32 %v14055_v10, %v2991_v45  ;;  %v3000_v28 = vshrl.u32 %v8403_v27, %v2991_v45 }
 0x2f3   : > { %v2749_v32 = vsel %vm2666_vm10, %v2748_v62, %v2747_v25  ;;  %v2996_v26 = vshll.u32 %v8401_v23, %v2990_v58  ;;  %v3003_v14 = vshrl.u32 %v8404_v29, %v2991_v45  ;;  %v3006_v9 = vshrl.u32 %v8405_v52, %v2991_v45 }
 0x2f4   : > { %v2752_v18 = vsel %vm10419_vm4, %v10257_v21, %v2749_v32  ;;  %v2834_v15 = vsub.s32 0, %v10477_v48  ;;  %v2995_v55 = vor.u32 %v2994_v59, %v2993_v51  ;;  %v3001_v31 = vor.u32 %v3000_v28, %v2999_v11 }
 0x2f5   : > { %8211 = vcosq.f32 %v2752_v18  ;;  %v2998_v44 = vor.u32 %v2997_v57, %v2996_v26  ;;  %v3004_v2 = vor.u32 %v3003_v14, %v3002_v35  ;;  %v2992_v47 = vshrl.u32 %v8400_v19, %v2991_v45 }
 0x2f6   : > { %8213 = vsinq.f32 %v2752_v18  ;;  %v7677_v0 = vmin.u32 %v2834_v15, %v10477_v48  ;;  %vm3008_vm10 = vcmp.lt.s32.totalorder %v2989_v13, 1  ;;  %v7680_v25 = vadd.s32 4294967169, %v2876_v63 }
 0x2f7   : > { %vm2763_vm4 = vcmp.eq.s32.totalorder %v10474_v5, 2  ;;  %v3007_v60 = vor.u32 %v3006_v9, %v3005_v54  ;;  %vm3009_vm1 = vcmp.lt.s32.totalorder %v2989_v13, 2  ;;  %vm3010_vm0 = vcmp.lt.s32.totalorder %v2989_v13, 3 }
 0x2f8   : > { %v2836_v17 = vclz %v7677_v0  ;;  %vm3011_vm2 = vcmp.lt.s32.totalorder %v2989_v13, 4  ;;  %vm2760_vm8 = vcmp.eq.s32.totalorder %v10474_v5, 0  ;;  %v3016_v58 = vsel %vm3008_vm10, %v2995_v55, %v2998_v44 }
 0x2f9   : > { %v3013_v59 = vsel %vm3011_vm2, %v3001_v31, 2102212464  ;;  %v3017_v32 = vsel %vm3011_vm2, %v3004_v2, 920167782  ;;  %vm2770_vm13 = vcmp.lt.s32.totalorder %v10315_v53, 0  ;;  %v3012_v50 = vsel %vm3008_vm10, %v2992_v47, %v2995_v55 }
 0x2fa   : > { %v7678_v62 = vadd.s32 4294967294, %v2836_v17  ;;  %v3018_v51 = vsel %vm3010_vm0, %v3001_v31, %v3017_v32  ;;  %v3020_v45 = vsel %vm3008_vm10, %v2998_v44, %v3001_v31  ;;  %v3021_v57 = vsel %vm3011_vm2, %v3007_v60, 1326507024 }
 0x2fb   : > { %vm2756_vm15 = vweird.f32 %v10257_v21  ;;  %v3014_v63 = vsel %vm3010_vm0, %v2998_v44, %v3013_v59  ;;  %v3019_v28 = vsel %vm3009_vm1, %v3016_v58, %v3018_v51  ;;  %v3022_v18 = vsel %vm3010_vm0, %v3004_v2, %v3021_v57  ;;  %v10516_v44 = vpop.f32.mrb[14].mxu0 }
 0x2fc   : > { %vm7679_vm12 = vcmp.lt.s32.totalorder %v7678_v62, 0  ;;  %v3023_v26 = vsel %vm3009_vm1, %v3020_v45, %v3022_v18  ;;  %v10509_v11 = vmul.u32.u64.low %v10496_v16, %v3019_v28  ;;  %v10510_v35 = vmul.u32.u64.high %v10496_v16, %v3019_v28, %v10509_v11 }
 0x2fd   : > { %v2839_v15 = vsel %vm7679_vm12, 0, %v7678_v62  ;;  %v2824_v55 = vadd.s32 %v10428_v22, %v10435_v37  ;;  %v2854_v31 = vsub.s32 4, %v10470_v7  ;;  %v3015_v2 = vsel %vm3009_vm1, %v3012_v50, %v3014_v63 }
 0x2fe   : > { %v2840_v14 = vsub.s32 32, %v2839_v15  ;;  %v2844_v0 = vsub.s32 4294967266, %v2839_v15  ;;  %v10520_v9 = vmul.u32.u64.low %v10496_v16, %v3023_v26  ;;  %v10521_v17 = vmul.u32.u64.high %v10496_v16, %v3023_v26, %v10520_v9 }
 0x2ff   : > { %v8212_v54 = vpop.eup %8211  ;;  %v2882_v47 = vadd.s32 1, %v7680_v25  ;;  %v2841_v59 = vshll.u32 %v10477_v48, %v2839_v15  ;;  %v3034_v32 = vadd.s32 1, %v10510_v35  ;;  %v10527_v51 = vand.u32 8388607, %v2872_v6 }
 0x300   : > { %v8214_v60 = vpop.eup %8213  ;;  %v2764_v62 = vxor.u32 2147483648, %v8212_v54  ;;  %v2842_v58 = vshrl.u32 %v2824_v55, %v2840_v14  ;;  %v2845_v22 = vadd.s32 127, %v2844_v0  ;;  %vm2759_vm11 = vcmp.lt.s32.totalorder %v10474_v5, 2 }
 0x301   : > { %v2761_v37 = vxor.u32 2147483648, %v8214_v60  ;;  %vm2883_vm7 = vcmp.gt.s32.totalorder %v2882_v47, 0  ;;  %v3031_v57 = vmul.u32 %v10496_v16, %v3015_v2  ;;  %vm3033_vm10 = vc.u32 %v10521_v17, %v10509_v11 }
 0x302   : > { %v2765_v13 = vsel %vm2763_vm4, %v2764_v62, %v8214_v60  ;;  %v2843_v50 = vor.u32 %v2842_v58, %v2841_v59  ;;  %v2846_v45 = vshll.u32 %v2845_v22, 23  ;;  %v2884_v25 = vsel %vm2883_vm7, %v2882_v47, 0 }
 0x303   : > { %v2762_v48 = vsel %vm2760_vm8, %v8212_v54, %v2761_v37  ;;  %v2855_v18 = vsel %vm2770_vm13, %v2854_v31, %v10470_v7  ;;  %v3035_v15 = vsel %vm3033_vm10, %v3034_v32, %v10510_v35  ;;  %vm10545_vm4 = vcmp.le.f32.partialorder %v2768_v24, 0.7853982 }
 0x304   : > { %v2766_v63 = vsel %vm2759_vm11, %v2762_v48, %v2765_v13  ;;  %v2847_v28 = vor.u32 4788187, %v2846_v45  ;;  %v3036_v16 = vadd.s32 %v3035_v15, %v3031_v57  ;;  %v2886_v55 = vand.u32 31, %v2884_v25 }
 0x305   : > { %v2767_v26 = vsel %vm2756_vm15, nan, %v2766_v63  ;;  %v2850_v54 = vcvt.s32.f32 %v2843_v50  ;;  %v2880_v7 = vor.u32 8388608, %v10527_v51  ;;  %v2857_v21 = vsel %vm10545_vm4, 0, %v2855_v18 }
 0x306   : > { %v7386_v14 = vsel %vm7366_vm6, %v9761_v49, %v2767_v26  ;;  %v2848_v0 = vand.u32 2147483647, %v2847_v28  ;;  %v3037_v35 = vadd.s32 536870912, %v3036_v16  ;;  %v2885_v24 = vshrl.u32 %v2884_v25, 5 }
 0x307   : > { %7451 = vst.msk [vmem:[%s8911_s28 + $0x98] sm:$0xff] %vm7434_vm9, %v7386_v14  ;;  %v2887_v31 = vsub.s32 32, %v2886_v55  ;;  %v2889_v9 = vshll.u32 %v8400_v19, %v2886_v55  ;;  %v2892_v47 = vshll.u32 %v8401_v23, %v2886_v55  ;;  %v2895_v60 = vshll.u32 %v14055_v10, %v2886_v55 }
 0x308   : > { %v2851_v2 = vmul.f32 %v2850_v54, %v2848_v0  ;;  %v3038_v49 = vshrl.u32 %v3037_v35, 30  ;;  %v2898_v58 = vshll.u32 %v8403_v27, %v2886_v55  ;;  %v2901_v45 = vshll.u32 %v8404_v29, %v2886_v55 }
 0x309   : > { %v2890_v62 = vshrl.u32 %v8401_v23, %v2887_v31  ;;  %v2893_v59 = vshrl.u32 %v14055_v10, %v2887_v31  ;;  %v2896_v37 = vshrl.u32 %v8403_v27, %v2887_v31  ;;  %v2899_v32 = vshrl.u32 %v8404_v29, %v2887_v31 }
 0x30a   : > { %v2852_v22 = vxor.u32 2147483648, %v2851_v2  ;;  %v2902_v51 = vshrl.u32 %v8405_v52, %v2887_v31  ;;  %v3039_v13 = vshll.u32 %v3038_v49, 30  ;;  %v10569_v25 = vadd.f32 %v8624_v4, %v10110_v46 }
 0x30b   : > { %v2891_v50 = vor.u32 %v2890_v62, %v2889_v9  ;;  %v2894_v57 = vor.u32 %v2893_v59, %v2892_v47  ;;  %v2897_v63 = vor.u32 %v2896_v37, %v2895_v60  ;;  %v2900_v28 = vor.u32 %v2899_v32, %v2898_v58 }
 0x30c   : > { %v2853_v48 = vsel %vm2770_vm13, %v2852_v22, %v2851_v2  ;;  %v2861_v15 = vadd.s32 3, %v2857_v21  ;;  %v10576_v26 = vsub.s32 %v3036_v16, %v3039_v13  ;;  %v2903_v14 = vor.u32 %v2902_v51, %v2901_v45 }
 0x30d   : > { %v2856_v18 = vsel %vm10545_vm4, %v10315_v53, %v2853_v48  ;;  %vm2904_vm1 = vcmp.lt.s32.totalorder %v2885_v24, 1  ;;  %vm2905_vm0 = vcmp.lt.s32.totalorder %v2885_v24, 2  ;;  %vm2906_vm2 = vcmp.lt.s32.totalorder %v2885_v24, 3 }
 0x30e   : > { %8215 = vcosq.f32 %v2856_v18  ;;  %vm10580_vm8 = vcmp.le.f32.partialorder %v2976_v33, 0.7853982  ;;  %v3042_v0 = vsub.s32 0, %v10576_v26  ;;  %v2888_v5 = vshrl.u32 %v8400_v19, %v2887_v31 }
 0x30f   : > { %8217 = vsinq.f32 %v2856_v18  ;;  %vm2907_vm13 = vcmp.lt.s32.totalorder %v2885_v24, 4  ;;  %v3062_v54 = vsub.s32 4, %v3038_v49  ;;  %v2912_v21 = vsel %vm2904_vm1, %v2891_v50, %v2894_v57 }
 0x310   : > { %v2909_v16 = vsel %vm2907_vm13, %v2897_v63, 2102212464  ;;  %v2913_v35 = vsel %vm2907_vm13, %v2900_v28, 920167782  ;;  %v7685_v2 = vmin.u32 %v3042_v0, %v10576_v26  ;;  %v2916_v47 = vsel %vm2904_vm1, %v2894_v57, %v2897_v63 }
 0x311   : > { %v2914_v9 = vsel %vm2906_vm2, %v2897_v63, %v2913_v35  ;;  %v2917_v33 = vsel %vm2907_vm13, %v2903_v14, 1326507024  ;;  %v2862_v60 = vand.u32 3, %v2861_v15  ;;  %v2920_v58 = vshll.u32 %v2880_v7, 8 }
 0x312   : > { %v2915_v62 = vsel %vm2905_vm0, %v2912_v21, %v2914_v9  ;;  %v2918_v59 = vsel %vm2906_vm2, %v2900_v28, %v2917_v33  ;;  %vm2978_vm15 = vcmp.lt.s32.totalorder %v10415_v34, 0  ;;  %v3044_v31 = vclz %v7685_v2 }
 0x313   : > { %v2908_v22 = vsel %vm2904_vm1, %v2888_v5, %v2891_v50  ;;  %v2910_v37 = vsel %vm2906_vm2, %v2894_v57, %v2909_v16  ;;  %v2919_v32 = vsel %vm2905_vm0, %v2916_v47, %v2918_v59  ;;  %v3083_v45 = vand.u32 2139095040, %v10569_v25 }
 0x314   : > { %v10596_v51 = vmul.u32.u64.low %v2920_v58, %v2915_v62  ;;  %v10597_v13 = vmul.u32.u64.high %v2920_v58, %v2915_v62, %v10596_v51  ;;  %vm2860_vm12 = vweird.f32 %v10315_v53  ;;  %v7686_v48 = vadd.s32 4294967294, %v3044_v31 }
 0x315   : > { %v3063_v7 = vsel %vm2978_vm15, %v3062_v54, %v3038_v49  ;;  %v10604_v63 = vmul.u32.u64.low %v2920_v58, %v2919_v32  ;;  %v10605_v28 = vmul.u32.u64.high %v2920_v58, %v2919_v32, %v10604_v63  ;;  %vm2863_vm7 = vcmp.lt.s32.totalorder %v2862_v60, 2 }
 0x316   : > { %vm2864_vm11 = vcmp.eq.s32.totalorder %v2862_v60, 0  ;;  %v2911_v50 = vsel %vm2905_vm0, %v2908_v22, %v2910_v37  ;;  %v3084_v57 = vshrl.u32 %v3083_v45, 23  ;;  %vm2867_vm10 = vcmp.eq.s32.totalorder %v2862_v60, 2 }
 0x317   : > { %v3032_v18 = vadd.s32 %v10509_v11, %v10521_v17  ;;  %vm7687_vm4 = vcmp.lt.s32.totalorder %v7686_v48, 0  ;;  %v3080_v15 = vand.u32 2147483647, %v10569_v25  ;;  %v3065_v49 = vsel %vm10580_vm8, 0, %v3063_v7  ;;  %v10617_v17 = vpop.f32.mrb[14].mxu1 }
 0x318   : > { %v8216_v14 = vpop.eup %8215  ;;  %v3047_v0 = vsel %vm7687_vm4, 0, %v7686_v48  ;;  %v2930_v5 = vadd.s32 1, %v10597_v13  ;;  %v7688_v54 = vadd.s32 4294967169, %v3084_v57  ;;  %v2927_v2 = vmul.u32 %v2920_v58, %v2911_v50 }
 0x319   : > { %v8218_v16 = vpop.eup %8217  ;;  %v2868_v21 = vxor.u32 2147483648, %v8216_v14  ;;  %v3048_v24 = vsub.s32 32, %v3047_v0  ;;  %v3052_v35 = vsub.s32 4294967266, %v3047_v0  ;;  %v3049_v47 = vshll.u32 %v10576_v26, %v3047_v0 }
 0x31a   : > { %v2865_v9 = vxor.u32 2147483648, %v8218_v16  ;;  %vm2929_vm1 = vc.u32 %v10605_v28, %v10596_v51  ;;  %v3090_v11 = vadd.s32 1, %v7688_v54  ;;  %v3069_v37 = vadd.s32 3, %v3065_v49 }
 0x31b   : > { %v2869_v33 = vsel %vm2867_vm10, %v2868_v21, %v8218_v16  ;;  %v3050_v62 = vshrl.u32 %v3032_v18, %v3048_v24  ;;  %v3053_v59 = vadd.s32 127, %v3052_v35  ;;  %v2931_v31 = vsel %vm2929_vm1, %v2930_v5, %v10597_v13 }
 0x31c   : > { %v2866_v22 = vsel %vm2864_vm11, %v8216_v14, %v2865_v9  ;;  %v2932_v58 = vadd.s32 %v2931_v31, %v2927_v2  ;;  %vm3091_vm0 = vcmp.gt.s32.totalorder %v3090_v11, 0  ;;  %v3087_v50 = vand.u32 8388607, %v3080_v15 }
 0x31d   : > { %v2870_v26 = vsel %vm2863_vm7, %v2866_v22, %v2869_v33  ;;  %v3051_v32 = vor.u32 %v3050_v62, %v3049_v47  ;;  %v3054_v45 = vshll.u32 %v3053_v59, 23  ;;  %v3092_v48 = vsel %vm3091_vm0, %v3090_v11, 0 }
 0x31e   : > { %v2871_v7 = vsel %vm2860_vm12, nan, %v2870_v26  ;;  %v2933_v63 = vadd.s32 536870912, %v2932_v58  ;;  %v3094_v57 = vand.u32 31, %v3092_v48  ;;  %v10631_v5 = vand.u32 3, %v3069_v37 }
 0x31f   : > { %v7387_v13 = vsel %vm7363_vm14, %v9873_v36, %v2871_v7  ;;  %v3055_v18 = vor.u32 4788187, %v3054_v45  ;;  %v3058_v49 = vcvt.s32.f32 %v3051_v32  ;;  %v10635_v53 = vadd.f32 %v8574_v39, %v10215_v61 }
 0x320   : > { %7452 = vst [vmem:[%s8911_s28 + $0xa0] sm:$0xff] %v7387_v13  ;;  %v2934_v14 = vshrl.u32 %v2933_v63, 30  ;;  %v3095_v60 = vsub.s32 32, %v3094_v57  ;;  %vm2874_vm2 = vcmp.lt.s32.totalorder %v10459_v3, 0  ;;  %v3088_v16 = vor.u32 8388608, %v3087_v50 }
 0x321   : > { %v3056_v0 = vand.u32 2147483647, %v3055_v18  ;;  %v3097_v21 = vshll.u32 %v8400_v19, %v3094_v57  ;;  %v3100_v11 = vshll.u32 %v8401_v23, %v3094_v57  ;;  %v3103_v33 = vshll.u32 %v14055_v10, %v3094_v57 }
 0x322   : > { %v2935_v54 = vshll.u32 %v2934_v14, 30  ;;  %v3098_v36 = vshrl.u32 %v8401_v23, %v3095_v60  ;;  %v3101_v35 = vshrl.u32 %v14055_v10, %v3095_v60  ;;  %v3104_v2 = vshrl.u32 %v8403_v27, %v3095_v60 }
 0x323   : > { %v3059_v24 = vmul.f32 %v3058_v49, %v3056_v0  ;;  %v3107_v9 = vshrl.u32 %v8404_v29, %v3095_v60  ;;  %v3110_v62 = vshrl.u32 %v8405_v52, %v3095_v60  ;;  %v3093_v31 = vshrl.u32 %v3092_v48, 5 }
 0x324   : > { %v10643_v47 = vsub.s32 %v2932_v58, %v2935_v54  ;;  %v3106_v22 = vshll.u32 %v8403_v27, %v3094_v57  ;;  %v3109_v37 = vshll.u32 %v8404_v29, %v3094_v57  ;;  %v3099_v32 = vor.u32 %v3098_v36, %v3097_v21 }
 0x325   : > { %v3060_v59 = vxor.u32 2147483648, %v3059_v24  ;;  %v3102_v45 = vor.u32 %v3101_v35, %v3100_v11  ;;  %v3105_v7 = vor.u32 %v3104_v2, %v3103_v33  ;;  %v2958_v63 = vsub.s32 4, %v2934_v14 }
 0x326   : > { %v2938_v26 = vsub.s32 0, %v10643_v47  ;;  %v3108_v50 = vor.u32 %v3107_v9, %v3106_v22  ;;  %v3184_v13 = vand.u32 2147483647, %v10635_v53  ;;  %vm10659_vm13 = vcmp.le.f32.partialorder %v2872_v6, 0.7853982 }
 0x327   : > { %v3061_v58 = vsel %vm2978_vm15, %v3060_v59, %v3059_v24  ;;  %v3111_v0 = vor.u32 %v3110_v62, %v3109_v37  ;;  %v3128_v49 = vshll.u32 %v3088_v16, 8  ;;  %v3096_v54 = vshrl.u32 %v8400_v19, %v3095_v60 }
 0x328   : > { %v3064_v48 = vsel %vm10580_vm8, %v10415_v34, %v3061_v58  ;;  %v7681_v18 = vmin.u32 %v2938_v26, %v10643_v47  ;;  %vm3112_vm15 = vcmp.lt.s32.totalorder %v3093_v31, 1  ;;  %vm3115_vm12 = vcmp.lt.s32.totalorder %v3093_v31, 4 }
 0x329   : > { %8219 = vcosq.f32 %v3064_v48  ;;  %v3117_v36 = vsel %vm3115_vm12, %v3105_v7, 2102212464  ;;  %v3120_v55 = vsel %vm3112_vm15, %v3099_v32, %v3102_v45  ;;  %v2959_v24 = vsel %vm2874_vm2, %v2958_v63, %v2934_v14  ;;  %v10673_v14 = vpop.f32.mrb[15].mxu0 }
 0x32a   : > { %8221 = vsinq.f32 %v3064_v48  ;;  %v2940_v21 = vclz %v7681_v18  ;;  %vm3114_vm8 = vcmp.lt.s32.totalorder %v3093_v31, 3  ;;  %v3121_v6 = vsel %vm3115_vm12, %v3108_v50, 920167782 }
 0x32b   : > { %v3124_v35 = vsel %vm3112_vm15, %v3102_v45, %v3105_v7  ;;  %vm3113_vm7 = vcmp.lt.s32.totalorder %v3093_v31, 2  ;;  %v3122_v9 = vsel %vm3114_vm8, %v3105_v7, %v3121_v6  ;;  %v3125_v11 = vsel %vm3115_vm12, %v3111_v0, 1326507024 }
 0x32c   : > { %v7682_v2 = vadd.s32 4294967294, %v2940_v21  ;;  %v3116_v16 = vsel %vm3112_vm15, %v3096_v54, %v3099_v32  ;;  %v3118_v33 = vsel %vm3114_vm8, %v3102_v45, %v3117_v36  ;;  %v3123_v60 = vsel %vm3113_vm7, %v3120_v55, %v3122_v9 }
 0x32d   : > { %v3126_v62 = vsel %vm3114_vm8, %v3108_v50, %v3125_v11  ;;  %v10669_v22 = vmul.u32.u64.low %v3128_v49, %v3123_v60  ;;  %v10670_v37 = vmul.u32.u64.high %v3128_v49, %v3123_v60, %v10669_v22  ;;  %v3187_v7 = vand.u32 2139095040, %v10635_v53 }
 0x32e   : > { %vm7683_vm11 = vcmp.lt.s32.totalorder %v7682_v2, 0  ;;  %v3127_v59 = vsel %vm3113_vm7, %v3124_v35, %v3126_v62  ;;  %vm3068_vm10 = vweird.f32 %v10415_v34  ;;  %v2928_v32 = vadd.s32 %v10596_v51, %v10605_v28 }
 0x32f   : > { %v2943_v26 = vsel %vm7683_vm11, 0, %v7682_v2  ;;  %v10675_v58 = vmul.u32.u64.low %v3128_v49, %v3127_v59  ;;  %v10676_v63 = vmul.u32.u64.high %v3128_v49, %v3127_v59, %v10675_v58  ;;  %v3119_v48 = vsel %vm3113_vm7, %v3116_v16, %v3118_v33 }
 0x330   : > { %v2944_v45 = vsub.s32 32, %v2943_v26  ;;  %v2948_v50 = vsub.s32 4294967266, %v2943_v26  ;;  %vm3071_vm4 = vcmp.lt.s32.totalorder %v10631_v5, 2  ;;  %vm3075_vm1 = vcmp.eq.s32.totalorder %v10631_v5, 2 }
 0x331   : > { %v2961_v18 = vsel %vm10659_vm13, 0, %v2959_v24  ;;  %v3188_v0 = vshrl.u32 %v3187_v7, 23  ;;  %v2945_v54 = vshll.u32 %v10643_v47, %v2943_v26  ;;  %v3138_v55 = vadd.s32 1, %v10670_v37 }
 0x332   : > { %v2946_v21 = vshrl.u32 %v2928_v32, %v2944_v45  ;;  %v2949_v36 = vadd.s32 127, %v2948_v50  ;;  %v3135_v51 = vmul.u32 %v3128_v49, %v3119_v48  ;;  %vm3137_vm0 = vc.u32 %v10676_v63, %v10669_v22 }
 0x333   : > { %v8220_v6 = vpop.eup %8219  ;;  %v7692_v28 = vadd.s32 4294967169, %v3188_v0  ;;  %v3191_v31 = vand.u32 8388607, %v3184_v13  ;;  %v3139_v11 = vsel %vm3137_vm0, %v3138_v55, %v10670_v37  ;;  %v10696_v60 = vadd.f32 %v8578_v40, %v10297_v38 }
 0x334   : > { %v8222_v35 = vpop.eup %8221  ;;  %v3076_v2 = vxor.u32 2147483648, %v8220_v6  ;;  %v2947_v9 = vor.u32 %v2946_v21, %v2945_v54  ;;  %v2950_v24 = vshll.u32 %v2949_v36, 23  ;;  %v3140_v16 = vadd.s32 %v3139_v11, %v3135_v51 }
 0x335   : > { %v3073_v47 = vxor.u32 2147483648, %v8222_v35  ;;  %v3194_v33 = vadd.s32 1, %v7692_v28  ;;  %vm3072_vm15 = vcmp.eq.s32.totalorder %v10631_v5, 0  ;;  %v2965_v59 = vadd.s32 3, %v2961_v18 }
 0x336   : > { %v3077_v49 = vsel %vm3075_vm1, %v3076_v2, %v8222_v35  ;;  %v2951_v62 = vor.u32 4788187, %v2950_v24  ;;  %v3141_v58 = vadd.s32 536870912, %v3140_v16  ;;  %v3192_v7 = vor.u32 8388608, %v3191_v31 }
 0x337   : > { %v3074_v26 = vsel %vm3072_vm15, %v8220_v6, %v3073_v47  ;;  %vm3195_vm12 = vcmp.gt.s32.totalorder %v3194_v33, 0  ;;  %v2954_v45 = vcvt.s32.f32 %v2947_v9  ;;  %v3395_v21 = vand.u32 2139095040, %v10696_v60 }
 0x338   : > { %v3078_v37 = vsel %vm3071_vm4, %v3074_v26, %v3077_v49  ;;  %v2952_v32 = vand.u32 2147483647, %v2951_v62  ;;  %v3196_v50 = vsel %vm3195_vm12, %v3194_v33, 0  ;;  %v10705_v0 = vshrl.u32 %v3141_v58, 30 }
 0x339   : > { %v3079_v48 = vsel %vm3068_vm10, nan, %v3078_v37  ;;  %v3198_v54 = vand.u32 31, %v3196_v50  ;;  %v10713_v51 = vand.u32 3, %v2965_v59  ;;  %v10715_v28 = vshll.u32 %v3192_v7, 8 }
 0x33a   : > { %v7389_v18 = vsel %vm7365_vm5, %v9948_v43, %v3079_v48  ;;  %v2955_v36 = vmul.f32 %v2954_v45, %v2952_v32  ;;  %v3143_v5 = vshll.u32 %v10705_v0, 30  ;;  %v3392_v34 = vand.u32 2147483647, %v10696_v60 }
 0x33b   : > { %7454 = vst [vmem:[%s8911_s28 + $0xb0] sm:$0xff] %v7389_v18  ;;  %v3199_v55 = vsub.s32 32, %v3198_v54  ;;  %v3197_v35 = vshrl.u32 %v3196_v50, 5  ;;  %v3396_v9 = vshrl.u32 %v3395_v21, 23  ;;  %v3201_v24 = vshll.u32 %v8400_v19, %v3198_v54 }
 0x33c   : > { %v2956_v6 = vxor.u32 2147483648, %v2955_v36  ;;  %v10718_v31 = vsub.s32 %v3140_v16, %v3143_v5  ;;  %v3204_v49 = vshll.u32 %v8401_v23, %v3198_v54  ;;  %v3207_v62 = vshll.u32 %v14055_v10, %v3198_v54 }
 0x33d   : > { %v3202_v2 = vshrl.u32 %v8401_v23, %v3199_v55  ;;  %v3205_v11 = vshrl.u32 %v14055_v10, %v3199_v55  ;;  %v3208_v47 = vshrl.u32 %v8403_v27, %v3199_v55  ;;  %v3210_v26 = vshll.u32 %v8403_v27, %v3198_v54 }
 0x33e   : > { %v2957_v43 = vsel %vm2874_vm2, %v2956_v6, %v2955_v36  ;;  %v3146_v16 = vsub.s32 0, %v10718_v31  ;;  %v3211_v58 = vshrl.u32 %v8404_v29, %v3199_v55  ;;  %v3213_v57 = vshll.u32 %v8404_v29, %v3198_v54 }
 0x33f   : > { %v2960_v33 = vsel %vm10659_vm13, %v10459_v3, %v2957_v43  ;;  %v3203_v59 = vor.u32 %v3202_v2, %v3201_v24  ;;  %v3206_v37 = vor.u32 %v3205_v11, %v3204_v49  ;;  %v3209_v32 = vor.u32 %v3208_v47, %v3207_v62 }
 0x340   : > { %8223 = vcosq.f32 %v2960_v33  ;;  %v7689_v7 = vmin.u32 %v3146_v16, %v10718_v31  ;;  %v3212_v45 = vor.u32 %v3211_v58, %v3210_v26  ;;  %v3214_v50 = vshrl.u32 %v8405_v52, %v3199_v55 }
 0x341   : > { %8225 = vsinq.f32 %v2960_v33  ;;  %v7700_v48 = vadd.s32 4294967169, %v3396_v9  ;;  %vm3082_vm2 = vcmp.lt.s32.totalorder %v10569_v25, 0  ;;  %v3166_v18 = vsub.s32 4, %v10705_v0 }
 0x342   : > { %v3148_v21 = vclz %v7689_v7  ;;  %v3200_v36 = vshrl.u32 %v8400_v19, %v3199_v55  ;;  %vm3216_vm13 = vcmp.lt.s32.totalorder %v3197_v35, 1  ;;  %vm2971_vm8 = vcmp.eq.s32.totalorder %v10713_v51, 2 }
 0x343   : > { %v3215_v5 = vor.u32 %v3214_v50, %v3213_v57  ;;  %vm3217_vm7 = vcmp.lt.s32.totalorder %v3197_v35, 2  ;;  %vm3218_vm11 = vcmp.lt.s32.totalorder %v3197_v35, 3  ;;  %vm3219_vm10 = vcmp.lt.s32.totalorder %v3197_v35, 4  ;;  %v10775_v35 = vpop.f32.mrb[15].mxu1 }
 0x344   : > { %vm2968_vm4 = vcmp.eq.s32.totalorder %v10713_v51, 0  ;;  %v7690_v54 = vadd.s32 4294967294, %v3148_v21  ;;  %v3221_v6 = vsel %vm3219_vm10, %v3209_v32, 2102212464  ;;  %v3224_v2 = vsel %vm3216_vm13, %v3203_v59, %v3206_v37 }
 0x345   : > { %v3225_v9 = vsel %vm3219_vm10, %v3212_v45, 920167782  ;;  %vm10744_vm1 = vcmp.le.f32.partialorder %v3080_v15, 0.7853982  ;;  %v3220_v55 = vsel %vm3216_vm13, %v3200_v36, %v3203_v59  ;;  %v3228_v11 = vsel %vm3216_vm13, %v3206_v37, %v3209_v32 }
 0x346   : > { %v3226_v24 = vsel %vm3218_vm11, %v3209_v32, %v3225_v9  ;;  %v3229_v47 = vsel %vm3219_vm10, %v3215_v5, 1326507024  ;;  %vm2964_vm0 = vweird.f32 %v10459_v3  ;;  %vm7691_vm15 = vcmp.lt.s32.totalorder %v7690_v54, 0 }
 0x347   : > { %v3222_v33 = vsel %vm3218_vm11, %v3206_v37, %v3221_v6  ;;  %v3227_v16 = vsel %vm3217_vm7, %v3224_v2, %v3226_v24  ;;  %v3230_v49 = vsel %vm3218_vm11, %v3212_v45, %v3229_v47  ;;  %v3151_v62 = vsel %vm7691_vm15, 0, %v7690_v54 }
 0x348   : > { %v3231_v15 = vsel %vm3217_vm7, %v3228_v11, %v3230_v49  ;;  %v10755_v26 = vmul.u32.u64.low %v10715_v28, %v3227_v16  ;;  %v10756_v58 = vmul.u32.u64.high %v10715_v28, %v3227_v16, %v10755_v26  ;;  %v3136_v59 = vadd.s32 %v10669_v22, %v10676_v63 }
 0x349   : > { %v3152_v7 = vsub.s32 32, %v3151_v62  ;;  %v3156_v32 = vsub.s32 4294967266, %v3151_v62  ;;  %v10763_v37 = vand.u32 8388607, %v3392_v34  ;;  %v3223_v45 = vsel %vm3217_vm7, %v3220_v55, %v3222_v33 }
 0x34a   : > { %v8224_v57 = vpop.eup %8223  ;;  %v10767_v50 = vmul.u32.u64.low %v10715_v28, %v3231_v15  ;;  %v10768_v21 = vmul.u32.u64.high %v10715_v28, %v3231_v15, %v10767_v50  ;;  %v3402_v36 = vadd.s32 1, %v7700_v48  ;;  %v3153_v6 = vshll.u32 %v10718_v31, %v3151_v62 }
 0x34b   : > { %v8226_v5 = vpop.eup %8225  ;;  %v2972_v54 = vxor.u32 2147483648, %v8224_v57  ;;  %v3154_v2 = vshrl.u32 %v3136_v59, %v3152_v7  ;;  %v3157_v22 = vadd.s32 127, %v3156_v32  ;;  %v3167_v9 = vsel %vm3082_vm2, %v3166_v18, %v10705_v0 }
 0x34c   : > { %v2969_v63 = vxor.u32 2147483648, %v8226_v5  ;;  %v3242_v24 = vadd.s32 1, %v10756_v58  ;;  %vm3403_vm12 = vcmp.gt.s32.totalorder %v3402_v36, 0  ;;  %vm2967_vm13 = vcmp.lt.s32.totalorder %v10713_v51, 2 }
 0x34d   : > { %v2973_v55 = vsel %vm2971_vm8, %v2972_v54, %v8226_v5  ;;  %v3155_v48 = vor.u32 %v3154_v2, %v3153_v6  ;;  %v3158_v11 = vshll.u32 %v3157_v22, 23  ;;  %v3404_v47 = vsel %vm3403_vm12, %v3402_v36, 0 }
 0x34e   : > { %v2970_v31 = vsel %vm2968_vm4, %v8224_v57, %v2969_v63  ;;  %v3239_v33 = vmul.u32 %v10715_v28, %v3223_v45  ;;  %vm3241_vm7 = vc.u32 %v10768_v21, %v10755_v26  ;;  %v3169_v16 = vsel %vm10744_vm1, 0, %v3167_v9 }
 0x34f   : > { %v2974_v0 = vsel %vm2967_vm13, %v2970_v31, %v2973_v55  ;;  %v3159_v18 = vor.u32 4788187, %v3158_v11  ;;  %v3243_v49 = vsel %vm3241_vm7, %v3242_v24, %v10756_v58  ;;  %v3406_v59 = vand.u32 31, %v3404_v47 }
 0x350   : > { %v2975_v62 = vsel %vm2964_vm0, nan, %v2974_v0  ;;  %v3244_v15 = vadd.s32 %v3243_v49, %v3239_v33  ;;  %v10792_v51 = vadd.f32 %v8582_v41, %v10355_v20  ;;  %v3162_v32 = vcvt.s32.f32 %v3155_v48 }
 0x351   : > { %v7388_v28 = vsel %vm7364_vm3, %v10067_v1, %v2975_v62  ;;  %v3160_v7 = vand.u32 2147483647, %v3159_v18  ;;  %v3400_v57 = vor.u32 8388608, %v10763_v37  ;;  %v3173_v45 = vadd.s32 3, %v3169_v16 }
 0x352   : > { %7453 = vst [vmem:[%s8911_s28 + $0xa8] sm:$0xff] %v7388_v28  ;;  %v3245_v58 = vadd.s32 536870912, %v3244_v15  ;;  %v3405_v50 = vshrl.u32 %v3404_v47, 5  ;;  %v3407_v3 = vsub.s32 32, %v3406_v59  ;;  %v3409_v5 = vshll.u32 %v8400_v19, %v3406_v59 }
 0x353   : > { %v3163_v36 = vmul.f32 %v3162_v32, %v3160_v7  ;;  %v3412_v54 = vshll.u32 %v8401_v23, %v3406_v59  ;;  %v3415_v6 = vshll.u32 %v14055_v10, %v3406_v59  ;;  %v3418_v63 = vshll.u32 %v8403_v27, %v3406_v59 }
 0x354   : > { %v3246_v2 = vshrl.u32 %v3245_v58, 30  ;;  %v3410_v22 = vshrl.u32 %v8401_v23, %v3407_v3  ;;  %v3413_v1 = vshrl.u32 %v14055_v10, %v3407_v3  ;;  %vm3186_vm8 = vcmp.lt.s32.totalorder %v10635_v53, 0 }
 0x355   : > { %v3164_v37 = vxor.u32 2147483648, %v3163_v36  ;;  %v3416_v9 = vshrl.u32 %v8403_v27, %v3407_v3  ;;  %v3419_v24 = vshrl.u32 %v8404_v29, %v3407_v3  ;;  %v3422_v55 = vshrl.u32 %v8405_v52, %v3407_v3 }
 0x356   : > { %v3247_v48 = vshll.u32 %v3246_v2, 30  ;;  %v3411_v11 = vor.u32 %v3410_v22, %v3409_v5  ;;  %v3421_v47 = vshll.u32 %v8404_v29, %v3406_v59  ;;  %vm3424_vm11 = vcmp.lt.s32.totalorder %v3405_v50, 1 }
 0x357   : > { %v3165_v31 = vsel %vm3082_vm2, %v3164_v37, %v3163_v36  ;;  %v3414_v33 = vor.u32 %v3413_v1, %v3412_v54  ;;  %v3417_v0 = vor.u32 %v3416_v9, %v3415_v6  ;;  %v3420_v18 = vor.u32 %v3419_v24, %v3418_v63 }
 0x358   : > { %v3168_v16 = vsel %vm10744_vm1, %v10569_v25, %v3165_v31  ;;  %v10815_v49 = vsub.s32 %v3244_v15, %v3247_v48  ;;  %v3423_v62 = vor.u32 %v3422_v55, %v3421_v47  ;;  %vm3427_vm10 = vcmp.lt.s32.totalorder %v3405_v50, 4 }
 0x359   : > { %8227 = vcosq.f32 %v3168_v16  ;;  %v3408_v28 = vshrl.u32 %v8400_v19, %v3407_v3  ;;  %vm3425_vm4 = vcmp.lt.s32.totalorder %v3405_v50, 2  ;;  %v3429_v59 = vsel %vm3427_vm10, %v3417_v0, 2102212464 }
 0x35a   : > { %8229 = vsinq.f32 %v3168_v16  ;;  %v3250_v7 = vsub.s32 0, %v10815_v49  ;;  %v3270_v32 = vsub.s32 4, %v3246_v2  ;;  %vm3426_vm2 = vcmp.lt.s32.totalorder %v3405_v50, 3 }
 0x35b   : > { %v3428_v58 = vsel %vm3424_vm11, %v3408_v28, %v3411_v11  ;;  %v3430_v36 = vsel %vm3426_vm2, %v3414_v33, %v3429_v59  ;;  %v3432_v43 = vsel %vm3424_vm11, %v3411_v11, %v3414_v33  ;;  %v3433_v15 = vsel %vm3427_vm10, %v3420_v18, 920167782 }
 0x35c   : > { %v7693_v5 = vmin.u32 %v3250_v7, %v10815_v49  ;;  %v3434_v54 = vsel %vm3426_vm2, %v3417_v0, %v3433_v15  ;;  %v3436_v3 = vsel %vm3424_vm11, %v3414_v33, %v3417_v0  ;;  %v3437_v6 = vsel %vm3427_vm10, %v3423_v62, 1326507024 }
 0x35d   : > { %v3174_v22 = vand.u32 3, %v3173_v45  ;;  %v3435_v1 = vsel %vm3425_vm4, %v3432_v43, %v3434_v54  ;;  %v3438_v63 = vsel %vm3426_vm2, %v3420_v18, %v3437_v6  ;;  %v3440_v37 = vshll.u32 %v3400_v57, 8  ;;  %v10858_v54 = vpop.f32.mrb[16].mxu0 }
 0x35e   : > { %v3252_v9 = vclz %v7693_v5  ;;  %v3271_v24 = vsel %vm3186_vm8, %v3270_v32, %v3246_v2  ;;  %v3288_v55 = vand.u32 2147483647, %v10792_v51  ;;  %v3431_v48 = vsel %vm3425_vm4, %v3428_v58, %v3430_v36 }
 0x35f   : > { %v3439_v11 = vsel %vm3425_vm4, %v3436_v3, %v3438_v63  ;;  %v10832_v47 = vmul.u32.u64.low %v3440_v37, %v3435_v1  ;;  %v10833_v31 = vmul.u32.u64.high %v3440_v37, %v3435_v1, %v10832_v47  ;;  %v3291_v18 = vand.u32 2139095040, %v10792_v51 }
 0x360   : > { %v7694_v33 = vadd.s32 4294967294, %v3252_v9  ;;  %v10835_v0 = vmul.u32.u64.low %v3440_v37, %v3439_v11  ;;  %v10836_v45 = vmul.u32.u64.high %v3440_v37, %v3439_v11, %v10835_v0  ;;  %vm3176_vm1 = vcmp.eq.s32.totalorder %v3174_v22, 0 }
 0x361   : > { %vm10841_vm0 = vcmp.le.f32.partialorder %v3184_v13, 0.7853982  ;;  %v10847_v50 = vadd.f32 %v8624_v4, %v10448_v8  ;;  %vm3179_vm15 = vcmp.eq.s32.totalorder %v3174_v22, 2  ;;  %v3240_v2 = vadd.s32 %v10755_v26, %v10768_v21 }
 0x362   : > { %vm7695_vm12 = vcmp.lt.s32.totalorder %v7694_v33, 0  ;;  %v3292_v16 = vshrl.u32 %v3291_v18, 23  ;;  %v3273_v59 = vsel %vm10841_vm0, 0, %v3271_v24  ;;  %v3447_v7 = vmul.u32 %v3440_v37, %v3431_v48 }
 0x363   : > { %v8228_v62 = vpop.eup %8227  ;;  %v3255_v28 = vsel %vm7695_vm12, 0, %v7694_v33  ;;  %v3450_v13 = vadd.s32 1, %v10833_v31  ;;  %v3295_v15 = vand.u32 8388607, %v3288_v55  ;;  %vm3449_vm13 = vc.u32 %v10836_v45, %v10832_v47 }
 0x364   : > { %v8230_v32 = vpop.eup %8229  ;;  %v3180_v58 = vxor.u32 2147483648, %v8228_v62  ;;  %v3256_v36 = vsub.s32 32, %v3255_v28  ;;  %v3260_v43 = vsub.s32 4294967266, %v3255_v28  ;;  %v3257_v26 = vshll.u32 %v10815_v49, %v3255_v28 }
 0x365   : > { %v3177_v5 = vxor.u32 2147483648, %v8230_v32  ;;  %v7696_v21 = vadd.s32 4294967169, %v3292_v16  ;;  %v3451_v63 = vsel %vm3449_vm13, %v3450_v13, %v10833_v31  ;;  %vm3175_vm7 = vcmp.lt.s32.totalorder %v3174_v22, 2 }
 0x366   : > { %v3181_v3 = vsel %vm3179_vm15, %v3180_v58, %v8230_v32  ;;  %v3258_v6 = vshrl.u32 %v3240_v2, %v3256_v36  ;;  %v3261_v1 = vadd.s32 127, %v3260_v43  ;;  %v3452_v9 = vadd.s32 %v3451_v63, %v3447_v7 }
 0x367   : > { %v3178_v37 = vsel %vm3176_vm1, %v8228_v62, %v3177_v5  ;;  %v3298_v24 = vadd.s32 1, %v7696_v21  ;;  %vm3172_vm11 = vweird.f32 %v10569_v25  ;;  %v3277_v0 = vadd.s32 3, %v3273_v59 }
 0x368   : > { %v3182_v49 = vsel %vm3175_vm7, %v3178_v37, %v3181_v3  ;;  %v3259_v48 = vor.u32 %v3258_v6, %v3257_v26  ;;  %v3262_v11 = vshll.u32 %v3261_v1, 23  ;;  %v3453_v18 = vadd.s32 536870912, %v3452_v9 }
 0x369   : > { %v3183_v33 = vsel %vm3172_vm11, nan, %v3182_v49  ;;  %vm3299_vm10 = vcmp.gt.s32.totalorder %v3298_v24, 0  ;;  %v3296_v16 = vor.u32 8388608, %v3295_v15  ;;  %v3499_v25 = vand.u32 2139095040, %v10847_v50 }
 0x36a   : > { %v7390_v2 = vsel %vm7366_vm6, %v10110_v46, %v3183_v33  ;;  %v3263_v31 = vor.u32 4788187, %v3262_v11  ;;  %v3300_v22 = vsel %vm3299_vm10, %v3298_v24, 0  ;;  %v3454_v62 = vshrl.u32 %v3453_v18, 30 }
 0x36b   : > { %7455 = vst.msk [vmem:[%s8911_s28 + $0xb8] sm:$0xff] %vm7434_vm9, %v7390_v2  ;;  %v3302_v28 = vand.u32 31, %v3300_v22  ;;  %v3266_v13 = vcvt.s32.f32 %v3259_v48  ;;  %vm3394_vm4 = vcmp.lt.s32.totalorder %v10696_v60, 0  ;;  %v10871_v59 = vand.u32 3, %v3277_v0 }
 0x36c   : > { %v3264_v7 = vand.u32 2147483647, %v3263_v31  ;;  %vm10875_vm2 = vcmp.le.f32.partialorder %v3392_v34, 0.7853982  ;;  %v3455_v46 = vshll.u32 %v3454_v62, 30  ;;  %v3448_v15 = vadd.s32 %v10832_v47, %v10836_v45 }
 0x36d   : > { %v3303_v58 = vsub.s32 32, %v3302_v28  ;;  %v3496_v36 = vand.u32 2147483647, %v10847_v50  ;;  %v3478_v5 = vsub.s32 4, %v3454_v62  ;;  %v10881_v26 = vshll.u32 %v3296_v16, 8 }
 0x36e   : > { %v3267_v43 = vmul.f32 %v3266_v13, %v3264_v7  ;;  %v10883_v21 = vsub.s32 %v3452_v9, %v3455_v46  ;;  %v10885_v3 = vshrl.u32 %v3300_v22, 5  ;;  %v3500_v34 = vshrl.u32 %v3499_v25, 23 }
 0x36f   : > { %v3306_v6 = vshrl.u32 %v8401_v23, %v3303_v58  ;;  %v3305_v63 = vshll.u32 %v8400_v19, %v3302_v28  ;;  %v3309_v37 = vshrl.u32 %v14055_v10, %v3303_v58  ;;  %v3312_v24 = vshrl.u32 %v8403_v27, %v3303_v58 }
 0x370   : > { %v3268_v1 = vxor.u32 2147483648, %v3267_v43  ;;  %v3458_v49 = vsub.s32 0, %v10883_v21  ;;  %v3308_v47 = vshll.u32 %v8401_v23, %v3302_v28  ;;  %v3311_v45 = vshll.u32 %v14055_v10, %v3302_v28 }
 0x371   : > { %v3315_v9 = vshrl.u32 %v8404_v29, %v3303_v58  ;;  %v3479_v11 = vsel %vm3394_vm4, %v3478_v5, %v3454_v62  ;;  %v3307_v33 = vor.u32 %v3306_v6, %v3305_v63  ;;  %v3314_v0 = vshll.u32 %v8403_v27, %v3302_v28 }
 0x372   : > { %v3269_v48 = vsel %vm3186_vm8, %v3268_v1, %v3267_v43  ;;  %v7701_v2 = vmin.u32 %v3458_v49, %v10883_v21  ;;  %v3310_v31 = vor.u32 %v3309_v37, %v3308_v47  ;;  %v3313_v16 = vor.u32 %v3312_v24, %v3311_v45 }
 0x373   : > { %v3272_v18 = vsel %vm10841_vm0, %v10635_v53, %v3269_v48  ;;  %v3316_v22 = vor.u32 %v3315_v9, %v3314_v0  ;;  %v3317_v25 = vshll.u32 %v8404_v29, %v3302_v28  ;;  %v3318_v7 = vshrl.u32 %v8405_v52, %v3303_v58  ;;  %v10933_v48 = vpop.f32.mrb[16].mxu1 }
 0x374   : > { %8231 = vcosq.f32 %v3272_v18  ;;  %v3460_v13 = vclz %v7701_v2  ;;  %v7704_v62 = vadd.s32 4294967169, %v3500_v34  ;;  %v10908_v46 = vand.u32 8388607, %v3496_v36 }
 0x375   : > { %8233 = vsinq.f32 %v3272_v18  ;;  %v3481_v57 = vsel %vm10875_vm2, 0, %v3479_v11  ;;  %v3304_v43 = vshrl.u32 %v8400_v19, %v3303_v58  ;;  %v3319_v5 = vor.u32 %v3318_v7, %v3317_v25 }
 0x376   : > { %vm3320_vm8 = vcmp.lt.s32.totalorder %v10885_v3, 1  ;;  %v7702_v6 = vadd.s32 4294967294, %v3460_v13  ;;  %vm3322_vm1 = vcmp.lt.s32.totalorder %v10885_v3, 3  ;;  %vm3323_vm0 = vcmp.lt.s32.totalorder %v10885_v3, 4 }
 0x377   : > { %v3328_v28 = vsel %vm3320_vm8, %v3307_v33, %v3310_v31  ;;  %v3325_v34 = vsel %vm3323_vm0, %v3313_v16, 2102212464  ;;  %v3329_v1 = vsel %vm3323_vm0, %v3316_v22, 920167782  ;;  %v3332_v63 = vsel %vm3320_vm8, %v3310_v31, %v3313_v16 }
 0x378   : > { %v3333_v37 = vsel %vm3323_vm0, %v3319_v5, 1326507024  ;;  %vm3280_vm15 = vcmp.eq.s32.totalorder %v10871_v59, 0  ;;  %vm7703_vm12 = vcmp.lt.s32.totalorder %v7702_v6, 0  ;;  %vm3321_vm13 = vcmp.lt.s32.totalorder %v10885_v3, 2 }
 0x379   : > { %v3330_v58 = vsel %vm3322_vm1, %v3313_v16, %v3329_v1  ;;  %v3334_v24 = vsel %vm3322_vm1, %v3316_v22, %v3333_v37  ;;  %vm3279_vm7 = vcmp.lt.s32.totalorder %v10871_v59, 2  ;;  %v3463_v49 = vsel %vm7703_vm12, 0, %v7702_v6 }
 0x37a   : > { %v3324_v47 = vsel %vm3320_vm8, %v3304_v43, %v3307_v33  ;;  %v3331_v45 = vsel %vm3321_vm13, %v3328_v28, %v3330_v58  ;;  %v3335_v9 = vsel %vm3321_vm13, %v3332_v63, %v3334_v24  ;;  %vm3276_vm11 = vweird.f32 %v10635_v53 }
 0x37b   : > { %v3464_v11 = vsub.s32 32, %v3463_v49  ;;  %v3468_v0 = vsub.s32 4294967266, %v3463_v49  ;;  %v3326_v18 = vsel %vm3322_vm1, %v3310_v31, %v3325_v34  ;;  %v3506_v2 = vadd.s32 1, %v7704_v62 }
 0x37c   : > { %v10939_v16 = vmul.u32.u64.low %v10881_v26, %v3335_v9  ;;  %v10940_v22 = vmul.u32.u64.high %v10881_v26, %v3335_v9, %v10939_v16  ;;  %v10943_v33 = vmul.u32.u64.low %v10881_v26, %v3331_v45  ;;  %v10944_v25 = vmul.u32.u64.high %v10881_v26, %v3331_v45, %v10943_v33 }
 0x37d   : > { %v3465_v7 = vshll.u32 %v10883_v21, %v3463_v49  ;;  %v3466_v13 = vshrl.u32 %v3448_v15, %v3464_v11  ;;  %v3469_v43 = vadd.s32 127, %v3468_v0  ;;  %vm3507_vm10 = vcmp.gt.s32.totalorder %v3506_v2, 0 }
 0x37e   : > { %v8232_v5 = vpop.eup %8231  ;;  %vm3283_vm8 = vcmp.eq.s32.totalorder %v10871_v59, 2  ;;  %v3485_v6 = vadd.s32 3, %v3481_v57  ;;  %v3327_v31 = vsel %vm3321_vm13, %v3324_v47, %v3326_v18  ;;  %v3508_v62 = vsel %vm3507_vm10, %v3506_v2, 0 }
 0x37f   : > { %v8234_v28 = vpop.eup %8233  ;;  %v3284_v34 = vxor.u32 2147483648, %v8232_v5  ;;  %v3467_v1 = vor.u32 %v3466_v13, %v3465_v7  ;;  %v3470_v63 = vshll.u32 %v3469_v43, 23  ;;  %v3504_v37 = vor.u32 8388608, %v10908_v46 }
 0x380   : > { %v3281_v58 = vxor.u32 2147483648, %v8234_v28  ;;  %vm3345_vm1 = vc.u32 %v10940_v22, %v10943_v33  ;;  %v3346_v15 = vadd.s32 1, %v10944_v25  ;;  %v10957_v21 = vadd.f32 %v8574_v39, %v10516_v44 }
 0x381   : > { %v3285_v57 = vsel %vm3283_vm8, %v3284_v34, %v8234_v28  ;;  %v3471_v3 = vor.u32 4788187, %v3470_v63  ;;  %v3343_v24 = vmul.u32 %v10881_v26, %v3327_v31  ;;  %v3510_v49 = vand.u32 31, %v3508_v62 }
 0x382   : > { %v3282_v47 = vsel %vm3280_vm15, %v8232_v5, %v3281_v58  ;;  %v3474_v46 = vcvt.s32.f32 %v3467_v1  ;;  %v10962_v45 = vand.u32 3, %v3485_v6  ;;  %v3347_v9 = vsel %vm3345_vm1, %v3346_v15, %v10944_v25 }
 0x383   : > { %v3286_v11 = vsel %vm3279_vm7, %v3282_v47, %v3285_v57  ;;  %v3472_v0 = vand.u32 2147483647, %v3471_v3  ;;  %v3348_v18 = vadd.s32 %v3347_v9, %v3343_v24  ;;  %v3511_v2 = vsub.s32 32, %v3510_v49 }
 0x384   : > { %v3287_v16 = vsel %vm3276_vm11, nan, %v3286_v11  ;;  %v3509_v26 = vshrl.u32 %v3508_v62, 5  ;;  %v3513_v7 = vshll.u32 %v8400_v19, %v3510_v49  ;;  %v3516_v13 = vshll.u32 %v8401_v23, %v3510_v49 }
 0x385   : > { %v7391_v43 = vsel %vm7363_vm14, %v10215_v61, %v3287_v16  ;;  %v3475_v5 = vmul.f32 %v3474_v46, %v3472_v0  ;;  %v3349_v25 = vadd.s32 536870912, %v3348_v18  ;;  %v3519_v59 = vshll.u32 %v14055_v10, %v3510_v49 }
 0x386   : > { %7456 = vst [vmem:[%s8911_s28 + $0xc0] sm:$0xff] %v7391_v43  ;;  %v3514_v6 = vshrl.u32 %v8401_v23, %v3511_v2  ;;  %v3517_v31 = vshrl.u32 %v14055_v10, %v3511_v2  ;;  %v3520_v53 = vshrl.u32 %v8403_v27, %v3511_v2  ;;  %v3522_v62 = vshll.u32 %v8403_v27, %v3510_v49 }
 0x387   : > { %v3476_v28 = vxor.u32 2147483648, %v3475_v5  ;;  %v3350_v34 = vshrl.u32 %v3349_v25, 30  ;;  %v3523_v1 = vshrl.u32 %v8404_v29, %v3511_v2  ;;  %v3525_v63 = vshll.u32 %v8404_v29, %v3510_v49 }
 0x388   : > { %v3515_v61 = vor.u32 %v3514_v6, %v3513_v7  ;;  %v3518_v58 = vor.u32 %v3517_v31, %v3516_v13  ;;  %v3521_v15 = vor.u32 %v3520_v53, %v3519_v59  ;;  %v3526_v57 = vshrl.u32 %v8405_v52, %v3511_v2 }
 0x389   : > { %v3477_v3 = vsel %vm3394_vm4, %v3476_v28, %v3475_v5  ;;  %v3351_v24 = vshll.u32 %v3350_v34, 30  ;;  %v3524_v47 = vor.u32 %v3523_v1, %v3522_v62  ;;  %v10985_v46 = vshll.u32 %v3504_v37, 8 }
 0x38a   : > { %v3480_v9 = vsel %vm10875_vm2, %v10696_v60, %v3477_v3  ;;  %v3527_v11 = vor.u32 %v3526_v57, %v3525_v63  ;;  %vm3528_vm0 = vcmp.lt.s32.totalorder %v3509_v26, 1  ;;  %v3603_v49 = vand.u32 2139095040, %v10957_v21 }
 0x38b   : > { %8235 = vcosq.f32 %v3480_v9  ;;  %v10991_v0 = vsub.s32 %v3348_v18, %v3351_v24  ;;  %vm3529_vm15 = vcmp.lt.s32.totalorder %v3509_v26, 2  ;;  %vm3531_vm12 = vcmp.lt.s32.totalorder %v3509_v26, 4 }
 0x38c   : > { %8237 = vsinq.f32 %v3480_v9  ;;  %v3512_v16 = vshrl.u32 %v8400_v19, %v3511_v2  ;;  %v3533_v7 = vsel %vm3531_vm12, %v3521_v15, 2102212464  ;;  %v3536_v37 = vsel %vm3528_vm0, %v3515_v61, %v3518_v58 }
 0x38d   : > { %v3354_v13 = vsub.s32 0, %v10991_v0  ;;  %v3374_v43 = vsub.s32 4, %v3350_v34  ;;  %vm3530_vm4 = vcmp.lt.s32.totalorder %v3509_v26, 3  ;;  %v3537_v32 = vsel %vm3531_vm12, %v3524_v47, 920167782 }
 0x38e   : > { %v3532_v5 = vsel %vm3528_vm0, %v3512_v16, %v3515_v61  ;;  %v3538_v25 = vsel %vm3530_vm4, %v3521_v15, %v3537_v32  ;;  %v3540_v59 = vsel %vm3528_vm0, %v3518_v58, %v3521_v15  ;;  %v3541_v18 = vsel %vm3531_vm12, %v3527_v11, 1326507024  ;;  %v11026_v11 = vpop.f32.mrb[17].mxu0 }
 0x38f   : > { %v7697_v6 = vmin.u32 %v3354_v13, %v10991_v0  ;;  %v3534_v31 = vsel %vm3530_vm4, %v3518_v58, %v3533_v7  ;;  %v3539_v53 = vsel %vm3529_vm15, %v3536_v37, %v3538_v25  ;;  %v3542_v2 = vsel %vm3530_vm4, %v3524_v47, %v3541_v18 }
 0x390   : > { %vm3290_vm2 = vcmp.lt.s32.totalorder %v10792_v51, 0  ;;  %v3543_v62 = vsel %vm3529_vm15, %v3540_v59, %v3542_v2  ;;  %v11003_v28 = vmul.u32.u64.low %v10985_v46, %v3539_v53  ;;  %v11004_v1 = vmul.u32.u64.high %v10985_v46, %v3539_v53, %v11003_v28 }
 0x391   : > { %v3356_v63 = vclz %v7697_v6  ;;  %v3375_v61 = vsel %vm3290_vm2, %v3374_v43, %v3350_v34  ;;  %v3600_v15 = vand.u32 2147483647, %v10957_v21  ;;  %v11011_v58 = vadd.f32 %v8578_v40, %v10617_v17 }
 0x392   : > { %v3535_v57 = vsel %vm3529_vm15, %v3532_v5, %v3534_v31  ;;  %v11015_v3 = vmul.u32.u64.low %v10985_v46, %v3543_v62  ;;  %v11016_v24 = vmul.u32.u64.high %v10985_v46, %v3543_v62, %v11015_v3  ;;  %v3604_v47 = vshrl.u32 %v3603_v49, 23 }
 0x393   : > { %vm3487_vm13 = vcmp.lt.s32.totalorder %v10962_v45, 2  ;;  %vm3488_vm7 = vcmp.eq.s32.totalorder %v10962_v45, 0  ;;  %vm11022_vm11 = vcmp.le.f32.partialorder %v3288_v55, 0.7853982  ;;  %v7698_v9 = vadd.s32 4294967294, %v3356_v63 }
 0x394   : > { %vm3491_vm10 = vcmp.eq.s32.totalorder %v10962_v45, 2  ;;  %v3344_v26 = vadd.s32 %v10943_v33, %v10940_v22  ;;  %v3554_v49 = vadd.s32 1, %v11004_v1  ;;  %v7708_v16 = vadd.s32 4294967169, %v3604_v47 }
 0x395   : > { %v8236_v7 = vpop.eup %8235  ;;  %vm7699_vm8 = vcmp.lt.s32.totalorder %v7698_v9, 0  ;;  %v3377_v37 = vsel %vm11022_vm11, 0, %v3375_v61  ;;  %v3551_v55 = vmul.u32 %v10985_v46, %v3535_v57  ;;  %v3607_v13 = vand.u32 8388607, %v3600_v15 }
 0x396   : > { %v8238_v43 = vpop.eup %8237  ;;  %v3492_v32 = vxor.u32 2147483648, %v8236_v7  ;;  %v3359_v5 = vsel %vm7699_vm8, 0, %v7698_v9  ;;  %vm3553_vm1 = vc.u32 %v11016_v24, %v11003_v28  ;;  %v3808_v22 = vand.u32 2147483647, %v11011_v58 }
 0x397   : > { %v3489_v33 = vxor.u32 2147483648, %v8238_v43  ;;  %v3360_v25 = vsub.s32 32, %v3359_v5  ;;  %v3364_v59 = vsub.s32 4294967266, %v3359_v5  ;;  %v3811_v18 = vand.u32 2139095040, %v11011_v58 }
 0x398   : > { %v3493_v6 = vsel %vm3491_vm10, %v3492_v32, %v8238_v43  ;;  %v3361_v46 = vshll.u32 %v10991_v0, %v3359_v5  ;;  %v3555_v31 = vsel %vm3553_vm1, %v3554_v49, %v11004_v1  ;;  %v3610_v53 = vadd.s32 1, %v7708_v16 }
 0x399   : > { %v3490_v2 = vsel %vm3488_vm7, %v8236_v7, %v3489_v33  ;;  %v3362_v62 = vshrl.u32 %v3344_v26, %v3360_v25  ;;  %v3365_v63 = vadd.s32 127, %v3364_v59  ;;  %v3556_v61 = vadd.s32 %v3555_v31, %v3551_v55 }
 0x39a   : > { %vm3484_vm0 = vweird.f32 %v10696_v60  ;;  %v3494_v57 = vsel %vm3487_vm13, %v3490_v2, %v3493_v6  ;;  %vm3611_vm15 = vcmp.gt.s32.totalorder %v3610_v53, 0  ;;  %v3381_v49 = vadd.s32 3, %v3377_v37 }
 0x39b   : > { %v3495_v3 = vsel %vm3484_vm0, nan, %v3494_v57  ;;  %v3363_v47 = vor.u32 %v3362_v62, %v3361_v46  ;;  %v3366_v9 = vshll.u32 %v3365_v63, 23  ;;  %v3557_v0 = vadd.s32 536870912, %v3556_v61 }
 0x39c   : > { %v7393_v1 = vsel %vm7365_vm5, %v10297_v38, %v3495_v3  ;;  %v3608_v16 = vor.u32 8388608, %v3607_v13  ;;  %v3612_v7 = vsel %vm3611_vm15, %v3610_v53, 0  ;;  %v3812_v43 = vshrl.u32 %v3811_v18, 23 }
 0x39d   : > { %7458 = vst [vmem:[%s8911_s28 + $0xd0] sm:$0xff] %v7393_v1  ;;  %v3367_v26 = vor.u32 4788187, %v3366_v9  ;;  %v3558_v55 = vshrl.u32 %v3557_v0, 30  ;;  %v11055_v60 = vand.u32 8388607, %v3808_v22  ;;  %v3370_v5 = vcvt.s32.f32 %v3363_v47 }
 0x39e   : > { %v3614_v45 = vand.u32 31, %v3612_v7  ;;  %v11057_v25 = vand.u32 3, %v3381_v49  ;;  %v11060_v59 = vadd.s32 %v11003_v28, %v11016_v24  ;;  %v11062_v37 = vshll.u32 %v3608_v16, 8 }
 0x39f   : > { %v3368_v32 = vand.u32 2147483647, %v3367_v26  ;;  %v3559_v33 = vshll.u32 %v3558_v55, 30  ;;  %v7716_v18 = vadd.s32 4294967169, %v3812_v43  ;;  %v3816_v46 = vor.u32 8388608, %v11055_v60 }
 0x3a0   : > { %v3615_v38 = vsub.s32 32, %v3614_v45  ;;  %v11067_v31 = vshrl.u32 %v3612_v7, 5  ;;  %v3617_v53 = vshll.u32 %v8400_v19, %v3614_v45  ;;  %vm3498_vm12 = vcmp.lt.s32.totalorder %v10847_v50, 0 }
 0x3a1   : > { %v3371_v13 = vmul.f32 %v3370_v5, %v3368_v32  ;;  %v11064_v6 = vsub.s32 %v3556_v61, %v3559_v33  ;;  %v3620_v24 = vshll.u32 %v8401_v23, %v3614_v45  ;;  %v3623_v3 = vshll.u32 %v14055_v10, %v3614_v45 }
 0x3a2   : > { %v3618_v2 = vshrl.u32 %v8401_v23, %v3615_v38  ;;  %v3621_v62 = vshrl.u32 %v14055_v10, %v3615_v38  ;;  %v3624_v61 = vshrl.u32 %v8403_v27, %v3615_v38  ;;  %v3626_v47 = vshll.u32 %v8403_v27, %v3614_v45 }
 0x3a3   : > { %v3372_v63 = vxor.u32 2147483648, %v3371_v13  ;;  %v3562_v28 = vsub.s32 0, %v11064_v6  ;;  %v3627_v9 = vshrl.u32 %v8404_v29, %v3615_v38  ;;  %v3629_v16 = vshll.u32 %v8404_v29, %v3614_v45 }
 0x3a4   : > { %v3619_v57 = vor.u32 %v3618_v2, %v3617_v53  ;;  %v3622_v49 = vor.u32 %v3621_v62, %v3620_v24  ;;  %v3625_v26 = vor.u32 %v3624_v61, %v3623_v3  ;;  %v3630_v32 = vshrl.u32 %v8405_v52, %v3615_v38 }
 0x3a5   : > { %v3373_v0 = vsel %vm3290_vm2, %v3372_v63, %v3371_v13  ;;  %v7705_v1 = vmin.u32 %v3562_v28, %v11064_v6  ;;  %v3628_v43 = vor.u32 %v3627_v9, %v3626_v47  ;;  %v3582_v33 = vsub.s32 4, %v3558_v55 }
 0x3a6   : > { %v3376_v7 = vsel %vm11022_vm11, %v10792_v51, %v3373_v0  ;;  %v3818_v53 = vadd.s32 1, %v7716_v18  ;;  %vm11089_vm4 = vcmp.le.f32.partialorder %v3496_v36, 0.7853982  ;;  %v3616_v45 = vshrl.u32 %v8400_v19, %v3615_v38 }
 0x3a7   : > { %8239 = vcosq.f32 %v3376_v7  ;;  %v3564_v5 = vclz %v7705_v1  ;;  %v3631_v2 = vor.u32 %v3630_v32, %v3629_v16  ;;  %vm3632_vm2 = vcmp.lt.s32.totalorder %v11067_v31, 1 }
 0x3a8   : > { %8241 = vsinq.f32 %v3376_v7  ;;  %vm3634_vm13 = vcmp.lt.s32.totalorder %v11067_v31, 3  ;;  %vm3635_vm7 = vcmp.lt.s32.totalorder %v11067_v31, 4  ;;  %v3640_v18 = vsel %vm3632_vm2, %v3619_v57, %v3622_v49 }
 0x3a9   : > { %v7706_v34 = vadd.s32 4294967294, %v3564_v5  ;;  %v3637_v62 = vsel %vm3635_vm7, %v3625_v26, 2102212464  ;;  %v3641_v63 = vsel %vm3635_vm7, %v3628_v43, 920167782  ;;  %v3644_v36 = vsel %vm3632_vm2, %v3622_v49, %v3625_v26 }
 0x3aa   : > { %v3645_v28 = vsel %vm3635_vm7, %v3631_v2, 1326507024  ;;  %vm3633_vm10 = vcmp.lt.s32.totalorder %v11067_v31, 2  ;;  %v3642_v38 = vsel %vm3634_vm13, %v3625_v26, %v3641_v63  ;;  %vm3384_vm8 = vcmp.eq.s32.totalorder %v11057_v25, 0  ;;  %v11118_v26 = vpop.f32.mrb[17].mxu1 }
 0x3ab   : > { %vm7707_vm11 = vcmp.lt.s32.totalorder %v7706_v34, 0  ;;  %v3646_v24 = vsel %vm3634_vm13, %v3628_v43, %v3645_v28  ;;  %v3583_v3 = vsel %vm3498_vm12, %v3582_v33, %v3558_v55  ;;  %v3643_v47 = vsel %vm3633_vm10, %v3640_v18, %v3642_v38 }
 0x3ac   : > { %v3567_v61 = vsel %vm7707_vm11, 0, %v7706_v34  ;;  %v3647_v9 = vsel %vm3633_vm10, %v3644_v36, %v3646_v24  ;;  %vm3383_vm1 = vcmp.lt.s32.totalorder %v11057_v25, 2  ;;  %v3636_v16 = vsel %vm3632_vm2, %v3616_v45, %v3619_v57 }
 0x3ad   : > { %v3568_v0 = vsub.s32 32, %v3567_v61  ;;  %v3572_v1 = vsub.s32 4294967266, %v3567_v61  ;;  %v3638_v7 = vsel %vm3634_vm13, %v3622_v49, %v3637_v62  ;;  %vm3380_vm0 = vweird.f32 %v10792_v51 }
 0x3ae   : > { %v11122_v55 = vmul.u32.u64.low %v11062_v37, %v3647_v9  ;;  %v11123_v43 = vmul.u32.u64.high %v11062_v37, %v3647_v9, %v11122_v55  ;;  %v11126_v32 = vmul.u32.u64.low %v11062_v37, %v3643_v47  ;;  %v11127_v5 = vmul.u32.u64.high %v11062_v37, %v3643_v47, %v11126_v32 }
 0x3af   : > { %v3569_v33 = vshll.u32 %v11064_v6, %v3567_v61  ;;  %v3570_v57 = vshrl.u32 %v11060_v59, %v3568_v0  ;;  %v3573_v45 = vadd.s32 127, %v3572_v1  ;;  %vm3819_vm15 = vcmp.gt.s32.totalorder %v3818_v53, 0 }
 0x3b0   : > { %vm3387_vm2 = vcmp.eq.s32.totalorder %v11057_v25, 2  ;;  %v3639_v49 = vsel %vm3633_vm10, %v3636_v16, %v3638_v7  ;;  %v3820_v2 = vsel %vm3819_vm15, %v3818_v53, 0  ;;  %v11137_v34 = vshll.u32 %v3816_v46, 8 }
 0x3b1   : > { %v8240_v18 = vpop.eup %8239  ;;  %v3571_v62 = vor.u32 %v3570_v57, %v3569_v33  ;;  %v3574_v63 = vshll.u32 %v3573_v45, 23  ;;  %v3585_v6 = vsel %vm11089_vm4, 0, %v3583_v3  ;;  %v3822_v36 = vand.u32 31, %v3820_v2 }
 0x3b2   : > { %v8242_v59 = vpop.eup %8241  ;;  %v3388_v28 = vxor.u32 2147483648, %v8240_v18  ;;  %vm3657_vm13 = vc.u32 %v11123_v43, %v11126_v32  ;;  %v3658_v31 = vadd.s32 1, %v11127_v5  ;;  %v11146_v53 = vadd.f32 %v8582_v41, %v10673_v14 }
 0x3b3   : > { %v3385_v60 = vxor.u32 2147483648, %v8242_v59  ;;  %v3575_v46 = vor.u32 4788187, %v3574_v63  ;;  %v3655_v38 = vmul.u32 %v11062_v37, %v3639_v49  ;;  %v3823_v24 = vsub.s32 32, %v3822_v36 }
 0x3b4   : > { %v3389_v61 = vsel %vm3387_vm2, %v3388_v28, %v8242_v59  ;;  %v3589_v3 = vadd.s32 3, %v3585_v6  ;;  %v3659_v47 = vsel %vm3657_vm13, %v3658_v31, %v11127_v5  ;;  %v3821_v9 = vshrl.u32 %v3820_v2, 5 }
 0x3b5   : > { %v3386_v0 = vsel %vm3384_vm8, %v8240_v18, %v3385_v60  ;;  %v3576_v1 = vand.u32 2147483647, %v3575_v46  ;;  %v3578_v16 = vcvt.s32.f32 %v3571_v62  ;;  %v3660_v7 = vadd.s32 %v3659_v47, %v3655_v38 }
 0x3b6   : > { %v3390_v55 = vsel %vm3383_vm1, %v3386_v0, %v3389_v61  ;;  %v3825_v37 = vshll.u32 %v8400_v19, %v3822_v36  ;;  %v3826_v33 = vshrl.u32 %v8401_v23, %v3823_v24  ;;  %v3829_v57 = vshrl.u32 %v14055_v10, %v3823_v24 }
 0x3b7   : > { %v3391_v5 = vsel %vm3380_vm0, nan, %v3390_v55  ;;  %v3579_v45 = vmul.f32 %v3578_v16, %v3576_v1  ;;  %v3661_v49 = vadd.s32 536870912, %v3660_v7  ;;  %v3832_v2 = vshrl.u32 %v8403_v27, %v3823_v24 }
 0x3b8   : > { %v7392_v18 = vsel %vm7364_vm3, %v10355_v20, %v3391_v5  ;;  %v3827_v62 = vor.u32 %v3826_v33, %v3825_v37  ;;  %v3828_v25 = vshll.u32 %v8401_v23, %v3822_v36  ;;  %v3831_v63 = vshll.u32 %v14055_v10, %v3822_v36 }
 0x3b9   : > { %7457 = vst [vmem:[%s8911_s28 + $0xc8] sm:$0xff] %v7392_v18  ;;  %v3580_v6 = vxor.u32 2147483648, %v3579_v45  ;;  %v3662_v59 = vshrl.u32 %v3661_v49, 30  ;;  %v3834_v28 = vshll.u32 %v8403_v27, %v3822_v36  ;;  %v3835_v51 = vshrl.u32 %v8404_v29, %v3823_v24 }
 0x3ba   : > { %v3830_v31 = vor.u32 %v3829_v57, %v3828_v25  ;;  %v3833_v60 = vor.u32 %v3832_v2, %v3831_v63  ;;  %v3837_v46 = vshll.u32 %v8404_v29, %v3822_v36  ;;  %v3838_v38 = vshrl.u32 %v8405_v52, %v3823_v24 }
 0x3bb   : > { %v3581_v20 = vsel %vm3498_vm12, %v3580_v6, %v3579_v45  ;;  %v11174_v61 = vand.u32 3, %v3589_v3  ;;  %v3663_v47 = vshll.u32 %v3662_v59, 30  ;;  %v3836_v0 = vor.u32 %v3835_v51, %v3834_v28 }
 0x3bc   : > { %v3584_v1 = vsel %vm11089_vm4, %v10847_v50, %v3581_v20  ;;  %v3824_v16 = vshrl.u32 %v8400_v19, %v3823_v24  ;;  %v3839_v55 = vor.u32 %v3838_v38, %v3837_v46  ;;  %v3707_v37 = vand.u32 2139095040, %v11146_v53 }
 0x3bd   : > { %8243 = vcosq.f32 %v3584_v1  ;;  %v11181_v36 = vsub.s32 %v3660_v7, %v3663_v47  ;;  %vm3840_vm7 = vcmp.lt.s32.totalorder %v3821_v9, 1  ;;  %vm3843_vm11 = vcmp.lt.s32.totalorder %v3821_v9, 4 }
 0x3be   : > { %8245 = vsinq.f32 %v3584_v1  ;;  %vm3841_vm12 = vcmp.lt.s32.totalorder %v3821_v9, 2  ;;  %v3845_v3 = vsel %vm3843_vm11, %v3833_v60, 2102212464  ;;  %v3848_v33 = vsel %vm3840_vm7, %v3827_v62, %v3830_v31 }
 0x3bf   : > { %v3666_v57 = vsub.s32 0, %v11181_v36  ;;  %v3686_v5 = vsub.s32 4, %v3662_v59  ;;  %vm3842_vm10 = vcmp.lt.s32.totalorder %v3821_v9, 3  ;;  %v3849_v13 = vsel %vm3843_vm11, %v3836_v0, 920167782 }
 0x3c0   : > { %v3844_v45 = vsel %vm3840_vm7, %v3824_v16, %v3827_v62  ;;  %v3850_v49 = vsel %vm3842_vm10, %v3833_v60, %v3849_v13  ;;  %v3852_v24 = vsel %vm3840_vm7, %v3830_v31, %v3833_v60  ;;  %v3853_v2 = vsel %vm3843_vm11, %v3839_v55, 1326507024  ;;  %v11210_v16 = vpop.f32.mrb[18].mxu0 }
 0x3c1   : > { %v7709_v18 = vmin.u32 %v3666_v57, %v11181_v36  ;;  %v3846_v25 = vsel %vm3842_vm10, %v3830_v31, %v3845_v3  ;;  %v3851_v7 = vsel %vm3841_vm12, %v3848_v33, %v3850_v49  ;;  %v3854_v63 = vsel %vm3842_vm10, %v3836_v0, %v3853_v2 }
 0x3c2   : > { %vm3602_vm4 = vcmp.lt.s32.totalorder %v10957_v21, 0  ;;  %v3855_v6 = vsel %vm3841_vm12, %v3852_v24, %v3854_v63  ;;  %v11189_v28 = vmul.u32.u64.low %v11137_v34, %v3851_v7  ;;  %v11190_v51 = vmul.u32.u64.high %v11137_v34, %v3851_v7, %v11189_v28 }
 0x3c3   : > { %v3668_v46 = vclz %v7709_v18  ;;  %v3687_v62 = vsel %vm3602_vm4, %v3686_v5, %v3662_v59  ;;  %v3704_v60 = vand.u32 2147483647, %v11146_v53  ;;  %v3847_v38 = vsel %vm3841_vm12, %v3844_v45, %v3846_v25 }
 0x3c4   : > { %v11197_v31 = vmul.u32.u64.low %v11137_v34, %v3855_v6  ;;  %v11198_v20 = vmul.u32.u64.high %v11137_v34, %v3855_v6, %v11197_v31  ;;  %v3708_v47 = vshrl.u32 %v3707_v37, 23  ;;  %vm3591_vm8 = vcmp.lt.s32.totalorder %v11174_v61, 2 }
 0x3c5   : > { %vm11203_vm1 = vcmp.le.f32.partialorder %v3600_v15, 0.7853982  ;;  %v7710_v1 = vadd.s32 4294967294, %v3668_v46  ;;  %vm3592_vm0 = vcmp.eq.s32.totalorder %v11174_v61, 0  ;;  %vm3595_vm15 = vcmp.eq.s32.totalorder %v11174_v61, 2 }
 0x3c6   : > { %v3866_v9 = vadd.s32 1, %v11190_v51  ;;  %v7712_v59 = vadd.s32 4294967169, %v3708_v47  ;;  %v3656_v37 = vadd.s32 %v11126_v32, %v11123_v43  ;;  %v3689_v15 = vsel %vm11203_vm1, 0, %v3687_v62 }
 0x3c7   : > { %v8244_v55 = vpop.eup %8243  ;;  %vm7711_vm2 = vcmp.lt.s32.totalorder %v7710_v1, 0  ;;  %v3863_v3 = vmul.u32 %v11137_v34, %v3847_v38  ;;  %vm3865_vm13 = vc.u32 %v11198_v20, %v11189_v28  ;;  %v3711_v13 = vand.u32 8388607, %v3704_v60 }
 0x3c8   : > { %v8246_v33 = vpop.eup %8245  ;;  %v3596_v57 = vxor.u32 2147483648, %v8244_v55  ;;  %v3671_v5 = vsel %vm7711_vm2, 0, %v7710_v1  ;;  %v11222_v43 = vadd.f32 %v8624_v4, %v10775_v35  ;;  %v3867_v2 = vsel %vm3865_vm13, %v3866_v9, %v11190_v51 }
 0x3c9   : > { %v3593_v45 = vxor.u32 2147483648, %v8246_v33  ;;  %v3672_v49 = vsub.s32 32, %v3671_v5  ;;  %v3676_v24 = vsub.s32 4294967266, %v3671_v5  ;;  %v3673_v34 = vshll.u32 %v11181_v36, %v3671_v5 }
 0x3ca   : > { %v3597_v32 = vsel %vm3595_vm15, %v3596_v57, %v8246_v33  ;;  %v3714_v18 = vadd.s32 1, %v7712_v59  ;;  %v3868_v6 = vadd.s32 %v3867_v2, %v3863_v3  ;;  %vm3588_vm7 = vweird.f32 %v10847_v50 }
 0x3cb   : > { %v3594_v25 = vsel %vm3592_vm0, %v8244_v55, %v3593_v45  ;;  %v3674_v7 = vshrl.u32 %v3656_v37, %v3672_v49  ;;  %v3677_v63 = vadd.s32 127, %v3676_v24  ;;  %v3693_v47 = vadd.s32 3, %v3689_v15 }
 0x3cc   : > { %v3598_v46 = vsel %vm3591_vm8, %v3594_v25, %v3597_v32  ;;  %vm3715_vm11 = vcmp.gt.s32.totalorder %v3714_v18, 0  ;;  %v3869_v36 = vadd.s32 536870912, %v3868_v6  ;;  %v3712_v55 = vor.u32 8388608, %v3711_v13 }
 0x3cd   : > { %v3599_v62 = vsel %vm3588_vm7, nan, %v3598_v46  ;;  %v3675_v38 = vor.u32 %v3674_v7, %v3673_v34  ;;  %v3678_v31 = vshll.u32 %v3677_v63, 23  ;;  %v3716_v1 = vsel %vm3715_vm11, %v3714_v18, 0 }
 0x3ce   : > { %v7394_v51 = vsel %vm7366_vm6, %v10448_v8, %v3599_v62  ;;  %v3870_v59 = vshrl.u32 %v3869_v36, 30  ;;  %v3915_v50 = vand.u32 2139095040, %v11222_v43  ;;  %v3718_v61 = vand.u32 31, %v3716_v1 }
 0x3cf   : > { %7459 = vst.msk [vmem:[%s8911_s28 + $0xd8] sm:$0xff] %vm7434_vm9, %v7394_v51  ;;  %v3679_v9 = vor.u32 4788187, %v3678_v31  ;;  %v3682_v3 = vcvt.s32.f32 %v3675_v38  ;;  %v11239_v57 = vand.u32 3, %v3693_v47  ;;  %v3864_v5 = vadd.s32 %v11189_v28, %v11198_v20 }
 0x3d0   : > { %v3871_v33 = vshll.u32 %v3870_v59, 30  ;;  %v3719_v45 = vsub.s32 32, %v3718_v61  ;;  %v3912_v8 = vand.u32 2147483647, %v11222_v43  ;;  %v11245_v24 = vshll.u32 %v3712_v55, 8 }
 0x3d1   : > { %v3680_v37 = vand.u32 2147483647, %v3679_v9  ;;  %v3916_v32 = vshrl.u32 %v3915_v50, 23  ;;  %v11247_v13 = vshrl.u32 %v3716_v1, 5  ;;  %v3721_v34 = vshll.u32 %v8400_v19, %v3718_v61 }
 0x3d2   : > { %v11243_v49 = vsub.s32 %v3868_v6, %v3871_v33  ;;  %v3722_v2 = vshrl.u32 %v8401_v23, %v3719_v45  ;;  %v3725_v18 = vshrl.u32 %v14055_v10, %v3719_v45  ;;  %vm3810_vm12 = vcmp.lt.s32.totalorder %v11011_v58, 0 }
 0x3d3   : > { %v3683_v15 = vmul.f32 %v3682_v3, %v3680_v37  ;;  %v3724_v20 = vshll.u32 %v8401_v23, %v3718_v61  ;;  %v3728_v7 = vshrl.u32 %v8403_v27, %v3719_v45  ;;  %v3727_v6 = vshll.u32 %v14055_v10, %v3718_v61 }
 0x3d4   : > { %v3874_v28 = vsub.s32 0, %v11243_v49  ;;  %v3723_v63 = vor.u32 %v3722_v2, %v3721_v34  ;;  %v3730_v46 = vshll.u32 %v8403_v27, %v3718_v61  ;;  %v3731_v62 = vshrl.u32 %v8404_v29, %v3719_v45 }
 0x3d5   : > { %v3684_v25 = vxor.u32 2147483648, %v3683_v15  ;;  %v3726_v36 = vor.u32 %v3725_v18, %v3724_v20  ;;  %v3733_v51 = vshll.u32 %v8404_v29, %v3718_v61  ;;  %v3729_v1 = vor.u32 %v3728_v7, %v3727_v6 }
 0x3d6   : > { %v7717_v31 = vmin.u32 %v3874_v28, %v11243_v49  ;;  %v3732_v9 = vor.u32 %v3731_v62, %v3730_v46  ;;  %v3734_v55 = vshrl.u32 %v8405_v52, %v3719_v45  ;;  %v3894_v37 = vsub.s32 4, %v3870_v59  ;;  %v11292_v46 = vpop.f32.mrb[18].mxu1 }
 0x3d7   : > { %v3685_v38 = vsel %vm3602_vm4, %v3684_v25, %v3683_v15  ;;  %v7720_v3 = vadd.s32 4294967169, %v3916_v32  ;;  %v3720_v33 = vshrl.u32 %v8400_v19, %v3719_v45  ;;  %vm3736_vm10 = vcmp.lt.s32.totalorder %v11247_v13, 1 }
 0x3d8   : > { %v3688_v47 = vsel %vm11203_vm1, %v10957_v21, %v3685_v38  ;;  %v3876_v50 = vclz %v7717_v31  ;;  %v3735_v15 = vor.u32 %v3734_v55, %v3733_v51  ;;  %vm11271_vm4 = vcmp.le.f32.partialorder %v3808_v22, 0.7853982 }
 0x3d9   : > { %8247 = vcosq.f32 %v3688_v47  ;;  %vm3738_vm8 = vcmp.lt.s32.totalorder %v11247_v13, 3  ;;  %vm3739_vm1 = vcmp.lt.s32.totalorder %v11247_v13, 4  ;;  %v3744_v32 = vsel %vm3736_vm10, %v3723_v63, %v3726_v36 }
 0x3da   : > { %8249 = vsinq.f32 %v3688_v47  ;;  %v7718_v0 = vadd.s32 4294967294, %v3876_v50  ;;  %v3741_v34 = vsel %vm3739_vm1, %v3729_v1, 2102212464  ;;  %v3745_v2 = vsel %vm3739_vm1, %v3732_v9, 920167782 }
 0x3db   : > { %v3748_v45 = vsel %vm3736_vm10, %v3726_v36, %v3729_v1  ;;  %v3749_v18 = vsel %vm3739_vm1, %v3735_v15, 1326507024  ;;  %vm3737_vm15 = vcmp.lt.s32.totalorder %v11247_v13, 2  ;;  %v3746_v22 = vsel %vm3738_vm8, %v3729_v1, %v3745_v2 }
 0x3dc   : > { %vm7719_vm0 = vcmp.lt.s32.totalorder %v7718_v0, 0  ;;  %v3750_v25 = vsel %vm3738_vm8, %v3732_v9, %v3749_v18  ;;  %v3895_v20 = vsel %vm3810_vm12, %v3894_v37, %v3870_v59  ;;  %v3747_v7 = vsel %vm3737_vm15, %v3744_v32, %v3746_v22 }
 0x3dd   : > { %v3879_v28 = vsel %vm7719_vm0, 0, %v7718_v0  ;;  %v3751_v6 = vsel %vm3737_vm15, %v3748_v45, %v3750_v25  ;;  %v3740_v31 = vsel %vm3736_vm10, %v3720_v33, %v3723_v63  ;;  %v3742_v51 = vsel %vm3738_vm8, %v3726_v36, %v3741_v34 }
 0x3de   : > { %v3880_v62 = vsub.s32 32, %v3879_v28  ;;  %v3884_v38 = vsub.s32 4294967266, %v3879_v28  ;;  %vm3692_vm2 = vweird.f32 %v10957_v21  ;;  %v3881_v55 = vshll.u32 %v11243_v49, %v3879_v28 }
 0x3df   : > { %v11300_v59 = vmul.u32.u64.low %v11245_v24, %v3751_v6  ;;  %v11301_v47 = vmul.u32.u64.high %v11245_v24, %v3751_v6, %v11300_v59  ;;  %v11304_v1 = vmul.u32.u64.low %v11245_v24, %v3747_v7  ;;  %v11305_v9 = vmul.u32.u64.high %v11245_v24, %v3747_v7, %v11304_v1 }
 0x3e0   : > { %v3882_v50 = vshrl.u32 %v3864_v5, %v3880_v62  ;;  %v3885_v37 = vadd.s32 127, %v3884_v38  ;;  %v3922_v15 = vadd.s32 1, %v7720_v3  ;;  %vm3695_vm13 = vcmp.lt.s32.totalorder %v11239_v57, 2 }
 0x3e1   : > { %vm3696_vm7 = vcmp.eq.s32.totalorder %v11239_v57, 0  ;;  %vm3699_vm11 = vcmp.eq.s32.totalorder %v11239_v57, 2  ;;  %v3743_v63 = vsel %vm3737_vm15, %v3740_v31, %v3742_v51  ;;  %v3919_v32 = vand.u32 8388607, %v3912_v8 }
 0x3e2   : > { %v3883_v33 = vor.u32 %v3882_v50, %v3881_v55  ;;  %v3886_v0 = vshll.u32 %v3885_v37, 23  ;;  %vm3923_vm10 = vcmp.gt.s32.totalorder %v3922_v15, 0  ;;  %v3897_v3 = vsel %vm11271_vm4, 0, %v3895_v20 }
 0x3e3   : > { %v8248_v36 = vpop.eup %8247  ;;  %vm3761_vm8 = vc.u32 %v11301_v47, %v11304_v1  ;;  %v3762_v34 = vadd.s32 1, %v11305_v9  ;;  %v3759_v45 = vmul.u32 %v11245_v24, %v3743_v63  ;;  %v3924_v18 = vsel %vm3923_vm10, %v3922_v15, 0 }
 0x3e4   : > { %v8250_v49 = vpop.eup %8249  ;;  %v3700_v5 = vxor.u32 2147483648, %v8248_v36  ;;  %v3887_v13 = vor.u32 4788187, %v3886_v0  ;;  %v3926_v28 = vand.u32 31, %v3924_v18  ;;  %v11327_v7 = vadd.f32 %v8574_v39, %v10858_v54 }
 0x3e5   : > { %v3697_v2 = vxor.u32 2147483648, %v8250_v49  ;;  %v3763_v25 = vsel %vm3761_vm8, %v3762_v34, %v11305_v9  ;;  %v3890_v62 = vcvt.s32.f32 %v3883_v33  ;;  %v3901_v31 = vadd.s32 3, %v3897_v3 }
 0x3e6   : > { %v3701_v22 = vsel %vm3699_vm11, %v3700_v5, %v8250_v49  ;;  %v3888_v6 = vand.u32 2147483647, %v3887_v13  ;;  %v3764_v38 = vadd.s32 %v3763_v25, %v3759_v45  ;;  %v3920_v51 = vor.u32 8388608, %v3919_v32 }
 0x3e7   : > { %v3698_v20 = vsel %vm3696_vm7, %v8248_v36, %v3697_v2  ;;  %v3927_v59 = vsub.s32 32, %v3926_v28  ;;  %v3925_v37 = vshrl.u32 %v3924_v18, 5  ;;  %v3929_v63 = vshll.u32 %v8400_v19, %v3926_v28 }
 0x3e8   : > { %v3702_v24 = vsel %vm3695_vm13, %v3698_v20, %v3701_v22  ;;  %v3891_v55 = vmul.f32 %v3890_v62, %v3888_v6  ;;  %v3765_v50 = vadd.s32 536870912, %v3764_v38  ;;  %v3932_v21 = vshll.u32 %v8401_v23, %v3926_v28 }
 0x3e9   : > { %v3703_v9 = vsel %vm3692_vm2, nan, %v3702_v24  ;;  %v3930_v36 = vshrl.u32 %v8401_v23, %v3927_v59  ;;  %v3933_v57 = vshrl.u32 %v14055_v10, %v3927_v59  ;;  %v3936_v32 = vshrl.u32 %v8403_v27, %v3927_v59 }
 0x3ea   : > { %v7395_v15 = vsel %vm7363_vm14, %v10516_v44, %v3703_v9  ;;  %v3892_v33 = vxor.u32 2147483648, %v3891_v55  ;;  %v11342_v0 = vshrl.u32 %v3765_v50, 30  ;;  %v3935_v5 = vshll.u32 %v14055_v10, %v3926_v28 }
 0x3eb   : > { %7460 = vst [vmem:[%s8911_s28 + $0xe0] sm:$0xff] %v7395_v15  ;;  %v3931_v49 = vor.u32 %v3930_v36, %v3929_v63  ;;  %v3938_v3 = vshll.u32 %v8403_v27, %v3926_v28  ;;  %v3939_v44 = vshrl.u32 %v8404_v29, %v3927_v59  ;;  %v3934_v13 = vor.u32 %v3933_v57, %v3932_v21 }
 0x3ec   : > { %v3893_v34 = vsel %vm3810_vm12, %v3892_v33, %v3891_v55  ;;  %v3767_v2 = vshll.u32 %v11342_v0, 30  ;;  %v3941_v45 = vshll.u32 %v8404_v29, %v3926_v28  ;;  %v3937_v22 = vor.u32 %v3936_v32, %v3935_v5 }
 0x3ed   : > { %v3896_v18 = vsel %vm11271_vm4, %v11011_v58, %v3893_v34  ;;  %v3940_v25 = vor.u32 %v3939_v44, %v3938_v3  ;;  %v3942_v20 = vshrl.u32 %v8405_v52, %v3927_v59  ;;  %v11361_v62 = vadd.f32 %v8578_v40, %v10933_v48 }
 0x3ee   : > { %8251 = vcosq.f32 %v3896_v18  ;;  %v11357_v6 = vsub.s32 %v3764_v38, %v3767_v2  ;;  %v3902_v24 = vand.u32 3, %v3901_v31  ;;  %v4019_v28 = vand.u32 2139095040, %v11327_v7 }
 0x3ef   : > { %8253 = vsinq.f32 %v3896_v18  ;;  %v3943_v9 = vor.u32 %v3942_v20, %v3941_v45  ;;  %vm3706_vm12 = vcmp.lt.s32.totalorder %v11146_v53, 0  ;;  %vm3944_vm4 = vcmp.lt.s32.totalorder %v3925_v37, 1  ;;  %v11382_v20 = vpop.f32.mrb[19].mxu0 }
 0x3f0   : > { %v3770_v61 = vsub.s32 0, %v11357_v6  ;;  %vm3947_vm1 = vcmp.lt.s32.totalorder %v3925_v37, 4  ;;  %v3960_v55 = vshll.u32 %v3920_v51, 8  ;;  %vm3946_vm0 = vcmp.lt.s32.totalorder %v3925_v37, 3 }
 0x3f1   : > { %v3949_v50 = vsel %vm3947_vm1, %v3937_v22, 2102212464  ;;  %v3952_v38 = vsel %vm3944_vm4, %v3931_v49, %v3934_v13  ;;  %v3953_v15 = vsel %vm3947_vm1, %v3940_v25, 920167782  ;;  %v3928_v36 = vshrl.u32 %v8400_v19, %v3927_v59 }
 0x3f2   : > { %v7713_v63 = vmin.u32 %v3770_v61, %v11357_v6  ;;  %vm3945_vm15 = vcmp.lt.s32.totalorder %v3925_v37, 2  ;;  %v3954_v31 = vsel %vm3946_vm0, %v3937_v22, %v3953_v15  ;;  %v3956_v33 = vsel %vm3944_vm4, %v3934_v13, %v3937_v22 }
 0x3f3   : > { %v3955_v57 = vsel %vm3945_vm15, %v3952_v38, %v3954_v31  ;;  %v3957_v21 = vsel %vm3947_vm1, %v3943_v9, 1326507024  ;;  %v4020_v32 = vshrl.u32 %v4019_v28, 23  ;;  %vm3903_vm2 = vcmp.lt.s32.totalorder %v3902_v24, 2 }
 0x3f4   : > { %v3772_v51 = vclz %v7713_v63  ;;  %v3948_v5 = vsel %vm3944_vm4, %v3928_v36, %v3931_v49  ;;  %v3950_v3 = vsel %vm3946_vm0, %v3934_v13, %v3949_v50  ;;  %vm3900_vm13 = vweird.f32 %v11011_v58 }
 0x3f5   : > { %v3790_v44 = vsub.s32 4, %v11342_v0  ;;  %v3958_v59 = vsel %vm3946_vm0, %v3940_v25, %v3957_v21  ;;  %v11377_v34 = vmul.u32.u64.low %v3960_v55, %v3955_v57  ;;  %v11378_v2 = vmul.u32.u64.high %v3960_v55, %v3955_v57, %v11377_v34 }
 0x3f6   : > { %vm3904_vm7 = vcmp.eq.s32.totalorder %v3902_v24, 0  ;;  %v7714_v45 = vadd.s32 4294967294, %v3772_v51  ;;  %v3959_v18 = vsel %vm3945_vm15, %v3956_v33, %v3958_v59  ;;  %v7724_v22 = vadd.s32 4294967169, %v4020_v32 }
 0x3f7   : > { %vm3907_vm11 = vcmp.eq.s32.totalorder %v3902_v24, 2  ;;  %v3951_v49 = vsel %vm3945_vm15, %v3948_v5, %v3950_v3  ;;  %v11385_v13 = vmul.u32.u64.low %v3960_v55, %v3959_v18  ;;  %v11386_v9 = vmul.u32.u64.high %v3960_v55, %v3959_v18, %v11385_v13 }
 0x3f8   : > { %v8252_v28 = vpop.eup %8251  ;;  %v3760_v25 = vadd.s32 %v11304_v1, %v11301_v47  ;;  %vm7715_vm10 = vcmp.lt.s32.totalorder %v7714_v45, 0  ;;  %v4016_v61 = vand.u32 2147483647, %v11327_v7  ;;  %v4026_v50 = vadd.s32 1, %v7724_v22 }
 0x3f9   : > { %v8254_v38 = vpop.eup %8253  ;;  %v3908_v15 = vxor.u32 2147483648, %v8252_v28  ;;  %v3775_v63 = vsel %vm7715_vm10, 0, %v7714_v45  ;;  %v3791_v36 = vsel %vm3706_vm12, %v3790_v44, %v11342_v0  ;;  %v3970_v37 = vadd.s32 1, %v11378_v2 }
 0x3fa   : > { %v3905_v31 = vxor.u32 2147483648, %v8254_v38  ;;  %v3776_v57 = vsub.s32 32, %v3775_v63  ;;  %v3780_v33 = vsub.s32 4294967266, %v3775_v63  ;;  %v3967_v21 = vmul.u32 %v3960_v55, %v3951_v49 }
 0x3fb   : > { %v3909_v32 = vsel %vm3907_vm11, %v3908_v15, %v8254_v38  ;;  %v3777_v47 = vshll.u32 %v11357_v6, %v3775_v63  ;;  %vm3969_vm8 = vc.u32 %v11386_v9, %v11377_v34  ;;  %vm4027_vm4 = vcmp.gt.s32.totalorder %v4026_v50, 0 }
 0x3fc   : > { %v3906_v1 = vsel %vm3904_vm7, %v8252_v28, %v3905_v31  ;;  %v3778_v51 = vshrl.u32 %v3760_v25, %v3776_v57  ;;  %v3781_v5 = vadd.s32 127, %v3780_v33  ;;  %v3971_v0 = vsel %vm3969_vm8, %v3970_v37, %v11378_v2 }
 0x3fd   : > { %v3910_v3 = vsel %vm3903_vm2, %v3906_v1, %v3909_v32  ;;  %v3972_v44 = vadd.s32 %v3971_v0, %v3967_v21  ;;  %v4023_v55 = vand.u32 8388607, %v4016_v61  ;;  %v4028_v59 = vsel %vm4027_vm4, %v4026_v50, 0 }
 0x3fe   : > { %v3911_v6 = vsel %vm3900_vm13, nan, %v3910_v3  ;;  %v3779_v45 = vor.u32 %v3778_v51, %v3777_v47  ;;  %v3782_v18 = vshll.u32 %v3781_v5, 23  ;;  %vm11411_vm1 = vcmp.le.f32.partialorder %v3704_v60, 0.7853982 }
 0x3ff   : > { %v7397_v22 = vsel %vm7365_vm5, %v10617_v17, %v3911_v6  ;;  %v3973_v24 = vadd.s32 536870912, %v3972_v44  ;;  %v4030_v49 = vand.u32 31, %v4028_v59  ;;  %v3793_v58 = vsel %vm11411_vm1, 0, %v3791_v36 }
 0x400   : > { %7462 = vst [vmem:[%s8911_s28 + $0xf0] sm:$0xff] %v7397_v22  ;;  %v3783_v13 = vor.u32 4788187, %v3782_v18  ;;  %v4224_v28 = vand.u32 2147483647, %v11361_v62  ;;  %v11421_v25 = vadd.f32 %v8582_v41, %v11026_v11  ;;  %v4024_v50 = vor.u32 8388608, %v4023_v55 }
 0x401   : > { %v11423_v17 = vshrl.u32 %v3973_v24, 30  ;;  %v4031_v60 = vsub.s32 32, %v4030_v49  ;;  %v4227_v38 = vand.u32 2139095040, %v11361_v62  ;;  %v3786_v63 = vcvt.s32.f32 %v3779_v45 }
 0x402   : > { %v3784_v15 = vand.u32 2147483647, %v3783_v13  ;;  %v11426_v37 = vshrl.u32 %v4028_v59, 5  ;;  %v4033_v31 = vshll.u32 %v8400_v19, %v4030_v49  ;;  %v4036_v33 = vshll.u32 %v8401_v23, %v4030_v49 }
 0x403   : > { %v3975_v36 = vshll.u32 %v11423_v17, 30  ;;  %v4034_v57 = vshrl.u32 %v8401_v23, %v4031_v60  ;;  %v4039_v21 = vshll.u32 %v14055_v10, %v4030_v49  ;;  %v4037_v47 = vshrl.u32 %v14055_v10, %v4031_v60 }
 0x404   : > { %v3787_v32 = vmul.f32 %v3786_v63, %v3784_v15  ;;  %v4040_v1 = vshrl.u32 %v8403_v27, %v4031_v60  ;;  %v4043_v51 = vshrl.u32 %v8404_v29, %v4031_v60  ;;  %v3797_v5 = vadd.s32 3, %v3793_v58 }
 0x405   : > { %v11436_v0 = vsub.s32 %v3972_v44, %v3975_v36  ;;  %v4042_v3 = vshll.u32 %v8403_v27, %v4030_v49  ;;  %v4046_v55 = vshrl.u32 %v8405_v52, %v4031_v60  ;;  %v4035_v6 = vor.u32 %v4034_v57, %v4033_v31 }
 0x406   : > { %v3788_v59 = vxor.u32 2147483648, %v3787_v32  ;;  %v4038_v45 = vor.u32 %v4037_v47, %v4036_v33  ;;  %v4041_v18 = vor.u32 %v4040_v1, %v4039_v21  ;;  %v4045_v13 = vshll.u32 %v8404_v29, %v4030_v49 }
 0x407   : > { %v3978_v22 = vsub.s32 0, %v11436_v0  ;;  %v4044_v24 = vor.u32 %v4043_v51, %v4042_v3  ;;  %v11442_v15 = vshll.u32 %v4024_v50, 8  ;;  %vm3914_vm0 = vcmp.lt.s32.totalorder %v11222_v43, 0 }
 0x408   : > { %v3789_v58 = vsel %vm3706_vm12, %v3788_v59, %v3787_v32  ;;  %v4032_v44 = vshrl.u32 %v8400_v19, %v4031_v60  ;;  %vm4048_vm15 = vcmp.lt.s32.totalorder %v11426_v37, 1  ;;  %v4228_v63 = vshrl.u32 %v4227_v38, 23 }
 0x409   : > { %v3792_v31 = vsel %vm11411_vm1, %v11146_v53, %v3789_v58  ;;  %v7721_v36 = vmin.u32 %v3978_v22, %v11436_v0  ;;  %v4047_v57 = vor.u32 %v4046_v55, %v4045_v13  ;;  %vm4051_vm2 = vcmp.lt.s32.totalorder %v11426_v37, 4 }
 0x40a   : > { %8255 = vcosq.f32 %v3792_v31  ;;  %v4053_v49 = vsel %vm4051_vm2, %v4041_v18, 2102212464  ;;  %v4056_v50 = vsel %vm4048_vm15, %v4035_v6, %v4038_v45  ;;  %v4057_v60 = vsel %vm4051_vm2, %v4044_v24, 920167782 }
 0x40b   : > { %8257 = vsinq.f32 %v3792_v31  ;;  %v3980_v38 = vclz %v7721_v36  ;;  %vm4049_vm12 = vcmp.lt.s32.totalorder %v11426_v37, 2  ;;  %vm4050_vm13 = vcmp.lt.s32.totalorder %v11426_v37, 3 }
 0x40c   : > { %v3998_v2 = vsub.s32 4, %v11423_v17  ;;  %v4052_v33 = vsel %vm4048_vm15, %v4032_v44, %v4035_v6  ;;  %v4058_v21 = vsel %vm4050_vm13, %v4041_v18, %v4057_v60  ;;  %v4060_v32 = vsel %vm4048_vm15, %v4038_v45, %v4041_v18 }
 0x40d   : > { %v7722_v47 = vadd.s32 4294967294, %v3980_v38  ;;  %v4054_v1 = vsel %vm4050_vm13, %v4038_v45, %v4053_v49  ;;  %v4059_v51 = vsel %vm4049_vm12, %v4056_v50, %v4058_v21  ;;  %v4061_v3 = vsel %vm4051_vm2, %v4047_v57, 1326507024  ;;  %v11499_v50 = vpop.f32.mrb[19].mxu1 }
 0x40e   : > { %v4062_v55 = vsel %vm4050_vm13, %v4044_v24, %v4061_v3  ;;  %v11472_v59 = vmul.u32.u64.low %v11442_v15, %v4059_v51  ;;  %v11473_v22 = vmul.u32.u64.high %v11442_v15, %v4059_v51, %v11472_v59  ;;  %v7732_v13 = vadd.s32 4294967169, %v4228_v63 }
 0x40f   : > { %vm11478_vm7 = vcmp.le.f32.partialorder %v3912_v8, 0.7853982  ;;  %v3968_v45 = vadd.s32 %v11377_v34, %v11386_v9  ;;  %vm7723_vm11 = vcmp.lt.s32.totalorder %v7722_v47, 0  ;;  %v4063_v18 = vsel %vm4049_vm12, %v4060_v32, %v4062_v55 }
 0x410   : > { %v3983_v24 = vsel %vm7723_vm11, 0, %v7722_v47  ;;  %v11487_v58 = vmul.u32.u64.low %v11442_v15, %v4063_v18  ;;  %v11488_v44 = vmul.u32.u64.high %v11442_v15, %v4063_v18, %v11487_v58  ;;  %v4234_v31 = vadd.s32 1, %v7732_v13 }
 0x411   : > { %vm3796_vm10 = vweird.f32 %v11146_v53  ;;  %v3984_v63 = vsub.s32 32, %v3983_v24  ;;  %v3988_v8 = vsub.s32 4294967266, %v3983_v24  ;;  %v3999_v36 = vsel %vm3914_vm0, %v3998_v2, %v11423_v17 }
 0x412   : > { %v4055_v34 = vsel %vm4049_vm12, %v4052_v33, %v4054_v1  ;;  %v3798_v9 = vand.u32 3, %v3797_v5  ;;  %v4074_v57 = vadd.s32 1, %v11473_v22  ;;  %v4231_v49 = vand.u32 8388607, %v4224_v28 }
 0x413   : > { %vm4235_vm8 = vcmp.gt.s32.totalorder %v4234_v31, 0  ;;  %v3985_v60 = vshll.u32 %v11436_v0, %v3983_v24  ;;  %v3986_v38 = vshrl.u32 %v3968_v45, %v3984_v63  ;;  %v3989_v21 = vadd.s32 127, %v3988_v8 }
 0x414   : > { %v4236_v32 = vsel %vm4235_vm8, %v4234_v31, 0  ;;  %v8256_v47 = vpop.eup %8255  ;;  %v4001_v17 = vsel %vm11478_vm7, 0, %v3999_v36  ;;  %v4071_v37 = vmul.u32 %v11442_v15, %v4055_v34  ;;  %vm4073_vm4 = vc.u32 %v11488_v44, %v11472_v59 }
 0x415   : > { %v4238_v5 = vand.u32 31, %v4236_v32  ;;  %v8258_v2 = vpop.eup %8257  ;;  %v3804_v33 = vxor.u32 2147483648, %v8256_v47  ;;  %v3987_v1 = vor.u32 %v3986_v38, %v3985_v60  ;;  %v3990_v51 = vshll.u32 %v3989_v21, 23 }
 0x416   : > { %v4075_v3 = vsel %vm4073_vm4, %v4074_v57, %v11473_v22  ;;  %v3801_v0 = vxor.u32 2147483648, %v8258_v2  ;;  %vm3803_vm1 = vcmp.eq.s32.totalorder %v3798_v9, 2  ;;  %vm3799_vm15 = vcmp.lt.s32.totalorder %v3798_v9, 2 }
 0x417   : > { %v4076_v55 = vadd.s32 %v4075_v3, %v4071_v37  ;;  %v4239_v13 = vsub.s32 32, %v4238_v5  ;;  %vm3800_vm2 = vcmp.eq.s32.totalorder %v3798_v9, 0  ;;  %v3805_v45 = vsel %vm3803_vm1, %v3804_v33, %v8258_v2 }
 0x418   : > { %v3991_v18 = vor.u32 4788187, %v3990_v51  ;;  %v3802_v24 = vsel %vm3800_vm2, %v8256_v47, %v3801_v0  ;;  %v4005_v15 = vadd.s32 3, %v4001_v17  ;;  %v4232_v31 = vor.u32 8388608, %v4231_v49 }
 0x419   : > { %v4077_v58 = vadd.s32 536870912, %v4076_v55  ;;  %v3806_v63 = vsel %vm3799_vm15, %v3802_v24, %v3805_v45  ;;  %v3994_v36 = vcvt.s32.f32 %v3987_v1  ;;  %v4237_v34 = vshrl.u32 %v4236_v32, 5 }
 0x41a   : > { %v3992_v8 = vand.u32 2147483647, %v3991_v18  ;;  %v3807_v22 = vsel %vm3796_vm10, nan, %v3806_v63  ;;  %v4242_v60 = vshrl.u32 %v8401_v23, %v4239_v13  ;;  %v4248_v9 = vshrl.u32 %v8403_v27, %v4239_v13 }
 0x41b   : > { %v11510_v57 = vshrl.u32 %v4077_v58, 30  ;;  %v7396_v38 = vsel %vm7364_vm3, %v10673_v14, %v3807_v22  ;;  %v4241_v49 = vshll.u32 %v8400_v19, %v4238_v5  ;;  %v4245_v47 = vshrl.u32 %v14055_v10, %v4239_v13 }
 0x41c   : > { %v3995_v21 = vmul.f32 %v3994_v36, %v3992_v8  ;;  %7461 = vst [vmem:[%s8911_s28 + $0xe8] sm:$0xff] %v7396_v38  ;;  %v4244_v53 = vshll.u32 %v8401_v23, %v4238_v5  ;;  %v4247_v17 = vshll.u32 %v14055_v10, %v4238_v5  ;;  %v4251_v37 = vshrl.u32 %v8404_v29, %v4239_v13 }
 0x41d   : > { %v4079_v32 = vshll.u32 %v11510_v57, 30  ;;  %v4250_v33 = vshll.u32 %v8403_v27, %v4238_v5  ;;  %v4253_v1 = vshll.u32 %v8404_v29, %v4238_v5  ;;  %v4254_v14 = vshrl.u32 %v8405_v52, %v4239_v13 }
 0x41e   : > { %v3996_v2 = vxor.u32 2147483648, %v3995_v21  ;;  %v4243_v3 = vor.u32 %v4242_v60, %v4241_v49  ;;  %v4249_v0 = vor.u32 %v4248_v9, %v4247_v17  ;;  %v4246_v18 = vor.u32 %v4245_v47, %v4244_v53 }
 0x41f   : > { %v11527_v51 = vsub.s32 %v4076_v55, %v4079_v32  ;;  %v4252_v24 = vor.u32 %v4251_v37, %v4250_v33  ;;  %v4255_v58 = vor.u32 %v4254_v14, %v4253_v1  ;;  %v11534_v8 = vand.u32 3, %v4005_v15 }
 0x420   : > { %v3997_v45 = vsel %vm3914_vm0, %v3996_v2, %v3995_v21  ;;  %v4272_v36 = vshll.u32 %v4232_v31, 8  ;;  %v4240_v55 = vshrl.u32 %v8400_v19, %v4239_v13  ;;  %vm4259_vm12 = vcmp.lt.s32.totalorder %v4237_v34, 4 }
 0x421   : > { %v4000_v63 = vsel %vm11478_vm7, %v11222_v43, %v3997_v45  ;;  %v4082_v5 = vsub.s32 0, %v11527_v51  ;;  %v4123_v22 = vand.u32 2139095040, %v11421_v25  ;;  %vm4256_vm0 = vcmp.lt.s32.totalorder %v4237_v34, 1 }
 0x422   : > { %8259 = vcosq.f32 %v4000_v63  ;;  %v4261_v9 = vsel %vm4259_vm12, %v4249_v0, 2102212464  ;;  %v4264_v38 = vsel %vm4256_vm0, %v4243_v3, %v4246_v18  ;;  %v4265_v21 = vsel %vm4259_vm12, %v4252_v24, 920167782 }
 0x423   : > { %8261 = vsinq.f32 %v4000_v63  ;;  %v7725_v60 = vmin.u32 %v4082_v5, %v11527_v51  ;;  %v4268_v6 = vsel %vm4256_vm0, %v4246_v18, %v4249_v0  ;;  %v4269_v49 = vsel %vm4259_vm12, %v4255_v58, 1326507024  ;;  %v11558_v58 = vpop.f32.mrb[20].mxu0 }
 0x424   : > { %v4102_v47 = vsub.s32 4, %v11510_v57  ;;  %vm4257_vm13 = vcmp.lt.s32.totalorder %v4237_v34, 2  ;;  %vm4258_vm7 = vcmp.lt.s32.totalorder %v4237_v34, 3  ;;  %v4260_v31 = vsel %vm4256_vm0, %v4240_v55, %v4243_v3 }
 0x425   : > { %v4084_v15 = vclz %v7725_v60  ;;  %v4262_v32 = vsel %vm4258_vm7, %v4246_v18, %v4261_v9  ;;  %v4266_v13 = vsel %vm4258_vm7, %v4249_v0, %v4265_v21  ;;  %v4270_v53 = vsel %vm4258_vm7, %v4252_v24, %v4269_v49 }
 0x426   : > { %v4267_v37 = vsel %vm4257_vm13, %v4264_v38, %v4266_v13  ;;  %v4271_v2 = vsel %vm4257_vm13, %v4268_v6, %v4270_v53  ;;  %v4124_v33 = vshrl.u32 %v4123_v22, 23  ;;  %vm4004_vm11 = vweird.f32 %v11222_v43 }
 0x427   : > { %v7726_v17 = vadd.s32 4294967294, %v4084_v15  ;;  %v11541_v1 = vmul.u32.u64.low %v4272_v36, %v4271_v2  ;;  %v11542_v14 = vmul.u32.u64.high %v4272_v36, %v4271_v2, %v11541_v1  ;;  %vm11551_vm10 = vcmp.le.f32.partialorder %v4016_v61, 0.7853982 }
 0x428   : > { %v11544_v45 = vmul.u32.u64.low %v4272_v36, %v4267_v37  ;;  %v11545_v63 = vmul.u32.u64.high %v4272_v36, %v4267_v37, %v11544_v45  ;;  %v4263_v3 = vsel %vm4257_vm13, %v4260_v31, %v4262_v32  ;;  %v7728_v0 = vadd.s32 4294967169, %v4124_v33 }
 0x429   : > { %vm7727_vm8 = vcmp.lt.s32.totalorder %v7726_v17, 0  ;;  %vm4008_vm4 = vcmp.eq.s32.totalorder %v11534_v8, 0  ;;  %vm4018_vm1 = vcmp.lt.s32.totalorder %v11327_v7, 0  ;;  %v4120_v24 = vand.u32 2147483647, %v11421_v25 }
 0x42a   : > { %v4087_v18 = vsel %vm7727_vm8, 0, %v7726_v17  ;;  %v4072_v5 = vadd.s32 %v11472_v59, %v11488_v44  ;;  %v4103_v22 = vsel %vm4018_vm1, %v4102_v47, %v11510_v57  ;;  %v4279_v9 = vmul.u32 %v4272_v36, %v4263_v3 }
 0x42b   : > { %v4088_v55 = vsub.s32 32, %v4087_v18  ;;  %v4092_v61 = vsub.s32 4294967266, %v4087_v18  ;;  %vm4281_vm15 = vc.u32 %v11542_v14, %v11544_v45  ;;  %v4282_v38 = vadd.s32 1, %v11545_v63 }
 0x42c   : > { %v8260_v60 = vpop.eup %8259  ;;  %v4130_v21 = vadd.s32 1, %v7728_v0  ;;  %v4089_v15 = vshll.u32 %v11527_v51, %v4087_v18  ;;  %vm4011_vm2 = vcmp.eq.s32.totalorder %v11534_v8, 2  ;;  %vm4007_vm0 = vcmp.lt.s32.totalorder %v11534_v8, 2 }
 0x42d   : > { %v8262_v6 = vpop.eup %8261  ;;  %v4012_v49 = vxor.u32 2147483648, %v8260_v60  ;;  %v4090_v31 = vshrl.u32 %v4072_v5, %v4088_v55  ;;  %v4093_v59 = vadd.s32 127, %v4092_v61  ;;  %v4283_v32 = vsel %vm4281_vm15, %v4282_v38, %v11545_v63 }
 0x42e   : > { %v4009_v44 = vxor.u32 2147483648, %v8262_v6  ;;  %vm4131_vm12 = vcmp.gt.s32.totalorder %v4130_v21, 0  ;;  %v4284_v13 = vadd.s32 %v4283_v32, %v4279_v9  ;;  %v4105_v51 = vsel %vm11551_vm10, 0, %v4103_v22 }
 0x42f   : > { %v4013_v57 = vsel %vm4011_vm2, %v4012_v49, %v8262_v6  ;;  %v4091_v36 = vor.u32 %v4090_v31, %v4089_v15  ;;  %v4094_v47 = vshll.u32 %v4093_v59, 23  ;;  %v4132_v17 = vsel %vm4131_vm12, %v4130_v21, 0 }
 0x430   : > { %v4010_v53 = vsel %vm4008_vm4, %v8260_v60, %v4009_v44  ;;  %v4285_v33 = vadd.s32 536870912, %v4284_v13  ;;  %v4127_v1 = vand.u32 8388607, %v4120_v24  ;;  %v4134_v3 = vand.u32 31, %v4132_v17 }
 0x431   : > { %v4014_v37 = vsel %vm4007_vm0, %v4010_v53, %v4013_v57  ;;  %v4095_v2 = vor.u32 4788187, %v4094_v47  ;;  %v4098_v18 = vcvt.s32.f32 %v4091_v36  ;;  %v4109_v55 = vadd.s32 3, %v4105_v51 }
 0x432   : > { %v4015_v63 = vsel %vm4004_vm11, nan, %v4014_v37  ;;  %v11583_v5 = vshrl.u32 %v4285_v33, 30  ;;  %v4135_v61 = vsub.s32 32, %v4134_v3  ;;  %v11589_v22 = vadd.f32 %v8624_v4, %v11118_v26 }
 0x433   : > { %v7398_v0 = vsel %vm7366_vm6, %v10775_v35, %v4015_v63  ;;  %v4096_v8 = vand.u32 2147483647, %v4095_v2  ;;  %v4128_v9 = vor.u32 8388608, %v4127_v1  ;;  %v4137_v38 = vshll.u32 %v8400_v19, %v4134_v3 }
 0x434   : > { %7463 = vst.msk [vmem:[%s8911_s28 + $0xf8] sm:$0xff] %vm7434_vm9, %v7398_v0  ;;  %v4287_v43 = vshll.u32 %v11583_v5, 30  ;;  %v4138_v35 = vshrl.u32 %v8401_v23, %v4135_v61  ;;  %v4140_v21 = vshll.u32 %v8401_v23, %v4134_v3  ;;  %v4141_v6 = vshrl.u32 %v14055_v10, %v4135_v61 }
 0x435   : > { %v4099_v60 = vmul.f32 %v4098_v18, %v4096_v8  ;;  %v4144_v49 = vshrl.u32 %v8403_v27, %v4135_v61  ;;  %v4143_v59 = vshll.u32 %v14055_v10, %v4134_v3  ;;  %v4147_v44 = vshrl.u32 %v8404_v29, %v4135_v61 }
 0x436   : > { %v11597_v31 = vsub.s32 %v4284_v13, %v4287_v43  ;;  %v11601_v32 = vand.u32 3, %v4109_v55  ;;  %v4133_v57 = vshrl.u32 %v4132_v17, 5  ;;  %v4139_v36 = vor.u32 %v4138_v35, %v4137_v38 }
 0x437   : > { %v4100_v15 = vxor.u32 2147483648, %v4099_v60  ;;  %v4146_v47 = vshll.u32 %v8403_v27, %v4134_v3  ;;  %v4142_v37 = vor.u32 %v4141_v6, %v4140_v21  ;;  %v4145_v2 = vor.u32 %v4144_v49, %v4143_v59 }
 0x438   : > { %v4290_v51 = vsub.s32 0, %v11597_v31  ;;  %vm4226_vm13 = vcmp.lt.s32.totalorder %v11361_v62, 0  ;;  %v4149_v1 = vshll.u32 %v8404_v29, %v4134_v3  ;;  %v4150_v17 = vshrl.u32 %v8405_v52, %v4135_v61 }
 0x439   : > { %v4101_v53 = vsel %vm4018_vm1, %v4100_v15, %v4099_v60  ;;  %v4148_v33 = vor.u32 %v4147_v44, %v4146_v47  ;;  %v11614_v0 = vshll.u32 %v4128_v9, 8  ;;  %v4331_v8 = vand.u32 2139095040, %v11589_v22 }
 0x43a   : > { %v4104_v13 = vsel %vm11551_vm10, %v11327_v7, %v4101_v53  ;;  %v7733_v63 = vmin.u32 %v4290_v51, %v11597_v31  ;;  %v4310_v18 = vsub.s32 4, %v11583_v5  ;;  %v4136_v34 = vshrl.u32 %v8400_v19, %v4135_v61 }
 0x43b   : > { %8263 = vcosq.f32 %v4104_v13  ;;  %v4151_v55 = vor.u32 %v4150_v17, %v4149_v1  ;;  %vm4152_vm7 = vcmp.lt.s32.totalorder %v4133_v57, 1  ;;  %vm4153_vm11 = vcmp.lt.s32.totalorder %v4133_v57, 2  ;;  %v11634_v1 = vpop.f32.mrb[20].mxu1 }
 0x43c   : > { %8265 = vsinq.f32 %v4104_v13  ;;  %v4292_v60 = vclz %v7733_v63  ;;  %vm4155_vm10 = vcmp.lt.s32.totalorder %v4133_v57, 4  ;;  %vm4154_vm8 = vcmp.lt.s32.totalorder %v4133_v57, 3 }
 0x43d   : > { %v4157_v3 = vsel %vm4155_vm10, %v4145_v2, 2102212464  ;;  %v4160_v43 = vsel %vm4152_vm7, %v4139_v36, %v4142_v37  ;;  %v4161_v38 = vsel %vm4155_vm10, %v4148_v33, 920167782  ;;  %vm11621_vm4 = vcmp.le.f32.partialorder %v4224_v28, 0.7853982 }
 0x43e   : > { %v7734_v35 = vadd.s32 4294967294, %v4292_v60  ;;  %v4156_v21 = vsel %vm4152_vm7, %v4136_v34, %v4139_v36  ;;  %v4162_v6 = vsel %vm4154_vm8, %v4145_v2, %v4161_v38  ;;  %v4164_v49 = vsel %vm4152_vm7, %v4142_v37, %v4145_v2 }
 0x43f   : > { %vm4112_vm1 = vcmp.eq.s32.totalorder %v11601_v32, 0  ;;  %v4158_v61 = vsel %vm4154_vm8, %v4142_v37, %v4157_v3  ;;  %v4163_v15 = vsel %vm4153_vm11, %v4160_v43, %v4162_v6  ;;  %v4165_v59 = vsel %vm4155_vm10, %v4151_v55, 1326507024 }
 0x440   : > { %v4332_v44 = vshrl.u32 %v4331_v8, 23  ;;  %vm7735_vm15 = vcmp.lt.s32.totalorder %v7734_v35, 0  ;;  %v4166_v47 = vsel %vm4154_vm8, %v4148_v33, %v4165_v59  ;;  %v4328_v36 = vand.u32 2147483647, %v11589_v22 }
 0x441   : > { %v11628_v53 = vmul.u32.u64.low %v11614_v0, %v4163_v15  ;;  %v11629_v51 = vmul.u32.u64.high %v11614_v0, %v4163_v15, %v11628_v53  ;;  %v4295_v28 = vsel %vm7735_vm15, 0, %v7734_v35  ;;  %v4167_v13 = vsel %vm4153_vm11, %v4164_v49, %v4166_v47 }
 0x442   : > { %v7736_v2 = vadd.s32 4294967169, %v4332_v44  ;;  %v4280_v37 = vadd.s32 %v11544_v45, %v11542_v14  ;;  %v4296_v17 = vsub.s32 32, %v4295_v28  ;;  %v4300_v63 = vsub.s32 4294967266, %v4295_v28 }
 0x443   : > { %v4311_v33 = vsel %vm4226_vm13, %v4310_v18, %v11583_v5  ;;  %v4159_v8 = vsel %vm4153_vm11, %v4156_v21, %v4158_v61  ;;  %v11643_v34 = vmul.u32.u64.low %v11614_v0, %v4167_v13  ;;  %v11644_v55 = vmul.u32.u64.high %v11614_v0, %v4167_v13, %v11643_v34 }
 0x444   : > { %v4338_v60 = vadd.s32 1, %v7736_v2  ;;  %v4297_v43 = vshll.u32 %v11597_v31, %v4295_v28  ;;  %v4298_v38 = vshrl.u32 %v4280_v37, %v4296_v17  ;;  %v4301_v35 = vadd.s32 127, %v4300_v63 }
 0x445   : > { %v8264_v3 = vpop.eup %8263  ;;  %v4178_v14 = vadd.s32 1, %v11629_v51  ;;  %vm4115_vm2 = vcmp.eq.s32.totalorder %v11601_v32, 2  ;;  %v4335_v5 = vand.u32 8388607, %v4328_v36  ;;  %v4313_v31 = vsel %vm11621_vm4, 0, %v4311_v33 }
 0x446   : > { %v8266_v45 = vpop.eup %8265  ;;  %v4116_v6 = vxor.u32 2147483648, %v8264_v3  ;;  %vm4339_vm12 = vcmp.gt.s32.totalorder %v4338_v60, 0  ;;  %v4299_v18 = vor.u32 %v4298_v38, %v4297_v43  ;;  %v4302_v21 = vshll.u32 %v4301_v35, 23 }
 0x447   : > { %v4113_v57 = vxor.u32 2147483648, %v8266_v45  ;;  %v4340_v49 = vsel %vm4339_vm12, %v4338_v60, 0  ;;  %v4175_v15 = vmul.u32 %v11614_v0, %v4159_v8  ;;  %vm4177_vm0 = vc.u32 %v11644_v55, %v11628_v53 }
 0x448   : > { %v4117_v61 = vsel %vm4115_vm2, %v4116_v6, %v8266_v45  ;;  %vm4111_vm7 = vcmp.lt.s32.totalorder %v11601_v32, 2  ;;  %v4303_v44 = vor.u32 4788187, %v4302_v21  ;;  %v4179_v47 = vsel %vm4177_vm0, %v4178_v14, %v11629_v51 }
 0x449   : > { %v4114_v59 = vsel %vm4112_vm1, %v8264_v3, %v4113_v57  ;;  %vm4108_vm11 = vweird.f32 %v11327_v7  ;;  %v4180_v13 = vadd.s32 %v4179_v47, %v4175_v15  ;;  %v4342_v2 = vand.u32 31, %v4340_v49 }
 0x44a   : > { %v4118_v28 = vsel %vm4111_vm7, %v4114_v59, %v4117_v61  ;;  %v4304_v17 = vand.u32 2147483647, %v4303_v44  ;;  %v4306_v0 = vcvt.s32.f32 %v4299_v18  ;;  %v4317_v63 = vadd.s32 3, %v4313_v31 }
 0x44b   : > { %v4119_v37 = vsel %vm4108_vm11, nan, %v4118_v28  ;;  %v4181_v8 = vadd.s32 536870912, %v4180_v13  ;;  %v4336_v32 = vor.u32 8388608, %v4335_v5  ;;  %v4343_v34 = vsub.s32 32, %v4342_v2 }
 0x44c   : > { %v7399_v33 = vsel %vm7363_vm14, %v10858_v54, %v4119_v37  ;;  %v4307_v60 = vmul.f32 %v4306_v0, %v4304_v17  ;;  %v4341_v3 = vshrl.u32 %v4340_v49, 5  ;;  %v4345_v51 = vshll.u32 %v8400_v19, %v4342_v2 }
 0x44d   : > { %7464 = vst [vmem:[%s8911_s28 + $0x100] sm:$0xff] %v7399_v33  ;;  %v4348_v7 = vshll.u32 %v8401_v23, %v4342_v2  ;;  %vm4122_vm10 = vcmp.lt.s32.totalorder %v11421_v25, 0  ;;  %v4182_v43 = vshrl.u32 %v4181_v8, 30  ;;  %v4346_v38 = vshrl.u32 %v8401_v23, %v4343_v34 }
 0x44e   : > { %v4349_v35 = vshrl.u32 %v14055_v10, %v4343_v34  ;;  %v4351_v14 = vshll.u32 %v14055_v10, %v4342_v2  ;;  %v4308_v54 = vxor.u32 2147483648, %v4307_v60  ;;  %v4352_v45 = vshrl.u32 %v8403_v27, %v4343_v34 }
 0x44f   : > { %v4354_v6 = vshll.u32 %v8403_v27, %v4342_v2  ;;  %v4355_v5 = vshrl.u32 %v8404_v29, %v4343_v34  ;;  %v4183_v57 = vshll.u32 %v4182_v43, 30  ;;  %v4347_v18 = vor.u32 %v4346_v38, %v4345_v51 }
 0x450   : > { %v4350_v21 = vor.u32 %v4349_v35, %v4348_v7  ;;  %v4357_v49 = vshll.u32 %v8404_v29, %v4342_v2  ;;  %v4309_v61 = vsel %vm4226_vm13, %v4308_v54, %v4307_v60  ;;  %v4353_v31 = vor.u32 %v4352_v45, %v4351_v14 }
 0x451   : > { %v4356_v15 = vor.u32 %v4355_v5, %v4354_v6  ;;  %v4358_v59 = vshrl.u32 %v8405_v52, %v4343_v34  ;;  %v4312_v44 = vsel %vm11621_vm4, %v11361_v62, %v4309_v61  ;;  %v11681_v47 = vand.u32 3, %v4317_v63 }
 0x452   : > { %v11683_v28 = vsub.s32 %v4180_v13, %v4183_v57  ;;  %v11687_v37 = vadd.f32 %v8574_v39, %v11210_v16  ;;  %8267 = vcosq.f32 %v4312_v44  ;;  %v4206_v2 = vsub.s32 4, %v4182_v43 }
 0x453   : > { %v4359_v17 = vor.u32 %v4358_v59, %v4357_v49  ;;  %v4376_v0 = vshll.u32 %v4336_v32, 8  ;;  %8269 = vsinq.f32 %v4312_v44  ;;  %vm4360_vm13 = vcmp.lt.s32.totalorder %v4341_v3, 1 }
 0x454   : > { %v4186_v33 = vsub.s32 0, %v11683_v28  ;;  %vm4363_vm8 = vcmp.lt.s32.totalorder %v4341_v3, 4  ;;  %vm4362_vm1 = vcmp.lt.s32.totalorder %v4341_v3, 3  ;;  %v4368_v63 = vsel %vm4360_vm13, %v4347_v18, %v4350_v21 }
 0x455   : > { %v4365_v9 = vsel %vm4363_vm8, %v4353_v31, 2102212464  ;;  %v4369_v8 = vsel %vm4363_vm8, %v4356_v15, 920167782  ;;  %v4344_v60 = vshrl.u32 %v8400_v19, %v4343_v34  ;;  %vm4361_vm4 = vcmp.lt.s32.totalorder %v4341_v3, 2 }
 0x456   : > { %v7729_v13 = vmin.u32 %v4186_v33, %v11683_v28  ;;  %v4370_v51 = vsel %vm4362_vm1, %v4353_v31, %v4369_v8  ;;  %v4207_v32 = vsel %vm4122_vm10, %v4206_v2, %v4182_v43  ;;  %v4372_v38 = vsel %vm4360_vm13, %v4350_v21, %v4353_v31 }
 0x457   : > { %v4371_v7 = vsel %vm4361_vm4, %v4368_v63, %v4370_v51  ;;  %v4373_v35 = vsel %vm4363_vm8, %v4359_v17, 1326507024  ;;  %vm11700_vm15 = vcmp.le.f32.partialorder %v4120_v24, 0.7853982  ;;  %v4364_v34 = vsel %vm4360_vm13, %v4344_v60, %v4347_v18 }
 0x458   : > { %v4188_v54 = vclz %v7729_v13  ;;  %v4366_v45 = vsel %vm4362_vm1, %v4350_v21, %v4365_v9  ;;  %vm4319_vm2 = vcmp.lt.s32.totalorder %v11681_v47, 2  ;;  %v4374_v43 = vsel %vm4362_vm1, %v4356_v15, %v4373_v35 }
 0x459   : > { %v11708_v6 = vmul.u32.u64.low %v4376_v0, %v4371_v7  ;;  %v11709_v5 = vmul.u32.u64.high %v4376_v0, %v4371_v7, %v11708_v6  ;;  %v4435_v57 = vand.u32 2139095040, %v11687_v37  ;;  %vm4316_vm12 = vweird.f32 %v11361_v62 }
 0x45a   : > { %vm4320_vm0 = vcmp.eq.s32.totalorder %v11681_v47, 0  ;;  %v7730_v24 = vadd.s32 4294967294, %v4188_v54  ;;  %v4209_v18 = vsel %vm11700_vm15, 0, %v4207_v32  ;;  %v4375_v21 = vsel %vm4361_vm4, %v4372_v38, %v4374_v43 }
 0x45b   : > { %v4367_v49 = vsel %vm4361_vm4, %v4364_v34, %v4366_v45  ;;  %v11719_v61 = vmul.u32.u64.low %v4376_v0, %v4375_v21  ;;  %v11720_v31 = vmul.u32.u64.high %v4376_v0, %v4375_v21, %v11719_v61  ;;  %v4436_v15 = vshrl.u32 %v4435_v57, 23 }
 0x45c   : > { %vm4323_vm7 = vcmp.eq.s32.totalorder %v11681_v47, 2  ;;  %v4176_v59 = vadd.s32 %v11628_v53, %v11644_v55  ;;  %vm7731_vm11 = vcmp.lt.s32.totalorder %v7730_v24, 0  ;;  %v4432_v44 = vand.u32 2147483647, %v11687_v37  ;;  %v8268_v2 = vpop.eup %8267  ;;  %v11730_v55 = vpop.f32.mrb[21].mxu0 }
 0x45d   : > { %v4191_v17 = vsel %vm7731_vm11, 0, %v7730_v24  ;;  %v4213_v33 = vadd.s32 3, %v4209_v18  ;;  %v4386_v9 = vadd.s32 1, %v11709_v5  ;;  %v7740_v63 = vadd.s32 4294967169, %v4436_v15  ;;  %v8270_v3 = vpop.eup %8269 }
 0x45e   : > { %v4324_v8 = vxor.u32 2147483648, %v8268_v2  ;;  %v4192_v13 = vsub.s32 32, %v4191_v17  ;;  %v4196_v60 = vsub.s32 4294967266, %v4191_v17  ;;  %v4383_v51 = vmul.u32 %v4376_v0, %v4367_v49 }
 0x45f   : > { %v4321_v32 = vxor.u32 2147483648, %v8270_v3  ;;  %v4193_v7 = vshll.u32 %v11683_v28, %v4191_v17  ;;  %vm4385_vm13 = vc.u32 %v11720_v31, %v11708_v6  ;;  %v4442_v53 = vadd.s32 1, %v7740_v63 }
 0x460   : > { %v4325_v38 = vsel %vm4323_vm7, %v4324_v8, %v8270_v3  ;;  %v4194_v35 = vshrl.u32 %v4176_v59, %v4192_v13  ;;  %v4197_v54 = vadd.s32 127, %v4196_v60  ;;  %v4387_v34 = vsel %vm4385_vm13, %v4386_v9, %v11709_v5 }
 0x461   : > { %v4322_v0 = vsel %vm4320_vm0, %v8268_v2, %v4321_v32  ;;  %v4388_v45 = vadd.s32 %v4387_v34, %v4383_v51  ;;  %v4439_v28 = vand.u32 8388607, %v4432_v44  ;;  %vm4443_vm8 = vcmp.gt.s32.totalorder %v4442_v53, 0 }
 0x462   : > { %v4326_v43 = vsel %vm4319_vm2, %v4322_v0, %v4325_v38  ;;  %v4195_v57 = vor.u32 %v4194_v35, %v4193_v7  ;;  %v4198_v24 = vshll.u32 %v4197_v54, 23  ;;  %v4444_v18 = vsel %vm4443_vm8, %v4442_v53, 0 }
 0x463   : > { %v4327_v21 = vsel %vm4316_vm12, nan, %v4326_v43  ;;  %v4389_v49 = vadd.s32 536870912, %v4388_v45  ;;  %v4446_v61 = vand.u32 31, %v4444_v18  ;;  %v11745_v5 = vadd.f32 %v8578_v40, %v11292_v46 }
 0x464   : > { %v7401_v15 = vsel %vm7365_vm5, %v10933_v48, %v4327_v21  ;;  %v4199_v59 = vor.u32 4788187, %v4198_v24  ;;  %v4202_v9 = vcvt.s32.f32 %v4195_v57  ;;  %v11753_v63 = vand.u32 3, %v4213_v33 }
 0x465   : > { %7466 = vst [vmem:[%s8911_s28 + $0x110] sm:$0xff] %v7401_v15  ;;  %v11751_v47 = vshrl.u32 %v4389_v49, 30  ;;  %v4447_v2 = vsub.s32 32, %v4446_v61  ;;  %v4440_v62 = vor.u32 8388608, %v4439_v28  ;;  %v4449_v8 = vshll.u32 %v8400_v19, %v4446_v61 }
 0x466   : > { %v4200_v17 = vand.u32 2147483647, %v4199_v59  ;;  %v4643_v60 = vand.u32 2139095040, %v11745_v5  ;;  %v4452_v33 = vshll.u32 %v8401_v23, %v4446_v61  ;;  %v4455_v38 = vshll.u32 %v14055_v10, %v4446_v61 }
 0x467   : > { %v4391_v3 = vshll.u32 %v11751_v47, 30  ;;  %v4450_v13 = vshrl.u32 %v8401_v23, %v4447_v2  ;;  %v4453_v48 = vshrl.u32 %v14055_v10, %v4447_v2  ;;  %v4456_v32 = vshrl.u32 %v8403_v27, %v4447_v2 }
 0x468   : > { %v4203_v51 = vmul.f32 %v4202_v9, %v4200_v17  ;;  %v4459_v7 = vshrl.u32 %v8404_v29, %v4447_v2  ;;  %v4462_v35 = vshrl.u32 %v8405_v52, %v4447_v2  ;;  %v4445_v34 = vshrl.u32 %v4444_v18, 5 }
 0x469   : > { %v11762_v53 = vsub.s32 %v4388_v45, %v4391_v3  ;;  %v4458_v0 = vshll.u32 %v8403_v27, %v4446_v61  ;;  %v4461_v28 = vshll.u32 %v8404_v29, %v4446_v61  ;;  %v4451_v57 = vor.u32 %v4450_v13, %v4449_v8 }
 0x46a   : > { %v4204_v54 = vxor.u32 2147483648, %v4203_v51  ;;  %v4454_v24 = vor.u32 %v4453_v48, %v4452_v33  ;;  %v4457_v21 = vor.u32 %v4456_v32, %v4455_v38  ;;  %v4384_v49 = vadd.s32 %v11708_v6, %v11720_v31 }
 0x46b   : > { %v4394_v43 = vsub.s32 0, %v11762_v53  ;;  %v4460_v15 = vor.u32 %v4459_v7, %v4458_v0  ;;  %v4480_v59 = vshll.u32 %v4440_v62, 8  ;;  %v4463_v61 = vor.u32 %v4462_v35, %v4461_v28 }
 0x46c   : > { %v4205_v45 = vsel %vm4122_vm10, %v4204_v54, %v4203_v51  ;;  %v4644_v9 = vshrl.u32 %v4643_v60, 23  ;;  %v4448_v3 = vshrl.u32 %v8400_v19, %v4447_v2  ;;  %vm4464_vm1 = vcmp.lt.s32.totalorder %v4445_v34, 1  ;;  %v11780_v2 = vpop.f32.mrb[21].mxu1 }
 0x46d   : > { %v4208_v18 = vsel %vm11700_vm15, %v11421_v25, %v4205_v45  ;;  %v7737_v17 = vmin.u32 %v4394_v43, %v11762_v53  ;;  %vm4467_vm4 = vcmp.lt.s32.totalorder %v4445_v34, 4  ;;  %v4472_v51 = vsel %vm4464_vm1, %v4451_v57, %v4454_v24 }
 0x46e   : > { %8271 = vcosq.f32 %v4208_v18  ;;  %v4469_v13 = vsel %vm4467_vm4, %v4457_v21, 2102212464  ;;  %vm4465_vm10 = vcmp.lt.s32.totalorder %v4445_v34, 2  ;;  %vm4466_vm2 = vcmp.lt.s32.totalorder %v4445_v34, 3 }
 0x46f   : > { %8273 = vsinq.f32 %v4208_v18  ;;  %v4396_v8 = vclz %v7737_v17  ;;  %v4473_v6 = vsel %vm4467_vm4, %v4460_v15, 920167782  ;;  %v4476_v31 = vsel %vm4464_vm1, %v4454_v24, %v4457_v21 }
 0x470   : > { %v4468_v14 = vsel %vm4464_vm1, %v4448_v3, %v4451_v57  ;;  %v4474_v48 = vsel %vm4466_vm2, %v4457_v21, %v4473_v6  ;;  %v4477_v32 = vsel %vm4467_vm4, %v4463_v61, 1326507024  ;;  %v4470_v7 = vsel %vm4466_vm2, %v4454_v24, %v4469_v13 }
 0x471   : > { %v7738_v62 = vadd.s32 4294967294, %v4396_v8  ;;  %v4475_v60 = vsel %vm4465_vm10, %v4472_v51, %v4474_v48  ;;  %v4478_v33 = vsel %vm4466_vm2, %v4460_v15, %v4477_v32  ;;  %v7748_v38 = vadd.s32 4294967169, %v4644_v9 }
 0x472   : > { %v4479_v35 = vsel %vm4465_vm10, %v4476_v31, %v4478_v33  ;;  %v11783_v54 = vmul.u32.u64.low %v4480_v59, %v4475_v60  ;;  %v11784_v0 = vmul.u32.u64.high %v4480_v59, %v4475_v60, %v11783_v54  ;;  %v4414_v43 = vsub.s32 4, %v11751_v47 }
 0x473   : > { %vm7739_vm15 = vcmp.lt.s32.totalorder %v7738_v62, 0  ;;  %v11788_v57 = vmul.u32.u64.low %v4480_v59, %v4479_v35  ;;  %v11789_v21 = vmul.u32.u64.high %v4480_v59, %v4479_v35, %v11788_v57  ;;  %v4471_v15 = vsel %vm4465_vm10, %v4468_v14, %v4470_v7 }
 0x474   : > { %v4399_v28 = vsel %vm7739_vm15, 0, %v7738_v62  ;;  %v4650_v18 = vadd.s32 1, %v7748_v38  ;;  %vm4216_vm12 = vcmp.eq.s32.totalorder %v11753_v63, 0  ;;  %vm11795_vm0 = vcmp.le.f32.partialorder %v4328_v36, 0.7853982 }
 0x475   : > { %v4400_v24 = vsub.s32 32, %v4399_v28  ;;  %v4404_v45 = vsub.s32 4294967266, %v4399_v28  ;;  %vm4330_vm7 = vcmp.lt.s32.totalorder %v11589_v22, 0  ;;  %v4401_v61 = vshll.u32 %v11762_v53, %v4399_v28 }
 0x476   : > { %v4490_v8 = vadd.s32 1, %v11784_v0  ;;  %vm4651_vm11 = vcmp.gt.s32.totalorder %v4650_v18, 0  ;;  %v4415_v13 = vsel %vm4330_vm7, %v4414_v43, %v11751_v47  ;;  %v4487_v51 = vmul.u32 %v4480_v59, %v4471_v15 }
 0x477   : > { %v4402_v9 = vshrl.u32 %v4384_v49, %v4400_v24  ;;  %v4405_v3 = vadd.s32 127, %v4404_v45  ;;  %vm4489_vm13 = vc.u32 %v11789_v21, %v11783_v54  ;;  %v4652_v36 = vsel %vm4651_vm11, %v4650_v18, 0 }
 0x478   : > { %v8272_v34 = vpop.eup %8271  ;;  %v4491_v53 = vsel %vm4489_vm13, %v4490_v8, %v11784_v0  ;;  %vm4219_vm8 = vcmp.eq.s32.totalorder %v11753_v63, 2  ;;  %v4654_v32 = vand.u32 31, %v4652_v36  ;;  %v4417_v47 = vsel %vm11795_vm0, 0, %v4415_v13 }
 0x479   : > { %v8274_v6 = vpop.eup %8273  ;;  %v4220_v31 = vxor.u32 2147483648, %v8272_v34  ;;  %v4403_v62 = vor.u32 %v4402_v9, %v4401_v61  ;;  %v4406_v14 = vshll.u32 %v4405_v3, 23  ;;  %v4492_v48 = vadd.s32 %v4491_v53, %v4487_v51 }
 0x47a   : > { %v4217_v49 = vxor.u32 2147483648, %v8274_v6  ;;  %v4640_v59 = vand.u32 2147483647, %v11745_v5  ;;  %vm4215_vm1 = vcmp.lt.s32.totalorder %v11753_v63, 2  ;;  %v4655_v35 = vsub.s32 32, %v4654_v32 }
 0x47b   : > { %v4221_v7 = vsel %vm4219_vm8, %v4220_v31, %v8274_v6  ;;  %v4407_v60 = vor.u32 4788187, %v4406_v14  ;;  %v4493_v38 = vadd.s32 536870912, %v4492_v48  ;;  %vm4212_vm4 = vweird.f32 %v11421_v25 }
 0x47c   : > { %v4218_v33 = vsel %vm4216_vm12, %v8272_v34, %v4217_v49  ;;  %v4410_v43 = vcvt.s32.f32 %v4403_v62  ;;  %v4421_v24 = vadd.s32 3, %v4417_v47  ;;  %v4658_v15 = vshrl.u32 %v8401_v23, %v4655_v35 }
 0x47d   : > { %v4222_v0 = vsel %vm4215_vm1, %v4218_v33, %v4221_v7  ;;  %v4408_v28 = vand.u32 2147483647, %v4407_v60  ;;  %v4494_v45 = vshrl.u32 %v4493_v38, 30  ;;  %v4647_v63 = vand.u32 8388607, %v4640_v59 }
 0x47e   : > { %v4223_v57 = vsel %vm4212_vm4, nan, %v4222_v0  ;;  %v4661_v9 = vshrl.u32 %v14055_v10, %v4655_v35  ;;  %v4653_v3 = vshrl.u32 %v4652_v36, 5  ;;  %v4657_v8 = vshll.u32 %v8400_v19, %v4654_v32 }
 0x47f   : > { %v7400_v18 = vsel %vm7364_vm3, %v11026_v11, %v4223_v57  ;;  %v4411_v61 = vmul.f32 %v4410_v43, %v4408_v28  ;;  %v4495_v25 = vshll.u32 %v4494_v45, 30  ;;  %v4664_v34 = vshrl.u32 %v8403_v27, %v4655_v35 }
 0x480   : > { %7465 = vst [vmem:[%s8911_s28 + $0x108] sm:$0xff] %v7400_v18  ;;  %v4660_v51 = vshll.u32 %v8401_v23, %v4654_v32  ;;  %v4666_v6 = vshll.u32 %v8403_v27, %v4654_v32  ;;  %v4667_v11 = vshrl.u32 %v8404_v29, %v4655_v35  ;;  %v4659_v62 = vor.u32 %v4658_v15, %v4657_v8 }
 0x481   : > { %v4412_v13 = vxor.u32 2147483648, %v4411_v61  ;;  %v11829_v31 = vsub.s32 %v4492_v48, %v4495_v25  ;;  %v4663_v14 = vshll.u32 %v14055_v10, %v4654_v32  ;;  %v4670_v53 = vshrl.u32 %v8405_v52, %v4655_v35 }
 0x482   : > { %vm4434_vm10 = vcmp.lt.s32.totalorder %v11687_v37, 0  ;;  %v4662_v49 = vor.u32 %v4661_v9, %v4660_v51  ;;  %v4668_v7 = vor.u32 %v4667_v11, %v4666_v6  ;;  %v4669_v60 = vshll.u32 %v8404_v29, %v4654_v32 }
 0x483   : > { %v4413_v36 = vsel %vm4330_vm7, %v4412_v13, %v4411_v61  ;;  %v11840_v48 = vand.u32 3, %v4421_v24  ;;  %v4498_v33 = vsub.s32 0, %v11829_v31  ;;  %v4665_v38 = vor.u32 %v4664_v34, %v4663_v14 }
 0x484   : > { %v4416_v47 = vsel %vm11795_vm0, %v11589_v22, %v4413_v36  ;;  %v4648_v0 = vor.u32 8388608, %v4647_v63  ;;  %v4671_v28 = vor.u32 %v4670_v53, %v4669_v60  ;;  %v11845_v43 = vadd.f32 %v8582_v41, %v11382_v20 }
 0x485   : > { %8275 = vcosq.f32 %v4416_v47  ;;  %vm11849_vm2 = vcmp.le.f32.partialorder %v4432_v44, 0.7853982  ;;  %v7741_v17 = vmin.u32 %v4498_v33, %v11829_v31  ;;  %vm4672_vm15 = vcmp.lt.s32.totalorder %v4653_v3, 1 }
 0x486   : > { %8277 = vsinq.f32 %v4416_v47  ;;  %vm4675_vm12 = vcmp.lt.s32.totalorder %v4653_v3, 4  ;;  %v4518_v57 = vsub.s32 4, %v4494_v45  ;;  %v4656_v24 = vshrl.u32 %v8400_v19, %v4655_v35 }
 0x487   : > { %v4680_v15 = vsel %vm4672_vm15, %v4659_v62, %v4662_v49  ;;  %v4681_v18 = vsel %vm4675_vm12, %v4668_v7, 920167782  ;;  %v4500_v61 = vclz %v7741_v17  ;;  %vm4674_vm0 = vcmp.lt.s32.totalorder %v4653_v3, 3 }
 0x488   : > { %v4677_v63 = vsel %vm4675_vm12, %v4665_v38, 2102212464  ;;  %v4684_v9 = vsel %vm4672_vm15, %v4662_v49, %v4665_v38  ;;  %vm4673_vm7 = vcmp.lt.s32.totalorder %v4653_v3, 2  ;;  %v4682_v25 = vsel %vm4674_vm0, %v4665_v38, %v4681_v18 }
 0x489   : > { %v4685_v8 = vsel %vm4675_vm12, %v4671_v28, 1326507024  ;;  %v4688_v44 = vshll.u32 %v4648_v0, 8  ;;  %v7742_v34 = vadd.s32 4294967294, %v4500_v61  ;;  %v4676_v13 = vsel %vm4672_vm15, %v4656_v24, %v4659_v62 }
 0x48a   : > { %v4683_v51 = vsel %vm4673_vm7, %v4680_v15, %v4682_v25  ;;  %v4686_v6 = vsel %vm4674_vm0, %v4668_v7, %v4685_v8  ;;  %vm4423_vm11 = vcmp.lt.s32.totalorder %v11840_v48, 2  ;;  %v4678_v11 = vsel %vm4674_vm0, %v4662_v49, %v4677_v63 }
 0x48b   : > { %v4687_v35 = vsel %vm4673_vm7, %v4684_v9, %v4686_v6  ;;  %v11858_v14 = vmul.u32.u64.low %v4688_v44, %v4683_v51  ;;  %v11859_v53 = vmul.u32.u64.high %v4688_v44, %v4683_v51, %v11858_v14  ;;  %vm7743_vm13 = vcmp.lt.s32.totalorder %v7742_v34, 0 }
 0x48c   : > { %v4519_v36 = vsel %vm4434_vm10, %v4518_v57, %v4494_v45  ;;  %v11864_v60 = vmul.u32.u64.low %v4688_v44, %v4687_v35  ;;  %v11865_v47 = vmul.u32.u64.high %v4688_v44, %v4687_v35, %v11864_v60  ;;  %vm4424_vm8 = vcmp.eq.s32.totalorder %v11840_v48, 0 }
 0x48d   : > { %vm4427_vm1 = vcmp.eq.s32.totalorder %v11840_v48, 2  ;;  %v4503_v62 = vsel %vm7743_vm13, 0, %v7742_v34  ;;  %v4539_v49 = vand.u32 2139095040, %v11845_v43  ;;  %v4488_v7 = vadd.s32 %v11783_v54, %v11789_v21 }
 0x48e   : > { %v4504_v33 = vsub.s32 32, %v4503_v62  ;;  %v4508_v38 = vsub.s32 4294967266, %v4503_v62  ;;  %v4679_v0 = vsel %vm4673_vm7, %v4676_v13, %v4678_v11  ;;  %v4521_v45 = vsel %vm11849_vm2, 0, %v4519_v36  ;;  %v11889_v11 = vpop.f32.mrb[22].mxu0 }
 0x48f   : > { %v8276_v28 = vpop.eup %8275  ;;  %v4698_v17 = vadd.s32 1, %v11859_v53  ;;  %v4536_v57 = vand.u32 2147483647, %v11845_v43  ;;  %v4540_v24 = vshrl.u32 %v4539_v49, 23  ;;  %v4505_v61 = vshll.u32 %v11829_v31, %v4503_v62 }
 0x490   : > { %v8278_v15 = vpop.eup %8277  ;;  %v4428_v18 = vxor.u32 2147483648, %v8276_v28  ;;  %v4506_v63 = vshrl.u32 %v4488_v7, %v4504_v33  ;;  %v4509_v9 = vadd.s32 127, %v4508_v38  ;;  %v4695_v21 = vmul.u32 %v4688_v44, %v4679_v0 }
 0x491   : > { %v4425_v54 = vxor.u32 2147483648, %v8278_v15  ;;  %vm4697_vm4 = vc.u32 %v11865_v47, %v11858_v14  ;;  %v7744_v3 = vadd.s32 4294967169, %v4540_v24  ;;  %v11887_v44 = vadd.f32 %v8624_v4, %v11499_v50 }
 0x492   : > { %v4429_v25 = vsel %vm4427_vm1, %v4428_v18, %v8278_v15  ;;  %v4507_v8 = vor.u32 %v4506_v63, %v4505_v61  ;;  %v4510_v34 = vshll.u32 %v4509_v9, 23  ;;  %v4699_v13 = vsel %vm4697_vm4, %v4698_v17, %v11859_v53 }
 0x493   : > { %v4426_v51 = vsel %vm4424_vm8, %v8276_v28, %v4425_v54  ;;  %v4700_v6 = vadd.s32 %v4699_v13, %v4695_v21  ;;  %v4546_v31 = vadd.s32 1, %v7744_v3  ;;  %vm4420_vm15 = vweird.f32 %v11589_v22 }
 0x494   : > { %v4430_v35 = vsel %vm4423_vm11, %v4426_v51, %v4429_v25  ;;  %v4511_v36 = vor.u32 4788187, %v4510_v34  ;;  %v4525_v60 = vadd.s32 3, %v4521_v45  ;;  %v4543_v49 = vand.u32 8388607, %v4536_v57 }
 0x495   : > { %v4431_v53 = vsel %vm4420_vm15, nan, %v4430_v35  ;;  %v4701_v62 = vadd.s32 536870912, %v4700_v6  ;;  %vm4547_vm12 = vcmp.gt.s32.totalorder %v4546_v31, 0  ;;  %v4514_v38 = vcvt.s32.f32 %v4507_v8 }
 0x496   : > { %v7402_v7 = vsel %vm7366_vm6, %v11118_v26, %v4431_v53  ;;  %v4512_v33 = vand.u32 2147483647, %v4511_v36  ;;  %v4548_v0 = vsel %vm4547_vm12, %v4546_v31, 0  ;;  %v4747_v28 = vand.u32 2139095040, %v11887_v44 }
 0x497   : > { %7467 = vst.msk [vmem:[%s8911_s28 + $0x118] sm:$0xff] %vm7434_vm9, %v7402_v7  ;;  %v11901_v22 = vshrl.u32 %v4701_v62, 30  ;;  %v4550_v48 = vand.u32 31, %v4548_v0  ;;  %v11905_v18 = vand.u32 3, %v4525_v60  ;;  %v4544_v61 = vor.u32 8388608, %v4543_v49 }
 0x498   : > { %v4515_v45 = vmul.f32 %v4514_v38, %v4512_v33  ;;  %v4744_v26 = vand.u32 2147483647, %v11887_v44  ;;  %v4549_v9 = vshrl.u32 %v4548_v0, 5  ;;  %v4748_v21 = vshrl.u32 %v4747_v28, 23 }
 0x499   : > { %v4703_v17 = vshll.u32 %v11901_v22, 30  ;;  %v4551_v24 = vsub.s32 32, %v4550_v48  ;;  %v4553_v25 = vshll.u32 %v8400_v19, %v4550_v48  ;;  %v4559_v31 = vshll.u32 %v14055_v10, %v4550_v48 }
 0x49a   : > { %v4516_v15 = vxor.u32 2147483648, %v4515_v45  ;;  %v4562_v36 = vshll.u32 %v8403_v27, %v4550_v48  ;;  %v4565_v32 = vshll.u32 %v8404_v29, %v4550_v48  ;;  %v11927_v38 = vshll.u32 %v4544_v61, 8 }
 0x49b   : > { %v11908_v63 = vsub.s32 %v4700_v6, %v4703_v17  ;;  %v4554_v54 = vshrl.u32 %v8401_v23, %v4551_v24  ;;  %v4557_v8 = vshrl.u32 %v14055_v10, %v4551_v24  ;;  %v4560_v34 = vshrl.u32 %v8403_v27, %v4551_v24 }
 0x49c   : > { %v4517_v3 = vsel %vm4434_vm10, %v4516_v15, %v4515_v45  ;;  %v4556_v6 = vshll.u32 %v8401_v23, %v4550_v48  ;;  %v4563_v60 = vshrl.u32 %v8404_v29, %v4551_v24  ;;  %v4566_v33 = vshrl.u32 %v8405_v52, %v4551_v24 }
 0x49d   : > { %v4520_v13 = vsel %vm11849_vm2, %v11687_v37, %v4517_v3  ;;  %v4706_v51 = vsub.s32 0, %v11908_v63  ;;  %v4555_v35 = vor.u32 %v4554_v54, %v4553_v25  ;;  %v4561_v49 = vor.u32 %v4560_v34, %v4559_v31 }
 0x49e   : > { %8279 = vcosq.f32 %v4520_v13  ;;  %v4558_v62 = vor.u32 %v4557_v8, %v4556_v6  ;;  %v4564_v7 = vor.u32 %v4563_v60, %v4562_v36  ;;  %v4552_v28 = vshrl.u32 %v8400_v19, %v4551_v24 }
 0x49f   : > { %8281 = vsinq.f32 %v4520_v13  ;;  %v7749_v53 = vmin.u32 %v4706_v51, %v11908_v63  ;;  %vm4568_vm10 = vcmp.lt.s32.totalorder %v4549_v9, 1  ;;  %v7752_v45 = vadd.s32 4294967169, %v4748_v21  ;;  %v11934_v21 = vpop.f32.mrb[22].mxu1 }
 0x4a0   : > { %vm4531_vm2 = vcmp.eq.s32.totalorder %v11905_v18, 2  ;;  %v4567_v17 = vor.u32 %v4566_v33, %v4565_v32  ;;  %vm4569_vm0 = vcmp.lt.s32.totalorder %v4549_v9, 2  ;;  %vm4570_vm7 = vcmp.lt.s32.totalorder %v4549_v9, 3 }
 0x4a1   : > { %v4708_v0 = vclz %v7749_v53  ;;  %vm4571_vm11 = vcmp.lt.s32.totalorder %v4549_v9, 4  ;;  %vm4528_vm13 = vcmp.eq.s32.totalorder %v11905_v18, 0  ;;  %v4576_v48 = vsel %vm4568_vm10, %v4555_v35, %v4558_v62 }
 0x4a2   : > { %v4573_v54 = vsel %vm4571_vm11, %v4561_v49, 2102212464  ;;  %v4577_v3 = vsel %vm4571_vm11, %v4564_v7, 920167782  ;;  %vm4642_vm8 = vcmp.lt.s32.totalorder %v11745_v5, 0  ;;  %v4572_v61 = vsel %vm4568_vm10, %v4552_v28, %v4555_v35 }
 0x4a3   : > { %v7750_v15 = vadd.s32 4294967294, %v4708_v0  ;;  %v4578_v25 = vsel %vm4570_vm7, %v4561_v49, %v4577_v3  ;;  %v4580_v24 = vsel %vm4568_vm10, %v4558_v62, %v4561_v49  ;;  %v4581_v8 = vsel %vm4571_vm11, %v4567_v17, 1326507024 }
 0x4a4   : > { %vm4524_vm1 = vweird.f32 %v11687_v37  ;;  %v4574_v34 = vsel %vm4570_vm7, %v4558_v62, %v4573_v54  ;;  %v4579_v13 = vsel %vm4569_vm0, %v4576_v48, %v4578_v25  ;;  %v4582_v51 = vsel %vm4570_vm7, %v4564_v7, %v4581_v8 }
 0x4a5   : > { %vm7751_vm4 = vcmp.lt.s32.totalorder %v7750_v15, 0  ;;  %v4583_v31 = vsel %vm4569_vm0, %v4580_v24, %v4582_v51  ;;  %v11942_v35 = vmul.u32.u64.low %v11927_v38, %v4579_v13  ;;  %v11943_v36 = vmul.u32.u64.high %v11927_v38, %v4579_v13, %v11942_v35 }
 0x4a6   : > { %v4711_v6 = vsel %vm7751_vm4, 0, %v7750_v15  ;;  %v4696_v60 = vadd.s32 %v11858_v14, %v11865_v47  ;;  %v4726_v32 = vsub.s32 4, %v11901_v22  ;;  %v4575_v33 = vsel %vm4569_vm0, %v4572_v61, %v4574_v34 }
 0x4a7   : > { %v4712_v53 = vsub.s32 32, %v4711_v6  ;;  %v4716_v49 = vsub.s32 4294967266, %v4711_v6  ;;  %v11951_v7 = vmul.u32.u64.low %v11927_v38, %v4583_v31  ;;  %v11952_v0 = vmul.u32.u64.high %v11927_v38, %v4583_v31, %v11951_v7 }
 0x4a8   : > { %v8280_v62 = vpop.eup %8279  ;;  %v4754_v28 = vadd.s32 1, %v7752_v45  ;;  %v4713_v54 = vshll.u32 %v11908_v63, %v4711_v6  ;;  %v4594_v14 = vadd.s32 1, %v11943_v36  ;;  %v11958_v47 = vand.u32 8388607, %v4744_v26 }
 0x4a9   : > { %v8282_v17 = vpop.eup %8281  ;;  %v4532_v15 = vxor.u32 2147483648, %v8280_v62  ;;  %v4714_v48 = vshrl.u32 %v4696_v60, %v4712_v53  ;;  %v4717_v3 = vadd.s32 127, %v4716_v49  ;;  %vm4527_vm12 = vcmp.lt.s32.totalorder %v11905_v18, 2 }
 0x4aa   : > { %v4529_v25 = vxor.u32 2147483648, %v8282_v17  ;;  %vm4755_vm15 = vcmp.gt.s32.totalorder %v4754_v28, 0  ;;  %v4591_v8 = vmul.u32 %v11927_v38, %v4575_v33  ;;  %vm4593_vm10 = vc.u32 %v11952_v0, %v11942_v35 }
 0x4ab   : > { %v4533_v9 = vsel %vm4531_vm2, %v4532_v15, %v8282_v17  ;;  %v4715_v61 = vor.u32 %v4714_v48, %v4713_v54  ;;  %v4718_v24 = vshll.u32 %v4717_v3, 23  ;;  %v4756_v45 = vsel %vm4755_vm15, %v4754_v28, 0 }
 0x4ac   : > { %v4530_v63 = vsel %vm4528_vm13, %v8280_v62, %v4529_v25  ;;  %v4727_v51 = vsel %vm4642_vm8, %v4726_v32, %v11901_v22  ;;  %v4595_v6 = vsel %vm4593_vm10, %v4594_v14, %v11943_v36  ;;  %vm11976_vm2 = vcmp.le.f32.partialorder %v4640_v59, 0.7853982 }
 0x4ad   : > { %v4534_v34 = vsel %vm4527_vm12, %v4530_v63, %v4533_v9  ;;  %v4719_v13 = vor.u32 4788187, %v4718_v24  ;;  %v4596_v38 = vadd.s32 %v4595_v6, %v4591_v8  ;;  %v4758_v60 = vand.u32 31, %v4756_v45 }
 0x4ae   : > { %v4535_v31 = vsel %vm4524_vm1, nan, %v4534_v34  ;;  %v4722_v62 = vcvt.s32.f32 %v4715_v61  ;;  %v4752_v22 = vor.u32 8388608, %v11958_v47  ;;  %v4729_v37 = vsel %vm11976_vm2, 0, %v4727_v51 }
 0x4af   : > { %v7403_v53 = vsel %vm7363_vm14, %v11210_v16, %v4535_v31  ;;  %v4720_v49 = vand.u32 2147483647, %v4719_v13  ;;  %v4597_v36 = vadd.s32 536870912, %v4596_v38  ;;  %v4757_v32 = vshrl.u32 %v4756_v45, 5 }
 0x4b0   : > { %7468 = vst [vmem:[%s8911_s28 + $0x120] sm:$0xff] %v7403_v53  ;;  %v4759_v59 = vsub.s32 32, %v4758_v60  ;;  %v4761_v7 = vshll.u32 %v8400_v19, %v4758_v60  ;;  %v4764_v28 = vshll.u32 %v8401_v23, %v4758_v60  ;;  %v4767_v17 = vshll.u32 %v14055_v10, %v4758_v60 }
 0x4b1   : > { %v4723_v33 = vmul.f32 %v4722_v62, %v4720_v49  ;;  %v4598_v15 = vshrl.u32 %v4597_v36, 30  ;;  %v4770_v48 = vshll.u32 %v8403_v27, %v4758_v60  ;;  %v4773_v24 = vshll.u32 %v8404_v29, %v4758_v60 }
 0x4b2   : > { %v4762_v16 = vshrl.u32 %v8401_v23, %v4759_v59  ;;  %v4765_v54 = vshrl.u32 %v14055_v10, %v4759_v59  ;;  %v4768_v25 = vshrl.u32 %v8403_v27, %v4759_v59  ;;  %v4771_v14 = vshrl.u32 %v8404_v29, %v4759_v59 }
 0x4b3   : > { %v4724_v3 = vxor.u32 2147483648, %v4723_v33  ;;  %v4774_v47 = vshrl.u32 %v8405_v52, %v4759_v59  ;;  %v4599_v9 = vshll.u32 %v4598_v15, 30  ;;  %v11999_v45 = vadd.f32 %v8574_v39, %v11558_v58 }
 0x4b4   : > { %v4763_v61 = vor.u32 %v4762_v16, %v4761_v7  ;;  %v4766_v8 = vor.u32 %v4765_v54, %v4764_v28  ;;  %v4769_v34 = vor.u32 %v4768_v25, %v4767_v17  ;;  %v4772_v13 = vor.u32 %v4771_v14, %v4770_v48 }
 0x4b5   : > { %v4725_v63 = vsel %vm4642_vm8, %v4724_v3, %v4723_v33  ;;  %v4733_v6 = vadd.s32 3, %v4729_v37  ;;  %v12006_v31 = vsub.s32 %v4596_v38, %v4599_v9  ;;  %v4775_v53 = vor.u32 %v4774_v47, %v4773_v24 }
 0x4b6   : > { %v4728_v51 = vsel %vm11976_vm2, %v11745_v5, %v4725_v63  ;;  %vm4776_vm0 = vcmp.lt.s32.totalorder %v4757_v32, 1  ;;  %vm4777_vm7 = vcmp.lt.s32.totalorder %v4757_v32, 2  ;;  %vm4778_vm11 = vcmp.lt.s32.totalorder %v4757_v32, 3 }
 0x4b7   : > { %8283 = vcosq.f32 %v4728_v51  ;;  %vm12010_vm13 = vcmp.le.f32.partialorder %v4536_v57, 0.7853982  ;;  %v4602_v49 = vsub.s32 0, %v12006_v31  ;;  %v4760_v18 = vshrl.u32 %v8400_v19, %v4759_v59 }
 0x4b8   : > { %8285 = vsinq.f32 %v4728_v51  ;;  %vm4779_vm8 = vcmp.lt.s32.totalorder %v4757_v32, 4  ;;  %v4622_v62 = vsub.s32 4, %v4598_v15  ;;  %v4784_v37 = vsel %vm4776_vm0, %v4763_v61, %v4766_v8 }
 0x4b9   : > { %v4781_v38 = vsel %vm4779_vm8, %v4769_v34, 2102212464  ;;  %v4785_v36 = vsel %vm4779_vm8, %v4772_v13, 920167782  ;;  %v7745_v33 = vmin.u32 %v4602_v49, %v12006_v31  ;;  %v4788_v28 = vsel %vm4776_vm0, %v4766_v8, %v4769_v34 }
 0x4ba   : > { %v4786_v7 = vsel %vm4778_vm11, %v4769_v34, %v4785_v36  ;;  %v4789_v57 = vsel %vm4779_vm8, %v4775_v53, 1326507024  ;;  %v4734_v17 = vand.u32 3, %v4733_v6  ;;  %v4792_v48 = vshll.u32 %v4752_v22, 8 }
 0x4bb   : > { %v4787_v16 = vsel %vm4777_vm7, %v4784_v37, %v4786_v7  ;;  %v4790_v54 = vsel %vm4778_vm11, %v4772_v13, %v4789_v57  ;;  %vm4538_vm1 = vcmp.lt.s32.totalorder %v11845_v43, 0  ;;  %v4604_v59 = vclz %v7745_v33 }
 0x4bc   : > { %v4780_v3 = vsel %vm4776_vm0, %v4760_v18, %v4763_v61  ;;  %v4782_v25 = vsel %vm4778_vm11, %v4766_v8, %v4781_v38  ;;  %v4791_v14 = vsel %vm4777_vm7, %v4788_v28, %v4790_v54  ;;  %v4851_v24 = vand.u32 2139095040, %v11999_v45 }
 0x4bd   : > { %v12026_v47 = vmul.u32.u64.low %v4792_v48, %v4787_v16  ;;  %v12027_v9 = vmul.u32.u64.high %v4792_v48, %v4787_v16, %v12026_v47  ;;  %vm4732_vm4 = vweird.f32 %v11745_v5  ;;  %v7746_v63 = vadd.s32 4294967294, %v4604_v59  ;;  %v12049_v59 = vpop.f32.mrb[23].mxu0 }
 0x4be   : > { %v4623_v22 = vsel %vm4538_vm1, %v4622_v62, %v4598_v15  ;;  %v12034_v34 = vmul.u32.u64.low %v4792_v48, %v4791_v14  ;;  %v12035_v13 = vmul.u32.u64.high %v4792_v48, %v4791_v14, %v12034_v34  ;;  %vm4735_vm15 = vcmp.lt.s32.totalorder %v4734_v17, 2 }
 0x4bf   : > { %vm4736_vm12 = vcmp.eq.s32.totalorder %v4734_v17, 0  ;;  %v4783_v61 = vsel %vm4777_vm7, %v4780_v3, %v4782_v25  ;;  %v4852_v8 = vshrl.u32 %v4851_v24, 23  ;;  %vm4739_vm10 = vcmp.eq.s32.totalorder %v4734_v17, 2 }
 0x4c0   : > { %v4592_v51 = vadd.s32 %v11942_v35, %v11952_v0  ;;  %vm7747_vm2 = vcmp.lt.s32.totalorder %v7746_v63, 0  ;;  %v4848_v6 = vand.u32 2147483647, %v11999_v45  ;;  %v4625_v15 = vsel %vm12010_vm13, 0, %v4623_v22 }
 0x4c1   : > { %v8284_v53 = vpop.eup %8283  ;;  %v4607_v49 = vsel %vm7747_vm2, 0, %v7746_v63  ;;  %v4802_v18 = vadd.s32 1, %v12027_v9  ;;  %v7756_v62 = vadd.s32 4294967169, %v4852_v8  ;;  %v4799_v33 = vmul.u32 %v4792_v48, %v4783_v61 }
 0x4c2   : > { %v8286_v38 = vpop.eup %8285  ;;  %v4740_v37 = vxor.u32 2147483648, %v8284_v53  ;;  %v4608_v32 = vsub.s32 32, %v4607_v49  ;;  %v4612_v36 = vsub.s32 4294967266, %v4607_v49  ;;  %v4609_v28 = vshll.u32 %v12006_v31, %v4607_v49 }
 0x4c3   : > { %v4737_v7 = vxor.u32 2147483648, %v8286_v38  ;;  %vm4801_vm0 = vc.u32 %v12035_v13, %v12026_v47  ;;  %v4858_v35 = vadd.s32 1, %v7756_v62  ;;  %v4629_v25 = vadd.s32 3, %v4625_v15 }
 0x4c4   : > { %v4741_v0 = vsel %vm4739_vm10, %v4740_v37, %v8286_v38  ;;  %v4610_v57 = vshrl.u32 %v4592_v51, %v4608_v32  ;;  %v4613_v16 = vadd.s32 127, %v4612_v36  ;;  %v4803_v54 = vsel %vm4801_vm0, %v4802_v18, %v12027_v9 }
 0x4c5   : > { %v4738_v3 = vsel %vm4736_vm12, %v8284_v53, %v4737_v7  ;;  %v4804_v48 = vadd.s32 %v4803_v54, %v4799_v33  ;;  %vm4859_vm7 = vcmp.gt.s32.totalorder %v4858_v35, 0  ;;  %v4855_v9 = vand.u32 8388607, %v4848_v6 }
 0x4c6   : > { %v4742_v31 = vsel %vm4735_vm15, %v4738_v3, %v4741_v0  ;;  %v4611_v14 = vor.u32 %v4610_v57, %v4609_v28  ;;  %v4614_v24 = vshll.u32 %v4613_v16, 23  ;;  %v4860_v63 = vsel %vm4859_vm7, %v4858_v35, 0 }
 0x4c7   : > { %v4743_v22 = vsel %vm4732_vm4, nan, %v4742_v31  ;;  %v4805_v34 = vadd.s32 536870912, %v4804_v48  ;;  %v4862_v61 = vand.u32 31, %v4860_v63  ;;  %v12061_v18 = vand.u32 3, %v4629_v25 }
 0x4c8   : > { %v7405_v8 = vsel %vm7365_vm5, %v11292_v46, %v4743_v22  ;;  %v4615_v51 = vor.u32 4788187, %v4614_v24  ;;  %v4618_v15 = vcvt.s32.f32 %v4611_v14  ;;  %v12065_v5 = vadd.f32 %v8578_v40, %v11634_v1 }
 0x4c9   : > { %7470 = vst [vmem:[%s8911_s28 + $0x130] sm:$0xff] %v7405_v8  ;;  %v4806_v53 = vshrl.u32 %v4805_v34, 30  ;;  %v4863_v17 = vsub.s32 32, %v4862_v61  ;;  %vm4746_vm11 = vcmp.lt.s32.totalorder %v11887_v44, 0  ;;  %v4856_v38 = vor.u32 8388608, %v4855_v9 }
 0x4ca   : > { %v4616_v49 = vand.u32 2147483647, %v4615_v51  ;;  %v4865_v37 = vshll.u32 %v8400_v19, %v4862_v61  ;;  %v4868_v35 = vshll.u32 %v8401_v23, %v4862_v61  ;;  %v4871_v0 = vshll.u32 %v14055_v10, %v4862_v61 }
 0x4cb   : > { %v4807_v62 = vshll.u32 %v4806_v53, 30  ;;  %v4866_v46 = vshrl.u32 %v8401_v23, %v4863_v17  ;;  %v4869_v36 = vshrl.u32 %v14055_v10, %v4863_v17  ;;  %v4872_v33 = vshrl.u32 %v8403_v27, %v4863_v17 }
 0x4cc   : > { %v4619_v32 = vmul.f32 %v4618_v15, %v4616_v49  ;;  %v4875_v7 = vshrl.u32 %v8404_v29, %v4863_v17  ;;  %v4878_v57 = vshrl.u32 %v8405_v52, %v4863_v17  ;;  %v4861_v54 = vshrl.u32 %v4860_v63, 5 }
 0x4cd   : > { %v12073_v28 = vsub.s32 %v4804_v48, %v4807_v62  ;;  %v4874_v3 = vshll.u32 %v8403_v27, %v4862_v61  ;;  %v4877_v25 = vshll.u32 %v8404_v29, %v4862_v61  ;;  %v4867_v14 = vor.u32 %v4866_v46, %v4865_v37 }
 0x4ce   : > { %v4620_v16 = vxor.u32 2147483648, %v4619_v32  ;;  %v4870_v24 = vor.u32 %v4869_v36, %v4868_v35  ;;  %v4873_v22 = vor.u32 %v4872_v33, %v4871_v0  ;;  %v4830_v34 = vsub.s32 4, %v4806_v53 }
 0x4cf   : > { %v4810_v31 = vsub.s32 0, %v12073_v28  ;;  %v4876_v9 = vor.u32 %v4875_v7, %v4874_v3  ;;  %v5056_v8 = vand.u32 2147483647, %v12065_v5  ;;  %vm12089_vm8 = vcmp.le.f32.partialorder %v4744_v26, 0.7853982 }
 0x4d0   : > { %v4621_v48 = vsel %vm4538_vm1, %v4620_v16, %v4619_v32  ;;  %v4879_v49 = vor.u32 %v4878_v57, %v4877_v25  ;;  %v4896_v15 = vshll.u32 %v4856_v38, 8  ;;  %v4864_v62 = vshrl.u32 %v8400_v19, %v4863_v17  ;;  %v12098_v16 = vpop.f32.mrb[23].mxu1 }
 0x4d1   : > { %v4624_v63 = vsel %vm12010_vm13, %v11845_v43, %v4621_v48  ;;  %v7753_v51 = vmin.u32 %v4810_v31, %v12073_v28  ;;  %vm4880_vm1 = vcmp.lt.s32.totalorder %v4861_v54, 1  ;;  %vm4883_vm4 = vcmp.lt.s32.totalorder %v4861_v54, 4 }
 0x4d2   : > { %8287 = vcosq.f32 %v4624_v63  ;;  %v4885_v46 = vsel %vm4883_vm4, %v4873_v22, 2102212464  ;;  %v4888_v60 = vsel %vm4880_vm1, %v4867_v14, %v4870_v24  ;;  %v4831_v32 = vsel %vm4746_vm11, %v4830_v34, %v4806_v53 }
 0x4d3   : > { %8289 = vsinq.f32 %v4624_v63  ;;  %v4812_v37 = vclz %v7753_v51  ;;  %vm4882_vm13 = vcmp.lt.s32.totalorder %v4861_v54, 3  ;;  %v4889_v26 = vsel %vm4883_vm4, %v4876_v9, 920167782 }
 0x4d4   : > { %v4892_v36 = vsel %vm4880_vm1, %v4870_v24, %v4873_v22  ;;  %vm4881_vm15 = vcmp.lt.s32.totalorder %v4861_v54, 2  ;;  %v4890_v7 = vsel %vm4882_vm13, %v4873_v22, %v4889_v26  ;;  %v4893_v35 = vsel %vm4883_vm4, %v4879_v49, 1326507024 }
 0x4d5   : > { %v7754_v33 = vadd.s32 4294967294, %v4812_v37  ;;  %v4884_v38 = vsel %vm4880_vm1, %v4864_v62, %v4867_v14  ;;  %v4886_v0 = vsel %vm4882_vm13, %v4870_v24, %v4885_v46  ;;  %v4891_v17 = vsel %vm4881_vm15, %v4888_v60, %v4890_v7 }
 0x4d6   : > { %v4894_v57 = vsel %vm4882_vm13, %v4876_v9, %v4893_v35  ;;  %v12101_v25 = vmul.u32.u64.low %v4896_v15, %v4891_v17  ;;  %v12102_v31 = vmul.u32.u64.high %v4896_v15, %v4891_v17, %v12101_v25  ;;  %v5059_v22 = vand.u32 2139095040, %v12065_v5 }
 0x4d7   : > { %vm7755_vm12 = vcmp.lt.s32.totalorder %v7754_v33, 0  ;;  %v4895_v3 = vsel %vm4881_vm15, %v4892_v36, %v4894_v57  ;;  %vm4628_vm10 = vweird.f32 %v11845_v43  ;;  %v4800_v14 = vadd.s32 %v12026_v47, %v12035_v13 }
 0x4d8   : > { %v4815_v53 = vsel %vm7755_vm12, 0, %v7754_v33  ;;  %v12105_v48 = vmul.u32.u64.low %v4896_v15, %v4895_v3  ;;  %v12106_v34 = vmul.u32.u64.high %v4896_v15, %v4895_v3, %v12105_v48  ;;  %v4887_v63 = vsel %vm4881_vm15, %v4884_v38, %v4886_v0 }
 0x4d9   : > { %v4816_v24 = vsub.s32 32, %v4815_v53  ;;  %v4820_v9 = vsub.s32 4294967266, %v4815_v53  ;;  %vm4631_vm2 = vcmp.lt.s32.totalorder %v12061_v18, 2  ;;  %vm4635_vm0 = vcmp.eq.s32.totalorder %v12061_v18, 2 }
 0x4da   : > { %v4833_v51 = vsel %vm12089_vm8, 0, %v4831_v32  ;;  %v5060_v49 = vshrl.u32 %v5059_v22, 23  ;;  %v4817_v62 = vshll.u32 %v12073_v28, %v4815_v53  ;;  %v4906_v60 = vadd.s32 1, %v12102_v31 }
 0x4db   : > { %v4818_v37 = vshrl.u32 %v4800_v14, %v4816_v24  ;;  %v4821_v46 = vadd.s32 127, %v4820_v9  ;;  %v4903_v47 = vmul.u32 %v4896_v15, %v4887_v63  ;;  %vm4905_vm7 = vc.u32 %v12106_v34, %v12101_v25 }
 0x4dc   : > { %v8288_v26 = vpop.eup %8287  ;;  %v7764_v13 = vadd.s32 4294967169, %v5060_v49  ;;  %v5063_v54 = vand.u32 8388607, %v5056_v8  ;;  %v4907_v35 = vsel %vm4905_vm7, %v4906_v60, %v12102_v31  ;;  %v12126_v17 = vadd.f32 %v8582_v41, %v11730_v55 }
 0x4dd   : > { %v8290_v36 = vpop.eup %8289  ;;  %v4636_v33 = vxor.u32 2147483648, %v8288_v26  ;;  %v4819_v7 = vor.u32 %v4818_v37, %v4817_v62  ;;  %v4822_v32 = vshll.u32 %v4821_v46, 23  ;;  %v4908_v38 = vadd.s32 %v4907_v35, %v4903_v47 }
 0x4de   : > { %v4633_v28 = vxor.u32 2147483648, %v8290_v36  ;;  %v5066_v0 = vadd.s32 1, %v7764_v13  ;;  %vm4632_vm1 = vcmp.eq.s32.totalorder %v12061_v18, 0  ;;  %v4837_v3 = vadd.s32 3, %v4833_v51 }
 0x4df   : > { %v4637_v15 = vsel %vm4635_vm0, %v4636_v33, %v8290_v36  ;;  %v4823_v57 = vor.u32 4788187, %v4822_v32  ;;  %v4909_v48 = vadd.s32 536870912, %v4908_v38  ;;  %v5064_v22 = vor.u32 8388608, %v5063_v54 }
 0x4e0   : > { %v4634_v53 = vsel %vm4632_vm1, %v8288_v26, %v4633_v28  ;;  %vm5067_vm4 = vcmp.gt.s32.totalorder %v5066_v0, 0  ;;  %v4826_v24 = vcvt.s32.f32 %v4819_v7  ;;  %v4955_v37 = vand.u32 2139095040, %v12126_v17 }
 0x4e1   : > { %v4638_v31 = vsel %vm4631_vm2, %v4634_v53, %v4637_v15  ;;  %v4824_v14 = vand.u32 2147483647, %v4823_v57  ;;  %v5068_v9 = vsel %vm5067_vm4, %v5066_v0, 0  ;;  %v12135_v49 = vshrl.u32 %v4909_v48, 30 }
 0x4e2   : > { %v4639_v63 = vsel %vm4628_vm10, nan, %v4638_v31  ;;  %v5070_v62 = vand.u32 31, %v5068_v9  ;;  %v12143_v47 = vand.u32 3, %v4837_v3  ;;  %v12145_v13 = vshll.u32 %v5064_v22, 8 }
 0x4e3   : > { %v7404_v51 = vsel %vm7364_vm3, %v11382_v20, %v4639_v63  ;;  %v4827_v46 = vmul.f32 %v4826_v24, %v4824_v14  ;;  %v4911_v18 = vshll.u32 %v12135_v49, 30  ;;  %v4952_v43 = vand.u32 2147483647, %v12126_v17 }
 0x4e4   : > { %7469 = vst [vmem:[%s8911_s28 + $0x128] sm:$0xff] %v7404_v51  ;;  %v5071_v60 = vsub.s32 32, %v5070_v62  ;;  %v5069_v36 = vshrl.u32 %v5068_v9, 5  ;;  %v4956_v7 = vshrl.u32 %v4955_v37, 23  ;;  %v5073_v32 = vshll.u32 %v8400_v19, %v5070_v62 }
 0x4e5   : > { %v4828_v26 = vxor.u32 2147483648, %v4827_v46  ;;  %v12148_v54 = vsub.s32 %v4908_v38, %v4911_v18  ;;  %v5076_v15 = vshll.u32 %v8401_v23, %v5070_v62  ;;  %v5079_v57 = vshll.u32 %v14055_v10, %v5070_v62 }
 0x4e6   : > { %v5074_v33 = vshrl.u32 %v8401_v23, %v5071_v60  ;;  %v5077_v35 = vshrl.u32 %v14055_v10, %v5071_v60  ;;  %v5080_v28 = vshrl.u32 %v8403_v27, %v5071_v60  ;;  %v5082_v53 = vshll.u32 %v8403_v27, %v5070_v62 }
 0x4e7   : > { %v4829_v20 = vsel %vm4746_vm11, %v4828_v26, %v4827_v46  ;;  %v4914_v38 = vsub.s32 0, %v12148_v54  ;;  %v5083_v48 = vshrl.u32 %v8404_v29, %v5071_v60  ;;  %v5085_v61 = vshll.u32 %v8404_v29, %v5070_v62 }
 0x4e8   : > { %v4832_v0 = vsel %vm12089_vm8, %v11887_v44, %v4829_v20  ;;  %v5075_v3 = vor.u32 %v5074_v33, %v5073_v32  ;;  %v5078_v31 = vor.u32 %v5077_v35, %v5076_v15  ;;  %v5081_v14 = vor.u32 %v5080_v28, %v5079_v57 }
 0x4e9   : > { %8291 = vcosq.f32 %v4832_v0  ;;  %v7757_v22 = vmin.u32 %v4914_v38, %v12148_v54  ;;  %v5084_v24 = vor.u32 %v5083_v48, %v5082_v53  ;;  %v5086_v9 = vshrl.u32 %v8405_v52, %v5071_v60 }
 0x4ea   : > { %8293 = vsinq.f32 %v4832_v0  ;;  %v7760_v63 = vadd.s32 4294967169, %v4956_v7  ;;  %vm4850_vm11 = vcmp.lt.s32.totalorder %v11999_v45, 0  ;;  %v4934_v51 = vsub.s32 4, %v12135_v49 }
 0x4eb   : > { %v4916_v37 = vclz %v7757_v22  ;;  %v5072_v46 = vshrl.u32 %v8400_v19, %v5071_v60  ;;  %vm5088_vm8 = vcmp.lt.s32.totalorder %v5069_v36, 1  ;;  %vm4843_vm13 = vcmp.eq.s32.totalorder %v12143_v47, 2 }
 0x4ec   : > { %v5087_v18 = vor.u32 %v5086_v9, %v5085_v61  ;;  %vm5089_vm15 = vcmp.lt.s32.totalorder %v5069_v36, 2  ;;  %vm5090_vm12 = vcmp.lt.s32.totalorder %v5069_v36, 3  ;;  %vm5091_vm10 = vcmp.lt.s32.totalorder %v5069_v36, 4 }
 0x4ed   : > { %vm4840_vm2 = vcmp.eq.s32.totalorder %v12143_v47, 0  ;;  %v7758_v62 = vadd.s32 4294967294, %v4916_v37  ;;  %v5093_v26 = vsel %vm5091_vm10, %v5081_v14, 2102212464  ;;  %v5096_v33 = vsel %vm5088_vm8, %v5075_v3, %v5078_v31 }
 0x4ee   : > { %v5097_v7 = vsel %vm5091_vm10, %v5084_v24, 920167782  ;;  %vm12174_vm0 = vcmp.le.f32.partialorder %v4848_v6, 0.7853982  ;;  %v5092_v60 = vsel %vm5088_vm8, %v5072_v46, %v5075_v3  ;;  %v5100_v35 = vsel %vm5088_vm8, %v5078_v31, %v5081_v14 }
 0x4ef   : > { %v5098_v32 = vsel %vm5090_vm12, %v5081_v14, %v5097_v7  ;;  %v5101_v28 = vsel %vm5091_vm10, %v5087_v18, 1326507024  ;;  %vm4836_vm7 = vweird.f32 %v11887_v44  ;;  %vm7759_vm1 = vcmp.lt.s32.totalorder %v7758_v62, 0 }
 0x4f0   : > { %v5094_v0 = vsel %vm5090_vm12, %v5078_v31, %v5093_v26  ;;  %v5099_v38 = vsel %vm5089_vm15, %v5096_v33, %v5098_v32  ;;  %v5102_v15 = vsel %vm5090_vm12, %v5084_v24, %v5101_v28  ;;  %v4919_v57 = vsel %vm7759_vm1, 0, %v7758_v62 }
 0x4f1   : > { %v5103_v6 = vsel %vm5089_vm15, %v5100_v35, %v5102_v15  ;;  %v12185_v53 = vmul.u32.u64.low %v12145_v13, %v5099_v38  ;;  %v12186_v48 = vmul.u32.u64.high %v12145_v13, %v5099_v38, %v12185_v53  ;;  %v4904_v3 = vadd.s32 %v12101_v25, %v12106_v34  ;;  %v12216_v15 = vpop.f32.mrb[24].mxu0 }
 0x4f2   : > { %v4920_v22 = vsub.s32 32, %v4919_v57  ;;  %v4924_v14 = vsub.s32 4294967266, %v4919_v57  ;;  %v12193_v31 = vand.u32 8388607, %v4952_v43  ;;  %v5095_v24 = vsel %vm5089_vm15, %v5092_v60, %v5094_v0 }
 0x4f3   : > { %v8292_v61 = vpop.eup %8291  ;;  %v12197_v9 = vmul.u32.u64.low %v12145_v13, %v5103_v6  ;;  %v12198_v37 = vmul.u32.u64.high %v12145_v13, %v5103_v6, %v12197_v9  ;;  %v4962_v46 = vadd.s32 1, %v7760_v63  ;;  %v4921_v26 = vshll.u32 %v12148_v54, %v4919_v57 }
 0x4f4   : > { %v8294_v18 = vpop.eup %8293  ;;  %v4844_v62 = vxor.u32 2147483648, %v8292_v61  ;;  %v4922_v33 = vshrl.u32 %v4904_v3, %v4920_v22  ;;  %v4925_v25 = vadd.s32 127, %v4924_v14  ;;  %v4935_v7 = vsel %vm4850_vm11, %v4934_v51, %v12135_v49 }
 0x4f5   : > { %v4841_v34 = vxor.u32 2147483648, %v8294_v18  ;;  %v5114_v32 = vadd.s32 1, %v12186_v48  ;;  %vm4963_vm4 = vcmp.gt.s32.totalorder %v4962_v46, 0  ;;  %vm4839_vm8 = vcmp.lt.s32.totalorder %v12143_v47, 2 }
 0x4f6   : > { %v4845_v36 = vsel %vm4843_vm13, %v4844_v62, %v8294_v18  ;;  %v4923_v60 = vor.u32 %v4922_v33, %v4921_v26  ;;  %v4926_v35 = vshll.u32 %v4925_v25, 23  ;;  %v4964_v63 = vsel %vm4963_vm4, %v4962_v46, 0 }
 0x4f7   : > { %v4842_v54 = vsel %vm4840_vm2, %v8292_v61, %v4841_v34  ;;  %v5111_v28 = vmul.u32 %v12145_v13, %v5095_v24  ;;  %vm5113_vm15 = vc.u32 %v12198_v37, %v12185_v53  ;;  %v4937_v0 = vsel %vm12174_vm0, 0, %v4935_v7 }
 0x4f8   : > { %v4846_v49 = vsel %vm4839_vm8, %v4842_v54, %v4845_v36  ;;  %v4927_v51 = vor.u32 4788187, %v4926_v35  ;;  %v5115_v38 = vsel %vm5113_vm15, %v5114_v32, %v12186_v48  ;;  %v4966_v6 = vand.u32 31, %v4964_v63 }
 0x4f9   : > { %v4847_v57 = vsel %vm4836_vm7, nan, %v4846_v49  ;;  %v5116_v47 = vadd.s32 %v5115_v38, %v5111_v28  ;;  %v12222_v13 = vadd.f32 %v8624_v4, %v11780_v2  ;;  %v4930_v14 = vcvt.s32.f32 %v4923_v60 }
 0x4fa   : > { %v7406_v3 = vsel %vm7366_vm6, %v11499_v50, %v4847_v57  ;;  %v4928_v22 = vand.u32 2147483647, %v4927_v51  ;;  %v4960_v61 = vor.u32 8388608, %v12193_v31  ;;  %v4941_v48 = vadd.s32 3, %v4937_v0 }
 0x4fb   : > { %7471 = vst.msk [vmem:[%s8911_s28 + $0x138] sm:$0xff] %vm7434_vm9, %v7406_v3  ;;  %v5117_v24 = vadd.s32 536870912, %v5116_v47  ;;  %v4965_v44 = vshrl.u32 %v4964_v63, 5  ;;  %v4967_v9 = vsub.s32 32, %v4966_v6  ;;  %v4969_v18 = vshll.u32 %v8400_v19, %v4966_v6 }
 0x4fc   : > { %v4931_v46 = vmul.f32 %v4930_v14, %v4928_v22  ;;  %v4972_v62 = vshll.u32 %v8401_v23, %v4966_v6  ;;  %v4975_v26 = vshll.u32 %v14055_v10, %v4966_v6  ;;  %v4978_v31 = vshll.u32 %v8403_v27, %v4966_v6 }
 0x4fd   : > { %v5118_v33 = vshrl.u32 %v5117_v24, 30  ;;  %v4970_v50 = vshrl.u32 %v8401_v23, %v4967_v9  ;;  %v4973_v25 = vshrl.u32 %v14055_v10, %v4967_v9  ;;  %vm5058_vm13 = vcmp.lt.s32.totalorder %v12065_v5, 0 }
 0x4fe   : > { %v4932_v34 = vxor.u32 2147483648, %v4931_v46  ;;  %v4976_v7 = vshrl.u32 %v8403_v27, %v4967_v9  ;;  %v4979_v32 = vshrl.u32 %v8404_v29, %v4967_v9  ;;  %v4982_v36 = vshrl.u32 %v8405_v52, %v4967_v9 }
 0x4ff   : > { %v5119_v60 = vshll.u32 %v5118_v33, 30  ;;  %v4971_v35 = vor.u32 %v4970_v50, %v4969_v18  ;;  %v4981_v63 = vshll.u32 %v8404_v29, %v4966_v6  ;;  %vm4984_vm12 = vcmp.lt.s32.totalorder %v4965_v44, 1 }
 0x500   : > { %v4933_v54 = vsel %vm4850_vm11, %v4932_v34, %v4931_v46  ;;  %v4974_v28 = vor.u32 %v4973_v25, %v4972_v62  ;;  %v4977_v49 = vor.u32 %v4976_v7, %v4975_v26  ;;  %v4980_v51 = vor.u32 %v4979_v32, %v4978_v31 }
 0x501   : > { %v4936_v0 = vsel %vm12174_vm0, %v11999_v45, %v4933_v54  ;;  %v12246_v38 = vsub.s32 %v5116_v47, %v5119_v60  ;;  %v4983_v57 = vor.u32 %v4982_v36, %v4981_v63  ;;  %vm4987_vm10 = vcmp.lt.s32.totalorder %v4965_v44, 4 }
 0x502   : > { %8295 = vcosq.f32 %v4936_v0  ;;  %v4968_v3 = vshrl.u32 %v8400_v19, %v4967_v9  ;;  %vm4985_vm2 = vcmp.lt.s32.totalorder %v4965_v44, 2  ;;  %v4989_v6 = vsel %vm4987_vm10, %v4977_v49, 2102212464 }
 0x503   : > { %8297 = vsinq.f32 %v4936_v0  ;;  %v5122_v22 = vsub.s32 0, %v12246_v38  ;;  %v5142_v14 = vsub.s32 4, %v5118_v33  ;;  %vm4986_vm11 = vcmp.lt.s32.totalorder %v4965_v44, 3 }
 0x504   : > { %v4988_v24 = vsel %vm4984_vm12, %v4968_v3, %v4971_v35  ;;  %v4990_v46 = vsel %vm4986_vm11, %v4974_v28, %v4989_v6  ;;  %v4992_v20 = vsel %vm4984_vm12, %v4971_v35, %v4974_v28  ;;  %v4993_v47 = vsel %vm4987_vm10, %v4980_v51, 920167782 }
 0x505   : > { %v7765_v18 = vmin.u32 %v5122_v22, %v12246_v38  ;;  %v4994_v62 = vsel %vm4986_vm11, %v4977_v49, %v4993_v47  ;;  %v4996_v9 = vsel %vm4984_vm12, %v4974_v28, %v4977_v49  ;;  %v4997_v26 = vsel %vm4987_vm10, %v4983_v57, 1326507024  ;;  %v12282_v57 = vpop.f32.mrb[24].mxu1 }
 0x506   : > { %v4942_v50 = vand.u32 3, %v4941_v48  ;;  %v4995_v25 = vsel %vm4985_vm2, %v4992_v20, %v4994_v62  ;;  %v4998_v31 = vsel %vm4986_vm11, %v4980_v51, %v4997_v26  ;;  %v5000_v34 = vshll.u32 %v4960_v61, 8 }
 0x507   : > { %v5124_v7 = vclz %v7765_v18  ;;  %v5143_v32 = vsel %vm5058_vm13, %v5142_v14, %v5118_v33  ;;  %v5160_v36 = vand.u32 2147483647, %v12222_v13  ;;  %v4991_v60 = vsel %vm4985_vm2, %v4988_v24, %v4990_v46 }
 0x508   : > { %v4999_v35 = vsel %vm4985_vm2, %v4996_v9, %v4998_v31  ;;  %v12263_v63 = vmul.u32.u64.low %v5000_v34, %v4995_v25  ;;  %v12264_v54 = vmul.u32.u64.high %v5000_v34, %v4995_v25, %v12263_v63  ;;  %v5163_v51 = vand.u32 2139095040, %v12222_v13 }
 0x509   : > { %v7766_v28 = vadd.s32 4294967294, %v5124_v7  ;;  %v12266_v49 = vmul.u32.u64.low %v5000_v34, %v4999_v35  ;;  %v12267_v48 = vmul.u32.u64.high %v5000_v34, %v4999_v35, %v12266_v49  ;;  %vm4944_vm0 = vcmp.eq.s32.totalorder %v4942_v50, 0 }
 0x50a   : > { %vm12272_vm7 = vcmp.le.f32.partialorder %v5056_v8, 0.7853982  ;;  %v12278_v44 = vadd.f32 %v8574_v39, %v11889_v11  ;;  %vm4947_vm1 = vcmp.eq.s32.totalorder %v4942_v50, 2  ;;  %v5112_v33 = vadd.s32 %v12185_v53, %v12198_v37 }
 0x50b   : > { %vm7767_vm4 = vcmp.lt.s32.totalorder %v7766_v28, 0  ;;  %v5164_v0 = vshrl.u32 %v5163_v51, 23  ;;  %v5145_v8 = vsel %vm12272_vm7, 0, %v5143_v32  ;;  %v5007_v22 = vmul.u32 %v5000_v34, %v4991_v60 }
 0x50c   : > { %v8296_v3 = vpop.eup %8295  ;;  %v5127_v6 = vsel %vm7767_vm4, 0, %v7766_v28  ;;  %v5010_v14 = vadd.s32 1, %v12264_v54  ;;  %v5167_v18 = vand.u32 8388607, %v5160_v36  ;;  %vm5009_vm8 = vc.u32 %v12267_v48, %v12263_v63 }
 0x50d   : > { %v8298_v24 = vpop.eup %8297  ;;  %v4948_v46 = vxor.u32 2147483648, %v8296_v3  ;;  %v5128_v20 = vsub.s32 32, %v5127_v6  ;;  %v5132_v47 = vsub.s32 4294967266, %v5127_v6  ;;  %v5129_v37 = vshll.u32 %v12246_v38, %v5127_v6 }
 0x50e   : > { %v4945_v53 = vxor.u32 2147483648, %v8298_v24  ;;  %v7768_v62 = vadd.s32 4294967169, %v5164_v0  ;;  %v5011_v31 = vsel %vm5009_vm8, %v5010_v14, %v12264_v54  ;;  %vm4943_vm15 = vcmp.lt.s32.totalorder %v4942_v50, 2 }
 0x50f   : > { %v4949_v9 = vsel %vm4947_vm1, %v4948_v46, %v8298_v24  ;;  %v5130_v26 = vshrl.u32 %v5112_v33, %v5128_v20  ;;  %v5133_v25 = vadd.s32 127, %v5132_v47  ;;  %v5012_v7 = vadd.s32 %v5011_v31, %v5007_v22 }
 0x510   : > { %v4946_v34 = vsel %vm4944_vm0, %v8296_v3, %v4945_v53  ;;  %v5170_v32 = vadd.s32 1, %v7768_v62  ;;  %vm4940_vm12 = vweird.f32 %v11999_v45  ;;  %v5149_v49 = vadd.s32 3, %v5145_v8 }
 0x511   : > { %v4950_v60 = vsel %vm4943_vm15, %v4946_v34, %v4949_v9  ;;  %v5131_v35 = vor.u32 %v5130_v26, %v5129_v37  ;;  %v5134_v38 = vshll.u32 %v5133_v25, 23  ;;  %v5013_v51 = vadd.s32 536870912, %v5012_v7 }
 0x512   : > { %v4951_v28 = vsel %vm4940_vm12, nan, %v4950_v60  ;;  %vm5171_vm10 = vcmp.gt.s32.totalorder %v5170_v32, 0  ;;  %v5168_v0 = vor.u32 8388608, %v5167_v18  ;;  %v5267_v22 = vand.u32 2139095040, %v12278_v44 }
 0x513   : > { %v7407_v33 = vsel %vm7363_vm14, %v11558_v58, %v4951_v28  ;;  %v5135_v54 = vor.u32 4788187, %v5134_v38  ;;  %v5172_v50 = vsel %vm5171_vm10, %v5170_v32, 0  ;;  %v5014_v3 = vshrl.u32 %v5013_v51, 30 }
 0x514   : > { %7472 = vst [vmem:[%s8911_s28 + $0x140] sm:$0xff] %v7407_v33  ;;  %v5174_v6 = vand.u32 31, %v5172_v50  ;;  %v5138_v14 = vcvt.s32.f32 %v5131_v35  ;;  %vm4954_vm2 = vcmp.lt.s32.totalorder %v12126_v17, 0  ;;  %v12301_v24 = vand.u32 3, %v5149_v49 }
 0x515   : > { %v5136_v45 = vand.u32 2147483647, %v5135_v54  ;;  %vm12305_vm11 = vcmp.le.f32.partialorder %v4952_v43, 0.7853982  ;;  %v5015_v58 = vshll.u32 %v5014_v3, 30  ;;  %v5008_v18 = vadd.s32 %v12263_v63, %v12267_v48 }
 0x516   : > { %v5175_v46 = vsub.s32 32, %v5174_v6  ;;  %v5264_v20 = vand.u32 2147483647, %v12278_v44  ;;  %v5038_v53 = vsub.s32 4, %v5014_v3  ;;  %v12311_v37 = vshll.u32 %v5168_v0, 8 }
 0x517   : > { %v5139_v47 = vmul.f32 %v5138_v14, %v5136_v45  ;;  %v12313_v62 = vsub.s32 %v5012_v7, %v5015_v58  ;;  %v12315_v9 = vshrl.u32 %v5172_v50, 5  ;;  %v5268_v43 = vshrl.u32 %v5267_v22, 23 }
 0x518   : > { %v5178_v26 = vshrl.u32 %v8401_v23, %v5175_v46  ;;  %v5177_v31 = vshll.u32 %v8400_v19, %v5174_v6  ;;  %v5181_v34 = vshrl.u32 %v14055_v10, %v5175_v46  ;;  %v5184_v32 = vshrl.u32 %v8403_v27, %v5175_v46 }
 0x519   : > { %v5140_v25 = vxor.u32 2147483648, %v5139_v47  ;;  %v5018_v60 = vsub.s32 0, %v12313_v62  ;;  %v5180_v63 = vshll.u32 %v8401_v23, %v5174_v6  ;;  %v5183_v48 = vshll.u32 %v14055_v10, %v5174_v6 }
 0x51a   : > { %v5187_v7 = vshrl.u32 %v8404_v29, %v5175_v46  ;;  %v5039_v38 = vsel %vm4954_vm2, %v5038_v53, %v5014_v3  ;;  %v5179_v28 = vor.u32 %v5178_v26, %v5177_v31  ;;  %v5186_v49 = vshll.u32 %v8403_v27, %v5174_v6 }
 0x51b   : > { %v5141_v35 = vsel %vm5058_vm13, %v5140_v25, %v5139_v47  ;;  %v7761_v33 = vmin.u32 %v5018_v60, %v12313_v62  ;;  %v5182_v54 = vor.u32 %v5181_v34, %v5180_v63  ;;  %v5185_v0 = vor.u32 %v5184_v32, %v5183_v48 }
 0x51c   : > { %v5144_v51 = vsel %vm12272_vm7, %v12065_v5, %v5141_v35  ;;  %v5188_v50 = vor.u32 %v5187_v7, %v5186_v49  ;;  %v5189_v22 = vshll.u32 %v8404_v29, %v5174_v6  ;;  %v5190_v45 = vshrl.u32 %v8405_v52, %v5175_v46 }
 0x51d   : > { %8299 = vcosq.f32 %v5144_v51  ;;  %v5020_v14 = vclz %v7761_v33  ;;  %v7772_v3 = vadd.s32 4294967169, %v5268_v43  ;;  %v12338_v58 = vand.u32 8388607, %v5264_v20  ;;  %v12366_v33 = vpop.f32.mrb[25].mxu0 }
 0x51e   : > { %8301 = vsinq.f32 %v5144_v51  ;;  %v5041_v61 = vsel %vm12305_vm11, 0, %v5039_v38  ;;  %v5176_v47 = vshrl.u32 %v8400_v19, %v5175_v46  ;;  %v5191_v53 = vor.u32 %v5190_v45, %v5189_v22 }
 0x51f   : > { %vm5192_vm13 = vcmp.lt.s32.totalorder %v12315_v9, 1  ;;  %v7762_v26 = vadd.s32 4294967294, %v5020_v14  ;;  %vm5194_vm0 = vcmp.lt.s32.totalorder %v12315_v9, 3  ;;  %vm5195_vm7 = vcmp.lt.s32.totalorder %v12315_v9, 4 }
 0x520   : > { %v5200_v6 = vsel %vm5192_vm13, %v5179_v28, %v5182_v54  ;;  %v5197_v43 = vsel %vm5195_vm7, %v5185_v0, 2102212464  ;;  %v5201_v25 = vsel %vm5195_vm7, %v5188_v50, 920167782  ;;  %v5204_v31 = vsel %vm5192_vm13, %v5182_v54, %v5185_v0 }
 0x521   : > { %v5205_v34 = vsel %vm5195_vm7, %v5191_v53, 1326507024  ;;  %vm5152_vm1 = vcmp.eq.s32.totalorder %v12301_v24, 0  ;;  %vm7763_vm4 = vcmp.lt.s32.totalorder %v7762_v26, 0  ;;  %vm5193_vm8 = vcmp.lt.s32.totalorder %v12315_v9, 2 }
 0x522   : > { %v5202_v46 = vsel %vm5194_vm0, %v5185_v0, %v5201_v25  ;;  %v5206_v32 = vsel %vm5194_vm0, %v5188_v50, %v5205_v34  ;;  %vm5151_vm15 = vcmp.lt.s32.totalorder %v12301_v24, 2  ;;  %v5023_v60 = vsel %vm7763_vm4, 0, %v7762_v26 }
 0x523   : > { %v5196_v63 = vsel %vm5192_vm13, %v5176_v47, %v5179_v28  ;;  %v5203_v48 = vsel %vm5193_vm8, %v5200_v6, %v5202_v46  ;;  %v5207_v7 = vsel %vm5193_vm8, %v5204_v31, %v5206_v32  ;;  %vm5148_vm12 = vweird.f32 %v12065_v5 }
 0x524   : > { %v5024_v35 = vsub.s32 32, %v5023_v60  ;;  %v5028_v38 = vsub.s32 4294967266, %v5023_v60  ;;  %v5198_v49 = vsel %vm5194_vm0, %v5182_v54, %v5197_v43  ;;  %v5274_v51 = vadd.s32 1, %v7772_v3 }
 0x525   : > { %v12369_v0 = vmul.u32.u64.low %v12311_v37, %v5207_v7  ;;  %v12370_v50 = vmul.u32.u64.high %v12311_v37, %v5207_v7, %v12369_v0  ;;  %v12373_v28 = vmul.u32.u64.low %v12311_v37, %v5203_v48  ;;  %v12374_v22 = vmul.u32.u64.high %v12311_v37, %v5203_v48, %v12373_v28 }
 0x526   : > { %v5025_v45 = vshll.u32 %v12313_v62, %v5023_v60  ;;  %v5026_v14 = vshrl.u32 %v5008_v18, %v5024_v35  ;;  %v5029_v47 = vadd.s32 127, %v5028_v38  ;;  %vm5275_vm10 = vcmp.gt.s32.totalorder %v5274_v51, 0 }
 0x527   : > { %v8300_v53 = vpop.eup %8299  ;;  %vm5155_vm13 = vcmp.eq.s32.totalorder %v12301_v24, 2  ;;  %v5045_v54 = vadd.s32 3, %v5041_v61  ;;  %v5199_v3 = vsel %vm5193_vm8, %v5196_v63, %v5198_v49  ;;  %v5276_v26 = vsel %vm5275_vm10, %v5274_v51, 0 }
 0x528   : > { %v8302_v6 = vpop.eup %8301  ;;  %v5156_v43 = vxor.u32 2147483648, %v8300_v53  ;;  %v5027_v25 = vor.u32 %v5026_v14, %v5025_v45  ;;  %v5030_v31 = vshll.u32 %v5029_v47, 23  ;;  %v5272_v34 = vor.u32 8388608, %v12338_v58 }
 0x529   : > { %v5153_v46 = vxor.u32 2147483648, %v8302_v6  ;;  %vm5217_vm0 = vc.u32 %v12370_v50, %v12373_v28  ;;  %v5218_v18 = vadd.s32 1, %v12374_v22  ;;  %v12387_v62 = vadd.f32 %v8578_v40, %v11934_v21 }
 0x52a   : > { %v5157_v61 = vsel %vm5155_vm13, %v5156_v43, %v8302_v6  ;;  %v5031_v9 = vor.u32 4788187, %v5030_v31  ;;  %v5215_v32 = vmul.u32 %v12311_v37, %v5199_v3  ;;  %v5278_v60 = vand.u32 31, %v5276_v26 }
 0x52b   : > { %v5154_v63 = vsel %vm5152_vm1, %v8300_v53, %v5153_v46  ;;  %v5034_v58 = vcvt.s32.f32 %v5027_v25  ;;  %v12392_v48 = vand.u32 3, %v5045_v54  ;;  %v5219_v7 = vsel %vm5217_vm0, %v5218_v18, %v12374_v22 }
 0x52c   : > { %v5158_v35 = vsel %vm5151_vm15, %v5154_v63, %v5157_v61  ;;  %v5032_v38 = vand.u32 2147483647, %v5031_v9  ;;  %v5220_v49 = vadd.s32 %v5219_v7, %v5215_v32  ;;  %v5279_v51 = vsub.s32 32, %v5278_v60 }
 0x52d   : > { %v5159_v0 = vsel %vm5148_vm12, nan, %v5158_v35  ;;  %v5277_v37 = vshrl.u32 %v5276_v26, 5  ;;  %v5281_v45 = vshll.u32 %v8400_v19, %v5278_v60  ;;  %v5284_v14 = vshll.u32 %v8401_v23, %v5278_v60 }
 0x52e   : > { %v7409_v47 = vsel %vm7365_vm5, %v11634_v1, %v5159_v0  ;;  %v5035_v53 = vmul.f32 %v5034_v58, %v5032_v38  ;;  %v5221_v22 = vadd.s32 536870912, %v5220_v49  ;;  %v5287_v24 = vshll.u32 %v14055_v10, %v5278_v60 }
 0x52f   : > { %7474 = vst [vmem:[%s8911_s28 + $0x150] sm:$0xff] %v7409_v47  ;;  %v5282_v54 = vshrl.u32 %v8401_v23, %v5279_v51  ;;  %v5285_v3 = vshrl.u32 %v14055_v10, %v5279_v51  ;;  %v5288_v5 = vshrl.u32 %v8403_v27, %v5279_v51  ;;  %v5290_v26 = vshll.u32 %v8403_v27, %v5278_v60 }
 0x530   : > { %v5036_v6 = vxor.u32 2147483648, %v5035_v53  ;;  %v5222_v43 = vshrl.u32 %v5221_v22, 30  ;;  %v5291_v25 = vshrl.u32 %v8404_v29, %v5279_v51  ;;  %v5293_v31 = vshll.u32 %v8404_v29, %v5278_v60 }
 0x531   : > { %v5283_v1 = vor.u32 %v5282_v54, %v5281_v45  ;;  %v5286_v46 = vor.u32 %v5285_v3, %v5284_v14  ;;  %v5289_v18 = vor.u32 %v5288_v5, %v5287_v24  ;;  %v5294_v61 = vshrl.u32 %v8405_v52, %v5279_v51 }
 0x532   : > { %v5037_v9 = vsel %vm4954_vm2, %v5036_v6, %v5035_v53  ;;  %v5223_v32 = vshll.u32 %v5222_v43, 30  ;;  %v5292_v63 = vor.u32 %v5291_v25, %v5290_v26  ;;  %v12415_v58 = vshll.u32 %v5272_v34, 8 }
 0x533   : > { %v5040_v7 = vsel %vm12305_vm11, %v12126_v17, %v5037_v9  ;;  %v5295_v35 = vor.u32 %v5294_v61, %v5293_v31  ;;  %vm5296_vm7 = vcmp.lt.s32.totalorder %v5277_v37, 1  ;;  %v5475_v60 = vand.u32 2139095040, %v12387_v62 }
 0x534   : > { %8303 = vcosq.f32 %v5040_v7  ;;  %v12421_v38 = vsub.s32 %v5220_v49, %v5223_v32  ;;  %vm5297_vm1 = vcmp.lt.s32.totalorder %v5277_v37, 2  ;;  %vm5299_vm4 = vcmp.lt.s32.totalorder %v5277_v37, 4 }
 0x535   : > { %8305 = vsinq.f32 %v5040_v7  ;;  %v5280_v0 = vshrl.u32 %v8400_v19, %v5279_v51  ;;  %v5301_v45 = vsel %vm5299_vm4, %v5289_v18, 2102212464  ;;  %v5304_v34 = vsel %vm5296_vm7, %v5283_v1, %v5286_v46  ;;  %v12448_v7 = vpop.f32.mrb[25].mxu1 }
 0x536   : > { %v5226_v14 = vsub.s32 0, %v12421_v38  ;;  %v5246_v47 = vsub.s32 4, %v5222_v43  ;;  %vm5298_vm2 = vcmp.lt.s32.totalorder %v5277_v37, 3  ;;  %v5305_v8 = vsel %vm5299_vm4, %v5292_v63, 920167782 }
 0x537   : > { %v5300_v53 = vsel %vm5296_vm7, %v5280_v0, %v5283_v1  ;;  %v5306_v22 = vsel %vm5298_vm2, %v5289_v18, %v5305_v8  ;;  %v5308_v24 = vsel %vm5296_vm7, %v5286_v46, %v5289_v18  ;;  %v5309_v49 = vsel %vm5299_vm4, %v5295_v35, 1326507024 }
 0x538   : > { %v7769_v54 = vmin.u32 %v5226_v14, %v12421_v38  ;;  %v5302_v3 = vsel %vm5298_vm2, %v5286_v46, %v5301_v45  ;;  %v5307_v5 = vsel %vm5297_vm1, %v5304_v34, %v5306_v22  ;;  %v5310_v51 = vsel %vm5298_vm2, %v5292_v63, %v5309_v49 }
 0x539   : > { %vm5162_vm11 = vcmp.lt.s32.totalorder %v12222_v13, 0  ;;  %v5311_v26 = vsel %vm5297_vm1, %v5308_v24, %v5310_v51  ;;  %v12433_v6 = vmul.u32.u64.low %v12415_v58, %v5307_v5  ;;  %v12434_v25 = vmul.u32.u64.high %v12415_v58, %v5307_v5, %v12433_v6 }
 0x53a   : > { %v5228_v31 = vclz %v7769_v54  ;;  %v5247_v1 = vsel %vm5162_vm11, %v5246_v47, %v5222_v43  ;;  %v5472_v18 = vand.u32 2147483647, %v12387_v62  ;;  %v12441_v46 = vadd.f32 %v8582_v41, %v12049_v59 }
 0x53b   : > { %v5303_v61 = vsel %vm5297_vm1, %v5300_v53, %v5302_v3  ;;  %v12445_v9 = vmul.u32.u64.low %v12415_v58, %v5311_v26  ;;  %v12446_v32 = vmul.u32.u64.high %v12415_v58, %v5311_v26, %v12445_v9  ;;  %v5476_v63 = vshrl.u32 %v5475_v60, 23 }
 0x53c   : > { %vm5047_vm8 = vcmp.lt.s32.totalorder %v12392_v48, 2  ;;  %vm5048_vm15 = vcmp.eq.s32.totalorder %v12392_v48, 0  ;;  %vm12454_vm12 = vcmp.le.f32.partialorder %v5160_v36, 0.7853982  ;;  %v7770_v35 = vadd.s32 4294967294, %v5228_v31 }
 0x53d   : > { %vm5051_vm10 = vcmp.eq.s32.totalorder %v12392_v48, 2  ;;  %v5216_v37 = vadd.s32 %v12373_v28, %v12370_v50  ;;  %v5322_v60 = vadd.s32 1, %v12434_v25  ;;  %v7780_v0 = vadd.s32 4294967169, %v5476_v63 }
 0x53e   : > { %v8304_v45 = vpop.eup %8303  ;;  %vm7771_vm13 = vcmp.lt.s32.totalorder %v7770_v35, 0  ;;  %v5249_v34 = vsel %vm12454_vm12, 0, %v5247_v1  ;;  %v5319_v14 = vmul.u32 %v12415_v58, %v5303_v61  ;;  %v5479_v36 = vand.u32 8388607, %v5472_v18 }
 0x53f   : > { %v8306_v47 = vpop.eup %8305  ;;  %v5052_v8 = vxor.u32 2147483648, %v8304_v45  ;;  %v5231_v53 = vsel %vm7771_vm13, 0, %v7770_v35  ;;  %vm5321_vm0 = vc.u32 %v12446_v32, %v12433_v6  ;;  %v5368_v50 = vand.u32 2147483647, %v12441_v46 }
 0x540   : > { %v5049_v28 = vxor.u32 2147483648, %v8306_v47  ;;  %v5232_v22 = vsub.s32 32, %v5231_v53  ;;  %v5236_v24 = vsub.s32 4294967266, %v5231_v53  ;;  %v5371_v49 = vand.u32 2139095040, %v12441_v46 }
 0x541   : > { %v5053_v54 = vsel %vm5051_vm10, %v5052_v8, %v8306_v47  ;;  %v5233_v58 = vshll.u32 %v12421_v38, %v5231_v53  ;;  %v5323_v3 = vsel %vm5321_vm0, %v5322_v60, %v12434_v25  ;;  %v5482_v5 = vadd.s32 1, %v7780_v0 }
 0x542   : > { %v5050_v51 = vsel %vm5048_vm15, %v8304_v45, %v5049_v28  ;;  %v5234_v26 = vshrl.u32 %v5216_v37, %v5232_v22  ;;  %v5237_v31 = vadd.s32 127, %v5236_v24  ;;  %v5324_v1 = vadd.s32 %v5323_v3, %v5319_v14 }
 0x543   : > { %vm5044_vm7 = vweird.f32 %v12126_v17  ;;  %v5054_v61 = vsel %vm5047_vm8, %v5050_v51, %v5053_v54  ;;  %vm5483_vm1 = vcmp.gt.s32.totalorder %v5482_v5, 0  ;;  %v5253_v60 = vadd.s32 3, %v5249_v34 }
 0x544   : > { %v5055_v9 = vsel %vm5044_vm7, nan, %v5054_v61  ;;  %v5235_v63 = vor.u32 %v5234_v26, %v5233_v58  ;;  %v5238_v35 = vshll.u32 %v5237_v31, 23  ;;  %v5325_v38 = vadd.s32 536870912, %v5324_v1 }
 0x545   : > { %v7408_v25 = vsel %vm7364_vm3, %v11730_v55, %v5055_v9  ;;  %v5480_v0 = vor.u32 8388608, %v5479_v36  ;;  %v5484_v45 = vsel %vm5483_vm1, %v5482_v5, 0  ;;  %v5372_v47 = vshrl.u32 %v5371_v49, 23 }
 0x546   : > { %7473 = vst [vmem:[%s8911_s28 + $0x148] sm:$0xff] %v7408_v25  ;;  %v5239_v37 = vor.u32 4788187, %v5238_v35  ;;  %v5326_v14 = vshrl.u32 %v5325_v38, 30  ;;  %v12485_v17 = vand.u32 8388607, %v5368_v50  ;;  %v5242_v53 = vcvt.s32.f32 %v5235_v63 }
 0x547   : > { %v5486_v48 = vand.u32 31, %v5484_v45  ;;  %v12487_v22 = vand.u32 3, %v5253_v60  ;;  %v12490_v24 = vadd.s32 %v12433_v6, %v12446_v32  ;;  %v12492_v34 = vshll.u32 %v5480_v0, 8 }
 0x548   : > { %v5240_v8 = vand.u32 2147483647, %v5239_v37  ;;  %v5327_v28 = vshll.u32 %v5326_v14, 30  ;;  %v7776_v49 = vadd.s32 4294967169, %v5372_v47  ;;  %v5376_v58 = vor.u32 8388608, %v12485_v17 }
 0x549   : > { %v5487_v55 = vsub.s32 32, %v5486_v48  ;;  %v5485_v3 = vshrl.u32 %v5484_v45, 5  ;;  %v5489_v5 = vshll.u32 %v8400_v19, %v5486_v48  ;;  %vm5266_vm4 = vcmp.lt.s32.totalorder %v12278_v44, 0 }
 0x54a   : > { %v5243_v36 = vmul.f32 %v5242_v53, %v5240_v8  ;;  %v12494_v54 = vsub.s32 %v5324_v1, %v5327_v28  ;;  %v5492_v32 = vshll.u32 %v8401_v23, %v5486_v48  ;;  %v5495_v9 = vshll.u32 %v14055_v10, %v5486_v48 }
 0x54b   : > { %v5490_v51 = vshrl.u32 %v8401_v23, %v5487_v55  ;;  %v5493_v26 = vshrl.u32 %v14055_v10, %v5487_v55  ;;  %v5496_v1 = vshrl.u32 %v8403_v27, %v5487_v55  ;;  %v5498_v63 = vshll.u32 %v8403_v27, %v5486_v48 }
 0x54c   : > { %v5244_v31 = vxor.u32 2147483648, %v5243_v36  ;;  %v5330_v6 = vsub.s32 0, %v12494_v54  ;;  %v5499_v35 = vshrl.u32 %v8404_v29, %v5487_v55  ;;  %v5501_v0 = vshll.u32 %v8404_v29, %v5486_v48 }
 0x54d   : > { %v5491_v61 = vor.u32 %v5490_v51, %v5489_v5  ;;  %v5494_v60 = vor.u32 %v5493_v26, %v5492_v32  ;;  %v5497_v37 = vor.u32 %v5496_v1, %v5495_v9  ;;  %v5502_v8 = vshrl.u32 %v8405_v52, %v5487_v55 }
 0x54e   : > { %v5245_v38 = vsel %vm5162_vm11, %v5244_v31, %v5243_v36  ;;  %v7773_v25 = vmin.u32 %v5330_v6, %v12494_v54  ;;  %v5500_v47 = vor.u32 %v5499_v35, %v5498_v63  ;;  %v5350_v28 = vsub.s32 4, %v5326_v14 }
 0x54f   : > { %v5248_v45 = vsel %vm12454_vm12, %v12222_v13, %v5245_v38  ;;  %v5378_v5 = vadd.s32 1, %v7776_v49  ;;  %vm12517_vm2 = vcmp.le.f32.partialorder %v5264_v20, 0.7853982  ;;  %v5488_v48 = vshrl.u32 %v8400_v19, %v5487_v55 }
 0x550   : > { %8307 = vcosq.f32 %v5248_v45  ;;  %v5332_v53 = vclz %v7773_v25  ;;  %v5503_v51 = vor.u32 %v5502_v8, %v5501_v0  ;;  %vm5504_vm11 = vcmp.lt.s32.totalorder %v5485_v3, 1 }
 0x551   : > { %8309 = vsinq.f32 %v5248_v45  ;;  %vm5506_vm8 = vcmp.lt.s32.totalorder %v5485_v3, 3  ;;  %vm5507_vm15 = vcmp.lt.s32.totalorder %v5485_v3, 4  ;;  %v5512_v26 = vsel %vm5504_vm11, %v5491_v61, %v5494_v60 }
 0x552   : > { %v7774_v43 = vadd.s32 4294967294, %v5332_v53  ;;  %v5509_v31 = vsel %vm5507_vm15, %v5497_v37, 2102212464  ;;  %v5513_v6 = vsel %vm5507_vm15, %v5500_v47, 920167782  ;;  %v5516_v49 = vsel %vm5504_vm11, %v5494_v60, %v5497_v37 }
 0x553   : > { %v5517_v32 = vsel %vm5507_vm15, %v5503_v51, 1326507024  ;;  %vm5505_vm10 = vcmp.lt.s32.totalorder %v5485_v3, 2  ;;  %v5514_v20 = vsel %vm5506_vm8, %v5497_v37, %v5513_v6  ;;  %vm5256_vm13 = vcmp.eq.s32.totalorder %v12487_v22, 0 }
 0x554   : > { %vm7775_vm12 = vcmp.lt.s32.totalorder %v7774_v43, 0  ;;  %v5518_v1 = vsel %vm5506_vm8, %v5500_v47, %v5517_v32  ;;  %v5351_v9 = vsel %vm5266_vm4, %v5350_v28, %v5326_v14  ;;  %v5515_v63 = vsel %vm5505_vm10, %v5512_v26, %v5514_v20 }
 0x555   : > { %v5335_v55 = vsel %vm7775_vm12, 0, %v7774_v43  ;;  %v5519_v35 = vsel %vm5505_vm10, %v5516_v49, %v5518_v1  ;;  %vm5255_vm0 = vcmp.lt.s32.totalorder %v12487_v22, 2  ;;  %v5508_v0 = vsel %vm5504_vm11, %v5488_v48, %v5491_v61  ;;  %v12552_v43 = vpop.f32.mrb[26].mxu0 }
 0x556   : > { %v5336_v38 = vsub.s32 32, %v5335_v55  ;;  %v5340_v25 = vsub.s32 4294967266, %v5335_v55  ;;  %v5510_v45 = vsel %vm5506_vm8, %v5494_v60, %v5509_v31  ;;  %vm5252_vm7 = vweird.f32 %v12222_v13 }
 0x557   : > { %v12536_v37 = vmul.u32.u64.low %v12492_v34, %v5519_v35  ;;  %v12537_v47 = vmul.u32.u64.high %v12492_v34, %v5519_v35, %v12536_v37  ;;  %v12540_v14 = vmul.u32.u64.low %v12492_v34, %v5515_v63  ;;  %v12541_v8 = vmul.u32.u64.high %v12492_v34, %v5515_v63, %v12540_v14 }
 0x558   : > { %v5337_v53 = vshll.u32 %v12494_v54, %v5335_v55  ;;  %v5338_v28 = vshrl.u32 %v12490_v24, %v5336_v38  ;;  %v5341_v51 = vadd.s32 127, %v5340_v25  ;;  %vm5379_vm1 = vcmp.gt.s32.totalorder %v5378_v5, 0 }
 0x559   : > { %vm5259_vm11 = vcmp.eq.s32.totalorder %v12487_v22, 2  ;;  %v5511_v61 = vsel %vm5505_vm10, %v5508_v0, %v5510_v45  ;;  %v5380_v60 = vsel %vm5379_vm1, %v5378_v5, 0  ;;  %v12550_v48 = vshll.u32 %v5376_v58, 8 }
 0x55a   : > { %v8308_v26 = vpop.eup %8307  ;;  %v5339_v31 = vor.u32 %v5338_v28, %v5337_v53  ;;  %v5342_v6 = vshll.u32 %v5341_v51, 23  ;;  %v5353_v54 = vsel %vm12517_vm2, 0, %v5351_v9  ;;  %v5382_v24 = vand.u32 31, %v5380_v60 }
 0x55b   : > { %v8310_v49 = vpop.eup %8309  ;;  %v5260_v32 = vxor.u32 2147483648, %v8308_v26  ;;  %vm5529_vm8 = vc.u32 %v12537_v47, %v12540_v14  ;;  %v5530_v3 = vadd.s32 1, %v12541_v8  ;;  %v12561_v17 = vadd.f32 %v8624_v4, %v12098_v16 }
 0x55c   : > { %v5257_v58 = vxor.u32 2147483648, %v8310_v49  ;;  %v5343_v5 = vor.u32 4788187, %v5342_v6  ;;  %v5527_v20 = vmul.u32 %v12492_v34, %v5511_v61  ;;  %v5383_v1 = vsub.s32 32, %v5382_v24 }
 0x55d   : > { %v5261_v55 = vsel %vm5259_vm11, %v5260_v32, %v8310_v49  ;;  %v5357_v9 = vadd.s32 3, %v5353_v54  ;;  %v5531_v63 = vsel %vm5529_vm8, %v5530_v3, %v12541_v8  ;;  %v12567_v35 = vshrl.u32 %v5380_v60, 5 }
 0x55e   : > { %v5258_v38 = vsel %vm5256_vm13, %v8308_v26, %v5257_v58  ;;  %v5344_v25 = vand.u32 2147483647, %v5343_v5  ;;  %v5346_v0 = vcvt.s32.f32 %v5339_v31  ;;  %v5532_v45 = vadd.s32 %v5531_v63, %v5527_v20 }
 0x55f   : > { %v5262_v37 = vsel %vm5255_vm0, %v5258_v38, %v5261_v55  ;;  %v5385_v34 = vshll.u32 %v8400_v19, %v5382_v24  ;;  %v5386_v53 = vshrl.u32 %v8401_v23, %v5383_v1  ;;  %v5389_v28 = vshrl.u32 %v14055_v10, %v5383_v1 }
 0x560   : > { %v5263_v8 = vsel %vm5252_vm7, nan, %v5262_v37  ;;  %v5347_v51 = vmul.f32 %v5346_v0, %v5344_v25  ;;  %v5533_v61 = vadd.s32 536870912, %v5532_v45  ;;  %v5392_v60 = vshrl.u32 %v8403_v27, %v5383_v1 }
 0x561   : > { %v7410_v26 = vsel %vm7366_vm6, %v11780_v2, %v5263_v8  ;;  %v5387_v31 = vor.u32 %v5386_v53, %v5385_v34  ;;  %v5388_v22 = vshll.u32 %v8401_v23, %v5382_v24  ;;  %v5391_v6 = vshll.u32 %v14055_v10, %v5382_v24 }
 0x562   : > { %7475 = vst.msk [vmem:[%s8911_s28 + $0x158] sm:$0xff] %vm7434_vm9, %v7410_v26  ;;  %v5348_v54 = vxor.u32 2147483648, %v5347_v51  ;;  %v5534_v49 = vshrl.u32 %v5533_v61, 30  ;;  %v5394_v13 = vshll.u32 %v8403_v27, %v5382_v24  ;;  %v5395_v32 = vshrl.u32 %v8404_v29, %v5383_v1 }
 0x563   : > { %v5390_v3 = vor.u32 %v5389_v28, %v5388_v22  ;;  %v5393_v58 = vor.u32 %v5392_v60, %v5391_v6  ;;  %v5397_v5 = vshll.u32 %v8404_v29, %v5382_v24  ;;  %v5398_v20 = vshrl.u32 %v8405_v52, %v5383_v1 }
 0x564   : > { %v5349_v2 = vsel %vm5266_vm4, %v5348_v54, %v5347_v51  ;;  %v12592_v55 = vand.u32 3, %v5357_v9  ;;  %v5535_v63 = vshll.u32 %v5534_v49, 30  ;;  %v5396_v38 = vor.u32 %v5395_v32, %v5394_v13 }
 0x565   : > { %v5352_v25 = vsel %vm12517_vm2, %v12278_v44, %v5349_v2  ;;  %v5384_v0 = vshrl.u32 %v8400_v19, %v5383_v1  ;;  %v5399_v37 = vor.u32 %v5398_v20, %v5397_v5  ;;  %v5579_v34 = vand.u32 2139095040, %v12561_v17 }
 0x566   : > { %8311 = vcosq.f32 %v5352_v25  ;;  %v12599_v24 = vsub.s32 %v5532_v45, %v5535_v63  ;;  %vm5400_vm15 = vcmp.lt.s32.totalorder %v12567_v35, 1  ;;  %vm5403_vm4 = vcmp.lt.s32.totalorder %v12567_v35, 4 }
 0x567   : > { %8313 = vsinq.f32 %v5352_v25  ;;  %vm5401_vm12 = vcmp.lt.s32.totalorder %v12567_v35, 2  ;;  %v5405_v9 = vsel %vm5403_vm4, %v5393_v58, 2102212464  ;;  %v5408_v53 = vsel %vm5400_vm15, %v5387_v31, %v5390_v3 }
 0x568   : > { %v5538_v36 = vsub.s32 0, %v12599_v24  ;;  %v5558_v28 = vsub.s32 4, %v5534_v49  ;;  %vm5402_vm2 = vcmp.lt.s32.totalorder %v12567_v35, 3  ;;  %v5409_v1 = vsel %vm5403_vm4, %v5396_v38, 920167782 }
 0x569   : > { %v5404_v8 = vsel %vm5400_vm15, %v5384_v0, %v5387_v31  ;;  %v5410_v51 = vsel %vm5402_vm2, %v5393_v58, %v5409_v1  ;;  %v5412_v61 = vsel %vm5400_vm15, %v5390_v3, %v5393_v58  ;;  %v5413_v45 = vsel %vm5403_vm4, %v5399_v37, 1326507024 }
 0x56a   : > { %v7781_v60 = vmin.u32 %v5538_v36, %v12599_v24  ;;  %v5406_v26 = vsel %vm5402_vm2, %v5390_v3, %v5405_v9  ;;  %v5411_v22 = vsel %vm5401_vm12, %v5408_v53, %v5410_v51  ;;  %v5414_v6 = vsel %vm5402_vm2, %v5396_v38, %v5413_v45  ;;  %v12619_v3 = vpop.f32.mrb[26].mxu1 }
 0x56b   : > { %vm5474_vm10 = vcmp.lt.s32.totalorder %v12387_v62, 0  ;;  %v5415_v54 = vsel %vm5401_vm12, %v5412_v61, %v5414_v6  ;;  %v12613_v13 = vmul.u32.u64.low %v12550_v48, %v5411_v22  ;;  %v12614_v32 = vmul.u32.u64.high %v12550_v48, %v5411_v22, %v12613_v13 }
 0x56c   : > { %v5540_v31 = vclz %v7781_v60  ;;  %v5559_v58 = vsel %vm5474_vm10, %v5558_v28, %v5534_v49  ;;  %v5576_v5 = vand.u32 2147483647, %v12561_v17  ;;  %v5407_v20 = vsel %vm5401_vm12, %v5404_v8, %v5406_v26 }
 0x56d   : > { %v12624_v2 = vmul.u32.u64.low %v12550_v48, %v5415_v54  ;;  %v12625_v63 = vmul.u32.u64.high %v12550_v48, %v5415_v54, %v12624_v2  ;;  %v5580_v38 = vshrl.u32 %v5579_v34, 23  ;;  %vm5359_vm13 = vcmp.lt.s32.totalorder %v12592_v55, 2 }
 0x56e   : > { %vm12630_vm0 = vcmp.le.f32.partialorder %v5472_v18, 0.7853982  ;;  %v7782_v49 = vadd.s32 4294967294, %v5540_v31  ;;  %vm5360_vm7 = vcmp.eq.s32.totalorder %v12592_v55, 0  ;;  %vm5363_vm1 = vcmp.eq.s32.totalorder %v12592_v55, 2 }
 0x56f   : > { %v5426_v35 = vadd.s32 1, %v12614_v32  ;;  %v7784_v0 = vadd.s32 4294967169, %v5580_v38  ;;  %v5528_v34 = vadd.s32 %v12540_v14, %v12537_v47  ;;  %v5561_v9 = vsel %vm12630_vm0, 0, %v5559_v58 }
 0x570   : > { %v8312_v37 = vpop.eup %8311  ;;  %vm7783_vm11 = vcmp.lt.s32.totalorder %v7782_v49, 0  ;;  %v5423_v18 = vmul.u32 %v12550_v48, %v5407_v20  ;;  %vm5425_vm8 = vc.u32 %v12625_v63, %v12613_v13  ;;  %v5583_v1 = vand.u32 8388607, %v5576_v5 }
 0x571   : > { %v8314_v53 = vpop.eup %8313  ;;  %v5364_v36 = vxor.u32 2147483648, %v8312_v37  ;;  %v5543_v28 = vsel %vm7783_vm11, 0, %v7782_v49  ;;  %v12647_v47 = vadd.f32 %v8574_v39, %v12216_v15  ;;  %v5427_v45 = vsel %vm5425_vm8, %v5426_v35, %v12614_v32 }
 0x572   : > { %v5361_v8 = vxor.u32 2147483648, %v8314_v53  ;;  %v5544_v51 = vsub.s32 32, %v5543_v28  ;;  %v5548_v61 = vsub.s32 4294967266, %v5543_v28  ;;  %v5545_v48 = vshll.u32 %v12599_v24, %v5543_v28 }
 0x573   : > { %v5365_v14 = vsel %vm5363_vm1, %v5364_v36, %v8314_v53  ;;  %v5586_v60 = vadd.s32 1, %v7784_v0  ;;  %v5428_v54 = vadd.s32 %v5427_v45, %v5423_v18  ;;  %vm5356_vm15 = vweird.f32 %v12278_v44 }
 0x574   : > { %v5362_v26 = vsel %vm5360_vm7, %v8312_v37, %v5361_v8  ;;  %v5546_v22 = vshrl.u32 %v5528_v34, %v5544_v51  ;;  %v5549_v6 = vadd.s32 127, %v5548_v61  ;;  %v5565_v38 = vadd.s32 3, %v5561_v9 }
 0x575   : > { %v5366_v31 = vsel %vm5359_vm13, %v5362_v26, %v5365_v14  ;;  %vm5587_vm4 = vcmp.gt.s32.totalorder %v5586_v60, 0  ;;  %v5429_v24 = vadd.s32 536870912, %v5428_v54  ;;  %v5584_v37 = vor.u32 8388608, %v5583_v1 }
 0x576   : > { %v5367_v58 = vsel %vm5356_vm15, nan, %v5366_v31  ;;  %v5547_v20 = vor.u32 %v5546_v22, %v5545_v48  ;;  %v5550_v2 = vshll.u32 %v5549_v6, 23  ;;  %v5588_v49 = vsel %vm5587_vm4, %v5586_v60, 0 }
 0x577   : > { %v7411_v32 = vsel %vm7363_vm14, %v11889_v11, %v5367_v58  ;;  %v5430_v0 = vshrl.u32 %v5429_v24, 30  ;;  %v5683_v44 = vand.u32 2139095040, %v12647_v47  ;;  %v5590_v34 = vand.u32 31, %v5588_v49 }
 0x578   : > { %7476 = vst [vmem:[%s8911_s28 + $0x160] sm:$0xff] %v7411_v32  ;;  %v5551_v35 = vor.u32 4788187, %v5550_v2  ;;  %v5554_v18 = vcvt.s32.f32 %v5547_v20  ;;  %v12663_v36 = vand.u32 3, %v5565_v38  ;;  %v5424_v28 = vadd.s32 %v12613_v13, %v12625_v63 }
 0x579   : > { %v5431_v53 = vshll.u32 %v5430_v0, 30  ;;  %v5591_v8 = vsub.s32 32, %v5590_v34  ;;  %v5680_v51 = vand.u32 2147483647, %v12647_v47  ;;  %v12669_v61 = vshll.u32 %v5584_v37, 8 }
 0x57a   : > { %v5552_v55 = vand.u32 2147483647, %v5551_v35  ;;  %v5684_v14 = vshrl.u32 %v5683_v44, 23  ;;  %v12671_v1 = vshrl.u32 %v5588_v49, 5  ;;  %v5593_v48 = vshll.u32 %v8400_v19, %v5590_v34 }
 0x57b   : > { %v12667_v9 = vsub.s32 %v5428_v54, %v5431_v53  ;;  %v5594_v45 = vshrl.u32 %v8401_v23, %v5591_v8  ;;  %v5597_v60 = vshrl.u32 %v14055_v10, %v5591_v8  ;;  %vm5370_vm12 = vcmp.lt.s32.totalorder %v12441_v46, 0 }
 0x57c   : > { %v5555_v11 = vmul.f32 %v5554_v18, %v5552_v55  ;;  %v5596_v63 = vshll.u32 %v8401_v23, %v5590_v34  ;;  %v5600_v22 = vshrl.u32 %v8403_v27, %v5591_v8  ;;  %v5599_v54 = vshll.u32 %v14055_v10, %v5590_v34 }
 0x57d   : > { %v5434_v13 = vsub.s32 0, %v12667_v9  ;;  %v5595_v6 = vor.u32 %v5594_v45, %v5593_v48  ;;  %v5602_v31 = vshll.u32 %v8403_v27, %v5590_v34  ;;  %v5603_v58 = vshrl.u32 %v8404_v29, %v5591_v8 }
 0x57e   : > { %v5556_v26 = vxor.u32 2147483648, %v5555_v11  ;;  %v5598_v24 = vor.u32 %v5597_v60, %v5596_v63  ;;  %v5605_v32 = vshll.u32 %v8404_v29, %v5590_v34  ;;  %v5601_v49 = vor.u32 %v5600_v22, %v5599_v54 }
 0x57f   : > { %v7777_v2 = vmin.u32 %v5434_v13, %v12667_v9  ;;  %v5604_v35 = vor.u32 %v5603_v58, %v5602_v31  ;;  %v5606_v37 = vshrl.u32 %v8405_v52, %v5591_v8  ;;  %v5454_v55 = vsub.s32 4, %v5430_v0 }
 0x580   : > { %v5557_v20 = vsel %vm5474_vm10, %v5556_v26, %v5555_v11  ;;  %v7788_v18 = vadd.s32 4294967169, %v5684_v14  ;;  %v5592_v53 = vshrl.u32 %v8400_v19, %v5591_v8  ;;  %vm5608_vm2 = vcmp.lt.s32.totalorder %v12671_v1, 1 }
 0x581   : > { %v5560_v38 = vsel %vm12630_vm0, %v12387_v62, %v5557_v20  ;;  %v5436_v44 = vclz %v7777_v2  ;;  %v5607_v11 = vor.u32 %v5606_v37, %v5605_v32  ;;  %vm12695_vm10 = vcmp.le.f32.partialorder %v5368_v50, 0.7853982  ;;  %v12720_v32 = vpop.f32.mrb[27].mxu0 }
 0x582   : > { %8315 = vcosq.f32 %v5560_v38  ;;  %vm5610_vm13 = vcmp.lt.s32.totalorder %v12671_v1, 3  ;;  %vm5611_vm0 = vcmp.lt.s32.totalorder %v12671_v1, 4  ;;  %v5616_v14 = vsel %vm5608_vm2, %v5595_v6, %v5598_v24 }
 0x583   : > { %8317 = vsinq.f32 %v5560_v38  ;;  %v7778_v25 = vadd.s32 4294967294, %v5436_v44  ;;  %v5613_v48 = vsel %vm5611_vm0, %v5601_v49, 2102212464  ;;  %v5617_v45 = vsel %vm5611_vm0, %v5604_v35, 920167782 }
 0x584   : > { %v5620_v8 = vsel %vm5608_vm2, %v5598_v24, %v5601_v49  ;;  %v5621_v60 = vsel %vm5611_vm0, %v5607_v11, 1326507024  ;;  %vm5609_vm1 = vcmp.lt.s32.totalorder %v12671_v1, 2  ;;  %v5618_v50 = vsel %vm5610_vm13, %v5601_v49, %v5617_v45 }
 0x585   : > { %vm7779_vm7 = vcmp.lt.s32.totalorder %v7778_v25, 0  ;;  %v5622_v26 = vsel %vm5610_vm13, %v5604_v35, %v5621_v60  ;;  %v5455_v63 = vsel %vm5370_vm12, %v5454_v55, %v5430_v0  ;;  %v5619_v22 = vsel %vm5609_vm1, %v5616_v14, %v5618_v50 }
 0x586   : > { %v5439_v13 = vsel %vm7779_vm7, 0, %v7778_v25  ;;  %v5623_v54 = vsel %vm5609_vm1, %v5620_v8, %v5622_v26  ;;  %v5612_v20 = vsel %vm5608_vm2, %v5592_v53, %v5595_v6  ;;  %v5614_v2 = vsel %vm5610_vm13, %v5598_v24, %v5613_v48 }
 0x587   : > { %v5440_v31 = vsub.s32 32, %v5439_v13  ;;  %v5444_v58 = vsub.s32 4294967266, %v5439_v13  ;;  %vm5564_vm11 = vweird.f32 %v12387_v62  ;;  %v5441_v37 = vshll.u32 %v12667_v9, %v5439_v13 }
 0x588   : > { %v12724_v0 = vmul.u32.u64.low %v12669_v61, %v5623_v54  ;;  %v12725_v38 = vmul.u32.u64.high %v12669_v61, %v5623_v54, %v12724_v0  ;;  %v12728_v49 = vmul.u32.u64.low %v12669_v61, %v5619_v22  ;;  %v12729_v35 = vmul.u32.u64.high %v12669_v61, %v5619_v22, %v12728_v49 }
 0x589   : > { %v5442_v44 = vshrl.u32 %v5424_v28, %v5440_v31  ;;  %v5445_v6 = vadd.s32 127, %v5444_v58  ;;  %v5690_v55 = vadd.s32 1, %v7788_v18  ;;  %vm5567_vm8 = vcmp.lt.s32.totalorder %v12663_v36, 2 }
 0x58a   : > { %vm5568_vm15 = vcmp.eq.s32.totalorder %v12663_v36, 0  ;;  %vm5571_vm4 = vcmp.eq.s32.totalorder %v12663_v36, 2  ;;  %v5615_v24 = vsel %vm5609_vm1, %v5612_v20, %v5614_v2  ;;  %v5687_v14 = vand.u32 8388607, %v5680_v51 }
 0x58b   : > { %v5443_v11 = vor.u32 %v5442_v44, %v5441_v37  ;;  %v5446_v25 = vshll.u32 %v5445_v6, 23  ;;  %vm5691_vm2 = vcmp.gt.s32.totalorder %v5690_v55, 0  ;;  %v5457_v18 = vsel %vm12695_vm10, 0, %v5455_v63 }
 0x58c   : > { %v8316_v53 = vpop.eup %8315  ;;  %vm5633_vm13 = vc.u32 %v12725_v38, %v12728_v49  ;;  %v5634_v48 = vadd.s32 1, %v12729_v35  ;;  %v5631_v8 = vmul.u32 %v12669_v61, %v5615_v24  ;;  %v5692_v60 = vsel %vm5691_vm2, %v5690_v55, 0 }
 0x58d   : > { %v8318_v9 = vpop.eup %8317  ;;  %v5572_v28 = vxor.u32 2147483648, %v8316_v53  ;;  %v5447_v1 = vor.u32 4788187, %v5446_v25  ;;  %v5694_v13 = vand.u32 31, %v5692_v60  ;;  %v12751_v22 = vadd.f32 %v8578_v40, %v12282_v57 }
 0x58e   : > { %v5569_v45 = vxor.u32 2147483648, %v8318_v9  ;;  %v5635_v26 = vsel %vm5633_vm13, %v5634_v48, %v12729_v35  ;;  %v5450_v31 = vcvt.s32.f32 %v5443_v11  ;;  %v5461_v20 = vadd.s32 3, %v5457_v18 }
 0x58f   : > { %v5573_v50 = vsel %vm5571_vm4, %v5572_v28, %v8318_v9  ;;  %v5448_v54 = vand.u32 2147483647, %v5447_v1  ;;  %v5636_v58 = vadd.s32 %v5635_v26, %v5631_v8  ;;  %v5688_v2 = vor.u32 8388608, %v5687_v14 }
 0x590   : > { %v5570_v63 = vsel %vm5568_vm15, %v8316_v53, %v5569_v45  ;;  %v5695_v0 = vsub.s32 32, %v5694_v13  ;;  %v5693_v6 = vshrl.u32 %v5692_v60, 5  ;;  %v5697_v24 = vshll.u32 %v8400_v19, %v5694_v13 }
 0x591   : > { %v5574_v61 = vsel %vm5567_vm8, %v5570_v63, %v5573_v50  ;;  %v5451_v37 = vmul.f32 %v5450_v31, %v5448_v54  ;;  %v5637_v44 = vadd.s32 536870912, %v5636_v58  ;;  %v5700_v62 = vshll.u32 %v8401_v23, %v5694_v13 }
 0x592   : > { %v5575_v35 = vsel %vm5564_vm11, nan, %v5574_v61  ;;  %v5698_v53 = vshrl.u32 %v8401_v23, %v5695_v0  ;;  %v5701_v36 = vshrl.u32 %v14055_v10, %v5695_v0  ;;  %v5704_v14 = vshrl.u32 %v8403_v27, %v5695_v0 }
 0x593   : > { %v7413_v55 = vsel %vm7365_vm5, %v11934_v21, %v5575_v35  ;;  %v5452_v11 = vxor.u32 2147483648, %v5451_v37  ;;  %v12766_v25 = vshrl.u32 %v5637_v44, 30  ;;  %v5703_v28 = vshll.u32 %v14055_v10, %v5694_v13 }
 0x594   : > { %7478 = vst [vmem:[%s8911_s28 + $0x170] sm:$0xff] %v7413_v55  ;;  %v5699_v9 = vor.u32 %v5698_v53, %v5697_v24  ;;  %v5706_v18 = vshll.u32 %v8403_v27, %v5694_v13  ;;  %v5707_v21 = vshrl.u32 %v8404_v29, %v5695_v0  ;;  %v5702_v1 = vor.u32 %v5701_v36, %v5700_v62 }
 0x595   : > { %v5453_v48 = vsel %vm5370_vm12, %v5452_v11, %v5451_v37  ;;  %v5639_v45 = vshll.u32 %v12766_v25, 30  ;;  %v5709_v8 = vshll.u32 %v8404_v29, %v5694_v13  ;;  %v5705_v50 = vor.u32 %v5704_v14, %v5703_v28 }
 0x596   : > { %v5456_v60 = vsel %vm12695_vm10, %v12441_v46, %v5453_v48  ;;  %v5708_v26 = vor.u32 %v5707_v21, %v5706_v18  ;;  %v5710_v63 = vshrl.u32 %v8405_v52, %v5695_v0  ;;  %v12785_v31 = vadd.f32 %v8582_v41, %v12366_v33 }
 0x597   : > { %8319 = vcosq.f32 %v5456_v60  ;;  %v12781_v54 = vsub.s32 %v5636_v58, %v5639_v45  ;;  %v5462_v61 = vand.u32 3, %v5461_v20  ;;  %v5891_v13 = vand.u32 2139095040, %v12751_v22 }
 0x598   : > { %8321 = vsinq.f32 %v5456_v60  ;;  %v5711_v35 = vor.u32 %v5710_v63, %v5709_v8  ;;  %vm5578_vm12 = vcmp.lt.s32.totalorder %v12561_v17, 0  ;;  %vm5712_vm10 = vcmp.lt.s32.totalorder %v5693_v6, 1  ;;  %v12805_v8 = vpop.f32.mrb[27].mxu1 }
 0x599   : > { %v5642_v34 = vsub.s32 0, %v12781_v54  ;;  %vm5715_vm0 = vcmp.lt.s32.totalorder %v5693_v6, 4  ;;  %v5728_v37 = vshll.u32 %v5688_v2, 8  ;;  %vm5714_vm7 = vcmp.lt.s32.totalorder %v5693_v6, 3 }
 0x59a   : > { %v5717_v44 = vsel %vm5715_vm0, %v5705_v50, 2102212464  ;;  %v5720_v58 = vsel %vm5712_vm10, %v5699_v9, %v5702_v1  ;;  %v5721_v55 = vsel %vm5715_vm0, %v5708_v26, 920167782  ;;  %v5696_v53 = vshrl.u32 %v8400_v19, %v5695_v0 }
 0x59b   : > { %v7785_v24 = vmin.u32 %v5642_v34, %v12781_v54  ;;  %vm5713_vm1 = vcmp.lt.s32.totalorder %v5693_v6, 2  ;;  %v5722_v20 = vsel %vm5714_vm7, %v5705_v50, %v5721_v55  ;;  %v5724_v11 = vsel %vm5712_vm10, %v5702_v1, %v5705_v50 }
 0x59c   : > { %v5723_v36 = vsel %vm5713_vm1, %v5720_v58, %v5722_v20  ;;  %v5725_v62 = vsel %vm5715_vm0, %v5711_v35, 1326507024  ;;  %v5892_v14 = vshrl.u32 %v5891_v13, 23  ;;  %vm5463_vm11 = vcmp.lt.s32.totalorder %v5462_v61, 2 }
 0x59d   : > { %v5644_v2 = vclz %v7785_v24  ;;  %v5716_v28 = vsel %vm5712_vm10, %v5696_v53, %v5699_v9  ;;  %v5718_v18 = vsel %vm5714_vm7, %v5702_v1, %v5717_v44  ;;  %vm5460_vm8 = vweird.f32 %v12441_v46 }
 0x59e   : > { %v5662_v21 = vsub.s32 4, %v12766_v25  ;;  %v5726_v0 = vsel %vm5714_vm7, %v5708_v26, %v5725_v62  ;;  %v12801_v48 = vmul.u32.u64.low %v5728_v37, %v5723_v36  ;;  %v12802_v45 = vmul.u32.u64.high %v5728_v37, %v5723_v36, %v12801_v48 }
 0x59f   : > { %vm5464_vm15 = vcmp.eq.s32.totalorder %v5462_v61, 0  ;;  %v7786_v60 = vadd.s32 4294967294, %v5644_v2  ;;  %v5727_v50 = vsel %vm5713_vm1, %v5724_v11, %v5726_v0  ;;  %v7796_v63 = vadd.s32 4294967169, %v5892_v14 }
 0x5a0   : > { %vm5467_vm4 = vcmp.eq.s32.totalorder %v5462_v61, 2  ;;  %v5719_v9 = vsel %vm5713_vm1, %v5716_v28, %v5718_v18  ;;  %v12809_v1 = vmul.u32.u64.low %v5728_v37, %v5727_v50  ;;  %v12810_v35 = vmul.u32.u64.high %v5728_v37, %v5727_v50, %v12809_v1 }
 0x5a1   : > { %v8320_v13 = vpop.eup %8319  ;;  %v5632_v26 = vadd.s32 %v12728_v49, %v12725_v38  ;;  %vm7787_vm2 = vcmp.lt.s32.totalorder %v7786_v60, 0  ;;  %v5888_v34 = vand.u32 2147483647, %v12751_v22  ;;  %v5898_v44 = vadd.s32 1, %v7796_v63 }
 0x5a2   : > { %v8322_v58 = vpop.eup %8321  ;;  %v5468_v55 = vxor.u32 2147483648, %v8320_v13  ;;  %v5647_v24 = vsel %vm7787_vm2, 0, %v7786_v60  ;;  %v5663_v53 = vsel %vm5578_vm12, %v5662_v21, %v12766_v25  ;;  %v5738_v6 = vadd.s32 1, %v12802_v45 }
 0x5a3   : > { %v5465_v20 = vxor.u32 2147483648, %v8322_v58  ;;  %v5648_v36 = vsub.s32 32, %v5647_v24  ;;  %v5652_v11 = vsub.s32 4294967266, %v5647_v24  ;;  %v5735_v62 = vmul.u32 %v5728_v37, %v5719_v9 }
 0x5a4   : > { %v5469_v14 = vsel %vm5467_vm4, %v5468_v55, %v8322_v58  ;;  %v5649_v38 = vshll.u32 %v12781_v54, %v5647_v24  ;;  %vm5737_vm13 = vc.u32 %v12810_v35, %v12801_v48  ;;  %vm5899_vm10 = vcmp.gt.s32.totalorder %v5898_v44, 0 }
 0x5a5   : > { %v5466_v49 = vsel %vm5464_vm15, %v8320_v13, %v5465_v20  ;;  %v5650_v2 = vshrl.u32 %v5632_v26, %v5648_v36  ;;  %v5653_v28 = vadd.s32 127, %v5652_v11  ;;  %v5739_v25 = vsel %vm5737_vm13, %v5738_v6, %v12802_v45 }
 0x5a6   : > { %v5470_v18 = vsel %vm5463_vm11, %v5466_v49, %v5469_v14  ;;  %v5740_v21 = vadd.s32 %v5739_v25, %v5735_v62  ;;  %v5895_v37 = vand.u32 8388607, %v5888_v34  ;;  %v5900_v0 = vsel %vm5899_vm10, %v5898_v44, 0 }
 0x5a7   : > { %v5471_v54 = vsel %vm5460_vm8, nan, %v5470_v18  ;;  %v5651_v60 = vor.u32 %v5650_v2, %v5649_v38  ;;  %v5654_v50 = vshll.u32 %v5653_v28, 23  ;;  %vm12835_vm0 = vcmp.le.f32.partialorder %v5576_v5, 0.7853982 }
 0x5a8   : > { %v7412_v63 = vsel %vm7364_vm3, %v12049_v59, %v5471_v54  ;;  %v5741_v61 = vadd.s32 536870912, %v5740_v21  ;;  %v5902_v9 = vand.u32 31, %v5900_v0  ;;  %v5665_v46 = vsel %vm12835_vm0, 0, %v5663_v53 }
 0x5a9   : > { %7477 = vst [vmem:[%s8911_s28 + $0x168] sm:$0xff] %v7412_v63  ;;  %v5655_v1 = vor.u32 4788187, %v5654_v50  ;;  %v5784_v13 = vand.u32 2147483647, %v12785_v31  ;;  %v12845_v26 = vadd.f32 %v8624_v4, %v12448_v7  ;;  %v5896_v44 = vor.u32 8388608, %v5895_v37 }
 0x5aa   : > { %v12847_v59 = vshrl.u32 %v5741_v61, 30  ;;  %v5903_v5 = vsub.s32 32, %v5902_v9  ;;  %v5787_v58 = vand.u32 2139095040, %v12785_v31  ;;  %v5658_v24 = vcvt.s32.f32 %v5651_v60 }
 0x5ab   : > { %v5656_v55 = vand.u32 2147483647, %v5655_v1  ;;  %v12850_v6 = vshrl.u32 %v5900_v0, 5  ;;  %v5905_v20 = vshll.u32 %v8400_v19, %v5902_v9  ;;  %v5908_v11 = vshll.u32 %v8401_v23, %v5902_v9 }
 0x5ac   : > { %v5743_v53 = vshll.u32 %v12847_v59, 30  ;;  %v5906_v36 = vshrl.u32 %v8401_v23, %v5903_v5  ;;  %v5911_v62 = vshll.u32 %v14055_v10, %v5902_v9  ;;  %v5909_v38 = vshrl.u32 %v14055_v10, %v5903_v5 }
 0x5ad   : > { %v5659_v14 = vmul.f32 %v5658_v24, %v5656_v55  ;;  %v5912_v49 = vshrl.u32 %v8403_v27, %v5903_v5  ;;  %v5915_v2 = vshrl.u32 %v8404_v29, %v5903_v5  ;;  %v5669_v28 = vadd.s32 3, %v5665_v46 }
 0x5ae   : > { %v12860_v25 = vsub.s32 %v5740_v21, %v5743_v53  ;;  %v5914_v18 = vshll.u32 %v8403_v27, %v5902_v9  ;;  %v5918_v37 = vshrl.u32 %v8405_v52, %v5903_v5  ;;  %v5907_v54 = vor.u32 %v5906_v36, %v5905_v20 }
 0x5af   : > { %v5660_v0 = vxor.u32 2147483648, %v5659_v14  ;;  %v5910_v60 = vor.u32 %v5909_v38, %v5908_v11  ;;  %v5913_v50 = vor.u32 %v5912_v49, %v5911_v62  ;;  %v5917_v1 = vshll.u32 %v8404_v29, %v5902_v9 }
 0x5b0   : > { %v5746_v63 = vsub.s32 0, %v12860_v25  ;;  %v5916_v61 = vor.u32 %v5915_v2, %v5914_v18  ;;  %v12866_v55 = vshll.u32 %v5896_v44, 8  ;;  %vm5682_vm7 = vcmp.lt.s32.totalorder %v12647_v47, 0 }
 0x5b1   : > { %v5661_v46 = vsel %vm5578_vm12, %v5660_v0, %v5659_v14  ;;  %v5904_v21 = vshrl.u32 %v8400_v19, %v5903_v5  ;;  %vm5920_vm1 = vcmp.lt.s32.totalorder %v12850_v6, 1  ;;  %v5788_v24 = vshrl.u32 %v5787_v58, 23 }
 0x5b2   : > { %v5664_v20 = vsel %vm12835_vm0, %v12561_v17, %v5661_v46  ;;  %v7789_v53 = vmin.u32 %v5746_v63, %v12860_v25  ;;  %v5919_v36 = vor.u32 %v5918_v37, %v5917_v1  ;;  %vm5923_vm11 = vcmp.lt.s32.totalorder %v12850_v6, 4 }
 0x5b3   : > { %8323 = vcosq.f32 %v5664_v20  ;;  %v5925_v9 = vsel %vm5923_vm11, %v5913_v50, 2102212464  ;;  %v5928_v44 = vsel %vm5920_vm1, %v5907_v54, %v5910_v60  ;;  %v5929_v5 = vsel %vm5923_vm11, %v5916_v61, 920167782 }
 0x5b4   : > { %8325 = vsinq.f32 %v5664_v20  ;;  %v5748_v58 = vclz %v7789_v53  ;;  %vm5921_vm12 = vcmp.lt.s32.totalorder %v12850_v6, 2  ;;  %vm5922_vm8 = vcmp.lt.s32.totalorder %v12850_v6, 3 }
 0x5b5   : > { %v5766_v45 = vsub.s32 4, %v12847_v59  ;;  %v5924_v11 = vsel %vm5920_vm1, %v5904_v21, %v5907_v54  ;;  %v5930_v62 = vsel %vm5922_vm8, %v5913_v50, %v5929_v5  ;;  %v5932_v14 = vsel %vm5920_vm1, %v5910_v60, %v5913_v50 }
 0x5b6   : > { %v7790_v38 = vadd.s32 4294967294, %v5748_v58  ;;  %v5926_v49 = vsel %vm5922_vm8, %v5910_v60, %v5925_v9  ;;  %v5931_v2 = vsel %vm5921_vm12, %v5928_v44, %v5930_v62  ;;  %v5933_v18 = vsel %vm5923_vm11, %v5919_v36, 1326507024 }
 0x5b7   : > { %v5934_v37 = vsel %vm5922_vm8, %v5916_v61, %v5933_v18  ;;  %v12896_v0 = vmul.u32.u64.low %v12866_v55, %v5931_v2  ;;  %v12897_v63 = vmul.u32.u64.high %v12866_v55, %v5931_v2, %v12896_v0  ;;  %v7792_v1 = vadd.s32 4294967169, %v5788_v24 }
 0x5b8   : > { %vm12902_vm15 = vcmp.le.f32.partialorder %v5680_v51, 0.7853982  ;;  %v5736_v60 = vadd.s32 %v12801_v48, %v12810_v35  ;;  %vm7791_vm4 = vcmp.lt.s32.totalorder %v7790_v38, 0  ;;  %v5935_v50 = vsel %vm5921_vm12, %v5932_v14, %v5934_v37 }
 0x5b9   : > { %v5751_v61 = vsel %vm7791_vm4, 0, %v7790_v38  ;;  %v12911_v46 = vmul.u32.u64.low %v12866_v55, %v5935_v50  ;;  %v12912_v21 = vmul.u32.u64.high %v12866_v55, %v5935_v50, %v12911_v46  ;;  %v5794_v20 = vadd.s32 1, %v7792_v1 }
 0x5ba   : > { %vm5668_vm2 = vweird.f32 %v12561_v17  ;;  %v5752_v24 = vsub.s32 32, %v5751_v61  ;;  %v5756_v51 = vsub.s32 4294967266, %v5751_v61  ;;  %v5767_v53 = vsel %vm5682_vm7, %v5766_v45, %v12847_v59 }
 0x5bb   : > { %v5927_v48 = vsel %vm5921_vm12, %v5924_v11, %v5926_v49  ;;  %v5670_v35 = vand.u32 3, %v5669_v28  ;;  %v5946_v36 = vadd.s32 1, %v12897_v63  ;;  %v5791_v9 = vand.u32 8388607, %v5784_v13 }
 0x5bc   : > { %vm5795_vm13 = vcmp.gt.s32.totalorder %v5794_v20, 0  ;;  %v5753_v44 = vshll.u32 %v12860_v25, %v5751_v61  ;;  %v5754_v5 = vshrl.u32 %v5736_v60, %v5752_v24  ;;  %v5757_v58 = vadd.s32 127, %v5756_v51  ;;  %v12930_v25 = vpop.f32.mrb[28].mxu0 }
 0x5bd   : > { %v5796_v62 = vsel %vm5795_vm13, %v5794_v20, 0  ;;  %v8324_v14 = vpop.eup %8323  ;;  %v5769_v38 = vsel %vm12902_vm15, 0, %v5767_v53  ;;  %v5943_v59 = vmul.u32 %v12866_v55, %v5927_v48  ;;  %vm5945_vm10 = vc.u32 %v12912_v21, %v12896_v0 }
 0x5be   : > { %v5798_v6 = vand.u32 31, %v5796_v62  ;;  %v8326_v28 = vpop.eup %8325  ;;  %v5676_v45 = vxor.u32 2147483648, %v8324_v14  ;;  %v5755_v11 = vor.u32 %v5754_v5, %v5753_v44  ;;  %v5758_v49 = vshll.u32 %v5757_v58, 23 }
 0x5bf   : > { %v5947_v2 = vsel %vm5945_vm10, %v5946_v36, %v12897_v63  ;;  %v5673_v18 = vxor.u32 2147483648, %v8326_v28  ;;  %vm5675_vm0 = vcmp.eq.s32.totalorder %v5670_v35, 2  ;;  %vm5671_vm1 = vcmp.lt.s32.totalorder %v5670_v35, 2 }
 0x5c0   : > { %v5948_v37 = vadd.s32 %v5947_v2, %v5943_v59  ;;  %v5799_v1 = vsub.s32 32, %v5798_v6  ;;  %vm5672_vm11 = vcmp.eq.s32.totalorder %v5670_v35, 0  ;;  %v5677_v60 = vsel %vm5675_vm0, %v5676_v45, %v8326_v28 }
 0x5c1   : > { %v5759_v55 = vor.u32 4788187, %v5758_v49  ;;  %v5674_v50 = vsel %vm5672_vm11, %v8324_v14, %v5673_v18  ;;  %v5773_v61 = vadd.s32 3, %v5769_v38  ;;  %v5792_v20 = vor.u32 8388608, %v5791_v9 }
 0x5c2   : > { %v5949_v46 = vadd.s32 536870912, %v5948_v37  ;;  %v5678_v24 = vsel %vm5671_vm1, %v5674_v50, %v5677_v60  ;;  %v5762_v53 = vcvt.s32.f32 %v5755_v11  ;;  %v5797_v48 = vshrl.u32 %v5796_v62, 5 }
 0x5c3   : > { %v5760_v51 = vand.u32 2147483647, %v5759_v55  ;;  %v5679_v63 = vsel %vm5668_vm2, nan, %v5678_v24  ;;  %v5802_v44 = vshrl.u32 %v8401_v23, %v5799_v1  ;;  %v5808_v35 = vshrl.u32 %v8403_v27, %v5799_v1 }
 0x5c4   : > { %v12934_v36 = vshrl.u32 %v5949_v46, 30  ;;  %v7414_v5 = vsel %vm7366_vm6, %v12098_v16, %v5679_v63  ;;  %v5801_v9 = vshll.u32 %v8400_v19, %v5798_v6  ;;  %v5805_v14 = vshrl.u32 %v14055_v10, %v5799_v1 }
 0x5c5   : > { %v5763_v58 = vmul.f32 %v5762_v53, %v5760_v51  ;;  %7479 = vst.msk [vmem:[%s8911_s28 + $0x178] sm:$0xff] %vm7434_vm9, %v7414_v5  ;;  %v5804_v62 = vshll.u32 %v8401_v23, %v5798_v6  ;;  %v5807_v38 = vshll.u32 %v14055_v10, %v5798_v6  ;;  %v5811_v59 = vshrl.u32 %v8404_v29, %v5799_v1 }
 0x5c6   : > { %v5951_v17 = vshll.u32 %v12934_v36, 30  ;;  %v5810_v45 = vshll.u32 %v8403_v27, %v5798_v6  ;;  %v5813_v16 = vshll.u32 %v8404_v29, %v5798_v6  ;;  %v5814_v11 = vshrl.u32 %v8405_v52, %v5799_v1 }
 0x5c7   : > { %v5764_v28 = vxor.u32 2147483648, %v5763_v58  ;;  %v5803_v2 = vor.u32 %v5802_v44, %v5801_v9  ;;  %v5809_v18 = vor.u32 %v5808_v35, %v5807_v38  ;;  %v5806_v55 = vor.u32 %v5805_v14, %v5804_v62 }
 0x5c8   : > { %v12952_v49 = vsub.s32 %v5948_v37, %v5951_v17  ;;  %v5812_v50 = vor.u32 %v5811_v59, %v5810_v45  ;;  %v5815_v46 = vor.u32 %v5814_v11, %v5813_v16  ;;  %v12959_v51 = vand.u32 3, %v5773_v61  ;;  %v12968_v16 = vpop.f32.mrb[28].mxu1 }
 0x5c9   : > { %v5765_v60 = vsel %vm5682_vm7, %v5764_v28, %v5763_v58  ;;  %v5832_v53 = vshll.u32 %v5792_v20, 8  ;;  %v5800_v37 = vshrl.u32 %v8400_v19, %v5799_v1  ;;  %vm5819_vm12 = vcmp.lt.s32.totalorder %v5797_v48, 4 }
 0x5ca   : > { %v5768_v24 = vsel %vm12902_vm15, %v12647_v47, %v5765_v60  ;;  %v5954_v6 = vsub.s32 0, %v12952_v49  ;;  %v5995_v63 = vand.u32 2139095040, %v12845_v26  ;;  %vm5816_vm7 = vcmp.lt.s32.totalorder %v5797_v48, 1 }
 0x5cb   : > { %8327 = vcosq.f32 %v5768_v24  ;;  %v5821_v35 = vsel %vm5819_vm12, %v5809_v18, 2102212464  ;;  %v5824_v5 = vsel %vm5816_vm7, %v5803_v2, %v5806_v55  ;;  %v5825_v58 = vsel %vm5819_vm12, %v5812_v50, 920167782 }
 0x5cc   : > { %8329 = vsinq.f32 %v5768_v24  ;;  %v7797_v44 = vmin.u32 %v5954_v6, %v12952_v49  ;;  %v5828_v54 = vsel %vm5816_vm7, %v5806_v55, %v5809_v18  ;;  %v5829_v9 = vsel %vm5819_vm12, %v5815_v46, 1326507024 }
 0x5cd   : > { %v5974_v14 = vsub.s32 4, %v12934_v36  ;;  %vm5817_vm8 = vcmp.lt.s32.totalorder %v5797_v48, 2  ;;  %vm5818_vm15 = vcmp.lt.s32.totalorder %v5797_v48, 3  ;;  %v5820_v20 = vsel %vm5816_vm7, %v5800_v37, %v5803_v2 }
 0x5ce   : > { %v5956_v61 = vclz %v7797_v44  ;;  %v5822_v17 = vsel %vm5818_vm15, %v5806_v55, %v5821_v35  ;;  %v5826_v1 = vsel %vm5818_vm15, %v5809_v18, %v5825_v58  ;;  %v5830_v62 = vsel %vm5818_vm15, %v5812_v50, %v5829_v9 }
 0x5cf   : > { %v5827_v59 = vsel %vm5817_vm8, %v5824_v5, %v5826_v1  ;;  %v5831_v28 = vsel %vm5817_vm8, %v5828_v54, %v5830_v62  ;;  %v5996_v45 = vshrl.u32 %v5995_v63, 23  ;;  %vm5772_vm4 = vweird.f32 %v12647_v47 }
 0x5d0   : > { %v7798_v38 = vadd.s32 4294967294, %v5956_v61  ;;  %v12970_v11 = vmul.u32.u64.low %v5832_v53, %v5831_v28  ;;  %v12971_v60 = vmul.u32.u64.high %v5832_v53, %v5831_v28, %v12970_v11  ;;  %vm5890_vm2 = vcmp.lt.s32.totalorder %v12751_v22, 0 }
 0x5d1   : > { %v12973_v46 = vmul.u32.u64.low %v5832_v53, %v5827_v59  ;;  %v12974_v24 = vmul.u32.u64.high %v5832_v53, %v5827_v59, %v12973_v46  ;;  %v5823_v2 = vsel %vm5817_vm8, %v5820_v20, %v5822_v17  ;;  %v7800_v18 = vadd.s32 4294967169, %v5996_v45 }
 0x5d2   : > { %vm7799_vm13 = vcmp.lt.s32.totalorder %v7798_v38, 0  ;;  %vm5776_vm10 = vcmp.eq.s32.totalorder %v12959_v51, 0  ;;  %vm12983_vm0 = vcmp.le.f32.partialorder %v5888_v34, 0.7853982  ;;  %v5992_v6 = vand.u32 2147483647, %v12845_v26 }
 0x5d3   : > { %v5959_v50 = vsel %vm7799_vm13, 0, %v7798_v38  ;;  %v5944_v37 = vadd.s32 %v12896_v0, %v12912_v21  ;;  %v5975_v48 = vsel %vm5890_vm2, %v5974_v14, %v12934_v36  ;;  %v5839_v5 = vmul.u32 %v5832_v53, %v5823_v2 }
 0x5d4   : > { %v5960_v63 = vsub.s32 32, %v5959_v50  ;;  %v5964_v44 = vsub.s32 4294967266, %v5959_v50  ;;  %vm5841_vm1 = vc.u32 %v12971_v60, %v12973_v46  ;;  %v5842_v34 = vadd.s32 1, %v12974_v24 }
 0x5d5   : > { %v8328_v35 = vpop.eup %8327  ;;  %v6002_v58 = vadd.s32 1, %v7800_v18  ;;  %v5961_v61 = vshll.u32 %v12952_v49, %v5959_v50  ;;  %vm5779_vm11 = vcmp.eq.s32.totalorder %v12959_v51, 2  ;;  %vm5775_vm7 = vcmp.lt.s32.totalorder %v12959_v51, 2 }
 0x5d6   : > { %v8330_v54 = vpop.eup %8329  ;;  %v5780_v9 = vxor.u32 2147483648, %v8328_v35  ;;  %v5962_v20 = vshrl.u32 %v5944_v37, %v5960_v63  ;;  %v5965_v0 = vadd.s32 127, %v5964_v44  ;;  %v5843_v17 = vsel %vm5841_vm1, %v5842_v34, %v12974_v24 }
 0x5d7   : > { %v5777_v21 = vxor.u32 2147483648, %v8330_v54  ;;  %vm6003_vm12 = vcmp.gt.s32.totalorder %v6002_v58, 0  ;;  %v5844_v1 = vadd.s32 %v5843_v17, %v5839_v5  ;;  %v5977_v49 = vsel %vm12983_vm0, 0, %v5975_v48 }
 0x5d8   : > { %v5781_v36 = vsel %vm5779_vm11, %v5780_v9, %v8330_v54  ;;  %v5963_v53 = vor.u32 %v5962_v20, %v5961_v61  ;;  %v5966_v14 = vshll.u32 %v5965_v0, 23  ;;  %v6004_v38 = vsel %vm6003_vm12, %v6002_v58, 0 }
 0x5d9   : > { %v5778_v62 = vsel %vm5776_vm10, %v8328_v35, %v5777_v21  ;;  %v5845_v45 = vadd.s32 536870912, %v5844_v1  ;;  %v5999_v11 = vand.u32 8388607, %v5992_v6  ;;  %v6006_v2 = vand.u32 31, %v6004_v38 }
 0x5da   : > { %v5782_v59 = vsel %vm5775_vm7, %v5778_v62, %v5781_v36  ;;  %v5967_v28 = vor.u32 4788187, %v5966_v14  ;;  %v5970_v50 = vcvt.s32.f32 %v5963_v53  ;;  %v5981_v63 = vadd.s32 3, %v5977_v49 }
 0x5db   : > { %v5783_v24 = vsel %vm5772_vm4, nan, %v5782_v59  ;;  %v13011_v37 = vshrl.u32 %v5845_v45, 30  ;;  %v6007_v44 = vsub.s32 32, %v6006_v2  ;;  %v13016_v48 = vadd.f32 %v8574_v39, %v12552_v43 }
 0x5dc   : > { %v7415_v18 = vsel %vm7363_vm14, %v12216_v15, %v5783_v24  ;;  %v5968_v51 = vand.u32 2147483647, %v5967_v28  ;;  %v6000_v5 = vor.u32 8388608, %v5999_v11  ;;  %v6009_v34 = vshll.u32 %v8400_v19, %v6006_v2 }
 0x5dd   : > { %7480 = vst [vmem:[%s8911_s28 + $0x180] sm:$0xff] %v7415_v18  ;;  %v5847_v47 = vshll.u32 %v13011_v37, 30  ;;  %v6010_v58 = vshrl.u32 %v8401_v23, %v6007_v44  ;;  %v6012_v15 = vshll.u32 %v8401_v23, %v6006_v2  ;;  %v6013_v54 = vshrl.u32 %v14055_v10, %v6007_v44 }
 0x5de   : > { %v5971_v35 = vmul.f32 %v5970_v50, %v5968_v51  ;;  %v6016_v9 = vshrl.u32 %v8403_v27, %v6007_v44  ;;  %v6015_v0 = vshll.u32 %v14055_v10, %v6006_v2  ;;  %v6019_v21 = vshrl.u32 %v8404_v29, %v6007_v44 }
 0x5df   : > { %v13024_v20 = vsub.s32 %v5844_v1, %v5847_v47  ;;  %v13028_v17 = vand.u32 3, %v5981_v63  ;;  %v6005_v36 = vshrl.u32 %v6004_v38, 5  ;;  %v6011_v53 = vor.u32 %v6010_v58, %v6009_v34 }
 0x5e0   : > { %v5972_v61 = vxor.u32 2147483648, %v5971_v35  ;;  %v6018_v14 = vshll.u32 %v8403_v27, %v6006_v2  ;;  %v6014_v59 = vor.u32 %v6013_v54, %v6012_v15  ;;  %v6017_v28 = vor.u32 %v6016_v9, %v6015_v0 }
 0x5e1   : > { %v5850_v49 = vsub.s32 0, %v13024_v20  ;;  %vm5786_vm8 = vcmp.lt.s32.totalorder %v12785_v31, 0  ;;  %v6021_v11 = vshll.u32 %v8404_v29, %v6006_v2  ;;  %v6022_v38 = vshrl.u32 %v8405_v52, %v6007_v44 }
 0x5e2   : > { %v5973_v62 = vsel %vm5890_vm2, %v5972_v61, %v5971_v35  ;;  %v6020_v45 = vor.u32 %v6019_v21, %v6018_v14  ;;  %v13041_v18 = vshll.u32 %v6000_v5, 8  ;;  %v6099_v51 = vand.u32 2139095040, %v13016_v48 }
 0x5e3   : > { %v5976_v1 = vsel %vm12983_vm0, %v12751_v22, %v5973_v62  ;;  %v7793_v24 = vmin.u32 %v5850_v49, %v13024_v20  ;;  %v5870_v50 = vsub.s32 4, %v13011_v37  ;;  %v6008_v55 = vshrl.u32 %v8400_v19, %v6007_v44 }
 0x5e4   : > { %8331 = vcosq.f32 %v5976_v1  ;;  %v6023_v63 = vor.u32 %v6022_v38, %v6021_v11  ;;  %vm6024_vm15 = vcmp.lt.s32.totalorder %v6005_v36, 1  ;;  %vm6025_vm4 = vcmp.lt.s32.totalorder %v6005_v36, 2 }
 0x5e5   : > { %8333 = vsinq.f32 %v5976_v1  ;;  %v5852_v35 = vclz %v7793_v24  ;;  %vm6027_vm2 = vcmp.lt.s32.totalorder %v6005_v36, 4  ;;  %vm6026_vm13 = vcmp.lt.s32.totalorder %v6005_v36, 3  ;;  %v13066_v24 = vpop.f32.mrb[29].mxu0 }
 0x5e6   : > { %v6029_v2 = vsel %vm6027_vm2, %v6017_v28, 2102212464  ;;  %v6032_v47 = vsel %vm6024_vm15, %v6011_v53, %v6014_v59  ;;  %v6033_v34 = vsel %vm6027_vm2, %v6020_v45, 920167782  ;;  %vm13048_vm10 = vcmp.le.f32.partialorder %v5784_v13, 0.7853982 }
 0x5e7   : > { %v7794_v58 = vadd.s32 4294967294, %v5852_v35  ;;  %v6028_v15 = vsel %vm6024_vm15, %v6008_v55, %v6011_v53  ;;  %v6034_v54 = vsel %vm6026_vm13, %v6017_v28, %v6033_v34  ;;  %v6036_v9 = vsel %vm6024_vm15, %v6014_v59, %v6017_v28 }
 0x5e8   : > { %vm5984_vm0 = vcmp.eq.s32.totalorder %v13028_v17, 0  ;;  %v6030_v44 = vsel %vm6026_vm13, %v6014_v59, %v6029_v2  ;;  %v6035_v61 = vsel %vm6025_vm4, %v6032_v47, %v6034_v54  ;;  %v6037_v0 = vsel %vm6027_vm2, %v6023_v63, 1326507024 }
 0x5e9   : > { %v6100_v21 = vshrl.u32 %v6099_v51, 23  ;;  %vm7795_vm1 = vcmp.lt.s32.totalorder %v7794_v58, 0  ;;  %v6038_v14 = vsel %vm6026_vm13, %v6020_v45, %v6037_v0  ;;  %v6096_v53 = vand.u32 2147483647, %v13016_v48 }
 0x5ea   : > { %v13055_v62 = vmul.u32.u64.low %v13041_v18, %v6035_v61  ;;  %v13056_v49 = vmul.u32.u64.high %v13041_v18, %v6035_v61, %v13055_v62  ;;  %v5855_v13 = vsel %vm7795_vm1, 0, %v7794_v58  ;;  %v6039_v1 = vsel %vm6025_vm4, %v6036_v9, %v6038_v14 }
 0x5eb   : > { %v7804_v28 = vadd.s32 4294967169, %v6100_v21  ;;  %v5840_v59 = vadd.s32 %v12973_v46, %v12971_v60  ;;  %v5856_v11 = vsub.s32 32, %v5855_v13  ;;  %v5860_v38 = vsub.s32 4294967266, %v5855_v13 }
 0x5ec   : > { %v5871_v45 = vsel %vm5786_vm8, %v5870_v50, %v13011_v37  ;;  %v6031_v51 = vsel %vm6025_vm4, %v6028_v15, %v6030_v44  ;;  %v13070_v55 = vmul.u32.u64.low %v13041_v18, %v6039_v1  ;;  %v13071_v63 = vmul.u32.u64.high %v13041_v18, %v6039_v1, %v13070_v55 }
 0x5ed   : > { %v6106_v35 = vadd.s32 1, %v7804_v28  ;;  %v5857_v47 = vshll.u32 %v13024_v20, %v5855_v13  ;;  %v5858_v34 = vshrl.u32 %v5840_v59, %v5856_v11  ;;  %v5861_v60 = vadd.s32 127, %v5860_v38 }
 0x5ee   : > { %v8332_v2 = vpop.eup %8331  ;;  %v6050_v46 = vadd.s32 1, %v13056_v49  ;;  %vm5987_vm11 = vcmp.eq.s32.totalorder %v13028_v17, 2  ;;  %v6103_v36 = vand.u32 8388607, %v6096_v53  ;;  %v5873_v20 = vsel %vm13048_vm10, 0, %v5871_v45 }
 0x5ef   : > { %v8334_v58 = vpop.eup %8333  ;;  %v5988_v37 = vxor.u32 2147483648, %v8332_v2  ;;  %vm6107_vm12 = vcmp.gt.s32.totalorder %v6106_v35, 0  ;;  %v5859_v15 = vor.u32 %v5858_v34, %v5857_v47  ;;  %v5862_v54 = vshll.u32 %v5861_v60, 23 }
 0x5f0   : > { %v5985_v50 = vxor.u32 2147483648, %v8334_v58  ;;  %v6108_v9 = vsel %vm6107_vm12, %v6106_v35, 0  ;;  %v6047_v61 = vmul.u32 %v13041_v18, %v6031_v51  ;;  %vm6049_vm7 = vc.u32 %v13071_v63, %v13055_v62 }
 0x5f1   : > { %v5989_v44 = vsel %vm5987_vm11, %v5988_v37, %v8334_v58  ;;  %vm5983_vm15 = vcmp.lt.s32.totalorder %v13028_v17, 2  ;;  %v5863_v21 = vor.u32 4788187, %v5862_v54  ;;  %v6051_v14 = vsel %vm6049_vm7, %v6050_v46, %v13056_v49 }
 0x5f2   : > { %v5986_v0 = vsel %vm5984_vm0, %v8332_v2, %v5985_v50  ;;  %vm5980_vm4 = vweird.f32 %v12751_v22  ;;  %v6052_v1 = vadd.s32 %v6051_v14, %v6047_v61  ;;  %v6110_v28 = vand.u32 31, %v6108_v9 }
 0x5f3   : > { %v5990_v13 = vsel %vm5983_vm15, %v5986_v0, %v5989_v44  ;;  %v5864_v11 = vand.u32 2147483647, %v5863_v21  ;;  %v5866_v18 = vcvt.s32.f32 %v5859_v15  ;;  %v5877_v38 = vadd.s32 3, %v5873_v20 }
 0x5f4   : > { %v5991_v59 = vsel %vm5980_vm4, nan, %v5990_v13  ;;  %v6053_v51 = vadd.s32 536870912, %v6052_v1  ;;  %v6104_v17 = vor.u32 8388608, %v6103_v36  ;;  %v6111_v55 = vsub.s32 32, %v6110_v28 }
 0x5f5   : > { %v7417_v45 = vsel %vm7365_vm5, %v12282_v57, %v5991_v59  ;;  %v5867_v35 = vmul.f32 %v5866_v18, %v5864_v11  ;;  %v6109_v2 = vshrl.u32 %v6108_v9, 5  ;;  %v6113_v49 = vshll.u32 %v8400_v19, %v6110_v28 }
 0x5f6   : > { %7482 = vst [vmem:[%s8911_s28 + $0x190] sm:$0xff] %v7417_v45  ;;  %v6116_v22 = vshll.u32 %v8401_v23, %v6110_v28  ;;  %vm5994_vm2 = vcmp.lt.s32.totalorder %v12845_v26, 0  ;;  %v6054_v47 = vshrl.u32 %v6053_v51, 30  ;;  %v6114_v34 = vshrl.u32 %v8401_v23, %v6111_v55 }
 0x5f7   : > { %v6117_v60 = vshrl.u32 %v14055_v10, %v6111_v55  ;;  %v6119_v46 = vshll.u32 %v14055_v10, %v6110_v28  ;;  %v5868_v57 = vxor.u32 2147483648, %v5867_v35  ;;  %v6120_v58 = vshrl.u32 %v8403_v27, %v6111_v55 }
 0x5f8   : > { %v6122_v37 = vshll.u32 %v8403_v27, %v6110_v28  ;;  %v6123_v36 = vshrl.u32 %v8404_v29, %v6111_v55  ;;  %v6055_v50 = vshll.u32 %v6054_v47, 30  ;;  %v6115_v15 = vor.u32 %v6114_v34, %v6113_v49 }
 0x5f9   : > { %v6118_v54 = vor.u32 %v6117_v60, %v6116_v22  ;;  %v6125_v9 = vshll.u32 %v8404_v29, %v6110_v28  ;;  %v5869_v44 = vsel %vm5786_vm8, %v5868_v57, %v5867_v35  ;;  %v6121_v20 = vor.u32 %v6120_v58, %v6119_v46 }
 0x5fa   : > { %v6124_v61 = vor.u32 %v6123_v36, %v6122_v37  ;;  %v6126_v0 = vshrl.u32 %v8405_v52, %v6111_v55  ;;  %v5872_v21 = vsel %vm13048_vm10, %v12785_v31, %v5869_v44  ;;  %v13108_v14 = vand.u32 3, %v5877_v38 }
 0x5fb   : > { %v13110_v13 = vsub.s32 %v6052_v1, %v6055_v50  ;;  %v13114_v59 = vadd.f32 %v8578_v40, %v12619_v3  ;;  %8335 = vcosq.f32 %v5872_v21  ;;  %v6078_v28 = vsub.s32 4, %v6054_v47 }
 0x5fc   : > { %v6127_v11 = vor.u32 %v6126_v0, %v6125_v9  ;;  %v6144_v18 = vshll.u32 %v6104_v17, 8  ;;  %8337 = vsinq.f32 %v5872_v21  ;;  %vm6128_vm8 = vcmp.lt.s32.totalorder %v6109_v2, 1 }
 0x5fd   : > { %v6058_v45 = vsub.s32 0, %v13110_v13  ;;  %vm6131_vm13 = vcmp.lt.s32.totalorder %v6109_v2, 4  ;;  %vm6130_vm0 = vcmp.lt.s32.totalorder %v6109_v2, 3  ;;  %v6136_v38 = vsel %vm6128_vm8, %v6115_v15, %v6118_v54 }
 0x5fe   : > { %v6133_v5 = vsel %vm6131_vm13, %v6121_v20, 2102212464  ;;  %v6137_v51 = vsel %vm6131_vm13, %v6124_v61, 920167782  ;;  %v6112_v35 = vshrl.u32 %v8400_v19, %v6111_v55  ;;  %vm6129_vm10 = vcmp.lt.s32.totalorder %v6109_v2, 2 }
 0x5ff   : > { %v7801_v1 = vmin.u32 %v6058_v45, %v13110_v13  ;;  %v6138_v49 = vsel %vm6130_vm0, %v6121_v20, %v6137_v51  ;;  %v6079_v17 = vsel %vm5994_vm2, %v6078_v28, %v6054_v47  ;;  %v6140_v34 = vsel %vm6128_vm8, %v6118_v54, %v6121_v20 }
 0x600   : > { %v6139_v22 = vsel %vm6129_vm10, %v6136_v38, %v6138_v49  ;;  %v6141_v60 = vsel %vm6131_vm13, %v6127_v11, 1326507024  ;;  %vm13127_vm1 = vcmp.le.f32.partialorder %v5992_v6, 0.7853982  ;;  %v6132_v55 = vsel %vm6128_vm8, %v6112_v35, %v6115_v15 }
 0x601   : > { %v6060_v57 = vclz %v7801_v1  ;;  %v6134_v58 = vsel %vm6130_vm0, %v6118_v54, %v6133_v5  ;;  %vm5879_vm11 = vcmp.lt.s32.totalorder %v13108_v14, 2  ;;  %v6142_v47 = vsel %vm6130_vm0, %v6124_v61, %v6141_v60 }
 0x602   : > { %v13135_v37 = vmul.u32.u64.low %v6144_v18, %v6139_v22  ;;  %v13136_v36 = vmul.u32.u64.high %v6144_v18, %v6139_v22, %v13135_v37  ;;  %v6307_v50 = vand.u32 2139095040, %v13114_v59  ;;  %vm5876_vm12 = vweird.f32 %v12785_v31 }
 0x603   : > { %vm5880_vm7 = vcmp.eq.s32.totalorder %v13108_v14, 0  ;;  %v7802_v6 = vadd.s32 4294967294, %v6060_v57  ;;  %v6081_v15 = vsel %vm13127_vm1, 0, %v6079_v17  ;;  %v6143_v54 = vsel %vm6129_vm10, %v6140_v34, %v6142_v47  ;;  %v13154_v17 = vpop.f32.mrb[29].mxu1 }
 0x604   : > { %v6135_v9 = vsel %vm6129_vm10, %v6132_v55, %v6134_v58  ;;  %v13146_v44 = vmul.u32.u64.low %v6144_v18, %v6143_v54  ;;  %v13147_v20 = vmul.u32.u64.high %v6144_v18, %v6143_v54, %v13146_v44  ;;  %v6308_v61 = vshrl.u32 %v6307_v50, 23 }
 0x605   : > { %vm5883_vm15 = vcmp.eq.s32.totalorder %v13108_v14, 2  ;;  %v6048_v0 = vadd.s32 %v13055_v62, %v13071_v63  ;;  %vm7803_vm4 = vcmp.lt.s32.totalorder %v7802_v6, 0  ;;  %v6304_v21 = vand.u32 2147483647, %v13114_v59  ;;  %v8336_v28 = vpop.eup %8335 }
 0x606   : > { %v6063_v11 = vsel %vm7803_vm4, 0, %v7802_v6  ;;  %v6085_v45 = vadd.s32 3, %v6081_v15  ;;  %v6154_v5 = vadd.s32 1, %v13136_v36  ;;  %v7812_v38 = vadd.s32 4294967169, %v6308_v61  ;;  %v8338_v2 = vpop.eup %8337 }
 0x607   : > { %v5884_v51 = vxor.u32 2147483648, %v8336_v28  ;;  %v6064_v1 = vsub.s32 32, %v6063_v11  ;;  %v6068_v35 = vsub.s32 4294967266, %v6063_v11  ;;  %v6151_v49 = vmul.u32 %v6144_v18, %v6135_v9 }
 0x608   : > { %v5881_v22 = vxor.u32 2147483648, %v8338_v2  ;;  %v6065_v34 = vshll.u32 %v13110_v13, %v6063_v11  ;;  %vm6153_vm8 = vc.u32 %v13147_v20, %v13135_v37  ;;  %v6314_v62 = vadd.s32 1, %v7812_v38 }
 0x609   : > { %v5885_v63 = vsel %vm5883_vm15, %v5884_v51, %v8338_v2  ;;  %v6066_v60 = vshrl.u32 %v6048_v0, %v6064_v1  ;;  %v6069_v57 = vadd.s32 127, %v6068_v35  ;;  %v6155_v55 = vsel %vm6153_vm8, %v6154_v5, %v13136_v36 }
 0x60a   : > { %v5882_v18 = vsel %vm5880_vm7, %v8336_v28, %v5881_v22  ;;  %v6156_v58 = vadd.s32 %v6155_v55, %v6151_v49  ;;  %v6311_v47 = vand.u32 8388607, %v6304_v21  ;;  %vm6315_vm13 = vcmp.gt.s32.totalorder %v6314_v62, 0 }
 0x60b   : > { %v5886_v13 = vsel %vm5879_vm11, %v5882_v18, %v5885_v63  ;;  %v6067_v50 = vor.u32 %v6066_v60, %v6065_v34  ;;  %v6070_v6 = vshll.u32 %v6069_v57, 23  ;;  %v6316_v15 = vsel %vm6315_vm13, %v6314_v62, 0 }
 0x60c   : > { %v5887_v54 = vsel %vm5876_vm12, nan, %v5886_v13  ;;  %v6157_v9 = vadd.s32 536870912, %v6156_v58  ;;  %v6318_v44 = vand.u32 31, %v6316_v15  ;;  %v13172_v36 = vadd.f32 %v8582_v41, %v12720_v32 }
 0x60d   : > { %v7416_v61 = vsel %vm7364_vm3, %v12366_v33, %v5887_v54  ;;  %v6071_v0 = vor.u32 4788187, %v6070_v6  ;;  %v6074_v5 = vcvt.s32.f32 %v6067_v50  ;;  %v13180_v38 = vand.u32 3, %v6085_v45 }
 0x60e   : > { %7481 = vst [vmem:[%s8911_s28 + $0x188] sm:$0xff] %v7416_v61  ;;  %v13178_v14 = vshrl.u32 %v6157_v9, 30  ;;  %v6319_v28 = vsub.s32 32, %v6318_v44  ;;  %v6312_v31 = vor.u32 8388608, %v6311_v47  ;;  %v6321_v51 = vshll.u32 %v8400_v19, %v6318_v44 }
 0x60f   : > { %v6072_v11 = vand.u32 2147483647, %v6071_v0  ;;  %v6203_v35 = vand.u32 2139095040, %v13172_v36  ;;  %v6324_v45 = vshll.u32 %v8401_v23, %v6318_v44  ;;  %v6327_v63 = vshll.u32 %v14055_v10, %v6318_v44 }
 0x610   : > { %v6159_v2 = vshll.u32 %v13178_v14, 30  ;;  %v6322_v1 = vshrl.u32 %v8401_v23, %v6319_v28  ;;  %v6325_v33 = vshrl.u32 %v14055_v10, %v6319_v28  ;;  %v6328_v22 = vshrl.u32 %v8403_v27, %v6319_v28 }
 0x611   : > { %v6075_v49 = vmul.f32 %v6074_v5, %v6072_v11  ;;  %v6331_v34 = vshrl.u32 %v8404_v29, %v6319_v28  ;;  %v6334_v60 = vshrl.u32 %v8405_v52, %v6319_v28  ;;  %v6317_v55 = vshrl.u32 %v6316_v15, 5 }
 0x612   : > { %v13189_v62 = vsub.s32 %v6156_v58, %v6159_v2  ;;  %v6330_v18 = vshll.u32 %v8403_v27, %v6318_v44  ;;  %v6333_v47 = vshll.u32 %v8404_v29, %v6318_v44  ;;  %v6323_v50 = vor.u32 %v6322_v1, %v6321_v51 }
 0x613   : > { %v6076_v57 = vxor.u32 2147483648, %v6075_v49  ;;  %v6326_v6 = vor.u32 %v6325_v33, %v6324_v45  ;;  %v6329_v54 = vor.u32 %v6328_v22, %v6327_v63  ;;  %v6152_v9 = vadd.s32 %v13135_v37, %v13147_v20 }
 0x614   : > { %v6162_v13 = vsub.s32 0, %v13189_v62  ;;  %v6332_v61 = vor.u32 %v6331_v34, %v6330_v18  ;;  %v6352_v0 = vshll.u32 %v6312_v31, 8  ;;  %v6335_v44 = vor.u32 %v6334_v60, %v6333_v47 }
 0x615   : > { %v6077_v58 = vsel %vm5994_vm2, %v6076_v57, %v6075_v49  ;;  %v6204_v5 = vshrl.u32 %v6203_v35, 23  ;;  %v6320_v2 = vshrl.u32 %v8400_v19, %v6319_v28  ;;  %vm6336_vm0 = vcmp.lt.s32.totalorder %v6317_v55, 1 }
 0x616   : > { %v6080_v15 = vsel %vm13127_vm1, %v12845_v26, %v6077_v58  ;;  %v7805_v11 = vmin.u32 %v6162_v13, %v13189_v62  ;;  %vm6339_vm10 = vcmp.lt.s32.totalorder %v6317_v55, 4  ;;  %v6344_v49 = vsel %vm6336_vm0, %v6323_v50, %v6326_v6 }
 0x617   : > { %8339 = vcosq.f32 %v6080_v15  ;;  %v6341_v1 = vsel %vm6339_vm10, %v6329_v54, 2102212464  ;;  %vm6337_vm2 = vcmp.lt.s32.totalorder %v6317_v55, 2  ;;  %vm6338_vm11 = vcmp.lt.s32.totalorder %v6317_v55, 3 }
 0x618   : > { %8341 = vsinq.f32 %v6080_v15  ;;  %v6164_v51 = vclz %v7805_v11  ;;  %v6345_v37 = vsel %vm6339_vm10, %v6332_v61, 920167782  ;;  %v6348_v20 = vsel %vm6336_vm0, %v6326_v6, %v6329_v54 }
 0x619   : > { %v6340_v46 = vsel %vm6336_vm0, %v6320_v2, %v6323_v50  ;;  %v6346_v33 = vsel %vm6338_vm11, %v6329_v54, %v6345_v37  ;;  %v6349_v22 = vsel %vm6339_vm10, %v6335_v44, 1326507024  ;;  %v6342_v34 = vsel %vm6338_vm11, %v6326_v6, %v6341_v1 }
 0x61a   : > { %v7806_v31 = vadd.s32 4294967294, %v6164_v51  ;;  %v6347_v35 = vsel %vm6337_vm2, %v6344_v49, %v6346_v33  ;;  %v6350_v45 = vsel %vm6338_vm11, %v6332_v61, %v6349_v22  ;;  %v7808_v63 = vadd.s32 4294967169, %v6204_v5  ;;  %v13217_v61 = vpop.f32.mrb[30].mxu0 }
 0x61b   : > { %v6351_v28 = vsel %vm6337_vm2, %v6348_v20, %v6350_v45  ;;  %v13208_v60 = vmul.u32.u64.low %v6352_v0, %v6347_v35  ;;  %v13209_v57 = vmul.u32.u64.high %v6352_v0, %v6347_v35, %v13208_v60  ;;  %v6182_v47 = vsub.s32 4, %v13178_v14 }
 0x61c   : > { %vm7807_vm1 = vcmp.lt.s32.totalorder %v7806_v31, 0  ;;  %v13213_v13 = vmul.u32.u64.low %v6352_v0, %v6351_v28  ;;  %v13214_v58 = vmul.u32.u64.high %v6352_v0, %v6351_v28, %v13213_v13  ;;  %v6343_v6 = vsel %vm6337_vm2, %v6340_v46, %v6342_v34 }
 0x61d   : > { %v6167_v18 = vsel %vm7807_vm1, 0, %v7806_v31  ;;  %v6210_v15 = vadd.s32 1, %v7808_v63  ;;  %vm6088_vm12 = vcmp.eq.s32.totalorder %v13180_v38, 0  ;;  %vm13222_vm7 = vcmp.le.f32.partialorder %v6096_v53, 0.7853982 }
 0x61e   : > { %v6168_v50 = vsub.s32 32, %v6167_v18  ;;  %v6172_v54 = vsub.s32 4294967266, %v6167_v18  ;;  %vm6098_vm15 = vcmp.lt.s32.totalorder %v13016_v48, 0  ;;  %v6169_v44 = vshll.u32 %v13189_v62, %v6167_v18 }
 0x61f   : > { %v6362_v55 = vadd.s32 1, %v13209_v57  ;;  %vm6211_vm4 = vcmp.gt.s32.totalorder %v6210_v15, 0  ;;  %v6183_v1 = vsel %vm6098_vm15, %v6182_v47, %v13178_v14  ;;  %v6359_v49 = vmul.u32 %v6352_v0, %v6343_v6 }
 0x620   : > { %v6170_v5 = vshrl.u32 %v6152_v9, %v6168_v50  ;;  %v6173_v2 = vadd.s32 127, %v6172_v54  ;;  %vm6361_vm8 = vc.u32 %v13214_v58, %v13208_v60  ;;  %v6212_v53 = vsel %vm6211_vm4, %v6210_v15, 0 }
 0x621   : > { %v8340_v51 = vpop.eup %8339  ;;  %v6363_v62 = vsel %vm6361_vm8, %v6362_v55, %v13209_v57  ;;  %vm6091_vm13 = vcmp.eq.s32.totalorder %v13180_v38, 2  ;;  %v6214_v22 = vand.u32 31, %v6212_v53  ;;  %v6185_v14 = vsel %vm13222_vm7, 0, %v6183_v1 }
 0x622   : > { %v8342_v37 = vpop.eup %8341  ;;  %v6092_v20 = vxor.u32 2147483648, %v8340_v51  ;;  %v6171_v31 = vor.u32 %v6170_v5, %v6169_v44  ;;  %v6174_v46 = vshll.u32 %v6173_v2, 23  ;;  %v6364_v33 = vadd.s32 %v6363_v62, %v6359_v49 }
 0x623   : > { %v6089_v9 = vxor.u32 2147483648, %v8342_v37  ;;  %v6200_v0 = vand.u32 2147483647, %v13172_v36  ;;  %vm6087_vm0 = vcmp.lt.s32.totalorder %v13180_v38, 2  ;;  %v6215_v28 = vsub.s32 32, %v6214_v22 }
 0x624   : > { %v6093_v34 = vsel %vm6091_vm13, %v6092_v20, %v8342_v37  ;;  %v6175_v35 = vor.u32 4788187, %v6174_v46  ;;  %v6365_v63 = vadd.s32 536870912, %v6364_v33  ;;  %vm6084_vm10 = vweird.f32 %v12845_v26 }
 0x625   : > { %v6090_v45 = vsel %vm6088_vm12, %v8340_v51, %v6089_v9  ;;  %v6178_v47 = vcvt.s32.f32 %v6171_v31  ;;  %v6189_v50 = vadd.s32 3, %v6185_v14  ;;  %v6218_v6 = vshrl.u32 %v8401_v23, %v6215_v28 }
 0x626   : > { %v6094_v57 = vsel %vm6087_vm0, %v6090_v45, %v6093_v34  ;;  %v6176_v18 = vand.u32 2147483647, %v6175_v35  ;;  %v6366_v54 = vshrl.u32 %v6365_v63, 30  ;;  %v6207_v38 = vand.u32 8388607, %v6200_v0 }
 0x627   : > { %v6095_v13 = vsel %vm6084_vm10, nan, %v6094_v57  ;;  %v6221_v5 = vshrl.u32 %v14055_v10, %v6215_v28  ;;  %v6213_v2 = vshrl.u32 %v6212_v53, 5  ;;  %v6217_v55 = vshll.u32 %v8400_v19, %v6214_v22 }
 0x628   : > { %v7418_v15 = vsel %vm7366_vm6, %v12448_v7, %v6095_v13  ;;  %v6179_v44 = vmul.f32 %v6178_v47, %v6176_v18  ;;  %v6367_v26 = vshll.u32 %v6366_v54, 30  ;;  %v6224_v51 = vshrl.u32 %v8403_v27, %v6215_v28 }
 0x629   : > { %7483 = vst.msk [vmem:[%s8911_s28 + $0x198] sm:$0xff] %vm7434_vm9, %v7418_v15  ;;  %v6220_v49 = vshll.u32 %v8401_v23, %v6214_v22  ;;  %v6226_v37 = vshll.u32 %v8403_v27, %v6214_v22  ;;  %v6227_v7 = vshrl.u32 %v8404_v29, %v6215_v28  ;;  %v6219_v31 = vor.u32 %v6218_v6, %v6217_v55 }
 0x62a   : > { %v6180_v1 = vxor.u32 2147483648, %v6179_v44  ;;  %v13257_v20 = vsub.s32 %v6364_v33, %v6367_v26  ;;  %v6223_v46 = vshll.u32 %v14055_v10, %v6214_v22  ;;  %v6230_v62 = vshrl.u32 %v8405_v52, %v6215_v28 }
 0x62b   : > { %vm6306_vm2 = vcmp.lt.s32.totalorder %v13114_v59, 0  ;;  %v6222_v9 = vor.u32 %v6221_v5, %v6220_v49  ;;  %v6228_v34 = vor.u32 %v6227_v7, %v6226_v37  ;;  %v6229_v35 = vshll.u32 %v8404_v29, %v6214_v22 }
 0x62c   : > { %v6181_v53 = vsel %vm6098_vm15, %v6180_v1, %v6179_v44  ;;  %v13268_v33 = vand.u32 3, %v6189_v50  ;;  %v6370_v45 = vsub.s32 0, %v13257_v20  ;;  %v6225_v63 = vor.u32 %v6224_v51, %v6223_v46 }
 0x62d   : > { %v6184_v14 = vsel %vm13222_vm7, %v13016_v48, %v6181_v53  ;;  %v6208_v57 = vor.u32 8388608, %v6207_v38  ;;  %v6231_v18 = vor.u32 %v6230_v62, %v6229_v35  ;;  %v13273_v47 = vadd.f32 %v8624_v4, %v12805_v8 }
 0x62e   : > { %8343 = vcosq.f32 %v6184_v14  ;;  %vm13277_vm11 = vcmp.le.f32.partialorder %v6304_v21, 0.7853982  ;;  %v7813_v11 = vmin.u32 %v6370_v45, %v13257_v20  ;;  %vm6232_vm1 = vcmp.lt.s32.totalorder %v6213_v2, 1 }
 0x62f   : > { %8345 = vsinq.f32 %v6184_v14  ;;  %vm6235_vm12 = vcmp.lt.s32.totalorder %v6213_v2, 4  ;;  %v6390_v13 = vsub.s32 4, %v6366_v54  ;;  %v6216_v50 = vshrl.u32 %v8400_v19, %v6215_v28 }
 0x630   : > { %v6240_v6 = vsel %vm6232_vm1, %v6219_v31, %v6222_v9  ;;  %v6241_v15 = vsel %vm6235_vm12, %v6228_v34, 920167782  ;;  %v6372_v44 = vclz %v7813_v11  ;;  %vm6234_vm7 = vcmp.lt.s32.totalorder %v6213_v2, 3 }
 0x631   : > { %v6237_v38 = vsel %vm6235_vm12, %v6225_v63, 2102212464  ;;  %v6244_v5 = vsel %vm6232_vm1, %v6222_v9, %v6225_v63  ;;  %vm6233_vm15 = vcmp.lt.s32.totalorder %v6213_v2, 2  ;;  %v6242_v26 = vsel %vm6234_vm7, %v6225_v63, %v6241_v15 }
 0x632   : > { %v6245_v55 = vsel %vm6235_vm12, %v6231_v18, 1326507024  ;;  %v6248_v21 = vshll.u32 %v6208_v57, 8  ;;  %v7814_v51 = vadd.s32 4294967294, %v6372_v44  ;;  %v6236_v1 = vsel %vm6232_vm1, %v6216_v50, %v6219_v31 }
 0x633   : > { %v6243_v49 = vsel %vm6233_vm15, %v6240_v6, %v6242_v26  ;;  %v6246_v37 = vsel %vm6234_vm7, %v6228_v34, %v6245_v55  ;;  %vm6191_vm4 = vcmp.lt.s32.totalorder %v13268_v33, 2  ;;  %v6238_v7 = vsel %vm6234_vm7, %v6222_v9, %v6237_v38 }
 0x634   : > { %v6247_v28 = vsel %vm6233_vm15, %v6244_v5, %v6246_v37  ;;  %v13286_v46 = vmul.u32.u64.low %v6248_v21, %v6243_v49  ;;  %v13287_v62 = vmul.u32.u64.high %v6248_v21, %v6243_v49, %v13286_v46  ;;  %vm7815_vm8 = vcmp.lt.s32.totalorder %v7814_v51, 0 }
 0x635   : > { %v6391_v53 = vsel %vm6306_vm2, %v6390_v13, %v6366_v54  ;;  %v13292_v35 = vmul.u32.u64.low %v6248_v21, %v6247_v28  ;;  %v13293_v14 = vmul.u32.u64.high %v6248_v21, %v6247_v28, %v13292_v35  ;;  %vm6192_vm13 = vcmp.eq.s32.totalorder %v13268_v33, 0 }
 0x636   : > { %vm6195_vm0 = vcmp.eq.s32.totalorder %v13268_v33, 2  ;;  %v6375_v31 = vsel %vm7815_vm8, 0, %v7814_v51  ;;  %v6411_v9 = vand.u32 2139095040, %v13273_v47  ;;  %v6360_v34 = vadd.s32 %v13208_v60, %v13214_v58  ;;  %v13306_v60 = vpop.f32.mrb[30].mxu1 }
 0x637   : > { %v6376_v45 = vsub.s32 32, %v6375_v31  ;;  %v6380_v63 = vsub.s32 4294967266, %v6375_v31  ;;  %v6239_v57 = vsel %vm6233_vm15, %v6236_v1, %v6238_v7  ;;  %v6393_v54 = vsel %vm13277_vm11, 0, %v6391_v53 }
 0x638   : > { %v8344_v18 = vpop.eup %8343  ;;  %v6258_v11 = vadd.s32 1, %v13287_v62  ;;  %v6408_v13 = vand.u32 2147483647, %v13273_v47  ;;  %v6412_v50 = vshrl.u32 %v6411_v9, 23  ;;  %v6377_v44 = vshll.u32 %v13257_v20, %v6375_v31 }
 0x639   : > { %v8346_v6 = vpop.eup %8345  ;;  %v6196_v15 = vxor.u32 2147483648, %v8344_v18  ;;  %v6378_v38 = vshrl.u32 %v6360_v34, %v6376_v45  ;;  %v6381_v5 = vadd.s32 127, %v6380_v63  ;;  %v6255_v2 = vmul.u32 %v6248_v21, %v6239_v57 }
 0x63a   : > { %v6193_v58 = vxor.u32 2147483648, %v8346_v6  ;;  %vm6257_vm10 = vc.u32 %v13293_v14, %v13286_v46  ;;  %v7816_v26 = vadd.s32 4294967169, %v6412_v50  ;;  %v13317_v21 = vadd.f32 %v8574_v39, %v12930_v25 }
 0x63b   : > { %v6197_v55 = vsel %vm6195_vm0, %v6196_v15, %v8346_v6  ;;  %v6379_v51 = vor.u32 %v6378_v38, %v6377_v44  ;;  %v6382_v1 = vshll.u32 %v6381_v5, 23  ;;  %v6259_v49 = vsel %vm6257_vm10, %v6258_v11, %v13287_v62 }
 0x63c   : > { %v6194_v20 = vsel %vm6192_vm13, %v8344_v18, %v6193_v58  ;;  %v6260_v37 = vadd.s32 %v6259_v49, %v6255_v2  ;;  %v6418_v7 = vadd.s32 1, %v7816_v26  ;;  %vm6188_vm1 = vweird.f32 %v13016_v48 }
 0x63d   : > { %v6198_v28 = vsel %vm6191_vm4, %v6194_v20, %v6197_v55  ;;  %v6383_v53 = vor.u32 4788187, %v6382_v1  ;;  %v6397_v35 = vadd.s32 3, %v6393_v54  ;;  %v6415_v62 = vand.u32 8388607, %v6408_v13 }
 0x63e   : > { %v6199_v31 = vsel %vm6188_vm1, nan, %v6198_v28  ;;  %v6261_v9 = vadd.s32 536870912, %v6260_v37  ;;  %vm6419_vm12 = vcmp.gt.s32.totalorder %v6418_v7, 0  ;;  %v6386_v63 = vcvt.s32.f32 %v6379_v51 }
 0x63f   : > { %v7419_v34 = vsel %vm7363_vm14, %v12552_v43, %v6199_v31  ;;  %v6384_v45 = vand.u32 2147483647, %v6383_v53  ;;  %v6420_v57 = vsel %vm6419_vm12, %v6418_v7, 0  ;;  %v6515_v18 = vand.u32 2139095040, %v13317_v21 }
 0x640   : > { %7484 = vst [vmem:[%s8911_s28 + $0x1a0] sm:$0xff] %v7419_v34  ;;  %v13328_v48 = vshrl.u32 %v6261_v9, 30  ;;  %v6422_v33 = vand.u32 31, %v6420_v57  ;;  %v13332_v15 = vand.u32 3, %v6397_v35  ;;  %v6416_v44 = vor.u32 8388608, %v6415_v62 }
 0x641   : > { %v6387_v54 = vmul.f32 %v6386_v63, %v6384_v45  ;;  %v6512_v38 = vand.u32 2147483647, %v13317_v21  ;;  %v6421_v5 = vshrl.u32 %v6420_v57, 5  ;;  %v6516_v2 = vshrl.u32 %v6515_v18, 23 }
 0x642   : > { %v6263_v11 = vshll.u32 %v13328_v48, 30  ;;  %v6423_v50 = vsub.s32 32, %v6422_v33  ;;  %v6425_v55 = vshll.u32 %v8400_v19, %v6422_v33  ;;  %v6431_v7 = vshll.u32 %v14055_v10, %v6422_v33 }
 0x643   : > { %v6388_v6 = vxor.u32 2147483648, %v6387_v54  ;;  %v6434_v53 = vshll.u32 %v8403_v27, %v6422_v33  ;;  %v6437_v22 = vshll.u32 %v8404_v29, %v6422_v33  ;;  %v13354_v63 = vshll.u32 %v6416_v44, 8 }
 0x644   : > { %v13335_v43 = vsub.s32 %v6260_v37, %v6263_v11  ;;  %v6426_v58 = vshrl.u32 %v8401_v23, %v6423_v50  ;;  %v6429_v51 = vshrl.u32 %v14055_v10, %v6423_v50  ;;  %v6432_v1 = vshrl.u32 %v8403_v27, %v6423_v50 }
 0x645   : > { %v6389_v26 = vsel %vm6306_vm2, %v6388_v6, %v6387_v54  ;;  %v6428_v37 = vshll.u32 %v8401_v23, %v6422_v33  ;;  %v6435_v35 = vshrl.u32 %v8404_v29, %v6423_v50  ;;  %v6438_v45 = vshrl.u32 %v8405_v52, %v6423_v50 }
 0x646   : > { %v6392_v49 = vsel %vm13277_vm11, %v13114_v59, %v6389_v26  ;;  %v6266_v20 = vsub.s32 0, %v13335_v43  ;;  %v6427_v28 = vor.u32 %v6426_v58, %v6425_v55  ;;  %v6433_v62 = vor.u32 %v6432_v1, %v6431_v7 }
 0x647   : > { %8347 = vcosq.f32 %v6392_v49  ;;  %v6430_v9 = vor.u32 %v6429_v51, %v6428_v37  ;;  %v6436_v34 = vor.u32 %v6435_v35, %v6434_v53  ;;  %v6424_v18 = vshrl.u32 %v8400_v19, %v6423_v50 }
 0x648   : > { %8349 = vsinq.f32 %v6392_v49  ;;  %v7809_v31 = vmin.u32 %v6266_v20, %v13335_v43  ;;  %vm6440_vm2 = vcmp.lt.s32.totalorder %v6421_v5, 1  ;;  %v7820_v54 = vadd.s32 4294967169, %v6516_v2  ;;  %v13365_v20 = vpop.f32.mrb[31].mxu0 }
 0x649   : > { %vm6403_vm11 = vcmp.eq.s32.totalorder %v13332_v15, 2  ;;  %v6439_v11 = vor.u32 %v6438_v45, %v6437_v22  ;;  %vm6441_vm7 = vcmp.lt.s32.totalorder %v6421_v5, 2  ;;  %vm6442_vm15 = vcmp.lt.s32.totalorder %v6421_v5, 3 }
 0x64a   : > { %v6268_v57 = vclz %v7809_v31  ;;  %vm6443_vm4 = vcmp.lt.s32.totalorder %v6421_v5, 4  ;;  %vm6400_vm8 = vcmp.eq.s32.totalorder %v13332_v15, 0  ;;  %v6448_v33 = vsel %vm6440_vm2, %v6427_v28, %v6430_v9 }
 0x64b   : > { %v6445_v58 = vsel %vm6443_vm4, %v6433_v62, 2102212464  ;;  %v6449_v26 = vsel %vm6443_vm4, %v6436_v34, 920167782  ;;  %vm6202_vm13 = vcmp.lt.s32.totalorder %v13172_v36, 0  ;;  %v6444_v44 = vsel %vm6440_vm2, %v6424_v18, %v6427_v28 }
 0x64c   : > { %v7810_v6 = vadd.s32 4294967294, %v6268_v57  ;;  %v6450_v55 = vsel %vm6442_vm15, %v6433_v62, %v6449_v26  ;;  %v6452_v50 = vsel %vm6440_vm2, %v6430_v9, %v6433_v62  ;;  %v6453_v51 = vsel %vm6443_vm4, %v6439_v11, 1326507024 }
 0x64d   : > { %vm6396_vm0 = vweird.f32 %v13114_v59  ;;  %v6446_v2 = vsel %vm6442_vm15, %v6430_v9, %v6445_v58  ;;  %v6451_v1 = vsel %vm6441_vm7, %v6448_v33, %v6450_v55  ;;  %v6454_v49 = vsel %vm6442_vm15, %v6436_v34, %v6453_v51 }
 0x64e   : > { %vm7811_vm10 = vcmp.lt.s32.totalorder %v7810_v6, 0  ;;  %v6455_v7 = vsel %vm6441_vm7, %v6452_v50, %v6454_v49  ;;  %v13369_v28 = vmul.u32.u64.low %v13354_v63, %v6451_v1  ;;  %v13370_v53 = vmul.u32.u64.high %v13354_v63, %v6451_v1, %v13369_v28 }
 0x64f   : > { %v6271_v37 = vsel %vm7811_vm10, 0, %v7810_v6  ;;  %v6256_v35 = vadd.s32 %v13286_v46, %v13293_v14  ;;  %v6286_v9 = vsub.s32 4, %v13328_v48  ;;  %v6447_v34 = vsel %vm6441_vm7, %v6444_v44, %v6446_v2 }
 0x650   : > { %v6272_v31 = vsub.s32 32, %v6271_v37  ;;  %v6276_v62 = vsub.s32 4294967266, %v6271_v37  ;;  %v13378_v45 = vmul.u32.u64.low %v13354_v63, %v6455_v7  ;;  %v13379_v57 = vmul.u32.u64.high %v13354_v63, %v6455_v7, %v13378_v45 }
 0x651   : > { %v8348_v22 = vpop.eup %8347  ;;  %v6522_v18 = vadd.s32 1, %v7820_v54  ;;  %v6273_v58 = vshll.u32 %v13335_v43, %v6271_v37  ;;  %v6466_v46 = vadd.s32 1, %v13370_v53  ;;  %v13385_v14 = vand.u32 8388607, %v6512_v38 }
 0x652   : > { %v8350_v11 = vpop.eup %8349  ;;  %v6404_v6 = vxor.u32 2147483648, %v8348_v22  ;;  %v6274_v33 = vshrl.u32 %v6256_v35, %v6272_v31  ;;  %v6277_v26 = vadd.s32 127, %v6276_v62  ;;  %vm6399_vm12 = vcmp.lt.s32.totalorder %v13332_v15, 2 }
 0x653   : > { %v6401_v55 = vxor.u32 2147483648, %v8350_v11  ;;  %vm6523_vm1 = vcmp.gt.s32.totalorder %v6522_v18, 0  ;;  %v6463_v51 = vmul.u32 %v13354_v63, %v6447_v34  ;;  %vm6465_vm2 = vc.u32 %v13379_v57, %v13369_v28 }
 0x654   : > { %v6405_v5 = vsel %vm6403_vm11, %v6404_v6, %v8350_v11  ;;  %v6275_v44 = vor.u32 %v6274_v33, %v6273_v58  ;;  %v6278_v50 = vshll.u32 %v6277_v26, 23  ;;  %v6524_v54 = vsel %vm6523_vm1, %v6522_v18, 0 }
 0x655   : > { %v6402_v43 = vsel %vm6400_vm8, %v8348_v22, %v6401_v55  ;;  %v6287_v49 = vsel %vm6202_vm13, %v6286_v9, %v13328_v48  ;;  %v6467_v37 = vsel %vm6465_vm2, %v6466_v46, %v13370_v53  ;;  %vm13403_vm11 = vcmp.le.f32.partialorder %v6200_v0, 0.7853982 }
 0x656   : > { %v6406_v2 = vsel %vm6399_vm12, %v6402_v43, %v6405_v5  ;;  %v6279_v1 = vor.u32 4788187, %v6278_v50  ;;  %v6468_v63 = vadd.s32 %v6467_v37, %v6463_v51  ;;  %v6526_v35 = vand.u32 31, %v6524_v54 }
 0x657   : > { %v6407_v7 = vsel %vm6396_vm0, nan, %v6406_v2  ;;  %v6282_v22 = vcvt.s32.f32 %v6275_v44  ;;  %v6520_v48 = vor.u32 8388608, %v13385_v14  ;;  %v6289_v59 = vsel %vm13403_vm11, 0, %v6287_v49 }
 0x658   : > { %v7421_v31 = vsel %vm7365_vm5, %v12619_v3, %v6407_v7  ;;  %v6280_v62 = vand.u32 2147483647, %v6279_v1  ;;  %v6469_v53 = vadd.s32 536870912, %v6468_v63  ;;  %v6525_v9 = vshrl.u32 %v6524_v54, 5 }
 0x659   : > { %7486 = vst [vmem:[%s8911_s28 + $0x1b0] sm:$0xff] %v7421_v31  ;;  %v6527_v0 = vsub.s32 32, %v6526_v35  ;;  %v6529_v45 = vshll.u32 %v8400_v19, %v6526_v35  ;;  %v6532_v18 = vshll.u32 %v8401_v23, %v6526_v35  ;;  %v6535_v11 = vshll.u32 %v14055_v10, %v6526_v35 }
 0x65a   : > { %v6283_v34 = vmul.f32 %v6282_v22, %v6280_v62  ;;  %v6470_v6 = vshrl.u32 %v6469_v53, 30  ;;  %v6538_v33 = vshll.u32 %v8403_v27, %v6526_v35  ;;  %v6541_v50 = vshll.u32 %v8404_v29, %v6526_v35 }
 0x65b   : > { %v6530_v3 = vshrl.u32 %v8401_v23, %v6527_v0  ;;  %v6533_v58 = vshrl.u32 %v14055_v10, %v6527_v0  ;;  %v6536_v55 = vshrl.u32 %v8403_v27, %v6527_v0  ;;  %v6539_v46 = vshrl.u32 %v8404_v29, %v6527_v0 }
 0x65c   : > { %v6284_v26 = vxor.u32 2147483648, %v6283_v34  ;;  %v6542_v14 = vshrl.u32 %v8405_v52, %v6527_v0  ;;  %v6471_v5 = vshll.u32 %v6470_v6, 30  ;;  %v13426_v54 = vadd.f32 %v8578_v40, %v12968_v16 }
 0x65d   : > { %v6531_v44 = vor.u32 %v6530_v3, %v6529_v45  ;;  %v6534_v51 = vor.u32 %v6533_v58, %v6532_v18  ;;  %v6537_v2 = vor.u32 %v6536_v55, %v6535_v11  ;;  %v6540_v1 = vor.u32 %v6539_v46, %v6538_v33 }
 0x65e   : > { %v6285_v43 = vsel %vm6202_vm13, %v6284_v26, %v6283_v34  ;;  %v6293_v37 = vadd.s32 3, %v6289_v59  ;;  %v13433_v7 = vsub.s32 %v6468_v63, %v6471_v5  ;;  %v6543_v31 = vor.u32 %v6542_v14, %v6541_v50 }
 0x65f   : > { %v6288_v49 = vsel %vm13403_vm11, %v13172_v36, %v6285_v43  ;;  %vm6544_vm7 = vcmp.lt.s32.totalorder %v6525_v9, 1  ;;  %vm6545_vm15 = vcmp.lt.s32.totalorder %v6525_v9, 2  ;;  %vm6546_vm4 = vcmp.lt.s32.totalorder %v6525_v9, 3 }
 0x660   : > { %8351 = vcosq.f32 %v6288_v49  ;;  %vm13437_vm8 = vcmp.le.f32.partialorder %v6408_v13, 0.7853982  ;;  %v6474_v62 = vsub.s32 0, %v13433_v7  ;;  %v6528_v15 = vshrl.u32 %v8400_v19, %v6527_v0 }
 0x661   : > { %8353 = vsinq.f32 %v6288_v49  ;;  %vm6547_vm13 = vcmp.lt.s32.totalorder %v6525_v9, 4  ;;  %v6494_v22 = vsub.s32 4, %v6470_v6  ;;  %v6552_v59 = vsel %vm6544_vm7, %v6531_v44, %v6534_v51 }
 0x662   : > { %v6549_v63 = vsel %vm6547_vm13, %v6537_v2, 2102212464  ;;  %v6553_v53 = vsel %vm6547_vm13, %v6540_v1, 920167782  ;;  %v7817_v34 = vmin.u32 %v6474_v62, %v13433_v7  ;;  %v6556_v18 = vsel %vm6544_vm7, %v6534_v51, %v6537_v2 }
 0x663   : > { %v6554_v45 = vsel %vm6546_vm4, %v6537_v2, %v6553_v53  ;;  %v6557_v13 = vsel %vm6547_vm13, %v6543_v31, 1326507024  ;;  %v6294_v11 = vand.u32 3, %v6293_v37  ;;  %v6560_v33 = vshll.u32 %v6520_v48, 8 }
 0x664   : > { %v6555_v3 = vsel %vm6545_vm15, %v6552_v59, %v6554_v45  ;;  %v6558_v58 = vsel %vm6546_vm4, %v6540_v1, %v6557_v13  ;;  %vm6410_vm0 = vcmp.lt.s32.totalorder %v13273_v47, 0  ;;  %v6476_v0 = vclz %v7817_v34 }
 0x665   : > { %v6548_v26 = vsel %vm6544_vm7, %v6528_v15, %v6531_v44  ;;  %v6550_v55 = vsel %vm6546_vm4, %v6534_v51, %v6549_v63  ;;  %v6559_v46 = vsel %vm6545_vm15, %v6556_v18, %v6558_v58  ;;  %v6723_v50 = vand.u32 2139095040, %v13426_v54 }
 0x666   : > { %v13453_v14 = vmul.u32.u64.low %v6560_v33, %v6555_v3  ;;  %v13454_v5 = vmul.u32.u64.high %v6560_v33, %v6555_v3, %v13453_v14  ;;  %vm6292_vm10 = vweird.f32 %v13172_v36  ;;  %v7818_v43 = vadd.s32 4294967294, %v6476_v0 }
 0x667   : > { %v6495_v48 = vsel %vm6410_vm0, %v6494_v22, %v6470_v6  ;;  %v13461_v2 = vmul.u32.u64.low %v6560_v33, %v6559_v46  ;;  %v13462_v1 = vmul.u32.u64.high %v6560_v33, %v6559_v46, %v13461_v2  ;;  %vm6295_vm1 = vcmp.lt.s32.totalorder %v6294_v11, 2 }
 0x668   : > { %vm6296_vm12 = vcmp.eq.s32.totalorder %v6294_v11, 0  ;;  %v6551_v44 = vsel %vm6545_vm15, %v6548_v26, %v6550_v55  ;;  %v6724_v51 = vshrl.u32 %v6723_v50, 23  ;;  %vm6299_vm2 = vcmp.eq.s32.totalorder %v6294_v11, 2 }
 0x669   : > { %v6464_v49 = vadd.s32 %v13369_v28, %v13379_v57  ;;  %vm7819_vm11 = vcmp.lt.s32.totalorder %v7818_v43, 0  ;;  %v6720_v37 = vand.u32 2147483647, %v13426_v54  ;;  %v6497_v6 = vsel %vm13437_vm8, 0, %v6495_v48  ;;  %v13474_v57 = vpop.f32.mrb[31].mxu1 }
 0x66a   : > { %v8352_v31 = vpop.eup %8351  ;;  %v6479_v62 = vsel %vm7819_vm11, 0, %v7818_v43  ;;  %v6570_v15 = vadd.s32 1, %v13454_v5  ;;  %v7828_v22 = vadd.s32 4294967169, %v6724_v51  ;;  %v6567_v34 = vmul.u32 %v6560_v33, %v6551_v44 }
 0x66b   : > { %v8354_v63 = vpop.eup %8353  ;;  %v6300_v59 = vxor.u32 2147483648, %v8352_v31  ;;  %v6480_v9 = vsub.s32 32, %v6479_v62  ;;  %v6484_v53 = vsub.s32 4294967266, %v6479_v62  ;;  %v6481_v18 = vshll.u32 %v13433_v7, %v6479_v62 }
 0x66c   : > { %v6297_v45 = vxor.u32 2147483648, %v8354_v63  ;;  %vm6569_vm7 = vc.u32 %v13462_v1, %v13453_v14  ;;  %v6730_v28 = vadd.s32 1, %v7828_v22  ;;  %v6501_v55 = vadd.s32 3, %v6497_v6 }
 0x66d   : > { %v6301_v13 = vsel %vm6299_vm2, %v6300_v59, %v8354_v63  ;;  %v6482_v3 = vshrl.u32 %v6464_v49, %v6480_v9  ;;  %v6485_v58 = vadd.s32 127, %v6484_v53  ;;  %v6571_v0 = vsel %vm6569_vm7, %v6570_v15, %v13454_v5 }
 0x66e   : > { %v6298_v26 = vsel %vm6296_vm12, %v8352_v31, %v6297_v45  ;;  %v6572_v33 = vadd.s32 %v6571_v0, %v6567_v34  ;;  %vm6731_vm15 = vcmp.gt.s32.totalorder %v6730_v28, 0  ;;  %v6727_v44 = vand.u32 8388607, %v6720_v37 }
 0x66f   : > { %v6302_v7 = vsel %vm6295_vm1, %v6298_v26, %v6301_v13  ;;  %v6483_v46 = vor.u32 %v6482_v3, %v6481_v18  ;;  %v6486_v50 = vshll.u32 %v6485_v58, 23  ;;  %v6732_v43 = vsel %vm6731_vm15, %v6730_v28, 0 }
 0x670   : > { %v6303_v48 = vsel %vm6292_vm10, nan, %v6302_v7  ;;  %v6573_v2 = vadd.s32 536870912, %v6572_v33  ;;  %v6734_v51 = vand.u32 31, %v6732_v43  ;;  %v13488_v15 = vand.u32 3, %v6501_v55 }
 0x671   : > { %v7420_v5 = vsel %vm7364_vm3, %v12720_v32, %v6303_v48  ;;  %v6487_v49 = vor.u32 4788187, %v6486_v50  ;;  %v6490_v6 = vcvt.s32.f32 %v6483_v46  ;;  %v13492_v36 = vadd.f32 %v8582_v41, %v13066_v24 }
 0x672   : > { %7485 = vst [vmem:[%s8911_s28 + $0x1a8] sm:$0xff] %v7420_v5  ;;  %v6574_v31 = vshrl.u32 %v6573_v2, 30  ;;  %v6735_v11 = vsub.s32 32, %v6734_v51  ;;  %vm6514_vm4 = vcmp.lt.s32.totalorder %v13317_v21, 0  ;;  %v6728_v63 = vor.u32 8388608, %v6727_v44 }
 0x673   : > { %v6488_v62 = vand.u32 2147483647, %v6487_v49  ;;  %v6737_v59 = vshll.u32 %v8400_v19, %v6734_v51  ;;  %v6740_v28 = vshll.u32 %v8401_v23, %v6734_v51  ;;  %v6743_v13 = vshll.u32 %v14055_v10, %v6734_v51 }
 0x674   : > { %v6575_v22 = vshll.u32 %v6574_v31, 30  ;;  %v6738_v32 = vshrl.u32 %v8401_v23, %v6735_v11  ;;  %v6741_v53 = vshrl.u32 %v14055_v10, %v6735_v11  ;;  %v6744_v34 = vshrl.u32 %v8403_v27, %v6735_v11 }
 0x675   : > { %v6491_v9 = vmul.f32 %v6490_v6, %v6488_v62  ;;  %v6747_v45 = vshrl.u32 %v8404_v29, %v6735_v11  ;;  %v6750_v3 = vshrl.u32 %v8405_v52, %v6735_v11  ;;  %v6733_v0 = vshrl.u32 %v6732_v43, 5 }
 0x676   : > { %v13500_v18 = vsub.s32 %v6572_v33, %v6575_v22  ;;  %v6746_v26 = vshll.u32 %v8403_v27, %v6734_v51  ;;  %v6749_v55 = vshll.u32 %v8404_v29, %v6734_v51  ;;  %v6739_v46 = vor.u32 %v6738_v32, %v6737_v59 }
 0x677   : > { %v6492_v58 = vxor.u32 2147483648, %v6491_v9  ;;  %v6742_v50 = vor.u32 %v6741_v53, %v6740_v28  ;;  %v6745_v48 = vor.u32 %v6744_v34, %v6743_v13  ;;  %v6598_v2 = vsub.s32 4, %v6574_v31 }
 0x678   : > { %v6578_v7 = vsub.s32 0, %v13500_v18  ;;  %v6748_v44 = vor.u32 %v6747_v45, %v6746_v26  ;;  %v6616_v5 = vand.u32 2147483647, %v13492_v36  ;;  %vm13516_vm13 = vcmp.le.f32.partialorder %v6512_v38, 0.7853982 }
 0x679   : > { %v6493_v33 = vsel %vm6410_vm0, %v6492_v58, %v6491_v9  ;;  %v6751_v62 = vor.u32 %v6750_v3, %v6749_v55  ;;  %v6768_v6 = vshll.u32 %v6728_v63, 8  ;;  %v6736_v22 = vshrl.u32 %v8400_v19, %v6735_v11 }
 0x67a   : > { %v6496_v43 = vsel %vm13437_vm8, %v13273_v47, %v6493_v33  ;;  %v7821_v49 = vmin.u32 %v6578_v7, %v13500_v18  ;;  %vm6752_vm0 = vcmp.lt.s32.totalorder %v6733_v0, 1  ;;  %vm6755_vm10 = vcmp.lt.s32.totalorder %v6733_v0, 4 }
 0x67b   : > { %8355 = vcosq.f32 %v6496_v43  ;;  %v6757_v32 = vsel %vm6755_vm10, %v6745_v48, 2102212464  ;;  %v6760_v35 = vsel %vm6752_vm0, %v6739_v46, %v6742_v50  ;;  %v6599_v9 = vsel %vm6514_vm4, %v6598_v2, %v6574_v31 }
 0x67c   : > { %8357 = vsinq.f32 %v6496_v43  ;;  %v6580_v59 = vclz %v7821_v49  ;;  %vm6754_vm8 = vcmp.lt.s32.totalorder %v6733_v0, 3  ;;  %v6761_v38 = vsel %vm6755_vm10, %v6748_v44, 920167782 }
 0x67d   : > { %v6764_v53 = vsel %vm6752_vm0, %v6742_v50, %v6745_v48  ;;  %vm6753_vm1 = vcmp.lt.s32.totalorder %v6733_v0, 2  ;;  %v6762_v45 = vsel %vm6754_vm8, %v6745_v48, %v6761_v38  ;;  %v6765_v28 = vsel %vm6755_vm10, %v6751_v62, 1326507024 }
 0x67e   : > { %v7822_v34 = vadd.s32 4294967294, %v6580_v59  ;;  %v6756_v63 = vsel %vm6752_vm0, %v6736_v22, %v6739_v46  ;;  %v6758_v13 = vsel %vm6754_vm8, %v6742_v50, %v6757_v32  ;;  %v6763_v11 = vsel %vm6753_vm1, %v6760_v35, %v6762_v45 }
 0x67f   : > { %v6766_v3 = vsel %vm6754_vm8, %v6748_v44, %v6765_v28  ;;  %v13526_v26 = vmul.u32.u64.low %v6768_v6, %v6763_v11  ;;  %v13527_v55 = vmul.u32.u64.high %v6768_v6, %v6763_v11, %v13526_v26  ;;  %v6619_v2 = vand.u32 2139095040, %v13492_v36 }
 0x680   : > { %vm7823_vm12 = vcmp.lt.s32.totalorder %v7822_v34, 0  ;;  %v6767_v58 = vsel %vm6753_vm1, %v6764_v53, %v6766_v3  ;;  %vm6500_vm2 = vweird.f32 %v13273_v47  ;;  %v6568_v46 = vadd.s32 %v13453_v14, %v13462_v1 }
 0x681   : > { %v6583_v31 = vsel %vm7823_vm12, 0, %v7822_v34  ;;  %v13530_v7 = vmul.u32.u64.low %v6768_v6, %v6767_v58  ;;  %v13531_v33 = vmul.u32.u64.high %v6768_v6, %v6767_v58, %v13530_v7  ;;  %v6759_v44 = vsel %vm6753_vm1, %v6756_v63, %v6758_v13 }
 0x682   : > { %v6584_v50 = vsub.s32 32, %v6583_v31  ;;  %v6588_v48 = vsub.s32 4294967266, %v6583_v31  ;;  %vm6503_vm11 = vcmp.lt.s32.totalorder %v13488_v15, 2  ;;  %vm6507_vm7 = vcmp.eq.s32.totalorder %v13488_v15, 2 }
 0x683   : > { %v6601_v43 = vsel %vm13516_vm13, 0, %v6599_v9  ;;  %v6620_v49 = vshrl.u32 %v6619_v2, 23  ;;  %v6585_v62 = vshll.u32 %v13500_v18, %v6583_v31  ;;  %v6778_v32 = vadd.s32 1, %v13527_v55 }
 0x684   : > { %v6586_v22 = vshrl.u32 %v6568_v46, %v6584_v50  ;;  %v6589_v59 = vadd.s32 127, %v6588_v48  ;;  %v6775_v14 = vmul.u32 %v6768_v6, %v6759_v44  ;;  %vm6777_vm15 = vc.u32 %v13531_v33, %v13526_v26 }
 0x685   : > { %v8356_v35 = vpop.eup %8355  ;;  %v7824_v1 = vadd.s32 4294967169, %v6620_v49  ;;  %v6623_v0 = vand.u32 8388607, %v6616_v5  ;;  %v6779_v45 = vsel %vm6777_vm15, %v6778_v32, %v13527_v55  ;;  %v13551_v13 = vadd.f32 %v8624_v4, %v13154_v17 }
 0x686   : > { %v8358_v38 = vpop.eup %8357  ;;  %v6508_v53 = vxor.u32 2147483648, %v8356_v35  ;;  %v6587_v34 = vor.u32 %v6586_v22, %v6585_v62  ;;  %v6590_v9 = vshll.u32 %v6589_v59, 23  ;;  %v6780_v28 = vadd.s32 %v6779_v45, %v6775_v14 }
 0x687   : > { %v6505_v18 = vxor.u32 2147483648, %v8358_v38  ;;  %v6626_v63 = vadd.s32 1, %v7824_v1  ;;  %vm6504_vm0 = vcmp.eq.s32.totalorder %v13488_v15, 0  ;;  %v6605_v3 = vadd.s32 3, %v6601_v43 }
 0x688   : > { %v6509_v6 = vsel %vm6507_vm7, %v6508_v53, %v8358_v38  ;;  %v6591_v11 = vor.u32 4788187, %v6590_v9  ;;  %v6781_v31 = vadd.s32 536870912, %v6780_v28  ;;  %v6624_v7 = vor.u32 8388608, %v6623_v0 }
 0x689   : > { %v6506_v58 = vsel %vm6504_vm0, %v8356_v35, %v6505_v18  ;;  %vm6627_vm10 = vcmp.gt.s32.totalorder %v6626_v63, 0  ;;  %v6594_v46 = vcvt.s32.f32 %v6587_v34  ;;  %v6827_v62 = vand.u32 2139095040, %v13551_v13 }
 0x68a   : > { %v6510_v55 = vsel %vm6503_vm11, %v6506_v58, %v6509_v6  ;;  %v6592_v2 = vand.u32 2147483647, %v6591_v11  ;;  %v6628_v50 = vsel %vm6627_vm10, %v6626_v63, 0  ;;  %v13560_v44 = vshrl.u32 %v6781_v31, 30 }
 0x68b   : > { %v6511_v48 = vsel %vm6500_vm2, nan, %v6510_v55  ;;  %v6630_v49 = vand.u32 31, %v6628_v50  ;;  %v13569_v35 = vand.u32 3, %v6605_v3  ;;  %v13571_v47 = vshll.u32 %v6624_v7, 8 }
 0x68c   : > { %v7422_v43 = vsel %vm7366_vm6, %v12805_v8, %v6511_v48  ;;  %v6595_v22 = vmul.f32 %v6594_v46, %v6592_v2  ;;  %v6783_v15 = vshll.u32 %v13560_v44, 30  ;;  %v6824_v14 = vand.u32 2147483647, %v13551_v13 }
 0x68d   : > { %7487 = vst.msk [vmem:[%s8911_s28 + $0x1b8] sm:$0xff] %vm7434_vm9, %v7422_v43  ;;  %v6631_v59 = vsub.s32 32, %v6630_v49  ;;  %v6629_v0 = vshrl.u32 %v6628_v50, 5  ;;  %v6828_v53 = vshrl.u32 %v6827_v62, 23  ;;  %v6633_v34 = vshll.u32 %v8400_v19, %v6630_v49 }
 0x68e   : > { %v6596_v32 = vxor.u32 2147483648, %v6595_v22  ;;  %v13574_v1 = vsub.s32 %v6780_v28, %v6783_v15  ;;  %v6636_v63 = vshll.u32 %v8401_v23, %v6630_v49  ;;  %v6639_v6 = vshll.u32 %v14055_v10, %v6630_v49 }
 0x68f   : > { %v6634_v38 = vshrl.u32 %v8401_v23, %v6631_v59  ;;  %v6637_v9 = vshrl.u32 %v14055_v10, %v6631_v59  ;;  %v6640_v45 = vshrl.u32 %v8403_v27, %v6631_v59  ;;  %v6642_v3 = vshll.u32 %v8403_v27, %v6630_v49 }
 0x690   : > { %v6597_v8 = vsel %vm6514_vm4, %v6596_v32, %v6595_v22  ;;  %v6786_v28 = vsub.s32 0, %v13574_v1  ;;  %v6643_v58 = vshrl.u32 %v8404_v29, %v6631_v59  ;;  %v6645_v51 = vshll.u32 %v8404_v29, %v6630_v49 }
 0x691   : > { %v6600_v18 = vsel %vm13516_vm13, %v13317_v21, %v6597_v8  ;;  %v6635_v11 = vor.u32 %v6634_v38, %v6633_v34  ;;  %v6638_v7 = vor.u32 %v6637_v9, %v6636_v63  ;;  %v6641_v55 = vor.u32 %v6640_v45, %v6639_v6 }
 0x692   : > { %8359 = vcosq.f32 %v6600_v18  ;;  %v7829_v31 = vmin.u32 %v6786_v28, %v13574_v1  ;;  %v6644_v2 = vor.u32 %v6643_v58, %v6642_v3  ;;  %v6646_v46 = vshrl.u32 %v8405_v52, %v6631_v59 }
 0x693   : > { %8361 = vsinq.f32 %v6600_v18  ;;  %v7832_v50 = vadd.s32 4294967169, %v6828_v53  ;;  %vm6722_vm4 = vcmp.lt.s32.totalorder %v13426_v54, 0  ;;  %v6806_v62 = vsub.s32 4, %v13560_v44 }
 0x694   : > { %v6788_v48 = vclz %v7829_v31  ;;  %v6632_v43 = vshrl.u32 %v8400_v19, %v6631_v59  ;;  %vm6648_vm13 = vcmp.lt.s32.totalorder %v6629_v0, 1  ;;  %vm6611_vm8 = vcmp.eq.s32.totalorder %v13569_v35, 2 }
 0x695   : > { %v6647_v22 = vor.u32 %v6646_v46, %v6645_v51  ;;  %vm6649_vm1 = vcmp.lt.s32.totalorder %v6629_v0, 2  ;;  %vm6650_vm12 = vcmp.lt.s32.totalorder %v6629_v0, 3  ;;  %vm6651_vm2 = vcmp.lt.s32.totalorder %v6629_v0, 4 }
 0x696   : > { %vm6608_vm11 = vcmp.eq.s32.totalorder %v13569_v35, 0  ;;  %v7830_v49 = vadd.s32 4294967294, %v6788_v48  ;;  %v6653_v15 = vsel %vm6651_vm2, %v6641_v55, 2102212464  ;;  %v6656_v32 = vsel %vm6648_vm13, %v6635_v11, %v6638_v7 }
 0x697   : > { %v6657_v38 = vsel %vm6651_vm2, %v6644_v2, 920167782  ;;  %vm13600_vm7 = vcmp.le.f32.partialorder %v6720_v37, 0.7853982  ;;  %v6652_v59 = vsel %vm6648_vm13, %v6632_v43, %v6635_v11  ;;  %v6660_v34 = vsel %vm6648_vm13, %v6638_v7, %v6641_v55 }
 0x698   : > { %v6658_v8 = vsel %vm6650_vm12, %v6641_v55, %v6657_v38  ;;  %v6661_v9 = vsel %vm6651_vm2, %v6647_v22, 1326507024  ;;  %vm6604_vm15 = vweird.f32 %v13317_v21  ;;  %vm7831_vm0 = vcmp.lt.s32.totalorder %v7830_v49, 0 }
 0x699   : > { %v6654_v45 = vsel %vm6650_vm12, %v6638_v7, %v6653_v15  ;;  %v6659_v18 = vsel %vm6649_vm1, %v6656_v32, %v6658_v8  ;;  %v6662_v28 = vsel %vm6650_vm12, %v6644_v2, %v6661_v9  ;;  %v6791_v63 = vsel %vm7831_vm0, 0, %v7830_v49 }
 0x69a   : > { %v6663_v37 = vsel %vm6649_vm1, %v6660_v34, %v6662_v28  ;;  %v13611_v6 = vmul.u32.u64.low %v13571_v47, %v6659_v18  ;;  %v13612_v3 = vmul.u32.u64.high %v13571_v47, %v6659_v18, %v13611_v6  ;;  %v6776_v11 = vadd.s32 %v13526_v26, %v13531_v33 }
 0x69b   : > { %v6792_v58 = vsub.s32 32, %v6791_v63  ;;  %v6796_v31 = vsub.s32 4294967266, %v6791_v63  ;;  %v13619_v7 = vand.u32 8388607, %v6824_v14  ;;  %v6655_v2 = vsel %vm6649_vm1, %v6652_v59, %v6654_v45 }
 0x69c   : > { %v8360_v55 = vpop.eup %8359  ;;  %v13623_v51 = vmul.u32.u64.low %v13571_v47, %v6663_v37  ;;  %v13624_v46 = vmul.u32.u64.high %v13571_v47, %v6663_v37, %v13623_v51  ;;  %v6834_v48 = vadd.s32 1, %v7832_v50  ;;  %v6793_v49 = vshll.u32 %v13574_v1, %v6791_v63 }
 0x69d   : > { %v8362_v43 = vpop.eup %8361  ;;  %v6612_v22 = vxor.u32 2147483648, %v8360_v55  ;;  %v6794_v15 = vshrl.u32 %v6776_v11, %v6792_v58  ;;  %v6797_v26 = vadd.s32 127, %v6796_v31  ;;  %v6807_v32 = vsel %vm6722_vm4, %v6806_v62, %v13560_v44 }
 0x69e   : > { %v6609_v33 = vxor.u32 2147483648, %v8362_v43  ;;  %v6674_v38 = vadd.s32 1, %v13612_v3  ;;  %vm6835_vm10 = vcmp.gt.s32.totalorder %v6834_v48, 0  ;;  %vm6607_vm13 = vcmp.lt.s32.totalorder %v13569_v35, 2 }
 0x69f   : > { %v6613_v0 = vsel %vm6611_vm8, %v6612_v22, %v8362_v43  ;;  %v6795_v59 = vor.u32 %v6794_v15, %v6793_v49  ;;  %v6798_v8 = vshll.u32 %v6797_v26, 23  ;;  %v6836_v50 = vsel %vm6835_vm10, %v6834_v48, 0 }
 0x6a0   : > { %v6610_v1 = vsel %vm6608_vm11, %v8360_v55, %v6609_v33  ;;  %v6671_v34 = vmul.u32 %v13571_v47, %v6655_v2  ;;  %vm6673_vm1 = vc.u32 %v13624_v46, %v13611_v6  ;;  %v6809_v9 = vsel %vm13600_vm7, 0, %v6807_v32 }
 0x6a1   : > { %v6614_v44 = vsel %vm6607_vm13, %v6610_v1, %v6613_v0  ;;  %v6799_v62 = vor.u32 4788187, %v6798_v8  ;;  %v6675_v45 = vsel %vm6673_vm1, %v6674_v38, %v13612_v3  ;;  %v6838_v63 = vand.u32 31, %v6836_v50 }
 0x6a2   : > { %v6615_v18 = vsel %vm6604_vm15, nan, %v6614_v44  ;;  %v6676_v28 = vadd.s32 %v6675_v45, %v6671_v34  ;;  %v13646_v35 = vadd.f32 %v8574_v39, %v13217_v61  ;;  %v6802_v11 = vcvt.s32.f32 %v6795_v59 }
 0x6a3   : > { %v7423_v47 = vsel %vm7363_vm14, %v12930_v25, %v6615_v18  ;;  %v6800_v37 = vand.u32 2147483647, %v6799_v62  ;;  %v6832_v58 = vor.u32 8388608, %v13619_v7  ;;  %v6813_v31 = vadd.s32 3, %v6809_v9 }
 0x6a4   : > { %7488 = vst [vmem:[%s8911_s28 + $0x1c0] sm:$0xff] %v7423_v47  ;;  %v6677_v3 = vadd.s32 536870912, %v6676_v28  ;;  %v6837_v55 = vshrl.u32 %v6836_v50, 5  ;;  %v6839_v21 = vsub.s32 32, %v6838_v63  ;;  %v6841_v51 = vshll.u32 %v8400_v19, %v6838_v63 }
 0x6a5   : > { %v6803_v2 = vmul.f32 %v6802_v11, %v6800_v37  ;;  %v6844_v48 = vshll.u32 %v8401_v23, %v6838_v63  ;;  %v6847_v39 = vshll.u32 %v14055_v10, %v6838_v63  ;;  %v6850_v49 = vshll.u32 %v8403_v27, %v6838_v63 }
 0x6a6   : > { %v6678_v43 = vshrl.u32 %v6677_v3, 30  ;;  %v6842_v22 = vshrl.u32 %v8401_v23, %v6839_v21  ;;  %v6845_v25 = vshrl.u32 %v14055_v10, %v6839_v21  ;;  %vm6618_vm8 = vcmp.lt.s32.totalorder %v13492_v36, 0 }
 0x6a7   : > { %v6804_v7 = vxor.u32 2147483648, %v6803_v2  ;;  %v6848_v15 = vshrl.u32 %v8403_v27, %v6839_v21  ;;  %v6851_v26 = vshrl.u32 %v8404_v29, %v6839_v21  ;;  %v6854_v33 = vshrl.u32 %v8405_v52, %v6839_v21 }
 0x6a8   : > { %v6679_v32 = vshll.u32 %v6678_v43, 30  ;;  %v6843_v38 = vor.u32 %v6842_v22, %v6841_v51  ;;  %v6853_v0 = vshll.u32 %v8404_v29, %v6838_v63  ;;  %vm6856_vm12 = vcmp.lt.s32.totalorder %v6837_v55, 1 }
 0x6a9   : > { %v6805_v59 = vsel %vm6722_vm4, %v6804_v7, %v6803_v2  ;;  %v6846_v8 = vor.u32 %v6845_v25, %v6844_v48  ;;  %v6849_v50 = vor.u32 %v6848_v15, %v6847_v39  ;;  %v6852_v1 = vor.u32 %v6851_v26, %v6850_v49 }
 0x6aa   : > { %v6808_v34 = vsel %vm13600_vm7, %v13426_v54, %v6805_v59  ;;  %v13669_v44 = vsub.s32 %v6676_v28, %v6679_v32  ;;  %v6855_v62 = vor.u32 %v6854_v33, %v6853_v0  ;;  %vm6859_vm2 = vcmp.lt.s32.totalorder %v6837_v55, 4 }
 0x6ab   : > { %8363 = vcosq.f32 %v6808_v34  ;;  %v6840_v9 = vshrl.u32 %v8400_v19, %v6839_v21  ;;  %vm6857_vm11 = vcmp.lt.s32.totalorder %v6837_v55, 2  ;;  %v6861_v45 = vsel %vm6859_vm2, %v6849_v50, 2102212464 }
 0x6ac   : > { %8365 = vsinq.f32 %v6808_v34  ;;  %v6682_v18 = vsub.s32 0, %v13669_v44  ;;  %v6702_v63 = vsub.s32 4, %v6678_v43  ;;  %vm6858_vm4 = vcmp.lt.s32.totalorder %v6837_v55, 3 }
 0x6ad   : > { %v6860_v47 = vsel %vm6856_vm12, %v6840_v9, %v6843_v38  ;;  %v6862_v37 = vsel %vm6858_vm4, %v6846_v8, %v6861_v45  ;;  %v6864_v53 = vsel %vm6856_vm12, %v6843_v38, %v6846_v8  ;;  %v6865_v28 = vsel %vm6859_vm2, %v6852_v1, 920167782 }
 0x6ae   : > { %v7825_v11 = vmin.u32 %v6682_v18, %v13669_v44  ;;  %v6866_v3 = vsel %vm6858_vm4, %v6849_v50, %v6865_v28  ;;  %v6868_v21 = vsel %vm6856_vm12, %v6846_v8, %v6849_v50  ;;  %v6869_v2 = vsel %vm6859_vm2, %v6855_v62, 1326507024 }
 0x6af   : > { %v6814_v51 = vand.u32 3, %v6813_v31  ;;  %v6867_v48 = vsel %vm6857_vm11, %v6864_v53, %v6866_v3  ;;  %v6870_v39 = vsel %vm6858_vm4, %v6852_v1, %v6869_v2  ;;  %v6872_v22 = vshll.u32 %v6832_v58, 8 }
 0x6b0   : > { %v6684_v25 = vclz %v7825_v11  ;;  %v6703_v49 = vsel %vm6618_vm8, %v6702_v63, %v6678_v43  ;;  %v6928_v7 = vand.u32 2147483647, %v13646_v35  ;;  %v6863_v15 = vsel %vm6857_vm11, %v6860_v47, %v6862_v37 }
 0x6b1   : > { %v6871_v26 = vsel %vm6857_vm11, %v6868_v21, %v6870_v39  ;;  %v13686_v33 = vmul.u32.u64.low %v6872_v22, %v6867_v48  ;;  %v13687_v32 = vmul.u32.u64.high %v6872_v22, %v6867_v48, %v13686_v33  ;;  %v6931_v59 = vand.u32 2139095040, %v13646_v35 }
 0x6b2   : > { %v7826_v38 = vadd.s32 4294967294, %v6684_v25  ;;  %v13689_v0 = vmul.u32.u64.low %v6872_v22, %v6871_v26  ;;  %v13690_v31 = vmul.u32.u64.high %v6872_v22, %v6871_v26, %v13689_v0  ;;  %vm6816_vm7 = vcmp.eq.s32.totalorder %v6814_v51, 0 }
 0x6b3   : > { %vm13695_vm15 = vcmp.le.f32.partialorder %v6616_v5, 0.7853982  ;;  %v13701_v55 = vadd.f32 %v8578_v40, %v13306_v60  ;;  %vm6819_vm0 = vcmp.eq.s32.totalorder %v6814_v51, 2  ;;  %v6672_v43 = vadd.s32 %v13611_v6, %v13624_v46 }
 0x6b4   : > { %vm7827_vm10 = vcmp.lt.s32.totalorder %v7826_v38, 0  ;;  %v6932_v8 = vshrl.u32 %v6931_v59, 23  ;;  %v6705_v34 = vsel %vm13695_vm15, 0, %v6703_v49  ;;  %v6879_v62 = vmul.u32 %v6872_v22, %v6863_v15 }
 0x6b5   : > { %v8364_v50 = vpop.eup %8363  ;;  %v6687_v1 = vsel %vm7827_vm10, 0, %v7826_v38  ;;  %v6882_v5 = vadd.s32 1, %v13687_v32  ;;  %v6935_v40 = vand.u32 8388607, %v6928_v7  ;;  %vm6881_vm13 = vc.u32 %v13690_v31, %v13686_v33 }
 0x6b6   : > { %v8366_v9 = vpop.eup %8365  ;;  %v6820_v45 = vxor.u32 2147483648, %v8364_v50  ;;  %v6688_v18 = vsub.s32 32, %v6687_v1  ;;  %v6692_v63 = vsub.s32 4294967266, %v6687_v1  ;;  %v6689_v6 = vshll.u32 %v13669_v44, %v6687_v1 }
 0x6b7   : > { %v6817_v47 = vxor.u32 2147483648, %v8366_v9  ;;  %v7836_v46 = vadd.s32 4294967169, %v6932_v8  ;;  %v6883_v11 = vsel %vm6881_vm13, %v6882_v5, %v13687_v32  ;;  %vm6815_vm1 = vcmp.lt.s32.totalorder %v6814_v51, 2 }
 0x6b8   : > { %v6821_v37 = vsel %vm6819_vm0, %v6820_v45, %v8366_v9  ;;  %v6690_v53 = vshrl.u32 %v6672_v43, %v6688_v18  ;;  %v6693_v28 = vadd.s32 127, %v6692_v63  ;;  %v6884_v21 = vadd.s32 %v6883_v11, %v6879_v62 }
 0x6b9   : > { %v6818_v3 = vsel %vm6816_vm7, %v8364_v50, %v6817_v47  ;;  %v6938_v2 = vadd.s32 1, %v7836_v46  ;;  %vm6812_vm12 = vweird.f32 %v13426_v54  ;;  %v6709_v25 = vadd.s32 3, %v6705_v34 }
 0x6ba   : > { %v6822_v48 = vsel %vm6815_vm1, %v6818_v3, %v6821_v37  ;;  %v6691_v39 = vor.u32 %v6690_v53, %v6689_v6  ;;  %v6694_v44 = vshll.u32 %v6693_v28, 23  ;;  %v6885_v49 = vadd.s32 536870912, %v6884_v21 }
 0x6bb   : > { %v6823_v22 = vsel %vm6812_vm12, nan, %v6822_v48  ;;  %vm6939_vm2 = vcmp.gt.s32.totalorder %v6938_v2, 0  ;;  %v6936_v32 = vor.u32 8388608, %v6935_v40  ;;  %v7139_v59 = vand.u32 2139095040, %v13701_v55 }
 0x6bc   : > { %v7425_v15 = vsel %vm7365_vm5, %v12968_v16, %v6823_v22  ;;  %v6695_v26 = vor.u32 4788187, %v6694_v44  ;;  %v6940_v51 = vsel %vm6939_vm2, %v6938_v2, 0  ;;  %v6886_v38 = vshrl.u32 %v6885_v49, 30 }
 0x6bd   : > { %7490 = vst [vmem:[%s8911_s28 + $0x1d0] sm:$0xff] %v7425_v15  ;;  %v6942_v0 = vand.u32 31, %v6940_v51  ;;  %v6698_v43 = vcvt.s32.f32 %v6691_v39  ;;  %vm6826_vm11 = vcmp.lt.s32.totalorder %v13551_v13, 0  ;;  %v13722_v8 = vand.u32 3, %v6709_v25 }
 0x6be   : > { %v6696_v54 = vand.u32 2147483647, %v6695_v26  ;;  %vm13726_vm4 = vcmp.le.f32.partialorder %v6824_v14, 0.7853982  ;;  %v6887_v16 = vshll.u32 %v6886_v38, 30  ;;  %v6880_v5 = vadd.s32 %v13686_v33, %v13690_v31 }
 0x6bf   : > { %v6943_v1 = vsub.s32 32, %v6942_v0  ;;  %v7136_v34 = vand.u32 2147483647, %v13701_v55  ;;  %v6910_v9 = vsub.s32 4, %v6886_v38  ;;  %v13732_v45 = vshll.u32 %v6936_v32, 8 }
 0x6c0   : > { %v6699_v62 = vmul.f32 %v6698_v43, %v6696_v54  ;;  %v13734_v18 = vsub.s32 %v6884_v21, %v6887_v16  ;;  %v13736_v63 = vshrl.u32 %v6940_v51, 5  ;;  %v7140_v14 = vshrl.u32 %v7139_v59, 23 }
 0x6c1   : > { %v6946_v40 = vshrl.u32 %v8401_v23, %v6943_v1  ;;  %v6945_v6 = vshll.u32 %v8400_v19, %v6942_v0  ;;  %v6949_v46 = vshrl.u32 %v14055_v10, %v6943_v1  ;;  %v6952_v37 = vshrl.u32 %v8403_v27, %v6943_v1 }
 0x6c2   : > { %v6700_v47 = vxor.u32 2147483648, %v6699_v62  ;;  %v6890_v53 = vsub.s32 0, %v13734_v18  ;;  %v6948_v33 = vshll.u32 %v8401_v23, %v6942_v0  ;;  %v6951_v31 = vshll.u32 %v14055_v10, %v6942_v0 }
 0x6c3   : > { %v6955_v28 = vshrl.u32 %v8404_v29, %v6943_v1  ;;  %v6911_v3 = vsel %vm6826_vm11, %v6910_v9, %v6886_v38  ;;  %v6947_v21 = vor.u32 %v6946_v40, %v6945_v6  ;;  %v6954_v2 = vshll.u32 %v8403_v27, %v6942_v0 }
 0x6c4   : > { %v6701_v11 = vsel %vm6618_vm8, %v6700_v47, %v6699_v62  ;;  %v7833_v39 = vmin.u32 %v6890_v53, %v13734_v18  ;;  %v6950_v44 = vor.u32 %v6949_v46, %v6948_v33  ;;  %v6953_v22 = vor.u32 %v6952_v37, %v6951_v31 }
 0x6c5   : > { %v6704_v48 = vsel %vm13695_vm15, %v13492_v36, %v6701_v11  ;;  %v6956_v25 = vor.u32 %v6955_v28, %v6954_v2  ;;  %v6957_v49 = vshll.u32 %v8404_v29, %v6942_v0  ;;  %v6958_v15 = vshrl.u32 %v8405_v52, %v6943_v1 }
 0x6c6   : > { %8367 = vcosq.f32 %v6704_v48  ;;  %v6892_v26 = vclz %v7833_v39  ;;  %v7844_v32 = vadd.s32 4294967169, %v7140_v14  ;;  %v13759_v51 = vand.u32 8388607, %v7136_v34 }
 0x6c7   : > { %8369 = vsinq.f32 %v6704_v48  ;;  %v6913_v58 = vsel %vm13726_vm4, 0, %v6911_v3  ;;  %v6944_v38 = vshrl.u32 %v8400_v19, %v6943_v1  ;;  %v6959_v59 = vor.u32 %v6958_v15, %v6957_v49 }
 0x6c8   : > { %vm6960_vm8 = vcmp.lt.s32.totalorder %v13736_v63, 1  ;;  %v7834_v54 = vadd.s32 4294967294, %v6892_v26  ;;  %vm6962_vm7 = vcmp.lt.s32.totalorder %v13736_v63, 3  ;;  %vm6963_vm15 = vcmp.lt.s32.totalorder %v13736_v63, 4 }
 0x6c9   : > { %v6968_v0 = vsel %vm6960_vm8, %v6947_v21, %v6950_v44  ;;  %v6965_v43 = vsel %vm6963_vm15, %v6953_v22, 2102212464  ;;  %v6969_v16 = vsel %vm6963_vm15, %v6956_v25, 920167782  ;;  %v6972_v62 = vsel %vm6960_vm8, %v6950_v44, %v6953_v22 }
 0x6ca   : > { %v6973_v9 = vsel %vm6963_vm15, %v6959_v59, 1326507024  ;;  %vm7835_vm0 = vcmp.lt.s32.totalorder %v7834_v54, 0  ;;  %vm6961_vm10 = vcmp.lt.s32.totalorder %v13736_v63, 2  ;;  %v6970_v40 = vsel %vm6962_vm7, %v6953_v22, %v6969_v16 }
 0x6cb   : > { %v6974_v1 = vsel %vm6962_vm7, %v6956_v25, %v6973_v9  ;;  %vm6711_vm13 = vcmp.lt.s32.totalorder %v13722_v8, 2  ;;  %v6895_v14 = vsel %vm7835_vm0, 0, %v7834_v54  ;;  %v6964_v47 = vsel %vm6960_vm8, %v6944_v38, %v6947_v21 }
 0x6cc   : > { %v6971_v6 = vsel %vm6961_vm10, %v6968_v0, %v6970_v40  ;;  %v6975_v46 = vsel %vm6961_vm10, %v6972_v62, %v6974_v1  ;;  %vm6708_vm1 = vweird.f32 %v13492_v36  ;;  %v6896_v37 = vsub.s32 32, %v6895_v14 }
 0x6cd   : > { %v6900_v53 = vsub.s32 4294967266, %v6895_v14  ;;  %v6966_v33 = vsel %vm6962_vm7, %v6950_v44, %v6965_v43  ;;  %v7146_v31 = vadd.s32 1, %v7844_v32  ;;  %v6897_v2 = vshll.u32 %v13734_v18, %v6895_v14 }
 0x6ce   : > { %v13781_v28 = vmul.u32.u64.low %v13732_v45, %v6975_v46  ;;  %v13782_v11 = vmul.u32.u64.high %v13732_v45, %v6975_v46, %v13781_v28  ;;  %v13785_v3 = vmul.u32.u64.low %v13732_v45, %v6971_v6  ;;  %v13786_v21 = vmul.u32.u64.high %v13732_v45, %v6971_v6, %v13785_v3 }
 0x6cf   : > { %v6898_v48 = vshrl.u32 %v6880_v5, %v6896_v37  ;;  %v6901_v39 = vadd.s32 127, %v6900_v53  ;;  %vm7147_vm12 = vcmp.gt.s32.totalorder %v7146_v31, 0  ;;  %vm6712_vm2 = vcmp.eq.s32.totalorder %v13722_v8, 0 }
 0x6d0   : > { %v8368_v22 = vpop.eup %8367  ;;  %vm6715_vm8 = vcmp.eq.s32.totalorder %v13722_v8, 2  ;;  %v6967_v44 = vsel %vm6961_vm10, %v6964_v47, %v6966_v33  ;;  %v7148_v25 = vsel %vm7147_vm12, %v7146_v31, 0  ;;  %v7144_v38 = vor.u32 8388608, %v13759_v51 }
 0x6d1   : > { %v8370_v49 = vpop.eup %8369  ;;  %v6716_v15 = vxor.u32 2147483648, %v8368_v22  ;;  %v6899_v26 = vor.u32 %v6898_v48, %v6897_v2  ;;  %v6902_v32 = vshll.u32 %v6901_v39, 23  ;;  %v6917_v18 = vadd.s32 3, %v6913_v58 }
 0x6d2   : > { %v6713_v59 = vxor.u32 2147483648, %v8370_v49  ;;  %vm6985_vm7 = vc.u32 %v13782_v11, %v13785_v3  ;;  %v6986_v5 = vadd.s32 1, %v13786_v21  ;;  %v6983_v43 = vmul.u32 %v13732_v45, %v6967_v44 }
 0x6d3   : > { %v6717_v54 = vsel %vm6715_vm8, %v6716_v15, %v8370_v49  ;;  %v6903_v0 = vor.u32 4788187, %v6902_v32  ;;  %v7150_v63 = vand.u32 31, %v7148_v25  ;;  %v6906_v62 = vcvt.s32.f32 %v6899_v26 }
 0x6d4   : > { %v6714_v16 = vsel %vm6712_vm2, %v8368_v22, %v6713_v59  ;;  %v6987_v9 = vsel %vm6985_vm7, %v6986_v5, %v13786_v21  ;;  %v13804_v51 = vadd.f32 %v8582_v41, %v13365_v20  ;;  %v13810_v47 = vand.u32 3, %v6917_v18 }
 0x6d5   : > { %v6718_v58 = vsel %vm6711_vm13, %v6714_v16, %v6717_v54  ;;  %v6904_v40 = vand.u32 2147483647, %v6903_v0  ;;  %v6988_v1 = vadd.s32 %v6987_v9, %v6983_v43  ;;  %v7151_v14 = vsub.s32 32, %v7150_v63 }
 0x6d6   : > { %v6719_v45 = vsel %vm6708_vm1, nan, %v6718_v58  ;;  %v7149_v6 = vshrl.u32 %v7148_v25, 5  ;;  %v7153_v46 = vshll.u32 %v8400_v19, %v7150_v63  ;;  %v7156_v8 = vshll.u32 %v8401_v23, %v7150_v63 }
 0x6d7   : > { %v7424_v37 = vsel %vm7364_vm3, %v13066_v24, %v6719_v45  ;;  %v6907_v41 = vmul.f32 %v6906_v62, %v6904_v40  ;;  %v6989_v53 = vadd.s32 536870912, %v6988_v1  ;;  %v7154_v33 = vshrl.u32 %v8401_v23, %v7151_v14 }
 0x6d8   : > { %7489 = vst [vmem:[%s8911_s28 + $0x1c8] sm:$0xff] %v7424_v37  ;;  %v7157_v31 = vshrl.u32 %v14055_v10, %v7151_v14  ;;  %v7159_v36 = vshll.u32 %v14055_v10, %v7150_v63  ;;  %v7160_v28 = vshrl.u32 %v8403_v27, %v7151_v14  ;;  %v7162_v48 = vshll.u32 %v8403_v27, %v7150_v63 }
 0x6d9   : > { %v6908_v21 = vxor.u32 2147483648, %v6907_v41  ;;  %v6990_v2 = vshrl.u32 %v6989_v53, 30  ;;  %v7163_v39 = vshrl.u32 %v8404_v29, %v7151_v14  ;;  %v7155_v24 = vor.u32 %v7154_v33, %v7153_v46 }
 0x6da   : > { %v7158_v22 = vor.u32 %v7157_v31, %v7156_v8  ;;  %v7165_v44 = vshll.u32 %v8404_v29, %v7150_v63  ;;  %v7166_v25 = vshrl.u32 %v8405_v52, %v7151_v14  ;;  %v7161_v26 = vor.u32 %v7160_v28, %v7159_v36 }
 0x6db   : > { %v6909_v49 = vsel %vm6826_vm11, %v6908_v21, %v6907_v41  ;;  %v6991_v15 = vshll.u32 %v6990_v2, 30  ;;  %v7164_v32 = vor.u32 %v7163_v39, %v7162_v48  ;;  %v13831_v5 = vshll.u32 %v7144_v38, 8 }
 0x6dc   : > { %v6912_v59 = vsel %vm13726_vm4, %v13551_v13, %v6909_v49  ;;  %v7167_v18 = vor.u32 %v7166_v25, %v7165_v44  ;;  %v7035_v54 = vand.u32 2139095040, %v13804_v51  ;;  %vm7168_vm15 = vcmp.lt.s32.totalorder %v7149_v6, 1 }
 0x6dd   : > { %8371 = vcosq.f32 %v6912_v59  ;;  %v13834_v0 = vsub.s32 %v6988_v1, %v6991_v15  ;;  %vm7169_vm0 = vcmp.lt.s32.totalorder %v7149_v6, 2  ;;  %v7152_v43 = vshrl.u32 %v8400_v19, %v7151_v14 }
 0x6de   : > { %8373 = vsinq.f32 %v6912_v59  ;;  %vm7171_vm11 = vcmp.lt.s32.totalorder %v7149_v6, 4  ;;  %v7176_v63 = vsel %vm7168_vm15, %v7155_v24, %v7158_v22  ;;  %vm7170_vm10 = vcmp.lt.s32.totalorder %v7149_v6, 3 }
 0x6df   : > { %v6994_v16 = vsub.s32 0, %v13834_v0  ;;  %v7173_v50 = vsel %vm7171_vm11, %v7161_v26, 2102212464  ;;  %v7177_v62 = vsel %vm7171_vm11, %v7164_v32, 920167782  ;;  %v7014_v9 = vsub.s32 4, %v6990_v2 }
 0x6e0   : > { %v7178_v38 = vsel %vm7170_vm10, %v7161_v26, %v7177_v62  ;;  %v7180_v58 = vsel %vm7168_vm15, %v7158_v22, %v7161_v26  ;;  %v7181_v40 = vsel %vm7171_vm11, %v7167_v18, 1326507024  ;;  %v7172_v1 = vsel %vm7168_vm15, %v7152_v43, %v7155_v24 }
 0x6e1   : > { %v7837_v45 = vmin.u32 %v6994_v16, %v13834_v0  ;;  %v7179_v46 = vsel %vm7169_vm0, %v7176_v63, %v7178_v38  ;;  %v7182_v37 = vsel %vm7170_vm10, %v7164_v32, %v7181_v40  ;;  %v7174_v41 = vsel %vm7170_vm10, %v7158_v22, %v7173_v50 }
 0x6e2   : > { %v7183_v14 = vsel %vm7169_vm0, %v7180_v58, %v7182_v37  ;;  %v13842_v53 = vmul.u32.u64.low %v13831_v5, %v7179_v46  ;;  %v13843_v8 = vmul.u32.u64.high %v13831_v5, %v7179_v46, %v13842_v53  ;;  %vm13848_vm4 = vcmp.le.f32.partialorder %v6928_v7, 0.7853982 }
 0x6e3   : > { %vm6930_vm13 = vcmp.lt.s32.totalorder %v13646_v35, 0  ;;  %v6996_v31 = vclz %v7837_v45  ;;  %v13856_v28 = vmul.u32.u64.low %v13831_v5, %v7183_v14  ;;  %v13857_v21 = vmul.u32.u64.high %v13831_v5, %v7183_v14, %v13856_v28 }
 0x6e4   : > { %v7015_v36 = vsel %vm6930_vm13, %v7014_v9, %v6990_v2  ;;  %v7036_v48 = vshrl.u32 %v7035_v54, 23  ;;  %vm6919_vm1 = vcmp.lt.s32.totalorder %v13810_v47, 2  ;;  %v7175_v24 = vsel %vm7169_vm0, %v7172_v1, %v7174_v41 }
 0x6e5   : > { %v7838_v39 = vadd.s32 4294967294, %v6996_v31  ;;  %v13863_v7 = vadd.f32 %v8624_v4, %v13474_v57  ;;  %vm6920_vm12 = vcmp.eq.s32.totalorder %v13810_v47, 0  ;;  %vm6923_vm2 = vcmp.eq.s32.totalorder %v13810_v47, 2 }
 0x6e6   : > { %v7194_v2 = vadd.s32 1, %v13843_v8  ;;  %v7840_v22 = vadd.s32 4294967169, %v7036_v48  ;;  %v6984_v25 = vadd.s32 %v13785_v3, %v13782_v11  ;;  %v7017_v6 = vsel %vm13848_vm4, 0, %v7015_v36 }
 0x6e7   : > { %v8372_v44 = vpop.eup %8371  ;;  %vm7839_vm8 = vcmp.lt.s32.totalorder %v7838_v39, 0  ;;  %v7032_v49 = vand.u32 2147483647, %v13804_v51  ;;  %v7191_v32 = vmul.u32 %v13831_v5, %v7175_v24  ;;  %vm7193_vm7 = vc.u32 %v13857_v21, %v13842_v53 }
 0x6e8   : > { %v8374_v15 = vpop.eup %8373  ;;  %v6924_v4 = vxor.u32 2147483648, %v8372_v44  ;;  %v6999_v26 = vsel %vm7839_vm8, 0, %v7838_v39  ;;  %v7243_v43 = vand.u32 2139095040, %v13863_v7  ;;  %v7195_v63 = vsel %vm7193_vm7, %v7194_v2, %v13843_v8 }
 0x6e9   : > { %v6921_v59 = vxor.u32 2147483648, %v8374_v15  ;;  %v7000_v18 = vsub.s32 32, %v6999_v26  ;;  %v7004_v54 = vsub.s32 4294967266, %v6999_v26  ;;  %v7001_v3 = vshll.u32 %v13834_v0, %v6999_v26 }
 0x6ea   : > { %v6925_v11 = vsel %vm6923_vm2, %v6924_v4, %v8374_v15  ;;  %v7042_v16 = vadd.s32 1, %v7840_v22  ;;  %v7196_v9 = vadd.s32 %v7195_v63, %v7191_v32  ;;  %vm6916_vm15 = vweird.f32 %v13551_v13 }
 0x6eb   : > { %v6922_v5 = vsel %vm6920_vm12, %v8372_v44, %v6921_v59  ;;  %v7002_v50 = vshrl.u32 %v6984_v25, %v7000_v18  ;;  %v7005_v62 = vadd.s32 127, %v7004_v54  ;;  %v7021_v46 = vadd.s32 3, %v7017_v6 }
 0x6ec   : > { %v6926_v38 = vsel %vm6919_vm1, %v6922_v5, %v6925_v11  ;;  %vm7043_vm0 = vcmp.gt.s32.totalorder %v7042_v16, 0  ;;  %v7197_v0 = vadd.s32 536870912, %v7196_v9  ;;  %v7039_v13 = vand.u32 8388607, %v7032_v49 }
 0x6ed   : > { %v6927_v58 = vsel %vm6916_vm15, nan, %v6926_v38  ;;  %v7003_v40 = vor.u32 %v7002_v50, %v7001_v3  ;;  %v7006_v45 = vshll.u32 %v7005_v62, 23  ;;  %v7044_v37 = vsel %vm7043_vm0, %v7042_v16, 0 }
 0x6ee   : > { %v7426_v1 = vsel %vm7366_vm6, %v13154_v17, %v6927_v58  ;;  %v13891_v14 = vshrl.u32 %v7197_v0, 30  ;;  %v7244_v47 = vshrl.u32 %v7243_v43, 23  ;;  %v7046_v8 = vand.u32 31, %v7044_v37 }
 0x6ef   : > { %7491 = vst.msk [vmem:[%s8911_s28 + $0x1d8] sm:$0xff] %vm7434_vm9, %v7426_v1  ;;  %v7007_v41 = vor.u32 4788187, %v7006_v45  ;;  %v7010_v36 = vcvt.s32.f32 %v7003_v40  ;;  %v13896_v48 = vand.u32 3, %v7021_v46  ;;  %v7240_v17 = vand.u32 2147483647, %v13863_v7 }
 0x6f0   : > { %v7199_v28 = vshll.u32 %v13891_v14, 30  ;;  %v7047_v39 = vsub.s32 32, %v7046_v8  ;;  %v7040_v22 = vor.u32 8388608, %v7039_v13  ;;  %v7848_v44 = vadd.s32 4294967169, %v7244_v47 }
 0x6f1   : > { %v7008_v31 = vand.u32 2147483647, %v7007_v41  ;;  %v7045_v25 = vshrl.u32 %v7044_v37, 5  ;;  %v7049_v6 = vshll.u32 %v8400_v19, %v7046_v8  ;;  %v7052_v59 = vshll.u32 %v8401_v23, %v7046_v8 }
 0x6f2   : > { %v13899_v2 = vsub.s32 %v7196_v9, %v7199_v28  ;;  %v7050_v15 = vshrl.u32 %v8401_v23, %v7047_v39  ;;  %v7053_v4 = vshrl.u32 %v14055_v10, %v7047_v39  ;;  %v7056_v18 = vshrl.u32 %v8403_v27, %v7047_v39 }
 0x6f3   : > { %v7011_v24 = vmul.f32 %v7010_v36, %v7008_v31  ;;  %v7055_v43 = vshll.u32 %v14055_v10, %v7046_v8  ;;  %v7058_v11 = vshll.u32 %v8403_v27, %v7046_v8  ;;  %v7059_v3 = vshrl.u32 %v8404_v29, %v7047_v39 }
 0x6f4   : > { %v7202_v32 = vsub.s32 0, %v13899_v2  ;;  %v7051_v54 = vor.u32 %v7050_v15, %v7049_v6  ;;  %v7054_v5 = vor.u32 %v7053_v4, %v7052_v59  ;;  %v7061_v50 = vshll.u32 %v8404_v29, %v7046_v8 }
 0x6f5   : > { %v7012_v26 = vxor.u32 2147483648, %v7011_v24  ;;  %v7057_v9 = vor.u32 %v7056_v18, %v7055_v43  ;;  %v7060_v38 = vor.u32 %v7059_v3, %v7058_v11  ;;  %v7062_v58 = vshrl.u32 %v8405_v52, %v7047_v39 }
 0x6f6   : > { %v7845_v16 = vmin.u32 %v7202_v32, %v13899_v2  ;;  %v7192_v40 = vadd.s32 %v13842_v53, %v13857_v21  ;;  %v7250_v0 = vadd.s32 1, %v7848_v44  ;;  %v7048_v1 = vshrl.u32 %v8400_v19, %v7047_v39 }
 0x6f7   : > { %v7013_v63 = vsel %vm6930_vm13, %v7012_v26, %v7011_v24  ;;  %v7063_v46 = vor.u32 %v7062_v58, %v7061_v50  ;;  %vm7064_vm11 = vcmp.lt.s32.totalorder %v7045_v25, 1  ;;  %vm7066_vm10 = vcmp.lt.s32.totalorder %v7045_v25, 3 }
 0x6f8   : > { %v7016_v62 = vsel %vm13848_vm4, %v13646_v35, %v7013_v63  ;;  %v7204_v45 = vclz %v7845_v16  ;;  %vm7067_vm13 = vcmp.lt.s32.totalorder %v7045_v25, 4  ;;  %v7072_v33 = vsel %vm7064_vm11, %v7051_v54, %v7054_v5 }
 0x6f9   : > { %8375 = vcosq.f32 %v7016_v62  ;;  %v7069_v41 = vsel %vm7067_vm13, %v7057_v9, 2102212464  ;;  %v7073_v13 = vsel %vm7067_vm13, %v7060_v38, 920167782  ;;  %v7076_v47 = vsel %vm7064_vm11, %v7054_v5, %v7057_v9 }
 0x6fa   : > { %8377 = vsinq.f32 %v7016_v62  ;;  %v7846_v37 = vadd.s32 4294967294, %v7204_v45  ;;  %v7077_v8 = vsel %vm7067_vm13, %v7063_v46, 1326507024  ;;  %vm7138_vm4 = vcmp.lt.s32.totalorder %v13701_v55, 0 }
 0x6fb   : > { %vm7065_vm12 = vcmp.lt.s32.totalorder %v7045_v25, 2  ;;  %v7074_v53 = vsel %vm7066_vm10, %v7057_v9, %v7073_v13  ;;  %v7078_v21 = vsel %vm7066_vm10, %v7060_v38, %v7077_v8  ;;  %v7080_v39 = vshll.u32 %v7040_v22, 8 }
 0x6fc   : > { %vm7847_vm1 = vcmp.lt.s32.totalorder %v7846_v37, 0  ;;  %v7075_v36 = vsel %vm7065_vm12, %v7072_v33, %v7074_v53  ;;  %v7079_v28 = vsel %vm7065_vm12, %v7076_v47, %v7078_v21  ;;  %vm7023_vm2 = vcmp.lt.s32.totalorder %v13896_v48, 2 }
 0x6fd   : > { %v7207_v31 = vsel %vm7847_vm1, 0, %v7846_v37  ;;  %v7068_v6 = vsel %vm7064_vm11, %v7048_v1, %v7051_v54  ;;  %v7070_v15 = vsel %vm7066_vm10, %v7054_v5, %v7069_v41  ;;  %vm7020_vm8 = vweird.f32 %v13646_v35 }
 0x6fe   : > { %v7208_v24 = vsub.s32 32, %v7207_v31  ;;  %v7212_v44 = vsub.s32 4294967266, %v7207_v31  ;;  %v13932_v4 = vmul.u32.u64.low %v7080_v39, %v7079_v28  ;;  %v13933_v26 = vmul.u32.u64.high %v7080_v39, %v7079_v28, %v13932_v4 }
 0x6ff   : > { %v13935_v32 = vmul.u32.u64.low %v7080_v39, %v7075_v36  ;;  %v13936_v59 = vmul.u32.u64.high %v7080_v39, %v7075_v36, %v13935_v32  ;;  %v7209_v18 = vshll.u32 %v13899_v2, %v7207_v31  ;;  %vm7251_vm7 = vcmp.gt.s32.totalorder %v7250_v0, 0 }
 0x700   : > { %v7210_v22 = vshrl.u32 %v7192_v40, %v7208_v24  ;;  %v7213_v43 = vadd.s32 127, %v7212_v44  ;;  %v7222_v11 = vsub.s32 4, %v13891_v14  ;;  %v7071_v54 = vsel %vm7065_vm12, %v7068_v6, %v7070_v15 }
 0x701   : > { %v7247_v3 = vand.u32 8388607, %v7240_v17  ;;  %v7252_v63 = vsel %vm7251_vm7, %v7250_v0, 0  ;;  %vm7024_vm15 = vcmp.eq.s32.totalorder %v13896_v48, 0  ;;  %vm7027_vm0 = vcmp.eq.s32.totalorder %v13896_v48, 2 }
 0x702   : > { %v7211_v5 = vor.u32 %v7210_v22, %v7209_v18  ;;  %v7214_v50 = vshll.u32 %v7213_v43, 23  ;;  %v7254_v62 = vand.u32 31, %v7252_v63  ;;  %vm13948_vm11 = vcmp.le.f32.partialorder %v7136_v34, 0.7853982 }
 0x703   : > { %v8376_v16 = vpop.eup %8375  ;;  %vm7089_vm10 = vc.u32 %v13933_v26, %v13935_v32  ;;  %v7090_v25 = vadd.s32 1, %v13936_v59  ;;  %v7087_v45 = vmul.u32 %v7080_v39, %v7071_v54  ;;  %v7223_v46 = vsel %vm7138_vm4, %v7222_v11, %v13891_v14 }
 0x704   : > { %v8378_v9 = vpop.eup %8377  ;;  %v7028_v2 = vxor.u32 2147483648, %v8376_v16  ;;  %v7215_v40 = vor.u32 4788187, %v7214_v50  ;;  %v7255_v0 = vsub.s32 32, %v7254_v62  ;;  %v7248_v34 = vor.u32 8388608, %v7247_v3 }
 0x705   : > { %v7025_v58 = vxor.u32 2147483648, %v8378_v9  ;;  %v7091_v37 = vsel %vm7089_vm10, %v7090_v25, %v13936_v59  ;;  %v7218_v13 = vcvt.s32.f32 %v7211_v5  ;;  %v7253_v53 = vshrl.u32 %v7252_v63, 5 }
 0x706   : > { %v7029_v1 = vsel %vm7027_vm0, %v7028_v2, %v8378_v9  ;;  %v7216_v41 = vand.u32 2147483647, %v7215_v40  ;;  %v7092_v47 = vadd.s32 %v7091_v37, %v7087_v45  ;;  %v7258_v21 = vshrl.u32 %v8401_v23, %v7255_v0 }
 0x707   : > { %v7026_v33 = vsel %vm7024_vm15, %v8376_v16, %v7025_v58  ;;  %v7261_v31 = vshrl.u32 %v14055_v10, %v7255_v0  ;;  %v7257_v39 = vshll.u32 %v8400_v19, %v7254_v62  ;;  %v7260_v44 = vshll.u32 %v8401_v23, %v7254_v62 }
 0x708   : > { %v7030_v8 = vsel %vm7023_vm2, %v7026_v33, %v7029_v1  ;;  %v7219_v36 = vmul.f32 %v7218_v13, %v7216_v41  ;;  %v7093_v28 = vadd.s32 536870912, %v7092_v47  ;;  %v7263_v48 = vshll.u32 %v14055_v10, %v7254_v62 }
 0x709   : > { %v7031_v14 = vsel %vm7020_vm8, nan, %v7030_v8  ;;  %v7264_v6 = vshrl.u32 %v8403_v27, %v7255_v0  ;;  %v7266_v35 = vshll.u32 %v8403_v27, %v7254_v62  ;;  %v7267_v59 = vshrl.u32 %v8404_v29, %v7255_v0 }
 0x70a   : > { %v7427_v24 = vsel %vm7363_vm14, %v13217_v61, %v7031_v14  ;;  %v7220_v15 = vxor.u32 2147483648, %v7219_v36  ;;  %v13975_v4 = vshrl.u32 %v7093_v28, 30  ;;  %v7259_v18 = vor.u32 %v7258_v21, %v7257_v39 }
 0x70b   : > { %7492 = vst [vmem:[%s8911_s28 + $0x1e0] sm:$0xff] %v7427_v24  ;;  %v7262_v22 = vor.u32 %v7261_v31, %v7260_v44  ;;  %v7269_v43 = vshll.u32 %v8404_v29, %v7254_v62  ;;  %v7270_v56 = vshrl.u32 %v8405_v52, %v7255_v0  ;;  %v7225_v10 = vsel %vm13948_vm11, 0, %v7223_v46 }
 0x70c   : > { %v7221_v23 = vsel %vm7138_vm4, %v7220_v15, %v7219_v36  ;;  %v7095_v61 = vshll.u32 %v13975_v4, 30  ;;  %v7268_v11 = vor.u32 %v7267_v59, %v7266_v35  ;;  %v7265_v54 = vor.u32 %v7264_v6, %v7263_v48 }
 0x70d   : > { %v7224_v27 = vsel %vm13948_vm11, %v13701_v55, %v7221_v23  ;;  %v7271_v3 = vor.u32 %v7270_v56, %v7269_v43  ;;  %vm7272_vm14 = vcmp.lt.s32.totalorder %v7253_v53, 1  ;;  %v7288_v29 = vshll.u32 %v7248_v34, 8 }
 0x70e   : > { %8379 = vcosq.f32 %v7224_v27  ;;  %v7096_v63 = vsub.s32 %v7092_v47, %v7095_v61  ;;  %v7229_v52 = vadd.s32 3, %v7225_v10  ;;  %vm7275_vm13 = vcmp.lt.s32.totalorder %v7253_v53, 4 }
 0x70f   : > { %8381 = vsinq.f32 %v7224_v27  ;;  %v7280_v16 = vsel %vm7272_vm14, %v7259_v18, %v7262_v22  ;;  %vm7273_vm4 = vcmp.lt.s32.totalorder %v7253_v53, 2  ;;  %vm7274_vm1 = vcmp.lt.s32.totalorder %v7253_v53, 3 }
 0x710   : > { %v7098_v5 = vsub.s32 0, %v7096_v63  ;;  %v7281_v50 = vsel %vm7275_vm13, %v7268_v11, 920167782  ;;  %v7277_v62 = vsel %vm7275_vm13, %v7265_v54, 2102212464  ;;  %v7284_v2 = vsel %vm7272_vm14, %v7262_v22, %v7265_v54 }
 0x711   : > { %v7282_v9 = vsel %vm7274_vm1, %v7265_v54, %v7281_v50  ;;  %v7285_v38 = vsel %vm7275_vm13, %v7271_v3, 1326507024  ;;  %v7256_v58 = vshrl.u32 %v8400_v19, %v7255_v0  ;;  %v7230_v34 = vand.u32 3, %v7229_v52 }
 0x712   : > { %v7841_v25 = vmin.u32 %v7098_v5, %v7096_v63  ;;  %v7283_v40 = vsel %vm7273_vm4, %v7280_v16, %v7282_v9  ;;  %v7286_v45 = vsel %vm7274_vm1, %v7268_v11, %v7285_v38  ;;  %v7278_v13 = vsel %vm7274_vm1, %v7262_v22, %v7277_v62 }
 0x713   : > { %v7287_v1 = vsel %vm7273_vm4, %v7284_v2, %v7286_v45  ;;  %v13994_v46 = vmul.u32.u64.low %v7288_v29, %v7283_v40  ;;  %v13995_v37 = vmul.u32.u64.high %v7288_v29, %v7283_v40, %v13994_v46  ;;  %v7276_v41 = vsel %vm7272_vm14, %v7256_v58, %v7259_v18 }
 0x714   : > { %v7100_v33 = vclz %v7841_v25  ;;  %v13999_v47 = vmul.u32.u64.low %v7288_v29, %v7287_v1  ;;  %v14000_v8 = vmul.u32.u64.high %v7288_v29, %v7287_v1, %v13999_v47  ;;  %v7279_v19 = vsel %vm7273_vm4, %v7276_v41, %v7278_v13 }
 0x715   : > { %v7298_v0 = vadd.s32 1, %v13995_v37  ;;  %vm7231_vm12 = vcmp.lt.s32.totalorder %v7230_v34, 2  ;;  %vm7235_vm2 = vcmp.eq.s32.totalorder %v7230_v34, 2  ;;  %v7088_v28 = vadd.s32 %v13935_v32, %v13933_v26 }
 0x716   : > { %v7842_v21 = vadd.s32 4294967294, %v7100_v33  ;;  %vm7297_vm7 = vc.u32 %v14000_v8, %v13994_v46  ;;  %v7295_v53 = vmul.u32 %v7288_v29, %v7279_v19  ;;  %vm7232_vm15 = vcmp.eq.s32.totalorder %v7230_v34, 0 }
 0x717   : > { %v7299_v35 = vsel %vm7297_vm7, %v7298_v0, %v13995_v37  ;;  %vm7228_vm0 = vweird.f32 %v13701_v55  ;;  %v7118_v52 = vsub.s32 4, %v13975_v4  ;;  %vm7034_vm11 = vcmp.lt.s32.totalorder %v13804_v51, 0 }
 0x718   : > { %v8380_v31 = vpop.eup %8379  ;;  %vm7843_vm8 = vcmp.lt.s32.totalorder %v7842_v21, 0  ;;  %v7300_v43 = vadd.s32 %v7299_v35, %v7295_v53  ;;  %vm7033_vm10 = vcmp.le.f32.partialorder %v7032_v49, 0.7853982  ;;  %v7296_v40 = vadd.s32 %v13994_v46, %v14000_v8 }
 0x719   : > { %v8382_v14 = vpop.eup %8381  ;;  %v7236_v36 = vxor.u32 2147483648, %v8380_v31  ;;  %v7103_v39 = vsel %vm7843_vm8, 0, %v7842_v21  ;;  %v7119_v12 = vsel %vm7034_vm11, %v7118_v52, %v13975_v4  ;;  %vm7124_vm1 = vweird.f32 %v13804_v51 }
 0x71a   : > { %v7233_v24 = vxor.u32 2147483648, %v8382_v14  ;;  %v7104_v44 = vsub.s32 32, %v7103_v39  ;;  %v7108_v48 = vsub.s32 4294967266, %v7103_v39  ;;  %v7105_v15 = vshll.u32 %v7096_v63, %v7103_v39 }
 0x71b   : > { %v7237_v6 = vsel %vm7235_vm2, %v7236_v36, %v8382_v14  ;;  %v7301_v10 = vadd.s32 536870912, %v7300_v43  ;;  %v7121_v2 = vsel %vm7033_vm10, 0, %v7119_v12  ;;  %vm7241_vm2 = vcmp.le.f32.partialorder %v7240_v17, 0.7853982 }
 0x71c   : > { %v7234_v59 = vsel %vm7232_vm15, %v8380_v31, %v7233_v24  ;;  %v7106_v18 = vshrl.u32 %v7088_v28, %v7104_v44  ;;  %v7109_v22 = vadd.s32 127, %v7108_v48  ;;  %v7125_v25 = vadd.s32 3, %v7121_v2 }
 0x71d   : > { %v7238_v26 = vsel %vm7231_vm12, %v7234_v59, %v7237_v6  ;;  %v7302_v27 = vshrl.u32 %v7301_v10, 30  ;;  %vm7242_vm12 = vcmp.lt.s32.totalorder %v13863_v7, 0  ;;  %vm7332_vm15 = vweird.f32 %v13863_v7 }
 0x71e   : > { %v7239_v32 = vsel %vm7228_vm0, nan, %v7238_v26  ;;  %v7107_v56 = vor.u32 %v7106_v18, %v7105_v15  ;;  %v7110_v23 = vshll.u32 %v7109_v22, 23  ;;  %v7126_v49 = vand.u32 3, %v7125_v25 }
 0x71f   : > { %v7429_v61 = vsel %vm7365_vm5, %v13306_v60, %v7239_v32  ;;  %v7303_v63 = vshll.u32 %v7302_v27, 30  ;;  %v7326_v24 = vsub.s32 4, %v7302_v27 }
 0x720   : > { %7494 = vst [vmem:[%s8911_s28 + $0x1f0] sm:$0xff] %v7429_v61  ;;  %v7111_v11 = vor.u32 4788187, %v7110_v23  ;;  %v7114_v3 = vcvt.s32.f32 %v7107_v56  ;;  %vm7131_vm14 = vcmp.eq.s32.totalorder %v7126_v49, 2  ;;  %vm7128_vm13 = vcmp.eq.s32.totalorder %v7126_v49, 0 }
 0x721   : > { %v7304_v55 = vsub.s32 %v7300_v43, %v7303_v63  ;;  %vm7127_vm4 = vcmp.lt.s32.totalorder %v7126_v49, 2  ;;  %v7327_v6 = vsel %vm7242_vm12, %v7326_v24, %v7302_v27 }
 0x722   : > { %v7112_v54 = vand.u32 2147483647, %v7111_v11 }
 0x723   : > { %v7306_v5 = vsub.s32 0, %v7304_v55 }
 0x724   : > { %v7115_v29 = vmul.f32 %v7114_v3, %v7112_v54 }
 0x725   : > { %v7849_v60 = vmin.u32 %v7306_v5, %v7304_v55 }
 0x726   : > { %v7116_v16 = vxor.u32 2147483648, %v7115_v29 }
 0x727   : > { %v7308_v9 = vclz %v7849_v60 }
 0x728   : > { %v7117_v50 = vsel %vm7034_vm11, %v7116_v16, %v7115_v29 }
 0x729   : > { %v7120_v62 = vsel %vm7033_vm10, %v13804_v51, %v7117_v50  ;;  %v7850_v38 = vadd.s32 4294967294, %v7308_v9  ;;  %v7329_v51 = vsel %vm7241_vm2, 0, %v7327_v6 }
 0x72a   : > { %8383 = vcosq.f32 %v7120_v62  ;;  %v7333_v35 = vadd.s32 3, %v7329_v51 }
 0x72b   : > { %8385 = vsinq.f32 %v7120_v62  ;;  %vm7851_vm5 = vcmp.lt.s32.totalorder %v7850_v38, 0 }
 0x72c   : > { %v7311_v58 = vsel %vm7851_vm5, 0, %v7850_v38  ;;  %v7334_v59 = vand.u32 3, %v7333_v35 }
 0x72d   : > { %v7312_v45 = vsub.s32 32, %v7311_v58  ;;  %v7316_v1 = vsub.s32 4294967266, %v7311_v58  ;;  %v7313_v37 = vshll.u32 %v7304_v55, %v7311_v58 }
 0x72e   : > { %vm7336_vm8 = vcmp.eq.s32.totalorder %v7334_v59, 0  ;;  %vm7335_vm7 = vcmp.lt.s32.totalorder %v7334_v59, 2 }
 0x72f   : > { %v7314_v34 = vshrl.u32 %v7296_v40, %v7312_v45  ;;  %v7317_v4 = vadd.s32 127, %v7316_v1 }
 0x731   : > { %v7315_v41 = vor.u32 %v7314_v34, %v7313_v37  ;;  %v7318_v13 = vshll.u32 %v7317_v4, 23 }
 0x733   : > { %v7319_v0 = vor.u32 4788187, %v7318_v13  ;;  %v7322_v8 = vcvt.s32.f32 %v7315_v41 }
 0x734   : > { %v8384_v33 = vpop.eup %8383 }
 0x735   : > { %v8386_v47 = vpop.eup %8385  ;;  %v7132_v21 = vxor.u32 2147483648, %v8384_v33  ;;  %v7320_v46 = vand.u32 2147483647, %v7319_v0 }
 0x736   : > { %v7129_v19 = vxor.u32 2147483648, %v8386_v47 }
 0x737   : > { %v7133_v31 = vsel %vm7131_vm14, %v7132_v21, %v8386_v47  ;;  %v7323_v39 = vmul.f32 %v7322_v8, %v7320_v46 }
 0x738   : > { %v7130_v14 = vsel %vm7128_vm13, %v8384_v33, %v7129_v19 }
 0x739   : > { %v7134_v36 = vsel %vm7127_vm4, %v7130_v14, %v7133_v31  ;;  %v7324_v48 = vxor.u32 2147483648, %v7323_v39 }
 0x73a   : > { %v7135_v28 = vsel %vm7124_vm1, nan, %v7134_v36 }
 0x73b   : > { %v7428_v44 = vsel %vm7364_vm3, %v13365_v20, %v7135_v28  ;;  %v7325_v53 = vsel %vm7242_vm12, %v7324_v48, %v7323_v39  ;;  %vm7339_vm3 = vcmp.eq.s32.totalorder %v7334_v59, 2 }
 0x73c   : > { %7493 = vst [vmem:[%s8911_s28 + $0x1e8] sm:$0xff] %v7428_v44  ;;  %v7328_v15 = vsel %vm7241_vm2, %v13863_v7, %v7325_v53 }
 0x73d   : > { %8387 = vcosq.f32 %v7328_v15 }
 0x73e   : > { %8389 = vsinq.f32 %v7328_v15 }
 0x747   : > { %v8388_v18 = vpop.eup %8387 }
 0x748   : > { %v8390_v42 = vpop.eup %8389  ;;  %v7340_v20 = vxor.u32 2147483648, %v8388_v18 }
 0x749   : > { %v7337_v22 = vxor.u32 2147483648, %v8390_v42 }
 0x74a   : > { %v7341_v43 = vsel %vm7339_vm3, %v7340_v20, %v8390_v42 }
 0x74b   : > { %v7338_v26 = vsel %vm7336_vm8, %v8388_v18, %v7337_v22 }
 0x74c   : > { %v7342_v17 = vsel %vm7335_vm7, %v7338_v26, %v7341_v43 }
 0x74d   : > { %v7343_v32 = vsel %vm7332_vm15, nan, %v7342_v17 }
 0x74e   : > { %v7430_v56 = vsel %vm7366_vm6, %v13474_v57, %v7343_v32 }
 0x74f   : > { %7495 = vst.msk [vmem:[%s8911_s28 + $0x1f8] sm:$0xff] %vm7434_vm9, %v7430_v56 }
 0x750 PF: > { %s14_s15 = sadd.s32 1, %s8397_s15  }
 0x751   : > { %p11_p4 = scmp.ge.s32.totalorder %s14_s15, 4  }
 0x753   :  { %13 = sbr.rel (!%p11_p4) target bundleno = 1 (0x1), region = 66 }

</bundles_post_ra>
